<compile_context>
chip_gen: v5e
topology: v5e:2x2
jax: 0.10.0
libtpu: 0.0.40
codegen_flags: <defaults>
</compile_context>

<pallas_src>
import math

import numpy as np
import jax
import jax.numpy as jnp
from jax.experimental import pallas as pl
from jax.experimental.pallas import tpu as pltpu

LANE = 128        # channel padding / lane width for all activations
_IMG_CP = 32      # image (3ch) padded to 32 so space-to-depth gives 4*32 = 128

_LAYER_CFG = [    # (cin, cout, stride) for the 8 convrelu layers
    (3, 24, 2), (24, 24, 1),
    (24, 36, 2), (36, 36, 1),
    (36, 54, 2), (54, 54, 1),
    (54, 72, 2), (72, 72, 1),
]


# ---------------------------------------------------------------------------
# Tap-piece layouts.  Each piece is (dh, dw, c0, kc, koff):
#     band[dh:dh+tr, dw:dw+Wo, c0:c0+kc]  ->  slab[:, koff:koff+kc]
# All c0 / kc / koff are multiples of 128 (lane-aligned slab writes).
# ---------------------------------------------------------------------------
def _stride1_pieces():
    return [(dh, dw, 0, LANE, LANE * (3 * dh + dw))
            for dh in range(3) for dw in range(3)], 9 * LANE


def _stride2_pieces(blk):
    # After space-to-depth the stride-2 3x3 conv is a 2x2 conv over 4*blk
    # channels where tap (dh, dw) only touches the phase blocks listed below.
    if blk % LANE == 0:
        return [(0, 0, 0, 4 * blk, 0),
                (0, 1, 0, blk, 4 * blk),
                (0, 1, 2 * blk, blk, 5 * blk),
                (1, 0, 0, 2 * blk, 6 * blk),
                (1, 1, 0, blk, 8 * blk)], 9 * blk
    cb = 4 * blk
    return [(dh, dw, 0, cb, (2 * dh + dw) * cb)
            for dh in range(2) for dw in range(2)], 4 * cb


# ---------------------------------------------------------------------------
# Host-side parameter packing (numpy, one-time)
# ---------------------------------------------------------------------------
def _pack_w_stride1(w, cin, cout):
    pieces, K = _stride1_pieces()
    wk = np.zeros((K, LANE), np.float32)
    wnp = np.asarray(w, np.float32)
    for (dh, dw, _c0, _kc, koff) in pieces:
        wk[koff:koff + cin, :cout] = wnp[:, :, dh, dw].T
    return wk


def _pack_w_stride2(w, cin, cout, blk):
    pieces, K = _stride2_pieces(blk)
    wk = np.zeros((K, LANE), np.float32)
    wnp = np.asarray(w, np.float32)
    for (dh, dw, c0, kc, koff) in pieces:
        for zi in range(kc):
            ph, c = divmod(c0 + zi, blk)
            a, b = divmod(ph, 2)
            kh, kw = 2 * dh + a, 2 * dw + b
            if kh <= 2 and kw <= 2 and c < cin:
                wk[koff + zi, :cout] = wnp[:, c, kh, kw]
    return wk


def pack_params(params):
    """Pack per-layer (w, b, alpha) into ((K,128) bf16, (2,128) f32)."""
    packed = []
    for idx, ((w, b, a), (cin, cout, stride)) in enumerate(zip(params,
                                                               _LAYER_CFG)):
        if stride == 1:
            wk = _pack_w_stride1(w, cin, cout)
        else:
            blk = _IMG_CP if idx == 0 else LANE
            wk = _pack_w_stride2(w, cin, cout, blk)
        ba = np.zeros((2, LANE), np.float32)
        ba[0, :cout] = np.asarray(b, np.float32)
        ba[1, :cout] = np.asarray(a, np.float32)
        packed.append((jnp.asarray(wk, jnp.bfloat16),
                       jnp.asarray(ba, jnp.float32)))
    return packed


# ---------------------------------------------------------------------------
# Kernel bodies
# ---------------------------------------------------------------------------
def _emit_compute(band, w_ref, ba_ref, o_ref, slab, pieces, tr, Wo):
    """Build fused im2col slab, one MXU matmul, bias + PReLU, store."""
    M = tr * Wo
    for (dh, dw, c0, kc, koff) in pieces:
        piece = band[dh:dh + tr, dw:dw + Wo, c0:c0 + kc]
        slab[:, koff:koff + kc] = piece.reshape(M, kc)
    y = jnp.dot(slab[...], w_ref[...], preferred_element_type=jnp.float32)
    y = y + ba_ref[0:1, :]                          # bias (padded couts are 0)
    y = jnp.where(y >= 0.0, y, y * ba_ref[1:2, :])  # PReLU
    o_ref[0, :, :] = y.astype(o_ref.dtype)


def _make_simple_kernel(pieces, tr, Wo):
    # Whole padded image per grid step; BlockSpec pipelines the image DMA.
    def kernel(x_ref, w_ref, ba_ref, o_ref, slab):
        _emit_compute(x_ref, w_ref, ba_ref, o_ref, slab, pieces, tr, Wo)
    return kernel


def _make_banded_kernel(pieces, tr, Wo, band_h, R):
    # Manual double-buffered row-band DMA (input stays in HBM).
    def kernel(x_hbm, w_ref, ba_ref, o_ref, xband, slab, sem):
        n = pl.program_id(0)
        r = pl.program_id(1)
        slot = r % 2

        def fetch(row_block, sl):
            pltpu.make_async_copy(
                x_hbm.at[n, pl.ds(row_block * tr, band_h)],
                xband.at[sl], sem.at[sl]).start()

        @pl.when(r == 0)
        def _():
            fetch(0, 0)

        @pl.when(r + 1 < R)
        def _():
            fetch(r + 1, 1 - slot)       # prefetch next band of same image

        # Wait on the band fetched for this step; descriptor matches the real
        # source rows r*tr : r*tr + band_h.
        pltpu.make_async_copy(
            x_hbm.at[n, pl.ds(r * tr, band_h)],
            xband.at[slot], sem.at[slot]).wait()

        _emit_compute(xband.at[slot], w_ref, ba_ref, o_ref, slab,
                      pieces, tr, Wo)
    return kernel


# ---------------------------------------------------------------------------
# Tiling choice (static, trace-time)
# ---------------------------------------------------------------------------
def _choose_tile(Ho, Wo, halo, Win, cin_band, K, budget=10 << 20):
    def est(t):   # bytes: 2x band + slab + 2x out block + weights (bf16)
        return 2 * (2 * (t + halo) * Win * cin_band + t * Wo * K
                    + 2 * t * Wo * LANE + K * LANE)

    t = min(Ho, max(1, -(-1024 // Wo)))       # target ~1024 output px / step
    while t > 1 and est(t) > budget:
        t = max(1, t // 2)
    m = 8 // math.gcd(Wo, 8)                  # (t*Wo) % 8 == 0 when R > 1
    if t < Ho:
        t = max(m, (t // m) * m)
    R = -(-Ho // t)
    if R > 1:                                 # balance bands, keep alignment
        t_bal = -(-Ho // R)
        t = -(-t_bal // m) * m
        R = -(-Ho // t)
    return t, R, est(t)


# ---------------------------------------------------------------------------
# One convrelu layer
# ---------------------------------------------------------------------------
def conv3x3_prelu(x, wk, ba, stride):
    """x: (N, H, W, C) bf16 channel-padded; returns (N, Ho, Wo, 128) bf16."""
    N, H, W, C = x.shape
    if stride == 1:
        Ho, Wo, halo = H, W, 2
        Win, cin_band = W + 2, C
        pieces, K = _stride1_pieces()
        assert C == LANE
    else:
        Ho, Wo, halo = (H + 1) // 2, (W + 1) // 2, 1
        Win, cin_band = Wo + 1, 4 * C
        pieces, K = _stride2_pieces(C)
    assert K == wk.shape[0], (K, wk.shape)

    tr, R, vmem_est = _choose_tile(Ho, Wo, halo, Win, cin_band, K)
    Ho_pad = R * tr
    band_h = tr + halo
    M = tr * Wo

    # Zero-padded (and, for stride 2, space-to-depth) input in HBM.
    if stride == 1:
        xin = jnp.pad(x, ((0, 0), (1, Ho_pad + 1 - H), (1, 1), (0, 0)))
    else:
        Hp, Wp = 2 * (Ho_pad + 1), 2 * (Wo + 1)
        xp = jnp.pad(x, ((0, 0), (1, Hp - H - 1), (1, Wp - W - 1), (0, 0)))
        xin = xp.reshape(N, Ho_pad + 1, 2, Wo + 1, 2, C)
        xin = xin.transpose(0, 1, 3, 2, 4, 5).reshape(
            N, Ho_pad + 1, Wo + 1, cin_band)

    vmem_limit = int(min(60 << 20, max(20 << 20, 2 * vmem_est)))
    out_shape = jax.ShapeDtypeStruct((N, Ho_pad * Wo, LANE), jnp.bfloat16)

    if R == 1:
        grid_spec = pltpu.PrefetchScalarGridSpec(
            num_scalar_prefetch=0,
            grid=(N,),
            in_specs=[
                pl.BlockSpec((None, band_h, Win, cin_band),
                             lambda n: (n, 0, 0, 0)),
                pl.BlockSpec((K, LANE), lambda n: (0, 0)),
                pl.BlockSpec((2, LANE), lambda n: (0, 0)),
            ],
            out_specs=pl.BlockSpec((1, M, LANE), lambda n: (n, 0, 0)),
            scratch_shapes=[pltpu.VMEM((M, K), jnp.bfloat16)],
        )
        kernel = _make_simple_kernel(pieces, tr, Wo)
        dims = ("parallel",)
    else:
        grid_spec = pltpu.PrefetchScalarGridSpec(
            num_scalar_prefetch=0,
            grid=(N, R),
            in_specs=[
                pl.BlockSpec(memory_space=pl.ANY),                 # HBM input
                pl.BlockSpec((K, LANE), lambda n, r: (0, 0)),      # weights
                pl.BlockSpec((2, LANE), lambda n, r: (0, 0)),      # bias+alpha
            ],
            out_specs=pl.BlockSpec((1, M, LANE), lambda n, r: (n, r, 0)),
            scratch_shapes=[
                pltpu.VMEM((2, band_h, Win, cin_band), jnp.bfloat16),
                pltpu.VMEM((M, K), jnp.bfloat16),
                pltpu.SemaphoreType.DMA((2,)),
            ],
        )
        kernel = _make_banded_kernel(pieces, tr, Wo, band_h, R)
        dims = ("parallel", "arbitrary")

    out = pl.pallas_call(
        kernel,
        out_shape=out_shape,
        grid_spec=grid_spec,
        compiler_params=pltpu.CompilerParams(
            dimension_semantics=dims, vmem_limit_bytes=vmem_limit),
    )(xin, wk, ba)

    return out.reshape(N, Ho_pad, Wo, LANE)[:, :Ho]


# ---------------------------------------------------------------------------
# Encoder
# ---------------------------------------------------------------------------
def init_encoder_params(key):
    params = []
    for cin, cout, _ in _LAYER_CFG:
        key, kw_, kb_ = jax.random.split(key, 3)
        fan_in = cin * 9
        bound = 1.0 / (fan_in ** 0.5)
        w = jax.random.uniform(kw_, (cout, cin, 3, 3), jnp.float32,
                               -bound, bound)
        b = jax.random.uniform(kb_, (cout,), jnp.float32, -bound, bound)
        a = jnp.full((cout,), 0.25, jnp.float32)   # nn.PReLU default init
        params.append((w, b, a))
    return params


def encoder_forward(img_nchw, packed):
    """Returns (f1, f2, f3, f4) in NCHW f32, matching the PyTorch Encoder."""
    x = jnp.transpose(img_nchw, (0, 2, 3, 1)).astype(jnp.bfloat16)
    x = jnp.pad(x, ((0, 0), (0, 0), (0, 0), (0, _IMG_CP - x.shape[-1])))
    feats = []
    for idx, ((wk, ba), (_cin, cout, stride)) in enumerate(zip(packed,
                                                               _LAYER_CFG)):
        x = conv3x3_prelu(x, wk, ba, stride)
        if idx % 2 == 1:                           # end of a pyramid stage
            feats.append(jnp.transpose(x[..., :cout].astype(jnp.float32),
                                       (0, 3, 1, 2)))
    return tuple(feats)


# ---------------------------------------------------------------------------
# Pure-JAX reference (lax.conv, same bf16 rounding points)
# ---------------------------------------------------------------------------
def _ref_forward(img_nchw, params):
    x = jnp.transpose(img_nchw, (0, 2, 3, 1)).astype(jnp.bfloat16)
    feats = []
    for idx, ((w, b, a), (_cin, _cout, stride)) in enumerate(zip(params,
                                                                 _LAYER_CFG)):
        y = jax.lax.conv_general_dilated(
            x.astype(jnp.float32),
            w.astype(jnp.bfloat16).astype(jnp.float32),
            (stride, stride), ((1, 1), (1, 1)),
            dimension_numbers=("NHWC", "OIHW", "NHWC"),
            precision=jax.lax.Precision.HIGHEST)
        y = y + b[None, None, None, :]
        y = jnp.where(y >= 0.0, y, a[None, None, None, :] * y)
        x = y.astype(jnp.bfloat16)
        if idx % 2 == 1:
            feats.append(jnp.transpose(x.astype(jnp.float32), (0, 3, 1, 2)))
    return tuple(feats)


if __name__ == "__main__":
    key = jax.random.PRNGKey(0)
    kp, kx = jax.random.split(key)
    params = init_encoder_params(kp)
    packed = pack_params(params)

    fwd = jax.jit(encoder_forward)

    # Small input: every layer fits in one row band (BlockSpec-pipelined path).
    img = jax.random.normal(kx, (2, 3, 16, 16), jnp.float32)   # NCHW
    feats = jax.block_until_ready(fwd(img, packed))
    ref = _ref_forward(img, params)
    expected = [(2, 24, 8, 8), (2, 36, 4, 4), (2, 54, 2, 2), (2, 72, 1, 1)]
    for f, r, es in zip(feats, ref, expected):
        assert f.shape == es, (f.shape, es)
        err = float(jnp.max(jnp.abs(f - r)))
        assert err < 5e-2, err

    # Larger input: exercises the double-buffered banded-DMA path (R > 1).
    img2 = jax.random.normal(jax.random.PRNGKey(1), (1, 3, 80, 80),
                             jnp.float32)
    feats2 = jax.block_until_ready(fwd(img2, packed))
    ref2 = _ref_forward(img2, params)
    for f, r in zip(feats2, ref2):
        assert f.shape == r.shape, (f.shape, r.shape)
        err = float(jnp.max(jnp.abs(f - r)))
        assert err < 5e-2, err

    print("KERNEL_OK")
</pallas_src>

<mosaic_0001>
module attributes {stable_mosaic.version = 11 : i64} {
  func.func @kernel(%arg0: i32, %arg1: memref<1x9x9x128xbf16, #tpu.memory_space<vmem>>, %arg2: memref<512x128xbf16, #tpu.memory_space<vmem>>, %arg3: memref<2x128xf32, #tpu.memory_space<vmem>>, %arg4: memref<1x64x128xbf16, #tpu.memory_space<vmem>>, %arg5: memref<64x512xbf16, #tpu.memory_space<vmem>>) attributes {dimension_semantics = [#tpu.dimension_semantics<parallel>], iteration_bounds = array<i64: 2>, scalar_prefetch = 0 : i64, scratch_operands = 1 : i64, tpu.core_type = #tpu.core_type<tc>, window_params = [{transform_indices = @transform_0, window_bounds = array<i64: 1, 9, 9, 128>}, {pipeline_mode = #tpu.pipeline_mode<synchronous>, transform_indices = @transform_1, window_bounds = array<i64: 512, 128>}, {pipeline_mode = #tpu.pipeline_mode<synchronous>, transform_indices = @transform_2, window_bounds = array<i64: 2, 128>}, {transform_indices = @transform_3, window_bounds = array<i64: 1, 64, 128>}]} {
    %c0 = arith.constant 0 : index
    %c0_0 = arith.constant 0 : index
    %c0_1 = arith.constant 0 : index
    %c0_2 = arith.constant 0 : index
    %0 = vector.load %arg1[%c0, %c0_0, %c0_1, %c0_2] : memref<1x9x9x128xbf16, #tpu.memory_space<vmem>>, vector<1x8x8x128xbf16>
    %1 = vector.shape_cast %0 : vector<1x8x8x128xbf16> to vector<8x8x128xbf16>
    %2 = vector.shape_cast %1 : vector<8x8x128xbf16> to vector<64x128xbf16>
    %c0_3 = arith.constant 0 : index
    %c0_4 = arith.constant 0 : index
    %3 = vector.load %arg5[%c0_3, %c0_4] : memref<64x512xbf16, #tpu.memory_space<vmem>>, vector<64x128xbf16>
    tpu.vector_store %arg5[%c0_3, %c0_4], %2 {strides = array<i32>} : memref<64x512xbf16, #tpu.memory_space<vmem>>, vector<64x128xbf16>,
    %c0_5 = arith.constant 0 : index
    %c0_6 = arith.constant 0 : index
    %c1 = arith.constant 1 : index
    %c0_7 = arith.constant 0 : index
    %4 = vector.load %arg1[%c0_5, %c0_6, %c1, %c0_7] : memref<1x9x9x128xbf16, #tpu.memory_space<vmem>>, vector<1x8x8x128xbf16>
    %5 = vector.shape_cast %4 : vector<1x8x8x128xbf16> to vector<8x8x128xbf16>
    %6 = vector.shape_cast %5 : vector<8x8x128xbf16> to vector<64x128xbf16>
    %c0_8 = arith.constant 0 : index
    %c128 = arith.constant 128 : index
    %7 = vector.load %arg5[%c0_8, %c128] : memref<64x512xbf16, #tpu.memory_space<vmem>>, vector<64x128xbf16>
    tpu.vector_store %arg5[%c0_8, %c128], %6 {strides = array<i32>} : memref<64x512xbf16, #tpu.memory_space<vmem>>, vector<64x128xbf16>,
    %c0_9 = arith.constant 0 : index
    %c1_10 = arith.constant 1 : index
    %c0_11 = arith.constant 0 : index
    %c0_12 = arith.constant 0 : index
    %8 = vector.load %arg1[%c0_9, %c1_10, %c0_11, %c0_12] : memref<1x9x9x128xbf16, #tpu.memory_space<vmem>>, vector<1x8x8x128xbf16>
    %9 = vector.shape_cast %8 : vector<1x8x8x128xbf16> to vector<8x8x128xbf16>
    %10 = vector.shape_cast %9 : vector<8x8x128xbf16> to vector<64x128xbf16>
    %c0_13 = arith.constant 0 : index
    %c256 = arith.constant 256 : index
    %11 = vector.load %arg5[%c0_13, %c256] : memref<64x512xbf16, #tpu.memory_space<vmem>>, vector<64x128xbf16>
    tpu.vector_store %arg5[%c0_13, %c256], %10 {strides = array<i32>} : memref<64x512xbf16, #tpu.memory_space<vmem>>, vector<64x128xbf16>,
    %c0_14 = arith.constant 0 : index
    %c1_15 = arith.constant 1 : index
    %c1_16 = arith.constant 1 : index
    %c0_17 = arith.constant 0 : index
    %12 = vector.load %arg1[%c0_14, %c1_15, %c1_16, %c0_17] : memref<1x9x9x128xbf16, #tpu.memory_space<vmem>>, vector<1x8x8x128xbf16>
    %13 = vector.shape_cast %12 : vector<1x8x8x128xbf16> to vector<8x8x128xbf16>
    %14 = vector.shape_cast %13 : vector<8x8x128xbf16> to vector<64x128xbf16>
    %c0_18 = arith.constant 0 : index
    %c384 = arith.constant 384 : index
    %15 = vector.load %arg5[%c0_18, %c384] : memref<64x512xbf16, #tpu.memory_space<vmem>>, vector<64x128xbf16>
    tpu.vector_store %arg5[%c0_18, %c384], %14 {strides = array<i32>} : memref<64x512xbf16, #tpu.memory_space<vmem>>, vector<64x128xbf16>,
    %c0_19 = arith.constant 0 : index
    %c0_20 = arith.constant 0 : index
    %16 = vector.load %arg5[%c0_19, %c0_20] : memref<64x512xbf16, #tpu.memory_space<vmem>>, vector<64x512xbf16>
    %c0_21 = arith.constant 0 : index
    %c0_22 = arith.constant 0 : index
    %17 = vector.load %arg2[%c0_21, %c0_22] : memref<512x128xbf16, #tpu.memory_space<vmem>>, vector<512x128xbf16>
    %cst = arith.constant dense<0.000000e+00> : vector<64x128xf32>
    %18 = tpu.matmul %16, %17, %cst {dimension_numbers = #tpu.dot_dimension_numbers<[1], [0], [0], [1], [0, 0, 1, 1], [], []>} : vector<64x512xbf16>, vector<512x128xbf16>, vector<64x128xf32> -> vector<64x128xf32>
    %c0_23 = arith.constant 0 : index
    %c0_24 = arith.constant 0 : index
    %19 = vector.load %arg3[%c0_23, %c0_24] : memref<2x128xf32, #tpu.memory_space<vmem>>, vector<1x128xf32>
    %20 = vector.broadcast %19 : vector<1x128xf32> to vector<64x128xf32>
    %21 = arith.addf %18, %20 : vector<64x128xf32>
    %cst_25 = arith.constant 0.000000e+00 : f32
    %22 = vector.broadcast %cst_25 : f32 to vector<64x128xf32>
    %23 = arith.cmpf oge, %21, %22 : vector<64x128xf32>
    %c1_26 = arith.constant 1 : index
    %c0_27 = arith.constant 0 : index
    %24 = vector.load %arg3[%c1_26, %c0_27] : memref<2x128xf32, #tpu.memory_space<vmem>>, vector<1x128xf32>
    %25 = vector.broadcast %24 : vector<1x128xf32> to vector<64x128xf32>
    %26 = arith.mulf %21, %25 : vector<64x128xf32>
    %27 = arith.select %23, %21, %26 : vector<64x128xi1>, vector<64x128xf32>
    %28 = arith.truncf %27 : vector<64x128xf32> to vector<64x128xbf16>
    %c0_28 = arith.constant 0 : index
    %c0_29 = arith.constant 0 : index
    %c0_30 = arith.constant 0 : index
    %29 = vector.load %arg4[%c0_28, %c0_29, %c0_30] : memref<1x64x128xbf16, #tpu.memory_space<vmem>>, vector<1x64x128xbf16>
    %30 = vector.shape_cast %29 : vector<1x64x128xbf16> to vector<64x128xbf16>
    %31 = vector.shape_cast %28 : vector<64x128xbf16> to vector<1x64x128xbf16>
    tpu.vector_store %arg4[%c0_28, %c0_29, %c0_30], %31 {strides = array<i32>} : memref<1x64x128xbf16, #tpu.memory_space<vmem>>, vector<1x64x128xbf16>,
    return
  }
  func.func @transform_0(%arg0: i32) -> (i32, i32, i32, i32) {
    %c0_i32 = arith.constant 0 : i32
    %c0_i32_0 = arith.constant 0 : i32
    %c0_i32_1 = arith.constant 0 : i32
    %c0_i32_2 = arith.constant 0 : i32
    return %arg0, %c0_i32, %c0_i32_0, %c0_i32_1 : i32, i32, i32, i32
  }
  func.func @transform_1(%arg0: i32) -> (i32, i32) {
    %c0_i32 = arith.constant 0 : i32
    %c0_i32_0 = arith.constant 0 : i32
    %c0_i32_1 = arith.constant 0 : i32
    return %c0_i32, %c0_i32_0 : i32, i32
  }
  func.func @transform_2(%arg0: i32) -> (i32, i32) {
    %c0_i32 = arith.constant 0 : i32
    %c0_i32_0 = arith.constant 0 : i32
    %c0_i32_1 = arith.constant 0 : i32
    return %c0_i32, %c0_i32_0 : i32, i32
  }
  func.func @transform_3(%arg0: i32) -> (i32, i32, i32) {
    %c0_i32 = arith.constant 0 : i32
    %c0_i32_0 = arith.constant 0 : i32
    %c0_i32_1 = arith.constant 0 : i32
    return %arg0, %c0_i32, %c0_i32_0 : i32, i32, i32
  }
}

module attributes {stable_mosaic.version = 11 : i64} {
  func.func @kernel(%arg0: i32, %arg1: memref<1x10x10x128xbf16, #tpu.memory_space<vmem>>, %arg2: memref<1152x128xbf16, #tpu.memory_space<vmem>>, %arg3: memref<2x128xf32, #tpu.memory_space<vmem>>, %arg4: memref<1x64x128xbf16, #tpu.memory_space<vmem>>, %arg5: memref<64x1152xbf16, #tpu.memory_space<vmem>>) attributes {dimension_semantics = [#tpu.dimension_semantics<parallel>], iteration_bounds = array<i64: 2>, scalar_prefetch = 0 : i64, scratch_operands = 1 : i64, tpu.core_type = #tpu.core_type<tc>, window_params = [{transform_indices = @transform_0, window_bounds = array<i64: 1, 10, 10, 128>}, {pipeline_mode = #tpu.pipeline_mode<synchronous>, transform_indices = @transform_1, window_bounds = array<i64: 1152, 128>}, {pipeline_mode = #tpu.pipeline_mode<synchronous>, transform_indices = @transform_2, window_bounds = array<i64: 2, 128>}, {transform_indices = @transform_3, window_bounds = array<i64: 1, 64, 128>}]} {
    %c0 = arith.constant 0 : index
    %c0_0 = arith.constant 0 : index
    %c0_1 = arith.constant 0 : index
    %c0_2 = arith.constant 0 : index
    %0 = vector.load %arg1[%c0, %c0_0, %c0_1, %c0_2] : memref<1x10x10x128xbf16, #tpu.memory_space<vmem>>, vector<1x8x8x128xbf16>
    %1 = vector.shape_cast %0 : vector<1x8x8x128xbf16> to vector<8x8x128xbf16>
    %2 = vector.shape_cast %1 : vector<8x8x128xbf16> to vector<64x128xbf16>
    %c0_3 = arith.constant 0 : index
    %c0_4 = arith.constant 0 : index
    %3 = vector.load %arg5[%c0_3, %c0_4] : memref<64x1152xbf16, #tpu.memory_space<vmem>>, vector<64x128xbf16>
    tpu.vector_store %arg5[%c0_3, %c0_4], %2 {strides = array<i32>} : memref<64x1152xbf16, #tpu.memory_space<vmem>>, vector<64x128xbf16>,
    %c0_5 = arith.constant 0 : index
    %c0_6 = arith.constant 0 : index
    %c1 = arith.constant 1 : index
    %c0_7 = arith.constant 0 : index
    %4 = vector.load %arg1[%c0_5, %c0_6, %c1, %c0_7] : memref<1x10x10x128xbf16, #tpu.memory_space<vmem>>, vector<1x8x8x128xbf16>
    %5 = vector.shape_cast %4 : vector<1x8x8x128xbf16> to vector<8x8x128xbf16>
    %6 = vector.shape_cast %5 : vector<8x8x128xbf16> to vector<64x128xbf16>
    %c0_8 = arith.constant 0 : index
    %c128 = arith.constant 128 : index
    %7 = vector.load %arg5[%c0_8, %c128] : memref<64x1152xbf16, #tpu.memory_space<vmem>>, vector<64x128xbf16>
    tpu.vector_store %arg5[%c0_8, %c128], %6 {strides = array<i32>} : memref<64x1152xbf16, #tpu.memory_space<vmem>>, vector<64x128xbf16>,
    %c0_9 = arith.constant 0 : index
    %c0_10 = arith.constant 0 : index
    %c2 = arith.constant 2 : index
    %c0_11 = arith.constant 0 : index
    %8 = vector.load %arg1[%c0_9, %c0_10, %c2, %c0_11] : memref<1x10x10x128xbf16, #tpu.memory_space<vmem>>, vector<1x8x8x128xbf16>
    %9 = vector.shape_cast %8 : vector<1x8x8x128xbf16> to vector<8x8x128xbf16>
    %10 = vector.shape_cast %9 : vector<8x8x128xbf16> to vector<64x128xbf16>
    %c0_12 = arith.constant 0 : index
    %c256 = arith.constant 256 : index
    %11 = vector.load %arg5[%c0_12, %c256] : memref<64x1152xbf16, #tpu.memory_space<vmem>>, vector<64x128xbf16>
    tpu.vector_store %arg5[%c0_12, %c256], %10 {strides = array<i32>} : memref<64x1152xbf16, #tpu.memory_space<vmem>>, vector<64x128xbf16>,
    %c0_13 = arith.constant 0 : index
    %c1_14 = arith.constant 1 : index
    %c0_15 = arith.constant 0 : index
    %c0_16 = arith.constant 0 : index
    %12 = vector.load %arg1[%c0_13, %c1_14, %c0_15, %c0_16] : memref<1x10x10x128xbf16, #tpu.memory_space<vmem>>, vector<1x8x8x128xbf16>
    %13 = vector.shape_cast %12 : vector<1x8x8x128xbf16> to vector<8x8x128xbf16>
    %14 = vector.shape_cast %13 : vector<8x8x128xbf16> to vector<64x128xbf16>
    %c0_17 = arith.constant 0 : index
    %c384 = arith.constant 384 : index
    %15 = vector.load %arg5[%c0_17, %c384] : memref<64x1152xbf16, #tpu.memory_space<vmem>>, vector<64x128xbf16>
    tpu.vector_store %arg5[%c0_17, %c384], %14 {strides = array<i32>} : memref<64x1152xbf16, #tpu.memory_space<vmem>>, vector<64x128xbf16>,
    %c0_18 = arith.constant 0 : index
    %c1_19 = arith.constant 1 : index
    %c1_20 = arith.constant 1 : index
    %c0_21 = arith.constant 0 : index
    %16 = vector.load %arg1[%c0_18, %c1_19, %c1_20, %c0_21] : memref<1x10x10x128xbf16, #tpu.memory_space<vmem>>, vector<1x8x8x128xbf16>
    %17 = vector.shape_cast %16 : vector<1x8x8x128xbf16> to vector<8x8x128xbf16>
    %18 = vector.shape_cast %17 : vector<8x8x128xbf16> to vector<64x128xbf16>
    %c0_22 = arith.constant 0 : index
    %c512 = arith.constant 512 : index
    %19 = vector.load %arg5[%c0_22, %c512] : memref<64x1152xbf16, #tpu.memory_space<vmem>>, vector<64x128xbf16>
    tpu.vector_store %arg5[%c0_22, %c512], %18 {strides = array<i32>} : memref<64x1152xbf16, #tpu.memory_space<vmem>>, vector<64x128xbf16>,
    %c0_23 = arith.constant 0 : index
    %c1_24 = arith.constant 1 : index
    %c2_25 = arith.constant 2 : index
    %c0_26 = arith.constant 0 : index
    %20 = vector.load %arg1[%c0_23, %c1_24, %c2_25, %c0_26] : memref<1x10x10x128xbf16, #tpu.memory_space<vmem>>, vector<1x8x8x128xbf16>
    %21 = vector.shape_cast %20 : vector<1x8x8x128xbf16> to vector<8x8x128xbf16>
    %22 = vector.shape_cast %21 : vector<8x8x128xbf16> to vector<64x128xbf16>
    %c0_27 = arith.constant 0 : index
    %c640 = arith.constant 640 : index
    %23 = vector.load %arg5[%c0_27, %c640] : memref<64x1152xbf16, #tpu.memory_space<vmem>>, vector<64x128xbf16>
    tpu.vector_store %arg5[%c0_27, %c640], %22 {strides = array<i32>} : memref<64x1152xbf16, #tpu.memory_space<vmem>>, vector<64x128xbf16>,
    %c0_28 = arith.constant 0 : index
    %c2_29 = arith.constant 2 : index
    %c0_30 = arith.constant 0 : index
    %c0_31 = arith.constant 0 : index
    %24 = vector.load %arg1[%c0_28, %c2_29, %c0_30, %c0_31] : memref<1x10x10x128xbf16, #tpu.memory_space<vmem>>, vector<1x8x8x128xbf16>
    %25 = vector.shape_cast %24 : vector<1x8x8x128xbf16> to vector<8x8x128xbf16>
    %26 = vector.shape_cast %25 : vector<8x8x128xbf16> to vector<64x128xbf16>
    %c0_32 = arith.constant 0 : index
    %c768 = arith.constant 768 : index
    %27 = vector.load %arg5[%c0_32, %c768] : memref<64x1152xbf16, #tpu.memory_space<vmem>>, vector<64x128xbf16>
    tpu.vector_store %arg5[%c0_32, %c768], %26 {strides = array<i32>} : memref<64x1152xbf16, #tpu.memory_space<vmem>>, vector<64x128xbf16>,
    %c0_33 = arith.constant 0 : index
    %c2_34 = arith.constant 2 : index
    %c1_35 = arith.constant 1 : index
    %c0_36 = arith.constant 0 : index
    %28 = vector.load %arg1[%c0_33, %c2_34, %c1_35, %c0_36] : memref<1x10x10x128xbf16, #tpu.memory_space<vmem>>, vector<1x8x8x128xbf16>
    %29 = vector.shape_cast %28 : vector<1x8x8x128xbf16> to vector<8x8x128xbf16>
    %30 = vector.shape_cast %29 : vector<8x8x128xbf16> to vector<64x128xbf16>
    %c0_37 = arith.constant 0 : index
    %c896 = arith.constant 896 : index
    %31 = vector.load %arg5[%c0_37, %c896] : memref<64x1152xbf16, #tpu.memory_space<vmem>>, vector<64x128xbf16>
    tpu.vector_store %arg5[%c0_37, %c896], %30 {strides = array<i32>} : memref<64x1152xbf16, #tpu.memory_space<vmem>>, vector<64x128xbf16>,
    %c0_38 = arith.constant 0 : index
    %c2_39 = arith.constant 2 : index
    %c2_40 = arith.constant 2 : index
    %c0_41 = arith.constant 0 : index
    %32 = vector.load %arg1[%c0_38, %c2_39, %c2_40, %c0_41] : memref<1x10x10x128xbf16, #tpu.memory_space<vmem>>, vector<1x8x8x128xbf16>
    %33 = vector.shape_cast %32 : vector<1x8x8x128xbf16> to vector<8x8x128xbf16>
    %34 = vector.shape_cast %33 : vector<8x8x128xbf16> to vector<64x128xbf16>
    %c0_42 = arith.constant 0 : index
    %c1024 = arith.constant 1024 : index
    %35 = vector.load %arg5[%c0_42, %c1024] : memref<64x1152xbf16, #tpu.memory_space<vmem>>, vector<64x128xbf16>
    tpu.vector_store %arg5[%c0_42, %c1024], %34 {strides = array<i32>} : memref<64x1152xbf16, #tpu.memory_space<vmem>>, vector<64x128xbf16>,
    %c0_43 = arith.constant 0 : index
    %c0_44 = arith.constant 0 : index
    %36 = vector.load %arg5[%c0_43, %c0_44] : memref<64x1152xbf16, #tpu.memory_space<vmem>>, vector<64x1152xbf16>
    %c0_45 = arith.constant 0 : index
    %c0_46 = arith.constant 0 : index
    %37 = vector.load %arg2[%c0_45, %c0_46] : memref<1152x128xbf16, #tpu.memory_space<vmem>>, vector<1152x128xbf16>
    %cst = arith.constant dense<0.000000e+00> : vector<64x128xf32>
    %38 = tpu.matmul %36, %37, %cst {dimension_numbers = #tpu.dot_dimension_numbers<[1], [0], [0], [1], [0, 0, 1, 1], [], []>} : vector<64x1152xbf16>, vector<1152x128xbf16>, vector<64x128xf32> -> vector<64x128xf32>
    %c0_47 = arith.constant 0 : index
    %c0_48 = arith.constant 0 : index
    %39 = vector.load %arg3[%c0_47, %c0_48] : memref<2x128xf32, #tpu.memory_space<vmem>>, vector<1x128xf32>
    %40 = vector.broadcast %39 : vector<1x128xf32> to vector<64x128xf32>
    %41 = arith.addf %38, %40 : vector<64x128xf32>
    %cst_49 = arith.constant 0.000000e+00 : f32
    %42 = vector.broadcast %cst_49 : f32 to vector<64x128xf32>
    %43 = arith.cmpf oge, %41, %42 : vector<64x128xf32>
    %c1_50 = arith.constant 1 : index
    %c0_51 = arith.constant 0 : index
    %44 = vector.load %arg3[%c1_50, %c0_51] : memref<2x128xf32, #tpu.memory_space<vmem>>, vector<1x128xf32>
    %45 = vector.broadcast %44 : vector<1x128xf32> to vector<64x128xf32>
    %46 = arith.mulf %41, %45 : vector<64x128xf32>
    %47 = arith.select %43, %41, %46 : vector<64x128xi1>, vector<64x128xf32>
    %48 = arith.truncf %47 : vector<64x128xf32> to vector<64x128xbf16>
    %c0_52 = arith.constant 0 : index
    %c0_53 = arith.constant 0 : index
    %c0_54 = arith.constant 0 : index
    %49 = vector.load %arg4[%c0_52, %c0_53, %c0_54] : memref<1x64x128xbf16, #tpu.memory_space<vmem>>, vector<1x64x128xbf16>
    %50 = vector.shape_cast %49 : vector<1x64x128xbf16> to vector<64x128xbf16>
    %51 = vector.shape_cast %48 : vector<64x128xbf16> to vector<1x64x128xbf16>
    tpu.vector_store %arg4[%c0_52, %c0_53, %c0_54], %51 {strides = array<i32>} : memref<1x64x128xbf16, #tpu.memory_space<vmem>>, vector<1x64x128xbf16>,
    return
  }
  func.func @transform_0(%arg0: i32) -> (i32, i32, i32, i32) {
    %c0_i32 = arith.constant 0 : i32
    %c0_i32_0 = arith.constant 0 : i32
    %c0_i32_1 = arith.constant 0 : i32
    %c0_i32_2 = arith.constant 0 : i32
    return %arg0, %c0_i32, %c0_i32_0, %c0_i32_1 : i32, i32, i32, i32
  }
  func.func @transform_1(%arg0: i32) -> (i32, i32) {
    %c0_i32 = arith.constant 0 : i32
    %c0_i32_0 = arith.constant 0 : i32
    %c0_i32_1 = arith.constant 0 : i32
    return %c0_i32, %c0_i32_0 : i32, i32
  }
  func.func @transform_2(%arg0: i32) -> (i32, i32) {
    %c0_i32 = arith.constant 0 : i32
    %c0_i32_0 = arith.constant 0 : i32
    %c0_i32_1 = arith.constant 0 : i32
    return %c0_i32, %c0_i32_0 : i32, i32
  }
  func.func @transform_3(%arg0: i32) -> (i32, i32, i32) {
    %c0_i32 = arith.constant 0 : i32
    %c0_i32_0 = arith.constant 0 : i32
    %c0_i32_1 = arith.constant 0 : i32
    return %arg0, %c0_i32, %c0_i32_0 : i32, i32, i32
  }
}

module attributes {stable_mosaic.version = 11 : i64} {
  func.func @kernel(%arg0: i32, %arg1: memref<1x5x5x512xbf16, #tpu.memory_space<vmem>>, %arg2: memref<1152x128xbf16, #tpu.memory_space<vmem>>, %arg3: memref<2x128xf32, #tpu.memory_space<vmem>>, %arg4: memref<1x16x128xbf16, #tpu.memory_space<vmem>>, %arg5: memref<16x1152xbf16, #tpu.memory_space<vmem>>) attributes {dimension_semantics = [#tpu.dimension_semantics<parallel>], iteration_bounds = array<i64: 2>, scalar_prefetch = 0 : i64, scratch_operands = 1 : i64, tpu.core_type = #tpu.core_type<tc>, window_params = [{transform_indices = @transform_0, window_bounds = array<i64: 1, 5, 5, 512>}, {pipeline_mode = #tpu.pipeline_mode<synchronous>, transform_indices = @transform_1, window_bounds = array<i64: 1152, 128>}, {pipeline_mode = #tpu.pipeline_mode<synchronous>, transform_indices = @transform_2, window_bounds = array<i64: 2, 128>}, {transform_indices = @transform_3, window_bounds = array<i64: 1, 16, 128>}]} {
    %c0 = arith.constant 0 : index
    %c0_0 = arith.constant 0 : index
    %c0_1 = arith.constant 0 : index
    %c0_2 = arith.constant 0 : index
    %0 = vector.load %arg1[%c0, %c0_0, %c0_1, %c0_2] : memref<1x5x5x512xbf16, #tpu.memory_space<vmem>>, vector<1x4x4x512xbf16>
    %1 = vector.shape_cast %0 : vector<1x4x4x512xbf16> to vector<4x4x512xbf16>
    %2 = vector.shape_cast %1 : vector<4x4x512xbf16> to vector<16x512xbf16>
    %c0_3 = arith.constant 0 : index
    %c0_4 = arith.constant 0 : index
    %3 = vector.load %arg5[%c0_3, %c0_4] : memref<16x1152xbf16, #tpu.memory_space<vmem>>, vector<16x512xbf16>
    tpu.vector_store %arg5[%c0_3, %c0_4], %2 {strides = array<i32>} : memref<16x1152xbf16, #tpu.memory_space<vmem>>, vector<16x512xbf16>,
    %c0_5 = arith.constant 0 : index
    %c0_6 = arith.constant 0 : index
    %c1 = arith.constant 1 : index
    %c0_7 = arith.constant 0 : index
    %4 = vector.load %arg1[%c0_5, %c0_6, %c1, %c0_7] : memref<1x5x5x512xbf16, #tpu.memory_space<vmem>>, vector<1x4x4x128xbf16>
    %5 = vector.shape_cast %4 : vector<1x4x4x128xbf16> to vector<4x4x128xbf16>
    %6 = vector.shape_cast %5 : vector<4x4x128xbf16> to vector<16x128xbf16>
    %c0_8 = arith.constant 0 : index
    %c512 = arith.constant 512 : index
    %7 = vector.load %arg5[%c0_8, %c512] : memref<16x1152xbf16, #tpu.memory_space<vmem>>, vector<16x128xbf16>
    tpu.vector_store %arg5[%c0_8, %c512], %6 {strides = array<i32>} : memref<16x1152xbf16, #tpu.memory_space<vmem>>, vector<16x128xbf16>,
    %c0_9 = arith.constant 0 : index
    %c0_10 = arith.constant 0 : index
    %c1_11 = arith.constant 1 : index
    %c256 = arith.constant 256 : index
    %8 = vector.load %arg1[%c0_9, %c0_10, %c1_11, %c256] : memref<1x5x5x512xbf16, #tpu.memory_space<vmem>>, vector<1x4x4x128xbf16>
    %9 = vector.shape_cast %8 : vector<1x4x4x128xbf16> to vector<4x4x128xbf16>
    %10 = vector.shape_cast %9 : vector<4x4x128xbf16> to vector<16x128xbf16>
    %c0_12 = arith.constant 0 : index
    %c640 = arith.constant 640 : index
    %11 = vector.load %arg5[%c0_12, %c640] : memref<16x1152xbf16, #tpu.memory_space<vmem>>, vector<16x128xbf16>
    tpu.vector_store %arg5[%c0_12, %c640], %10 {strides = array<i32>} : memref<16x1152xbf16, #tpu.memory_space<vmem>>, vector<16x128xbf16>,
    %c0_13 = arith.constant 0 : index
    %c1_14 = arith.constant 1 : index
    %c0_15 = arith.constant 0 : index
    %c0_16 = arith.constant 0 : index
    %12 = vector.load %arg1[%c0_13, %c1_14, %c0_15, %c0_16] : memref<1x5x5x512xbf16, #tpu.memory_space<vmem>>, vector<1x4x4x256xbf16>
    %13 = vector.shape_cast %12 : vector<1x4x4x256xbf16> to vector<4x4x256xbf16>
    %14 = vector.shape_cast %13 : vector<4x4x256xbf16> to vector<16x256xbf16>
    %c0_17 = arith.constant 0 : index
    %c768 = arith.constant 768 : index
    %15 = vector.load %arg5[%c0_17, %c768] : memref<16x1152xbf16, #tpu.memory_space<vmem>>, vector<16x256xbf16>
    tpu.vector_store %arg5[%c0_17, %c768], %14 {strides = array<i32>} : memref<16x1152xbf16, #tpu.memory_space<vmem>>, vector<16x256xbf16>,
    %c0_18 = arith.constant 0 : index
    %c1_19 = arith.constant 1 : index
    %c1_20 = arith.constant 1 : index
    %c0_21 = arith.constant 0 : index
    %16 = vector.load %arg1[%c0_18, %c1_19, %c1_20, %c0_21] : memref<1x5x5x512xbf16, #tpu.memory_space<vmem>>, vector<1x4x4x128xbf16>
    %17 = vector.shape_cast %16 : vector<1x4x4x128xbf16> to vector<4x4x128xbf16>
    %18 = vector.shape_cast %17 : vector<4x4x128xbf16> to vector<16x128xbf16>
    %c0_22 = arith.constant 0 : index
    %c1024 = arith.constant 1024 : index
    %19 = vector.load %arg5[%c0_22, %c1024] : memref<16x1152xbf16, #tpu.memory_space<vmem>>, vector<16x128xbf16>
    tpu.vector_store %arg5[%c0_22, %c1024], %18 {strides = array<i32>} : memref<16x1152xbf16, #tpu.memory_space<vmem>>, vector<16x128xbf16>,
    %c0_23 = arith.constant 0 : index
    %c0_24 = arith.constant 0 : index
    %20 = vector.load %arg5[%c0_23, %c0_24] : memref<16x1152xbf16, #tpu.memory_space<vmem>>, vector<16x1152xbf16>
    %c0_25 = arith.constant 0 : index
    %c0_26 = arith.constant 0 : index
    %21 = vector.load %arg2[%c0_25, %c0_26] : memref<1152x128xbf16, #tpu.memory_space<vmem>>, vector<1152x128xbf16>
    %cst = arith.constant dense<0.000000e+00> : vector<16x128xf32>
    %22 = tpu.matmul %20, %21, %cst {dimension_numbers = #tpu.dot_dimension_numbers<[1], [0], [0], [1], [0, 0, 1, 1], [], []>} : vector<16x1152xbf16>, vector<1152x128xbf16>, vector<16x128xf32> -> vector<16x128xf32>
    %c0_27 = arith.constant 0 : index
    %c0_28 = arith.constant 0 : index
    %23 = vector.load %arg3[%c0_27, %c0_28] : memref<2x128xf32, #tpu.memory_space<vmem>>, vector<1x128xf32>
    %24 = vector.broadcast %23 : vector<1x128xf32> to vector<16x128xf32>
    %25 = arith.addf %22, %24 : vector<16x128xf32>
    %cst_29 = arith.constant 0.000000e+00 : f32
    %26 = vector.broadcast %cst_29 : f32 to vector<16x128xf32>
    %27 = arith.cmpf oge, %25, %26 : vector<16x128xf32>
    %c1_30 = arith.constant 1 : index
    %c0_31 = arith.constant 0 : index
    %28 = vector.load %arg3[%c1_30, %c0_31] : memref<2x128xf32, #tpu.memory_space<vmem>>, vector<1x128xf32>
    %29 = vector.broadcast %28 : vector<1x128xf32> to vector<16x128xf32>
    %30 = arith.mulf %25, %29 : vector<16x128xf32>
    %31 = arith.select %27, %25, %30 : vector<16x128xi1>, vector<16x128xf32>
    %32 = arith.truncf %31 : vector<16x128xf32> to vector<16x128xbf16>
    %c0_32 = arith.constant 0 : index
    %c0_33 = arith.constant 0 : index
    %c0_34 = arith.constant 0 : index
    %33 = vector.load %arg4[%c0_32, %c0_33, %c0_34] : memref<1x16x128xbf16, #tpu.memory_space<vmem>>, vector<1x16x128xbf16>
    %34 = vector.shape_cast %33 : vector<1x16x128xbf16> to vector<16x128xbf16>
    %35 = vector.shape_cast %32 : vector<16x128xbf16> to vector<1x16x128xbf16>
    tpu.vector_store %arg4[%c0_32, %c0_33, %c0_34], %35 {strides = array<i32>} : memref<1x16x128xbf16, #tpu.memory_space<vmem>>, vector<1x16x128xbf16>,
    return
  }
  func.func @transform_0(%arg0: i32) -> (i32, i32, i32, i32) {
    %c0_i32 = arith.constant 0 : i32
    %c0_i32_0 = arith.constant 0 : i32
    %c0_i32_1 = arith.constant 0 : i32
    %c0_i32_2 = arith.constant 0 : i32
    return %arg0, %c0_i32, %c0_i32_0, %c0_i32_1 : i32, i32, i32, i32
  }
  func.func @transform_1(%arg0: i32) -> (i32, i32) {
    %c0_i32 = arith.constant 0 : i32
    %c0_i32_0 = arith.constant 0 : i32
    %c0_i32_1 = arith.constant 0 : i32
    return %c0_i32, %c0_i32_0 : i32, i32
  }
  func.func @transform_2(%arg0: i32) -> (i32, i32) {
    %c0_i32 = arith.constant 0 : i32
    %c0_i32_0 = arith.constant 0 : i32
    %c0_i32_1 = arith.constant 0 : i32
    return %c0_i32, %c0_i32_0 : i32, i32
  }
  func.func @transform_3(%arg0: i32) -> (i32, i32, i32) {
    %c0_i32 = arith.constant 0 : i32
    %c0_i32_0 = arith.constant 0 : i32
    %c0_i32_1 = arith.constant 0 : i32
    return %arg0, %c0_i32, %c0_i32_0 : i32, i32, i32
  }
}

module attributes {stable_mosaic.version = 11 : i64} {
  func.func @kernel(%arg0: i32, %arg1: memref<1x6x6x128xbf16, #tpu.memory_space<vmem>>, %arg2: memref<1152x128xbf16, #tpu.memory_space<vmem>>, %arg3: memref<2x128xf32, #tpu.memory_space<vmem>>, %arg4: memref<1x16x128xbf16, #tpu.memory_space<vmem>>, %arg5: memref<16x1152xbf16, #tpu.memory_space<vmem>>) attributes {dimension_semantics = [#tpu.dimension_semantics<parallel>], iteration_bounds = array<i64: 2>, scalar_prefetch = 0 : i64, scratch_operands = 1 : i64, tpu.core_type = #tpu.core_type<tc>, window_params = [{transform_indices = @transform_0, window_bounds = array<i64: 1, 6, 6, 128>}, {pipeline_mode = #tpu.pipeline_mode<synchronous>, transform_indices = @transform_1, window_bounds = array<i64: 1152, 128>}, {pipeline_mode = #tpu.pipeline_mode<synchronous>, transform_indices = @transform_2, window_bounds = array<i64: 2, 128>}, {transform_indices = @transform_3, window_bounds = array<i64: 1, 16, 128>}]} {
    %c0 = arith.constant 0 : index
    %c0_0 = arith.constant 0 : index
    %c0_1 = arith.constant 0 : index
    %c0_2 = arith.constant 0 : index
    %0 = vector.load %arg1[%c0, %c0_0, %c0_1, %c0_2] : memref<1x6x6x128xbf16, #tpu.memory_space<vmem>>, vector<1x4x4x128xbf16>
    %1 = vector.shape_cast %0 : vector<1x4x4x128xbf16> to vector<4x4x128xbf16>
    %2 = vector.shape_cast %1 : vector<4x4x128xbf16> to vector<16x128xbf16>
    %c0_3 = arith.constant 0 : index
    %c0_4 = arith.constant 0 : index
    %3 = vector.load %arg5[%c0_3, %c0_4] : memref<16x1152xbf16, #tpu.memory_space<vmem>>, vector<16x128xbf16>
    tpu.vector_store %arg5[%c0_3, %c0_4], %2 {strides = array<i32>} : memref<16x1152xbf16, #tpu.memory_space<vmem>>, vector<16x128xbf16>,
    %c0_5 = arith.constant 0 : index
    %c0_6 = arith.constant 0 : index
    %c1 = arith.constant 1 : index
    %c0_7 = arith.constant 0 : index
    %4 = vector.load %arg1[%c0_5, %c0_6, %c1, %c0_7] : memref<1x6x6x128xbf16, #tpu.memory_space<vmem>>, vector<1x4x4x128xbf16>
    %5 = vector.shape_cast %4 : vector<1x4x4x128xbf16> to vector<4x4x128xbf16>
    %6 = vector.shape_cast %5 : vector<4x4x128xbf16> to vector<16x128xbf16>
    %c0_8 = arith.constant 0 : index
    %c128 = arith.constant 128 : index
    %7 = vector.load %arg5[%c0_8, %c128] : memref<16x1152xbf16, #tpu.memory_space<vmem>>, vector<16x128xbf16>
    tpu.vector_store %arg5[%c0_8, %c128], %6 {strides = array<i32>} : memref<16x1152xbf16, #tpu.memory_space<vmem>>, vector<16x128xbf16>,
    %c0_9 = arith.constant 0 : index
    %c0_10 = arith.constant 0 : index
    %c2 = arith.constant 2 : index
    %c0_11 = arith.constant 0 : index
    %8 = vector.load %arg1[%c0_9, %c0_10, %c2, %c0_11] : memref<1x6x6x128xbf16, #tpu.memory_space<vmem>>, vector<1x4x4x128xbf16>
    %9 = vector.shape_cast %8 : vector<1x4x4x128xbf16> to vector<4x4x128xbf16>
    %10 = vector.shape_cast %9 : vector<4x4x128xbf16> to vector<16x128xbf16>
    %c0_12 = arith.constant 0 : index
    %c256 = arith.constant 256 : index
    %11 = vector.load %arg5[%c0_12, %c256] : memref<16x1152xbf16, #tpu.memory_space<vmem>>, vector<16x128xbf16>
    tpu.vector_store %arg5[%c0_12, %c256], %10 {strides = array<i32>} : memref<16x1152xbf16, #tpu.memory_space<vmem>>, vector<16x128xbf16>,
    %c0_13 = arith.constant 0 : index
    %c1_14 = arith.constant 1 : index
    %c0_15 = arith.constant 0 : index
    %c0_16 = arith.constant 0 : index
    %12 = vector.load %arg1[%c0_13, %c1_14, %c0_15, %c0_16] : memref<1x6x6x128xbf16, #tpu.memory_space<vmem>>, vector<1x4x4x128xbf16>
    %13 = vector.shape_cast %12 : vector<1x4x4x128xbf16> to vector<4x4x128xbf16>
    %14 = vector.shape_cast %13 : vector<4x4x128xbf16> to vector<16x128xbf16>
    %c0_17 = arith.constant 0 : index
    %c384 = arith.constant 384 : index
    %15 = vector.load %arg5[%c0_17, %c384] : memref<16x1152xbf16, #tpu.memory_space<vmem>>, vector<16x128xbf16>
    tpu.vector_store %arg5[%c0_17, %c384], %14 {strides = array<i32>} : memref<16x1152xbf16, #tpu.memory_space<vmem>>, vector<16x128xbf16>,
    %c0_18 = arith.constant 0 : index
    %c1_19 = arith.constant 1 : index
    %c1_20 = arith.constant 1 : index
    %c0_21 = arith.constant 0 : index
    %16 = vector.load %arg1[%c0_18, %c1_19, %c1_20, %c0_21] : memref<1x6x6x128xbf16, #tpu.memory_space<vmem>>, vector<1x4x4x128xbf16>
    %17 = vector.shape_cast %16 : vector<1x4x4x128xbf16> to vector<4x4x128xbf16>
    %18 = vector.shape_cast %17 : vector<4x4x128xbf16> to vector<16x128xbf16>
    %c0_22 = arith.constant 0 : index
    %c512 = arith.constant 512 : index
    %19 = vector.load %arg5[%c0_22, %c512] : memref<16x1152xbf16, #tpu.memory_space<vmem>>, vector<16x128xbf16>
    tpu.vector_store %arg5[%c0_22, %c512], %18 {strides = array<i32>} : memref<16x1152xbf16, #tpu.memory_space<vmem>>, vector<16x128xbf16>,
    %c0_23 = arith.constant 0 : index
    %c1_24 = arith.constant 1 : index
    %c2_25 = arith.constant 2 : index
    %c0_26 = arith.constant 0 : index
    %20 = vector.load %arg1[%c0_23, %c1_24, %c2_25, %c0_26] : memref<1x6x6x128xbf16, #tpu.memory_space<vmem>>, vector<1x4x4x128xbf16>
    %21 = vector.shape_cast %20 : vector<1x4x4x128xbf16> to vector<4x4x128xbf16>
    %22 = vector.shape_cast %21 : vector<4x4x128xbf16> to vector<16x128xbf16>
    %c0_27 = arith.constant 0 : index
    %c640 = arith.constant 640 : index
    %23 = vector.load %arg5[%c0_27, %c640] : memref<16x1152xbf16, #tpu.memory_space<vmem>>, vector<16x128xbf16>
    tpu.vector_store %arg5[%c0_27, %c640], %22 {strides = array<i32>} : memref<16x1152xbf16, #tpu.memory_space<vmem>>, vector<16x128xbf16>,
    %c0_28 = arith.constant 0 : index
    %c2_29 = arith.constant 2 : index
    %c0_30 = arith.constant 0 : index
    %c0_31 = arith.constant 0 : index
    %24 = vector.load %arg1[%c0_28, %c2_29, %c0_30, %c0_31] : memref<1x6x6x128xbf16, #tpu.memory_space<vmem>>, vector<1x4x4x128xbf16>
    %25 = vector.shape_cast %24 : vector<1x4x4x128xbf16> to vector<4x4x128xbf16>
    %26 = vector.shape_cast %25 : vector<4x4x128xbf16> to vector<16x128xbf16>
    %c0_32 = arith.constant 0 : index
    %c768 = arith.constant 768 : index
    %27 = vector.load %arg5[%c0_32, %c768] : memref<16x1152xbf16, #tpu.memory_space<vmem>>, vector<16x128xbf16>
    tpu.vector_store %arg5[%c0_32, %c768], %26 {strides = array<i32>} : memref<16x1152xbf16, #tpu.memory_space<vmem>>, vector<16x128xbf16>,
    %c0_33 = arith.constant 0 : index
    %c2_34 = arith.constant 2 : index
    %c1_35 = arith.constant 1 : index
    %c0_36 = arith.constant 0 : index
    %28 = vector.load %arg1[%c0_33, %c2_34, %c1_35, %c0_36] : memref<1x6x6x128xbf16, #tpu.memory_space<vmem>>, vector<1x4x4x128xbf16>
    %29 = vector.shape_cast %28 : vector<1x4x4x128xbf16> to vector<4x4x128xbf16>
    %30 = vector.shape_cast %29 : vector<4x4x128xbf16> to vector<16x128xbf16>
    %c0_37 = arith.constant 0 : index
    %c896 = arith.constant 896 : index
    %31 = vector.load %arg5[%c0_37, %c896] : memref<16x1152xbf16, #tpu.memory_space<vmem>>, vector<16x128xbf16>
    tpu.vector_store %arg5[%c0_37, %c896], %30 {strides = array<i32>} : memref<16x1152xbf16, #tpu.memory_space<vmem>>, vector<16x128xbf16>,
    %c0_38 = arith.constant 0 : index
    %c2_39 = arith.constant 2 : index
    %c2_40 = arith.constant 2 : index
    %c0_41 = arith.constant 0 : index
    %32 = vector.load %arg1[%c0_38, %c2_39, %c2_40, %c0_41] : memref<1x6x6x128xbf16, #tpu.memory_space<vmem>>, vector<1x4x4x128xbf16>
    %33 = vector.shape_cast %32 : vector<1x4x4x128xbf16> to vector<4x4x128xbf16>
    %34 = vector.shape_cast %33 : vector<4x4x128xbf16> to vector<16x128xbf16>
    %c0_42 = arith.constant 0 : index
    %c1024 = arith.constant 1024 : index
    %35 = vector.load %arg5[%c0_42, %c1024] : memref<16x1152xbf16, #tpu.memory_space<vmem>>, vector<16x128xbf16>
    tpu.vector_store %arg5[%c0_42, %c1024], %34 {strides = array<i32>} : memref<16x1152xbf16, #tpu.memory_space<vmem>>, vector<16x128xbf16>,
    %c0_43 = arith.constant 0 : index
    %c0_44 = arith.constant 0 : index
    %36 = vector.load %arg5[%c0_43, %c0_44] : memref<16x1152xbf16, #tpu.memory_space<vmem>>, vector<16x1152xbf16>
    %c0_45 = arith.constant 0 : index
    %c0_46 = arith.constant 0 : index
    %37 = vector.load %arg2[%c0_45, %c0_46] : memref<1152x128xbf16, #tpu.memory_space<vmem>>, vector<1152x128xbf16>
    %cst = arith.constant dense<0.000000e+00> : vector<16x128xf32>
    %38 = tpu.matmul %36, %37, %cst {dimension_numbers = #tpu.dot_dimension_numbers<[1], [0], [0], [1], [0, 0, 1, 1], [], []>} : vector<16x1152xbf16>, vector<1152x128xbf16>, vector<16x128xf32> -> vector<16x128xf32>
    %c0_47 = arith.constant 0 : index
    %c0_48 = arith.constant 0 : index
    %39 = vector.load %arg3[%c0_47, %c0_48] : memref<2x128xf32, #tpu.memory_space<vmem>>, vector<1x128xf32>
    %40 = vector.broadcast %39 : vector<1x128xf32> to vector<16x128xf32>
    %41 = arith.addf %38, %40 : vector<16x128xf32>
    %cst_49 = arith.constant 0.000000e+00 : f32
    %42 = vector.broadcast %cst_49 : f32 to vector<16x128xf32>
    %43 = arith.cmpf oge, %41, %42 : vector<16x128xf32>
    %c1_50 = arith.constant 1 : index
    %c0_51 = arith.constant 0 : index
    %44 = vector.load %arg3[%c1_50, %c0_51] : memref<2x128xf32, #tpu.memory_space<vmem>>, vector<1x128xf32>
    %45 = vector.broadcast %44 : vector<1x128xf32> to vector<16x128xf32>
    %46 = arith.mulf %41, %45 : vector<16x128xf32>
    %47 = arith.select %43, %41, %46 : vector<16x128xi1>, vector<16x128xf32>
    %48 = arith.truncf %47 : vector<16x128xf32> to vector<16x128xbf16>
    %c0_52 = arith.constant 0 : index
    %c0_53 = arith.constant 0 : index
    %c0_54 = arith.constant 0 : index
    %49 = vector.load %arg4[%c0_52, %c0_53, %c0_54] : memref<1x16x128xbf16, #tpu.memory_space<vmem>>, vector<1x16x128xbf16>
    %50 = vector.shape_cast %49 : vector<1x16x128xbf16> to vector<16x128xbf16>
    %51 = vector.shape_cast %48 : vector<16x128xbf16> to vector<1x16x128xbf16>
    tpu.vector_store %arg4[%c0_52, %c0_53, %c0_54], %51 {strides = array<i32>} : memref<1x16x128xbf16, #tpu.memory_space<vmem>>, vector<1x16x128xbf16>,
    return
  }
  func.func @transform_0(%arg0: i32) -> (i32, i32, i32, i32) {
    %c0_i32 = arith.constant 0 : i32
    %c0_i32_0 = arith.constant 0 : i32
    %c0_i32_1 = arith.constant 0 : i32
    %c0_i32_2 = arith.constant 0 : i32
    return %arg0, %c0_i32, %c0_i32_0, %c0_i32_1 : i32, i32, i32, i32
  }
  func.func @transform_1(%arg0: i32) -> (i32, i32) {
    %c0_i32 = arith.constant 0 : i32
    %c0_i32_0 = arith.constant 0 : i32
    %c0_i32_1 = arith.constant 0 : i32
    return %c0_i32, %c0_i32_0 : i32, i32
  }
  func.func @transform_2(%arg0: i32) -> (i32, i32) {
    %c0_i32 = arith.constant 0 : i32
    %c0_i32_0 = arith.constant 0 : i32
    %c0_i32_1 = arith.constant 0 : i32
    return %c0_i32, %c0_i32_0 : i32, i32
  }
  func.func @transform_3(%arg0: i32) -> (i32, i32, i32) {
    %c0_i32 = arith.constant 0 : i32
    %c0_i32_0 = arith.constant 0 : i32
    %c0_i32_1 = arith.constant 0 : i32
    return %arg0, %c0_i32, %c0_i32_0 : i32, i32, i32
  }
}

module attributes {stable_mosaic.version = 11 : i64} {
  func.func @kernel(%arg0: i32, %arg1: memref<1x3x3x512xbf16, #tpu.memory_space<vmem>>, %arg2: memref<1152x128xbf16, #tpu.memory_space<vmem>>, %arg3: memref<2x128xf32, #tpu.memory_space<vmem>>, %arg4: memref<1x4x128xbf16, #tpu.memory_space<vmem>>, %arg5: memref<4x1152xbf16, #tpu.memory_space<vmem>>) attributes {dimension_semantics = [#tpu.dimension_semantics<parallel>], iteration_bounds = array<i64: 2>, scalar_prefetch = 0 : i64, scratch_operands = 1 : i64, tpu.core_type = #tpu.core_type<tc>, window_params = [{transform_indices = @transform_0, window_bounds = array<i64: 1, 3, 3, 512>}, {pipeline_mode = #tpu.pipeline_mode<synchronous>, transform_indices = @transform_1, window_bounds = array<i64: 1152, 128>}, {pipeline_mode = #tpu.pipeline_mode<synchronous>, transform_indices = @transform_2, window_bounds = array<i64: 2, 128>}, {transform_indices = @transform_3, window_bounds = array<i64: 1, 4, 128>}]} {
    %c0 = arith.constant 0 : index
    %c0_0 = arith.constant 0 : index
    %c0_1 = arith.constant 0 : index
    %c0_2 = arith.constant 0 : index
    %0 = vector.load %arg1[%c0, %c0_0, %c0_1, %c0_2] : memref<1x3x3x512xbf16, #tpu.memory_space<vmem>>, vector<1x2x2x512xbf16>
    %1 = vector.shape_cast %0 : vector<1x2x2x512xbf16> to vector<2x2x512xbf16>
    %2 = vector.shape_cast %1 : vector<2x2x512xbf16> to vector<4x512xbf16>
    %c0_3 = arith.constant 0 : index
    %c0_4 = arith.constant 0 : index
    %3 = vector.load %arg5[%c0_3, %c0_4] : memref<4x1152xbf16, #tpu.memory_space<vmem>>, vector<4x512xbf16>
    tpu.vector_store %arg5[%c0_3, %c0_4], %2 {strides = array<i32>} : memref<4x1152xbf16, #tpu.memory_space<vmem>>, vector<4x512xbf16>,
    %c0_5 = arith.constant 0 : index
    %c0_6 = arith.constant 0 : index
    %c1 = arith.constant 1 : index
    %c0_7 = arith.constant 0 : index
    %4 = vector.load %arg1[%c0_5, %c0_6, %c1, %c0_7] : memref<1x3x3x512xbf16, #tpu.memory_space<vmem>>, vector<1x2x2x128xbf16>
    %5 = vector.shape_cast %4 : vector<1x2x2x128xbf16> to vector<2x2x128xbf16>
    %6 = vector.shape_cast %5 : vector<2x2x128xbf16> to vector<4x128xbf16>
    %c0_8 = arith.constant 0 : index
    %c512 = arith.constant 512 : index
    %7 = vector.load %arg5[%c0_8, %c512] : memref<4x1152xbf16, #tpu.memory_space<vmem>>, vector<4x128xbf16>
    tpu.vector_store %arg5[%c0_8, %c512], %6 {strides = array<i32>} : memref<4x1152xbf16, #tpu.memory_space<vmem>>, vector<4x128xbf16>,
    %c0_9 = arith.constant 0 : index
    %c0_10 = arith.constant 0 : index
    %c1_11 = arith.constant 1 : index
    %c256 = arith.constant 256 : index
    %8 = vector.load %arg1[%c0_9, %c0_10, %c1_11, %c256] : memref<1x3x3x512xbf16, #tpu.memory_space<vmem>>, vector<1x2x2x128xbf16>
    %9 = vector.shape_cast %8 : vector<1x2x2x128xbf16> to vector<2x2x128xbf16>
    %10 = vector.shape_cast %9 : vector<2x2x128xbf16> to vector<4x128xbf16>
    %c0_12 = arith.constant 0 : index
    %c640 = arith.constant 640 : index
    %11 = vector.load %arg5[%c0_12, %c640] : memref<4x1152xbf16, #tpu.memory_space<vmem>>, vector<4x128xbf16>
    tpu.vector_store %arg5[%c0_12, %c640], %10 {strides = array<i32>} : memref<4x1152xbf16, #tpu.memory_space<vmem>>, vector<4x128xbf16>,
    %c0_13 = arith.constant 0 : index
    %c1_14 = arith.constant 1 : index
    %c0_15 = arith.constant 0 : index
    %c0_16 = arith.constant 0 : index
    %12 = vector.load %arg1[%c0_13, %c1_14, %c0_15, %c0_16] : memref<1x3x3x512xbf16, #tpu.memory_space<vmem>>, vector<1x2x2x256xbf16>
    %13 = vector.shape_cast %12 : vector<1x2x2x256xbf16> to vector<2x2x256xbf16>
    %14 = vector.shape_cast %13 : vector<2x2x256xbf16> to vector<4x256xbf16>
    %c0_17 = arith.constant 0 : index
    %c768 = arith.constant 768 : index
    %15 = vector.load %arg5[%c0_17, %c768] : memref<4x1152xbf16, #tpu.memory_space<vmem>>, vector<4x256xbf16>
    tpu.vector_store %arg5[%c0_17, %c768], %14 {strides = array<i32>} : memref<4x1152xbf16, #tpu.memory_space<vmem>>, vector<4x256xbf16>,
    %c0_18 = arith.constant 0 : index
    %c1_19 = arith.constant 1 : index
    %c1_20 = arith.constant 1 : index
    %c0_21 = arith.constant 0 : index
    %16 = vector.load %arg1[%c0_18, %c1_19, %c1_20, %c0_21] : memref<1x3x3x512xbf16, #tpu.memory_space<vmem>>, vector<1x2x2x128xbf16>
    %17 = vector.shape_cast %16 : vector<1x2x2x128xbf16> to vector<2x2x128xbf16>
    %18 = vector.shape_cast %17 : vector<2x2x128xbf16> to vector<4x128xbf16>
    %c0_22 = arith.constant 0 : index
    %c1024 = arith.constant 1024 : index
    %19 = vector.load %arg5[%c0_22, %c1024] : memref<4x1152xbf16, #tpu.memory_space<vmem>>, vector<4x128xbf16>
    tpu.vector_store %arg5[%c0_22, %c1024], %18 {strides = array<i32>} : memref<4x1152xbf16, #tpu.memory_space<vmem>>, vector<4x128xbf16>,
    %c0_23 = arith.constant 0 : index
    %c0_24 = arith.constant 0 : index
    %20 = vector.load %arg5[%c0_23, %c0_24] : memref<4x1152xbf16, #tpu.memory_space<vmem>>, vector<4x1152xbf16>
    %c0_25 = arith.constant 0 : index
    %c0_26 = arith.constant 0 : index
    %21 = vector.load %arg2[%c0_25, %c0_26] : memref<1152x128xbf16, #tpu.memory_space<vmem>>, vector<1152x128xbf16>
    %cst = arith.constant dense<0.000000e+00> : vector<4x128xf32>
    %22 = tpu.matmul %20, %21, %cst {dimension_numbers = #tpu.dot_dimension_numbers<[1], [0], [0], [1], [0, 0, 1, 1], [], []>} : vector<4x1152xbf16>, vector<1152x128xbf16>, vector<4x128xf32> -> vector<4x128xf32>
    %c0_27 = arith.constant 0 : index
    %c0_28 = arith.constant 0 : index
    %23 = vector.load %arg3[%c0_27, %c0_28] : memref<2x128xf32, #tpu.memory_space<vmem>>, vector<1x128xf32>
    %24 = vector.broadcast %23 : vector<1x128xf32> to vector<4x128xf32>
    %25 = arith.addf %22, %24 : vector<4x128xf32>
    %cst_29 = arith.constant 0.000000e+00 : f32
    %26 = vector.broadcast %cst_29 : f32 to vector<4x128xf32>
    %27 = arith.cmpf oge, %25, %26 : vector<4x128xf32>
    %c1_30 = arith.constant 1 : index
    %c0_31 = arith.constant 0 : index
    %28 = vector.load %arg3[%c1_30, %c0_31] : memref<2x128xf32, #tpu.memory_space<vmem>>, vector<1x128xf32>
    %29 = vector.broadcast %28 : vector<1x128xf32> to vector<4x128xf32>
    %30 = arith.mulf %25, %29 : vector<4x128xf32>
    %31 = arith.select %27, %25, %30 : vector<4x128xi1>, vector<4x128xf32>
    %32 = arith.truncf %31 : vector<4x128xf32> to vector<4x128xbf16>
    %c0_32 = arith.constant 0 : index
    %c0_33 = arith.constant 0 : index
    %c0_34 = arith.constant 0 : index
    %33 = vector.load %arg4[%c0_32, %c0_33, %c0_34] : memref<1x4x128xbf16, #tpu.memory_space<vmem>>, vector<1x4x128xbf16>
    %34 = vector.shape_cast %33 : vector<1x4x128xbf16> to vector<4x128xbf16>
    %35 = vector.shape_cast %32 : vector<4x128xbf16> to vector<1x4x128xbf16>
    tpu.vector_store %arg4[%c0_32, %c0_33, %c0_34], %35 {strides = array<i32>} : memref<1x4x128xbf16, #tpu.memory_space<vmem>>, vector<1x4x128xbf16>,
    return
  }
  func.func @transform_0(%arg0: i32) -> (i32, i32, i32, i32) {
    %c0_i32 = arith.constant 0 : i32
    %c0_i32_0 = arith.constant 0 : i32
    %c0_i32_1 = arith.constant 0 : i32
    %c0_i32_2 = arith.constant 0 : i32
    return %arg0, %c0_i32, %c0_i32_0, %c0_i32_1 : i32, i32, i32, i32
  }
  func.func @transform_1(%arg0: i32) -> (i32, i32) {
    %c0_i32 = arith.constant 0 : i32
    %c0_i32_0 = arith.constant 0 : i32
    %c0_i32_1 = arith.constant 0 : i32
    return %c0_i32, %c0_i32_0 : i32, i32
  }
  func.func @transform_2(%arg0: i32) -> (i32, i32) {
    %c0_i32 = arith.constant 0 : i32
    %c0_i32_0 = arith.constant 0 : i32
    %c0_i32_1 = arith.constant 0 : i32
    return %c0_i32, %c0_i32_0 : i32, i32
  }
  func.func @transform_3(%arg0: i32) -> (i32, i32, i32) {
    %c0_i32 = arith.constant 0 : i32
    %c0_i32_0 = arith.constant 0 : i32
    %c0_i32_1 = arith.constant 0 : i32
    return %arg0, %c0_i32, %c0_i32_0 : i32, i32, i32
  }
}

module attributes {stable_mosaic.version = 11 : i64} {
  func.func @kernel(%arg0: i32, %arg1: memref<1x4x4x128xbf16, #tpu.memory_space<vmem>>, %arg2: memref<1152x128xbf16, #tpu.memory_space<vmem>>, %arg3: memref<2x128xf32, #tpu.memory_space<vmem>>, %arg4: memref<1x4x128xbf16, #tpu.memory_space<vmem>>, %arg5: memref<4x1152xbf16, #tpu.memory_space<vmem>>) attributes {dimension_semantics = [#tpu.dimension_semantics<parallel>], iteration_bounds = array<i64: 2>, scalar_prefetch = 0 : i64, scratch_operands = 1 : i64, tpu.core_type = #tpu.core_type<tc>, window_params = [{transform_indices = @transform_0, window_bounds = array<i64: 1, 4, 4, 128>}, {pipeline_mode = #tpu.pipeline_mode<synchronous>, transform_indices = @transform_1, window_bounds = array<i64: 1152, 128>}, {pipeline_mode = #tpu.pipeline_mode<synchronous>, transform_indices = @transform_2, window_bounds = array<i64: 2, 128>}, {transform_indices = @transform_3, window_bounds = array<i64: 1, 4, 128>}]} {
    %c0 = arith.constant 0 : index
    %c0_0 = arith.constant 0 : index
    %c0_1 = arith.constant 0 : index
    %c0_2 = arith.constant 0 : index
    %0 = vector.load %arg1[%c0, %c0_0, %c0_1, %c0_2] : memref<1x4x4x128xbf16, #tpu.memory_space<vmem>>, vector<1x2x2x128xbf16>
    %1 = vector.shape_cast %0 : vector<1x2x2x128xbf16> to vector<2x2x128xbf16>
    %2 = vector.shape_cast %1 : vector<2x2x128xbf16> to vector<4x128xbf16>
    %c0_3 = arith.constant 0 : index
    %c0_4 = arith.constant 0 : index
    %3 = vector.load %arg5[%c0_3, %c0_4] : memref<4x1152xbf16, #tpu.memory_space<vmem>>, vector<4x128xbf16>
    tpu.vector_store %arg5[%c0_3, %c0_4], %2 {strides = array<i32>} : memref<4x1152xbf16, #tpu.memory_space<vmem>>, vector<4x128xbf16>,
    %c0_5 = arith.constant 0 : index
    %c0_6 = arith.constant 0 : index
    %c1 = arith.constant 1 : index
    %c0_7 = arith.constant 0 : index
    %4 = vector.load %arg1[%c0_5, %c0_6, %c1, %c0_7] : memref<1x4x4x128xbf16, #tpu.memory_space<vmem>>, vector<1x2x2x128xbf16>
    %5 = vector.shape_cast %4 : vector<1x2x2x128xbf16> to vector<2x2x128xbf16>
    %6 = vector.shape_cast %5 : vector<2x2x128xbf16> to vector<4x128xbf16>
    %c0_8 = arith.constant 0 : index
    %c128 = arith.constant 128 : index
    %7 = vector.load %arg5[%c0_8, %c128] : memref<4x1152xbf16, #tpu.memory_space<vmem>>, vector<4x128xbf16>
    tpu.vector_store %arg5[%c0_8, %c128], %6 {strides = array<i32>} : memref<4x1152xbf16, #tpu.memory_space<vmem>>, vector<4x128xbf16>,
    %c0_9 = arith.constant 0 : index
    %c0_10 = arith.constant 0 : index
    %c2 = arith.constant 2 : index
    %c0_11 = arith.constant 0 : index
    %8 = vector.load %arg1[%c0_9, %c0_10, %c2, %c0_11] : memref<1x4x4x128xbf16, #tpu.memory_space<vmem>>, vector<1x2x2x128xbf16>
    %9 = vector.shape_cast %8 : vector<1x2x2x128xbf16> to vector<2x2x128xbf16>
    %10 = vector.shape_cast %9 : vector<2x2x128xbf16> to vector<4x128xbf16>
    %c0_12 = arith.constant 0 : index
    %c256 = arith.constant 256 : index
    %11 = vector.load %arg5[%c0_12, %c256] : memref<4x1152xbf16, #tpu.memory_space<vmem>>, vector<4x128xbf16>
    tpu.vector_store %arg5[%c0_12, %c256], %10 {strides = array<i32>} : memref<4x1152xbf16, #tpu.memory_space<vmem>>, vector<4x128xbf16>,
    %c0_13 = arith.constant 0 : index
    %c1_14 = arith.constant 1 : index
    %c0_15 = arith.constant 0 : index
    %c0_16 = arith.constant 0 : index
    %12 = vector.load %arg1[%c0_13, %c1_14, %c0_15, %c0_16] : memref<1x4x4x128xbf16, #tpu.memory_space<vmem>>, vector<1x2x2x128xbf16>
    %13 = vector.shape_cast %12 : vector<1x2x2x128xbf16> to vector<2x2x128xbf16>
    %14 = vector.shape_cast %13 : vector<2x2x128xbf16> to vector<4x128xbf16>
    %c0_17 = arith.constant 0 : index
    %c384 = arith.constant 384 : index
    %15 = vector.load %arg5[%c0_17, %c384] : memref<4x1152xbf16, #tpu.memory_space<vmem>>, vector<4x128xbf16>
    tpu.vector_store %arg5[%c0_17, %c384], %14 {strides = array<i32>} : memref<4x1152xbf16, #tpu.memory_space<vmem>>, vector<4x128xbf16>,
    %c0_18 = arith.constant 0 : index
    %c1_19 = arith.constant 1 : index
    %c1_20 = arith.constant 1 : index
    %c0_21 = arith.constant 0 : index
    %16 = vector.load %arg1[%c0_18, %c1_19, %c1_20, %c0_21] : memref<1x4x4x128xbf16, #tpu.memory_space<vmem>>, vector<1x2x2x128xbf16>
    %17 = vector.shape_cast %16 : vector<1x2x2x128xbf16> to vector<2x2x128xbf16>
    %18 = vector.shape_cast %17 : vector<2x2x128xbf16> to vector<4x128xbf16>
    %c0_22 = arith.constant 0 : index
    %c512 = arith.constant 512 : index
    %19 = vector.load %arg5[%c0_22, %c512] : memref<4x1152xbf16, #tpu.memory_space<vmem>>, vector<4x128xbf16>
    tpu.vector_store %arg5[%c0_22, %c512], %18 {strides = array<i32>} : memref<4x1152xbf16, #tpu.memory_space<vmem>>, vector<4x128xbf16>,
    %c0_23 = arith.constant 0 : index
    %c1_24 = arith.constant 1 : index
    %c2_25 = arith.constant 2 : index
    %c0_26 = arith.constant 0 : index
    %20 = vector.load %arg1[%c0_23, %c1_24, %c2_25, %c0_26] : memref<1x4x4x128xbf16, #tpu.memory_space<vmem>>, vector<1x2x2x128xbf16>
    %21 = vector.shape_cast %20 : vector<1x2x2x128xbf16> to vector<2x2x128xbf16>
    %22 = vector.shape_cast %21 : vector<2x2x128xbf16> to vector<4x128xbf16>
    %c0_27 = arith.constant 0 : index
    %c640 = arith.constant 640 : index
    %23 = vector.load %arg5[%c0_27, %c640] : memref<4x1152xbf16, #tpu.memory_space<vmem>>, vector<4x128xbf16>
    tpu.vector_store %arg5[%c0_27, %c640], %22 {strides = array<i32>} : memref<4x1152xbf16, #tpu.memory_space<vmem>>, vector<4x128xbf16>,
    %c0_28 = arith.constant 0 : index
    %c2_29 = arith.constant 2 : index
    %c0_30 = arith.constant 0 : index
    %c0_31 = arith.constant 0 : index
    %24 = vector.load %arg1[%c0_28, %c2_29, %c0_30, %c0_31] : memref<1x4x4x128xbf16, #tpu.memory_space<vmem>>, vector<1x2x2x128xbf16>
    %25 = vector.shape_cast %24 : vector<1x2x2x128xbf16> to vector<2x2x128xbf16>
    %26 = vector.shape_cast %25 : vector<2x2x128xbf16> to vector<4x128xbf16>
    %c0_32 = arith.constant 0 : index
    %c768 = arith.constant 768 : index
    %27 = vector.load %arg5[%c0_32, %c768] : memref<4x1152xbf16, #tpu.memory_space<vmem>>, vector<4x128xbf16>
    tpu.vector_store %arg5[%c0_32, %c768], %26 {strides = array<i32>} : memref<4x1152xbf16, #tpu.memory_space<vmem>>, vector<4x128xbf16>,
    %c0_33 = arith.constant 0 : index
    %c2_34 = arith.constant 2 : index
    %c1_35 = arith.constant 1 : index
    %c0_36 = arith.constant 0 : index
    %28 = vector.load %arg1[%c0_33, %c2_34, %c1_35, %c0_36] : memref<1x4x4x128xbf16, #tpu.memory_space<vmem>>, vector<1x2x2x128xbf16>
    %29 = vector.shape_cast %28 : vector<1x2x2x128xbf16> to vector<2x2x128xbf16>
    %30 = vector.shape_cast %29 : vector<2x2x128xbf16> to vector<4x128xbf16>
    %c0_37 = arith.constant 0 : index
    %c896 = arith.constant 896 : index
    %31 = vector.load %arg5[%c0_37, %c896] : memref<4x1152xbf16, #tpu.memory_space<vmem>>, vector<4x128xbf16>
    tpu.vector_store %arg5[%c0_37, %c896], %30 {strides = array<i32>} : memref<4x1152xbf16, #tpu.memory_space<vmem>>, vector<4x128xbf16>,
    %c0_38 = arith.constant 0 : index
    %c2_39 = arith.constant 2 : index
    %c2_40 = arith.constant 2 : index
    %c0_41 = arith.constant 0 : index
    %32 = vector.load %arg1[%c0_38, %c2_39, %c2_40, %c0_41] : memref<1x4x4x128xbf16, #tpu.memory_space<vmem>>, vector<1x2x2x128xbf16>
    %33 = vector.shape_cast %32 : vector<1x2x2x128xbf16> to vector<2x2x128xbf16>
    %34 = vector.shape_cast %33 : vector<2x2x128xbf16> to vector<4x128xbf16>
    %c0_42 = arith.constant 0 : index
    %c1024 = arith.constant 1024 : index
    %35 = vector.load %arg5[%c0_42, %c1024] : memref<4x1152xbf16, #tpu.memory_space<vmem>>, vector<4x128xbf16>
    tpu.vector_store %arg5[%c0_42, %c1024], %34 {strides = array<i32>} : memref<4x1152xbf16, #tpu.memory_space<vmem>>, vector<4x128xbf16>,
    %c0_43 = arith.constant 0 : index
    %c0_44 = arith.constant 0 : index
    %36 = vector.load %arg5[%c0_43, %c0_44] : memref<4x1152xbf16, #tpu.memory_space<vmem>>, vector<4x1152xbf16>
    %c0_45 = arith.constant 0 : index
    %c0_46 = arith.constant 0 : index
    %37 = vector.load %arg2[%c0_45, %c0_46] : memref<1152x128xbf16, #tpu.memory_space<vmem>>, vector<1152x128xbf16>
    %cst = arith.constant dense<0.000000e+00> : vector<4x128xf32>
    %38 = tpu.matmul %36, %37, %cst {dimension_numbers = #tpu.dot_dimension_numbers<[1], [0], [0], [1], [0, 0, 1, 1], [], []>} : vector<4x1152xbf16>, vector<1152x128xbf16>, vector<4x128xf32> -> vector<4x128xf32>
    %c0_47 = arith.constant 0 : index
    %c0_48 = arith.constant 0 : index
    %39 = vector.load %arg3[%c0_47, %c0_48] : memref<2x128xf32, #tpu.memory_space<vmem>>, vector<1x128xf32>
    %40 = vector.broadcast %39 : vector<1x128xf32> to vector<4x128xf32>
    %41 = arith.addf %38, %40 : vector<4x128xf32>
    %cst_49 = arith.constant 0.000000e+00 : f32
    %42 = vector.broadcast %cst_49 : f32 to vector<4x128xf32>
    %43 = arith.cmpf oge, %41, %42 : vector<4x128xf32>
    %c1_50 = arith.constant 1 : index
    %c0_51 = arith.constant 0 : index
    %44 = vector.load %arg3[%c1_50, %c0_51] : memref<2x128xf32, #tpu.memory_space<vmem>>, vector<1x128xf32>
    %45 = vector.broadcast %44 : vector<1x128xf32> to vector<4x128xf32>
    %46 = arith.mulf %41, %45 : vector<4x128xf32>
    %47 = arith.select %43, %41, %46 : vector<4x128xi1>, vector<4x128xf32>
    %48 = arith.truncf %47 : vector<4x128xf32> to vector<4x128xbf16>
    %c0_52 = arith.constant 0 : index
    %c0_53 = arith.constant 0 : index
    %c0_54 = arith.constant 0 : index
    %49 = vector.load %arg4[%c0_52, %c0_53, %c0_54] : memref<1x4x128xbf16, #tpu.memory_space<vmem>>, vector<1x4x128xbf16>
    %50 = vector.shape_cast %49 : vector<1x4x128xbf16> to vector<4x128xbf16>
    %51 = vector.shape_cast %48 : vector<4x128xbf16> to vector<1x4x128xbf16>
    tpu.vector_store %arg4[%c0_52, %c0_53, %c0_54], %51 {strides = array<i32>} : memref<1x4x128xbf16, #tpu.memory_space<vmem>>, vector<1x4x128xbf16>,
    return
  }
  func.func @transform_0(%arg0: i32) -> (i32, i32, i32, i32) {
    %c0_i32 = arith.constant 0 : i32
    %c0_i32_0 = arith.constant 0 : i32
    %c0_i32_1 = arith.constant 0 : i32
    %c0_i32_2 = arith.constant 0 : i32
    return %arg0, %c0_i32, %c0_i32_0, %c0_i32_1 : i32, i32, i32, i32
  }
  func.func @transform_1(%arg0: i32) -> (i32, i32) {
    %c0_i32 = arith.constant 0 : i32
    %c0_i32_0 = arith.constant 0 : i32
    %c0_i32_1 = arith.constant 0 : i32
    return %c0_i32, %c0_i32_0 : i32, i32
  }
  func.func @transform_2(%arg0: i32) -> (i32, i32) {
    %c0_i32 = arith.constant 0 : i32
    %c0_i32_0 = arith.constant 0 : i32
    %c0_i32_1 = arith.constant 0 : i32
    return %c0_i32, %c0_i32_0 : i32, i32
  }
  func.func @transform_3(%arg0: i32) -> (i32, i32, i32) {
    %c0_i32 = arith.constant 0 : i32
    %c0_i32_0 = arith.constant 0 : i32
    %c0_i32_1 = arith.constant 0 : i32
    return %arg0, %c0_i32, %c0_i32_0 : i32, i32, i32
  }
}

module attributes {stable_mosaic.version = 11 : i64} {
  func.func @kernel(%arg0: i32, %arg1: memref<1x2x2x512xbf16, #tpu.memory_space<vmem>>, %arg2: memref<1152x128xbf16, #tpu.memory_space<vmem>>, %arg3: memref<2x128xf32, #tpu.memory_space<vmem>>, %arg4: memref<1x1x128xbf16, #tpu.memory_space<vmem>>, %arg5: memref<1x1152xbf16, #tpu.memory_space<vmem>>) attributes {dimension_semantics = [#tpu.dimension_semantics<parallel>], iteration_bounds = array<i64: 2>, scalar_prefetch = 0 : i64, scratch_operands = 1 : i64, tpu.core_type = #tpu.core_type<tc>, window_params = [{transform_indices = @transform_0, window_bounds = array<i64: 1, 2, 2, 512>}, {pipeline_mode = #tpu.pipeline_mode<synchronous>, transform_indices = @transform_1, window_bounds = array<i64: 1152, 128>}, {pipeline_mode = #tpu.pipeline_mode<synchronous>, transform_indices = @transform_2, window_bounds = array<i64: 2, 128>}, {transform_indices = @transform_3, window_bounds = array<i64: 1, 1, 128>}]} {
    %c0 = arith.constant 0 : index
    %c0_0 = arith.constant 0 : index
    %c0_1 = arith.constant 0 : index
    %c0_2 = arith.constant 0 : index
    %0 = vector.load %arg1[%c0, %c0_0, %c0_1, %c0_2] : memref<1x2x2x512xbf16, #tpu.memory_space<vmem>>, vector<1x1x1x512xbf16>
    %1 = vector.shape_cast %0 : vector<1x1x1x512xbf16> to vector<1x1x512xbf16>
    %2 = vector.shape_cast %1 : vector<1x1x512xbf16> to vector<1x512xbf16>
    %c0_3 = arith.constant 0 : index
    %c0_4 = arith.constant 0 : index
    %3 = vector.load %arg5[%c0_3, %c0_4] : memref<1x1152xbf16, #tpu.memory_space<vmem>>, vector<1x512xbf16>
    tpu.vector_store %arg5[%c0_3, %c0_4], %2 {strides = array<i32>} : memref<1x1152xbf16, #tpu.memory_space<vmem>>, vector<1x512xbf16>,
    %c0_5 = arith.constant 0 : index
    %c0_6 = arith.constant 0 : index
    %c1 = arith.constant 1 : index
    %c0_7 = arith.constant 0 : index
    %4 = vector.load %arg1[%c0_5, %c0_6, %c1, %c0_7] : memref<1x2x2x512xbf16, #tpu.memory_space<vmem>>, vector<1x1x1x128xbf16>
    %5 = vector.shape_cast %4 : vector<1x1x1x128xbf16> to vector<1x1x128xbf16>
    %6 = vector.shape_cast %5 : vector<1x1x128xbf16> to vector<1x128xbf16>
    %c0_8 = arith.constant 0 : index
    %c512 = arith.constant 512 : index
    %7 = vector.load %arg5[%c0_8, %c512] : memref<1x1152xbf16, #tpu.memory_space<vmem>>, vector<1x128xbf16>
    tpu.vector_store %arg5[%c0_8, %c512], %6 {strides = array<i32>} : memref<1x1152xbf16, #tpu.memory_space<vmem>>, vector<1x128xbf16>,
    %c0_9 = arith.constant 0 : index
    %c0_10 = arith.constant 0 : index
    %c1_11 = arith.constant 1 : index
    %c256 = arith.constant 256 : index
    %8 = vector.load %arg1[%c0_9, %c0_10, %c1_11, %c256] : memref<1x2x2x512xbf16, #tpu.memory_space<vmem>>, vector<1x1x1x128xbf16>
    %9 = vector.shape_cast %8 : vector<1x1x1x128xbf16> to vector<1x1x128xbf16>
    %10 = vector.shape_cast %9 : vector<1x1x128xbf16> to vector<1x128xbf16>
    %c0_12 = arith.constant 0 : index
    %c640 = arith.constant 640 : index
    %11 = vector.load %arg5[%c0_12, %c640] : memref<1x1152xbf16, #tpu.memory_space<vmem>>, vector<1x128xbf16>
    tpu.vector_store %arg5[%c0_12, %c640], %10 {strides = array<i32>} : memref<1x1152xbf16, #tpu.memory_space<vmem>>, vector<1x128xbf16>,
    %c0_13 = arith.constant 0 : index
    %c1_14 = arith.constant 1 : index
    %c0_15 = arith.constant 0 : index
    %c0_16 = arith.constant 0 : index
    %12 = vector.load %arg1[%c0_13, %c1_14, %c0_15, %c0_16] : memref<1x2x2x512xbf16, #tpu.memory_space<vmem>>, vector<1x1x1x256xbf16>
    %13 = vector.shape_cast %12 : vector<1x1x1x256xbf16> to vector<1x1x256xbf16>
    %14 = vector.shape_cast %13 : vector<1x1x256xbf16> to vector<1x256xbf16>
    %c0_17 = arith.constant 0 : index
    %c768 = arith.constant 768 : index
    %15 = vector.load %arg5[%c0_17, %c768] : memref<1x1152xbf16, #tpu.memory_space<vmem>>, vector<1x256xbf16>
    tpu.vector_store %arg5[%c0_17, %c768], %14 {strides = array<i32>} : memref<1x1152xbf16, #tpu.memory_space<vmem>>, vector<1x256xbf16>,
    %c0_18 = arith.constant 0 : index
    %c1_19 = arith.constant 1 : index
    %c1_20 = arith.constant 1 : index
    %c0_21 = arith.constant 0 : index
    %16 = vector.load %arg1[%c0_18, %c1_19, %c1_20, %c0_21] : memref<1x2x2x512xbf16, #tpu.memory_space<vmem>>, vector<1x1x1x128xbf16>
    %17 = vector.shape_cast %16 : vector<1x1x1x128xbf16> to vector<1x1x128xbf16>
    %18 = vector.shape_cast %17 : vector<1x1x128xbf16> to vector<1x128xbf16>
    %c0_22 = arith.constant 0 : index
    %c1024 = arith.constant 1024 : index
    %19 = vector.load %arg5[%c0_22, %c1024] : memref<1x1152xbf16, #tpu.memory_space<vmem>>, vector<1x128xbf16>
    tpu.vector_store %arg5[%c0_22, %c1024], %18 {strides = array<i32>} : memref<1x1152xbf16, #tpu.memory_space<vmem>>, vector<1x128xbf16>,
    %c0_23 = arith.constant 0 : index
    %c0_24 = arith.constant 0 : index
    %20 = vector.load %arg5[%c0_23, %c0_24] : memref<1x1152xbf16, #tpu.memory_space<vmem>>, vector<1x1152xbf16>
    %c0_25 = arith.constant 0 : index
    %c0_26 = arith.constant 0 : index
    %21 = vector.load %arg2[%c0_25, %c0_26] : memref<1152x128xbf16, #tpu.memory_space<vmem>>, vector<1152x128xbf16>
    %cst = arith.constant dense<0.000000e+00> : vector<1x128xf32>
    %22 = tpu.matmul %20, %21, %cst {dimension_numbers = #tpu.dot_dimension_numbers<[1], [0], [0], [1], [0, 0, 1, 1], [], []>} : vector<1x1152xbf16>, vector<1152x128xbf16>, vector<1x128xf32> -> vector<1x128xf32>
    %c0_27 = arith.constant 0 : index
    %c0_28 = arith.constant 0 : index
    %23 = vector.load %arg3[%c0_27, %c0_28] : memref<2x128xf32, #tpu.memory_space<vmem>>, vector<1x128xf32>
    %24 = arith.addf %22, %23 : vector<1x128xf32>
    %cst_29 = arith.constant 0.000000e+00 : f32
    %25 = vector.broadcast %cst_29 : f32 to vector<1x128xf32>
    %26 = arith.cmpf oge, %24, %25 : vector<1x128xf32>
    %c1_30 = arith.constant 1 : index
    %c0_31 = arith.constant 0 : index
    %27 = vector.load %arg3[%c1_30, %c0_31] : memref<2x128xf32, #tpu.memory_space<vmem>>, vector<1x128xf32>
    %28 = arith.mulf %24, %27 : vector<1x128xf32>
    %29 = arith.select %26, %24, %28 : vector<1x128xi1>, vector<1x128xf32>
    %30 = arith.truncf %29 : vector<1x128xf32> to vector<1x128xbf16>
    %c0_32 = arith.constant 0 : index
    %c0_33 = arith.constant 0 : index
    %c0_34 = arith.constant 0 : index
    %31 = vector.load %arg4[%c0_32, %c0_33, %c0_34] : memref<1x1x128xbf16, #tpu.memory_space<vmem>>, vector<1x1x128xbf16>
    %32 = vector.shape_cast %31 : vector<1x1x128xbf16> to vector<1x128xbf16>
    %33 = vector.shape_cast %30 : vector<1x128xbf16> to vector<1x1x128xbf16>
    tpu.vector_store %arg4[%c0_32, %c0_33, %c0_34], %33 {strides = array<i32>} : memref<1x1x128xbf16, #tpu.memory_space<vmem>>, vector<1x1x128xbf16>,
    return
  }
  func.func @transform_0(%arg0: i32) -> (i32, i32, i32, i32) {
    %c0_i32 = arith.constant 0 : i32
    %c0_i32_0 = arith.constant 0 : i32
    %c0_i32_1 = arith.constant 0 : i32
    %c0_i32_2 = arith.constant 0 : i32
    return %arg0, %c0_i32, %c0_i32_0, %c0_i32_1 : i32, i32, i32, i32
  }
  func.func @transform_1(%arg0: i32) -> (i32, i32) {
    %c0_i32 = arith.constant 0 : i32
    %c0_i32_0 = arith.constant 0 : i32
    %c0_i32_1 = arith.constant 0 : i32
    return %c0_i32, %c0_i32_0 : i32, i32
  }
  func.func @transform_2(%arg0: i32) -> (i32, i32) {
    %c0_i32 = arith.constant 0 : i32
    %c0_i32_0 = arith.constant 0 : i32
    %c0_i32_1 = arith.constant 0 : i32
    return %c0_i32, %c0_i32_0 : i32, i32
  }
  func.func @transform_3(%arg0: i32) -> (i32, i32, i32) {
    %c0_i32 = arith.constant 0 : i32
    %c0_i32_0 = arith.constant 0 : i32
    %c0_i32_1 = arith.constant 0 : i32
    return %arg0, %c0_i32, %c0_i32_0 : i32, i32, i32
  }
}

module attributes {stable_mosaic.version = 11 : i64} {
  func.func @kernel(%arg0: i32, %arg1: memref<1x3x3x128xbf16, #tpu.memory_space<vmem>>, %arg2: memref<1152x128xbf16, #tpu.memory_space<vmem>>, %arg3: memref<2x128xf32, #tpu.memory_space<vmem>>, %arg4: memref<1x1x128xbf16, #tpu.memory_space<vmem>>, %arg5: memref<1x1152xbf16, #tpu.memory_space<vmem>>) attributes {dimension_semantics = [#tpu.dimension_semantics<parallel>], iteration_bounds = array<i64: 2>, scalar_prefetch = 0 : i64, scratch_operands = 1 : i64, tpu.core_type = #tpu.core_type<tc>, window_params = [{transform_indices = @transform_0, window_bounds = array<i64: 1, 3, 3, 128>}, {pipeline_mode = #tpu.pipeline_mode<synchronous>, transform_indices = @transform_1, window_bounds = array<i64: 1152, 128>}, {pipeline_mode = #tpu.pipeline_mode<synchronous>, transform_indices = @transform_2, window_bounds = array<i64: 2, 128>}, {transform_indices = @transform_3, window_bounds = array<i64: 1, 1, 128>}]} {
    %c0 = arith.constant 0 : index
    %c0_0 = arith.constant 0 : index
    %c0_1 = arith.constant 0 : index
    %c0_2 = arith.constant 0 : index
    %0 = vector.load %arg1[%c0, %c0_0, %c0_1, %c0_2] : memref<1x3x3x128xbf16, #tpu.memory_space<vmem>>, vector<1x1x1x128xbf16>
    %1 = vector.shape_cast %0 : vector<1x1x1x128xbf16> to vector<1x1x128xbf16>
    %2 = vector.shape_cast %1 : vector<1x1x128xbf16> to vector<1x128xbf16>
    %c0_3 = arith.constant 0 : index
    %c0_4 = arith.constant 0 : index
    %3 = vector.load %arg5[%c0_3, %c0_4] : memref<1x1152xbf16, #tpu.memory_space<vmem>>, vector<1x128xbf16>
    tpu.vector_store %arg5[%c0_3, %c0_4], %2 {strides = array<i32>} : memref<1x1152xbf16, #tpu.memory_space<vmem>>, vector<1x128xbf16>,
    %c0_5 = arith.constant 0 : index
    %c0_6 = arith.constant 0 : index
    %c1 = arith.constant 1 : index
    %c0_7 = arith.constant 0 : index
    %4 = vector.load %arg1[%c0_5, %c0_6, %c1, %c0_7] : memref<1x3x3x128xbf16, #tpu.memory_space<vmem>>, vector<1x1x1x128xbf16>
    %5 = vector.shape_cast %4 : vector<1x1x1x128xbf16> to vector<1x1x128xbf16>
    %6 = vector.shape_cast %5 : vector<1x1x128xbf16> to vector<1x128xbf16>
    %c0_8 = arith.constant 0 : index
    %c128 = arith.constant 128 : index
    %7 = vector.load %arg5[%c0_8, %c128] : memref<1x1152xbf16, #tpu.memory_space<vmem>>, vector<1x128xbf16>
    tpu.vector_store %arg5[%c0_8, %c128], %6 {strides = array<i32>} : memref<1x1152xbf16, #tpu.memory_space<vmem>>, vector<1x128xbf16>,
    %c0_9 = arith.constant 0 : index
    %c0_10 = arith.constant 0 : index
    %c2 = arith.constant 2 : index
    %c0_11 = arith.constant 0 : index
    %8 = vector.load %arg1[%c0_9, %c0_10, %c2, %c0_11] : memref<1x3x3x128xbf16, #tpu.memory_space<vmem>>, vector<1x1x1x128xbf16>
    %9 = vector.shape_cast %8 : vector<1x1x1x128xbf16> to vector<1x1x128xbf16>
    %10 = vector.shape_cast %9 : vector<1x1x128xbf16> to vector<1x128xbf16>
    %c0_12 = arith.constant 0 : index
    %c256 = arith.constant 256 : index
    %11 = vector.load %arg5[%c0_12, %c256] : memref<1x1152xbf16, #tpu.memory_space<vmem>>, vector<1x128xbf16>
    tpu.vector_store %arg5[%c0_12, %c256], %10 {strides = array<i32>} : memref<1x1152xbf16, #tpu.memory_space<vmem>>, vector<1x128xbf16>,
    %c0_13 = arith.constant 0 : index
    %c1_14 = arith.constant 1 : index
    %c0_15 = arith.constant 0 : index
    %c0_16 = arith.constant 0 : index
    %12 = vector.load %arg1[%c0_13, %c1_14, %c0_15, %c0_16] : memref<1x3x3x128xbf16, #tpu.memory_space<vmem>>, vector<1x1x1x128xbf16>
    %13 = vector.shape_cast %12 : vector<1x1x1x128xbf16> to vector<1x1x128xbf16>
    %14 = vector.shape_cast %13 : vector<1x1x128xbf16> to vector<1x128xbf16>
    %c0_17 = arith.constant 0 : index
    %c384 = arith.constant 384 : index
    %15 = vector.load %arg5[%c0_17, %c384] : memref<1x1152xbf16, #tpu.memory_space<vmem>>, vector<1x128xbf16>
    tpu.vector_store %arg5[%c0_17, %c384], %14 {strides = array<i32>} : memref<1x1152xbf16, #tpu.memory_space<vmem>>, vector<1x128xbf16>,
    %c0_18 = arith.constant 0 : index
    %c1_19 = arith.constant 1 : index
    %c1_20 = arith.constant 1 : index
    %c0_21 = arith.constant 0 : index
    %16 = vector.load %arg1[%c0_18, %c1_19, %c1_20, %c0_21] : memref<1x3x3x128xbf16, #tpu.memory_space<vmem>>, vector<1x1x1x128xbf16>
    %17 = vector.shape_cast %16 : vector<1x1x1x128xbf16> to vector<1x1x128xbf16>
    %18 = vector.shape_cast %17 : vector<1x1x128xbf16> to vector<1x128xbf16>
    %c0_22 = arith.constant 0 : index
    %c512 = arith.constant 512 : index
    %19 = vector.load %arg5[%c0_22, %c512] : memref<1x1152xbf16, #tpu.memory_space<vmem>>, vector<1x128xbf16>
    tpu.vector_store %arg5[%c0_22, %c512], %18 {strides = array<i32>} : memref<1x1152xbf16, #tpu.memory_space<vmem>>, vector<1x128xbf16>,
    %c0_23 = arith.constant 0 : index
    %c1_24 = arith.constant 1 : index
    %c2_25 = arith.constant 2 : index
    %c0_26 = arith.constant 0 : index
    %20 = vector.load %arg1[%c0_23, %c1_24, %c2_25, %c0_26] : memref<1x3x3x128xbf16, #tpu.memory_space<vmem>>, vector<1x1x1x128xbf16>
    %21 = vector.shape_cast %20 : vector<1x1x1x128xbf16> to vector<1x1x128xbf16>
    %22 = vector.shape_cast %21 : vector<1x1x128xbf16> to vector<1x128xbf16>
    %c0_27 = arith.constant 0 : index
    %c640 = arith.constant 640 : index
    %23 = vector.load %arg5[%c0_27, %c640] : memref<1x1152xbf16, #tpu.memory_space<vmem>>, vector<1x128xbf16>
    tpu.vector_store %arg5[%c0_27, %c640], %22 {strides = array<i32>} : memref<1x1152xbf16, #tpu.memory_space<vmem>>, vector<1x128xbf16>,
    %c0_28 = arith.constant 0 : index
    %c2_29 = arith.constant 2 : index
    %c0_30 = arith.constant 0 : index
    %c0_31 = arith.constant 0 : index
    %24 = vector.load %arg1[%c0_28, %c2_29, %c0_30, %c0_31] : memref<1x3x3x128xbf16, #tpu.memory_space<vmem>>, vector<1x1x1x128xbf16>
    %25 = vector.shape_cast %24 : vector<1x1x1x128xbf16> to vector<1x1x128xbf16>
    %26 = vector.shape_cast %25 : vector<1x1x128xbf16> to vector<1x128xbf16>
    %c0_32 = arith.constant 0 : index
    %c768 = arith.constant 768 : index
    %27 = vector.load %arg5[%c0_32, %c768] : memref<1x1152xbf16, #tpu.memory_space<vmem>>, vector<1x128xbf16>
    tpu.vector_store %arg5[%c0_32, %c768], %26 {strides = array<i32>} : memref<1x1152xbf16, #tpu.memory_space<vmem>>, vector<1x128xbf16>,
    %c0_33 = arith.constant 0 : index
    %c2_34 = arith.constant 2 : index
    %c1_35 = arith.constant 1 : index
    %c0_36 = arith.constant 0 : index
    %28 = vector.load %arg1[%c0_33, %c2_34, %c1_35, %c0_36] : memref<1x3x3x128xbf16, #tpu.memory_space<vmem>>, vector<1x1x1x128xbf16>
    %29 = vector.shape_cast %28 : vector<1x1x1x128xbf16> to vector<1x1x128xbf16>
    %30 = vector.shape_cast %29 : vector<1x1x128xbf16> to vector<1x128xbf16>
    %c0_37 = arith.constant 0 : index
    %c896 = arith.constant 896 : index
    %31 = vector.load %arg5[%c0_37, %c896] : memref<1x1152xbf16, #tpu.memory_space<vmem>>, vector<1x128xbf16>
    tpu.vector_store %arg5[%c0_37, %c896], %30 {strides = array<i32>} : memref<1x1152xbf16, #tpu.memory_space<vmem>>, vector<1x128xbf16>,
    %c0_38 = arith.constant 0 : index
    %c2_39 = arith.constant 2 : index
    %c2_40 = arith.constant 2 : index
    %c0_41 = arith.constant 0 : index
    %32 = vector.load %arg1[%c0_38, %c2_39, %c2_40, %c0_41] : memref<1x3x3x128xbf16, #tpu.memory_space<vmem>>, vector<1x1x1x128xbf16>
    %33 = vector.shape_cast %32 : vector<1x1x1x128xbf16> to vector<1x1x128xbf16>
    %34 = vector.shape_cast %33 : vector<1x1x128xbf16> to vector<1x128xbf16>
    %c0_42 = arith.constant 0 : index
    %c1024 = arith.constant 1024 : index
    %35 = vector.load %arg5[%c0_42, %c1024] : memref<1x1152xbf16, #tpu.memory_space<vmem>>, vector<1x128xbf16>
    tpu.vector_store %arg5[%c0_42, %c1024], %34 {strides = array<i32>} : memref<1x1152xbf16, #tpu.memory_space<vmem>>, vector<1x128xbf16>,
    %c0_43 = arith.constant 0 : index
    %c0_44 = arith.constant 0 : index
    %36 = vector.load %arg5[%c0_43, %c0_44] : memref<1x1152xbf16, #tpu.memory_space<vmem>>, vector<1x1152xbf16>
    %c0_45 = arith.constant 0 : index
    %c0_46 = arith.constant 0 : index
    %37 = vector.load %arg2[%c0_45, %c0_46] : memref<1152x128xbf16, #tpu.memory_space<vmem>>, vector<1152x128xbf16>
    %cst = arith.constant dense<0.000000e+00> : vector<1x128xf32>
    %38 = tpu.matmul %36, %37, %cst {dimension_numbers = #tpu.dot_dimension_numbers<[1], [0], [0], [1], [0, 0, 1, 1], [], []>} : vector<1x1152xbf16>, vector<1152x128xbf16>, vector<1x128xf32> -> vector<1x128xf32>
    %c0_47 = arith.constant 0 : index
    %c0_48 = arith.constant 0 : index
    %39 = vector.load %arg3[%c0_47, %c0_48] : memref<2x128xf32, #tpu.memory_space<vmem>>, vector<1x128xf32>
    %40 = arith.addf %38, %39 : vector<1x128xf32>
    %cst_49 = arith.constant 0.000000e+00 : f32
    %41 = vector.broadcast %cst_49 : f32 to vector<1x128xf32>
    %42 = arith.cmpf oge, %40, %41 : vector<1x128xf32>
    %c1_50 = arith.constant 1 : index
    %c0_51 = arith.constant 0 : index
    %43 = vector.load %arg3[%c1_50, %c0_51] : memref<2x128xf32, #tpu.memory_space<vmem>>, vector<1x128xf32>
    %44 = arith.mulf %40, %43 : vector<1x128xf32>
    %45 = arith.select %42, %40, %44 : vector<1x128xi1>, vector<1x128xf32>
    %46 = arith.truncf %45 : vector<1x128xf32> to vector<1x128xbf16>
    %c0_52 = arith.constant 0 : index
    %c0_53 = arith.constant 0 : index
    %c0_54 = arith.constant 0 : index
    %47 = vector.load %arg4[%c0_52, %c0_53, %c0_54] : memref<1x1x128xbf16, #tpu.memory_space<vmem>>, vector<1x1x128xbf16>
    %48 = vector.shape_cast %47 : vector<1x1x128xbf16> to vector<1x128xbf16>
    %49 = vector.shape_cast %46 : vector<1x128xbf16> to vector<1x1x128xbf16>
    tpu.vector_store %arg4[%c0_52, %c0_53, %c0_54], %49 {strides = array<i32>} : memref<1x1x128xbf16, #tpu.memory_space<vmem>>, vector<1x1x128xbf16>,
    return
  }
  func.func @transform_0(%arg0: i32) -> (i32, i32, i32, i32) {
    %c0_i32 = arith.constant 0 : i32
    %c0_i32_0 = arith.constant 0 : i32
    %c0_i32_1 = arith.constant 0 : i32
    %c0_i32_2 = arith.constant 0 : i32
    return %arg0, %c0_i32, %c0_i32_0, %c0_i32_1 : i32, i32, i32, i32
  }
  func.func @transform_1(%arg0: i32) -> (i32, i32) {
    %c0_i32 = arith.constant 0 : i32
    %c0_i32_0 = arith.constant 0 : i32
    %c0_i32_1 = arith.constant 0 : i32
    return %c0_i32, %c0_i32_0 : i32, i32
  }
  func.func @transform_2(%arg0: i32) -> (i32, i32) {
    %c0_i32 = arith.constant 0 : i32
    %c0_i32_0 = arith.constant 0 : i32
    %c0_i32_1 = arith.constant 0 : i32
    return %c0_i32, %c0_i32_0 : i32, i32
  }
  func.func @transform_3(%arg0: i32) -> (i32, i32, i32) {
    %c0_i32 = arith.constant 0 : i32
    %c0_i32_0 = arith.constant 0 : i32
    %c0_i32_1 = arith.constant 0 : i32
    return %arg0, %c0_i32, %c0_i32_0 : i32, i32, i32
  }
}

</mosaic_0001>

<bundles_post_ra>
// kernel: encoder_forward.8
= control target key start
LH: loop header
LB: loop body
LE: loop exit
PB: predicated region body
PF: predicated region fallthrough
CT: control target
= control target key end

     0   :  { %8 = vsyncpa [#allocation4], 0  ;;  %s1480_s12 = smov 0   ;;  %s1624_s0 = inlined_call_operand.vmem [shape: bf16[2,9,9,128], index: 0, kind: input, shape index: {}]   ;;  %s1625_s1 = inlined_call_operand.hbm [shape: bf16[512,128], index: 1, kind: input, shape index: {}]   ;;  %s1626_s2 = inlined_call_operand.vmem [shape: f32[2,128], index: 2, kind: input, shape index: {}]   ;;  %s1627_s3 = inlined_call_operand.vmem [shape: bf16[2,64,128], index: 3, kind: output, shape index: {}]  }
   0x1 LB: > { %s124_s15 = sshll.u32 %s1625_s1, 4  ;;  %s1091_s16 = sadd.s32 4294967295, %s1455_s12   ;;  %s1455_s12 = sphi %s1480_s12, %s14_s12   ;;  %s125_s15 = int_to_ptr.hbm [resolvable:$true] %s124_s15 }
   0x2   : > { %p1093_p0 = scmp.ge.s32.totalorder %s1455_s12, 1  ;;  %p113_p1 = scmp.lt.s32.totalorder %s1455_s12, 3 }
   0x3   : > { %p1400_p2 = scmp.eq.s32.totalorder %s1091_s16, 0  ;;  %s1457_s17 = smov [#allocation3]  }
   0x4   : > { %p114_p3 = pnand %p1093_p0, %p113_p1  ;;  %s126_s18 = sshll.u32 %s1457_s17, 4  ;;  %s127_s18 = int_to_ptr.vmem [resolvable:$true] %s126_s18 }
   0x5   : > { %s1458_s19 = smov 64   ;;  %s1459_s20 = smov 4  }
   0x6   : > { %p1396_p4 = pneg %p114_p3  ;;  %153 = sbr.rel (%p114_p3) target bundleno = 244 (0xf4), region = 32 }
   0x8   : > { %p1397_p5 = pnand %p1400_p2, %p1396_p4 }
   0xa   : > { %1399 = dma.hbm_to_vmem [thread:$0]  (!%p1397_p5), %s125_s15, 4096, %s127_s18, [#allocation4], %s1458_s19, %s1458_s19, %s1459_s20  }
   0xb   : > { %1450 = dma.done.wait (%p1400_p2), [#allocation4], 4096  }
   0xc   : > { %1452 = vsyncadd (%p1400_p2), [#allocation4], 4294963200  ;;  %p178_p6 = scmp.lt.s32.totalorder %s1091_s16, 1  ;;  %v1343_v0 = vld [vmem:[#allocation3 + $0x38] sm:$0xff]  ;;  %v1342_v4 = vld [vmem:[#allocation3 + $0x30] sm:$0xff] }
   0xd   : > { %v1351_v1 = vld [vmem:[#allocation3 + $0x78] sm:$0xff]  ;;  %866 = vmatpush.bf16.msra.mxu0 %v1343_v0  ;;  %v1350_v5 = vld [vmem:[#allocation3 + $0x70] sm:$0xff]  ;;  %v1341_v8 = vld [vmem:[#allocation3 + $0x28] sm:$0xff]  ;;  %vm220_vm0 = vsmask.f32 3328 }
   0xe   : > { %v1359_v2 = vld [vmem:[#allocation3 + $0xb8] sm:$0xff]  ;;  %s1631_s16 = smov (!%p178_p6, %s1091_s16), 1  ;;  %895 = vmatpush.bf16.msra.mxu1 %v1351_v1  ;;  %v1358_v6 = vld [vmem:[#allocation3 + $0xb0] sm:$0xff]  ;;  %v1349_v9 = vld [vmem:[#allocation3 + $0x68] sm:$0xff]  ;;  %vm221_vm1 = vsmask.f32 7440 }
   0xf   : > { %v1367_v3 = vld [vmem:[#allocation3 + $0xf8] sm:$0xff]  ;;  %924 = vmatpush.bf16.msra.mxu2 %v1359_v2  ;;  %v1366_v7 = vld [vmem:[#allocation3 + $0xf0] sm:$0xff]  ;;  %s1391_s21 = smul.u32 72, %s1631_s16  ;;  %v1357_v10 = vld [vmem:[#allocation3 + $0xa8] sm:$0xff]  ;;  %s1319_s29 = sshll.u32 %s1631_s16, 5 }
  0x10   : > { %953 = vmatpush.bf16.msra.mxu3 %v1367_v3  ;;  %v1365_v11 = vld [vmem:[#allocation3 + $0xe8] sm:$0xff]  ;;  %v1340_v12 = vld [vmem:[#allocation3 + $0x20] sm:$0xff]  ;;  %v1339_v19 = vld [vmem:[#allocation3 + $0x18] sm:$0xff]  ;;  %s1604_s5 = scalar_lea.vmem %s1627_s3, %s1319_s29 }
  0x11   : > { %867 = vmatpush.bf16.msra.mxu0 %v1342_v4  ;;  %s1497_s24 = scalar_lea.vmem %s1624_s0, %s1391_s21  ;;  %v1348_v13 = vld [vmem:[#allocation3 + $0x60] sm:$0xff]  ;;  %v1347_v20 = vld [vmem:[#allocation3 + $0x58] sm:$0xff]  ;;  %v1338_v45 = vld [vmem:[#allocation3 + $0x10] sm:$0xff] }
  0x12   : > { %896 = vmatpush.bf16.msra.mxu1 %v1350_v5  ;;  %v1356_v14 = vld [vmem:[#allocation3 + $0xa0] sm:$0xff]  ;;  %v189_v17 = vld [vmem:[%s1497_s24 + $0x8] sm:$0xf]  ;;  %v1355_v23 = vld [vmem:[#allocation3 + $0x98] sm:$0xff] }
  0x13   : > { %925 = vmatpush.bf16.msra.mxu2 %v1358_v6  ;;  %v1364_v15 = vld [vmem:[#allocation3 + $0xe0] sm:$0xff]  ;;  %197 = vst [vmem:[#allocation2 + $0x10] sm:$0xf] %v189_v17  ;;  %v206_v22 = vld [vmem:[%s1497_s24 + $0x8] sm:$0xf]  ;;  %v1363_v24 = vld [vmem:[#allocation3 + $0xd8] sm:$0xff] }
  0x14   : > { %954 = vmatpush.bf16.msra.mxu3 %v1366_v7  ;;  %v188_v16 = vld [vmem:[%s1497_s24] sm:$0xf]  ;;  %v205_v21 = vld [vmem:[%s1497_s24 + $0x4] sm:$0x1]  ;;  %v207_v25 = vld [vmem:[%s1497_s24 + $0xc] sm:$0x1] }
  0x15   : > { %868 = vmatpush.bf16.msra.mxu0 %v1341_v8  ;;  %196 = vst [vmem:[#allocation2] sm:$0xf] %v188_v16  ;;  %v204_v18 = vld [vmem:[%s1497_s24] sm:$0xf]  ;;  %v233_v28 = vshll.u32 %v205_v21, 16  ;;  %v238_v29 = vshrl.u32 %v206_v22, 16  ;;  %vm1513_vm2 = vmor %vm220_vm0, %vm221_vm1 }
  0x16   : > { %897 = vmatpush.bf16.msra.mxu1 %v1349_v9  ;;  %v224_v26 = vshrl.u32 %v204_v18, 16  ;;  %v227_v27 = vshll.u32 %v204_v18, 16  ;;  %v241_v30 = vshll.u32 %v206_v22, 16  ;;  %v247_v31 = vshll.u32 %v207_v25, 16  ;;  %v1101_v32 = vld [vmem:[%s1497_s24 + $0x8] sm:$0xf] }
  0x17   : > { %926 = vmatpush.bf16.msra.mxu2 %v1357_v10  ;;  %v1102_v33 = vld [vmem:[%s1497_s24 + $0x10] sm:$0xf]  ;;  %v235_v36 = vrot.slane %v233_v28, 5  ;;  %v240_v37 = vrot.slane %v238_v29, 4  ;;  %360 = vst [vmem:[#allocation2 + $0x8] sm:$0xf] %v1101_v32 }
  0x18   : > { %955 = vmatpush.bf16.msra.mxu3 %v1365_v11  ;;  %v226_v34 = vrot.slane %v224_v26, 4  ;;  %v229_v35 = vrot.slane %v227_v27, 5  ;;  %v243_v38 = vrot.slane %v241_v30, 5  ;;  %v249_v39 = vrot.slane %v247_v31, 5  ;;  %361 = vst [vmem:[#allocation2 + $0x18] sm:$0xf] %v1102_v33 }
  0x19   : > { %869 = vmatpush.bf16.msra.mxu0 %v1340_v12  ;;  %v1109_v40 = vld [vmem:[%s1497_s24 + $0x8] sm:$0xf]  ;;  %v1110_v42 = vld [vmem:[%s1497_s24 + $0xc] sm:$0x1]  ;;  %v1111_v43 = vld [vmem:[%s1497_s24 + $0x10] sm:$0xf] }
  0x1a   : > { %898 = vmatpush.bf16.msra.mxu1 %v1348_v13  ;;  %v230_v41 = vor.u32 %v229_v35, %v226_v34  ;;  %v1112_v44 = vld [vmem:[%s1497_s24 + $0x14] sm:$0x1]  ;;  %v244_v48 = vor.u32 %v243_v38, %v240_v37  ;;  %v385_v49 = vshrl.u32 %v1109_v40, 16  ;;  %v388_v50 = vshll.u32 %v1109_v40, 16  ;;  %v1337_v61 = vld [vmem:[#allocation3 + $0x8] sm:$0xff]  ;;  %v1336_v12 = vld [vmem:[#allocation3] sm:$0xff] }
  0x1b   : > { %927 = vmatpush.bf16.msra.mxu2 %v1356_v14  ;;  %v1346_v46 = vld [vmem:[#allocation3 + $0x50] sm:$0xff]  ;;  %v394_v51 = vshll.u32 %v1110_v42, 16  ;;  %v399_v55 = vshrl.u32 %v1111_v43, 16  ;;  %v402_v56 = vshll.u32 %v1111_v43, 16  ;;  %v408_v57 = vshll.u32 %v1112_v44, 16  ;;  %v1345_v62 = vld [vmem:[#allocation3 + $0x48] sm:$0xff] }
  0x1c   : > { %956 = vmatpush.bf16.msra.mxu3 %v1364_v15  ;;  %v1354_v52 = vld [vmem:[#allocation3 + $0x90] sm:$0xff]  ;;  %v231_v54 = vrot.slane %v230_v41, 4  ;;  %v245_v58 = vrot.slane %v244_v48, 4  ;;  %v387_v59 = vrot.slane %v385_v49, 4  ;;  %v390_v60 = vrot.slane %v388_v50, 5  ;;  %v1353_v3 = vld [vmem:[#allocation3 + $0x88] sm:$0xff] }
  0x1d   : > { %870 = vmatpush.bf16.msra.mxu0 %v1339_v19  ;;  %v1362_v53 = vld [vmem:[#allocation3 + $0xd0] sm:$0xff]  ;;  %v401_v0 = vrot.slane %v399_v55, 4  ;;  %v404_v1 = vrot.slane %v402_v56, 5  ;;  %v396_v6 = vrot.slane %v394_v51, 5  ;;  %v191_v7 = vld [vmem:[%s1497_s24 + $0x18] sm:$0xf] }
  0x1e   : > { %899 = vmatpush.bf16.msra.mxu1 %v1347_v20  ;;  %v236_v63 = vsel %vm1513_vm2, %v231_v54, %v235_v36  ;;  %v190_v2 = vld [vmem:[%s1497_s24 + $0x10] sm:$0xf]  ;;  %v250_v4 = vsel %vm1513_vm2, %v245_v58, %v249_v39  ;;  %v391_v5 = vor.u32 %v390_v60, %v387_v59  ;;  %v1361_v8 = vld [vmem:[#allocation3 + $0xc8] sm:$0xff]  ;;  %v410_v10 = vrot.slane %v408_v57, 5  ;;  %v1344_v13 = vld [vmem:[#allocation3 + $0x40] sm:$0xff] }
  0x1f   : > { %928 = vmatpush.bf16.msra.mxu2 %v1355_v23  ;;  %343 = vst [vmem:[#allocation2 + $0x4] sm:$0xf] %v236_v63  ;;  %v405_v9 = vor.u32 %v404_v1, %v401_v0  ;;  %v208_v11 = vld [vmem:[%s1497_s24 + $0x10] sm:$0xf]  ;;  %v1127_v14 = vld [vmem:[#allocation2] sm:$0xf] }
  0x20   : > { %957 = vmatpush.bf16.msra.mxu3 %v1363_v24  ;;  %344 = vst [vmem:[#allocation2 + $0x14] sm:$0xf] %v250_v4  ;;  %v1322_v15 = vld [vmem:[#allocation2 + $0xc] sm:$0xf0]  ;;  %v392_v16 = vrot.slane %v391_v5, 4  ;;  %v252_v18 = vshrl.u32 %v208_v11, 16 }
  0x21   : > { %871 = vmatpush.bf16.msra.mxu0 %v1338_v45  ;;  %198 = vst [vmem:[#allocation2 + $0x20] sm:$0xf] %v190_v2  ;;  %v209_v17 = vld [vmem:[%s1497_s24 + $0x14] sm:$0x1]  ;;  %v1135_v19 = vld [vmem:[#allocation2 + $0x8] sm:$0xf]  ;;  %v1128_v38 = vor.u32 %v1322_v15, %v1127_v14 }
  0x22   : > { %900 = vmatpush.bf16.msra.mxu1 %v1346_v46  ;;  %v1323_v20 = vld [vmem:[#allocation2 + $0x14] sm:$0xf0]  ;;  %v406_v21 = vrot.slane %v405_v9, 4  ;;  %199 = vst [vmem:[#allocation2 + $0x30] sm:$0xf] %v191_v7  ;;  %v255_v23 = vshll.u32 %v208_v11, 16  ;;  %v397_v25 = vsel %vm1513_vm2, %v392_v16, %v396_v6 }
  0x23   : > { %929 = vmatpush.bf16.msra.mxu2 %v1354_v52  ;;  %v210_v22 = vld [vmem:[%s1497_s24 + $0x18] sm:$0xf]  ;;  %v1352_v24 = vld [vmem:[#allocation3 + $0x80] sm:$0xff]  ;;  %v211_v26 = vld [vmem:[%s1497_s24 + $0x1c] sm:$0x1]  ;;  %v254_v27 = vrot.slane %v252_v18, 4  ;;  %v1136_v45 = vor.u32 %v1323_v20, %v1135_v19 }
  0x24   : > { %958 = vmatpush.bf16.msra.mxu3 %v1362_v53  ;;  %v261_v28 = vshll.u32 %v209_v17, 16  ;;  %v266_v29 = vshrl.u32 %v210_v22, 16  ;;  %v1360_v30 = vld [vmem:[#allocation3 + $0xc0] sm:$0xff]  ;;  %v411_v31 = vsel %vm1513_vm2, %v406_v21, %v410_v10  ;;  %504 = vst [vmem:[#allocation2 + $0xc] sm:$0xf] %v397_v25  ;;  %v257_v32 = vrot.slane %v255_v23, 5 }
  0x25   : > { %872 = vmatpush.bf16.msra.mxu0 %v1337_v61  ;;  %v269_v33 = vshll.u32 %v210_v22, 16  ;;  %v275_v34 = vshll.u32 %v211_v26, 16  ;;  %505 = vst [vmem:[#allocation2 + $0x1c] sm:$0xf] %v411_v31  ;;  %v1103_v37 = vld [vmem:[%s1497_s24 + $0x18] sm:$0xf] }
  0x26   : > { %901 = vmatpush.bf16.msra.mxu1 %v1345_v62  ;;  %v263_v35 = vrot.slane %v261_v28, 5  ;;  %v268_v36 = vrot.slane %v266_v29, 4  ;;  %v1320_v39 = vld [vmem:[#allocation2 + $0x4] sm:$0xf]  ;;  %v258_v40 = vor.u32 %v257_v32, %v254_v27  ;;  %v1104_v43 = vld [vmem:[%s1497_s24 + $0x20] sm:$0xf] }
  0x27   : > { %930 = vmatpush.bf16.msra.mxu2 %v1353_v3  ;;  %v271_v41 = vrot.slane %v269_v33, 5  ;;  %v277_v42 = vrot.slane %v275_v34, 5  ;;  %v1129_v44 = vld [vmem:[#allocation2 + $0x10] sm:$0xf0]  ;;  %362 = vst [vmem:[#allocation2 + $0x28] sm:$0xf] %v1103_v37 }
  0x28   : > { %959 = vmatpush.bf16.msra.mxu3 %v1361_v8  ;;  %v1113_v46 = vld [vmem:[%s1497_s24 + $0x18] sm:$0xf]  ;;  %v1132_v48 = vor.u32 %v1320_v39, %v1129_v44  ;;  %v259_v49 = vrot.slane %v258_v40, 4  ;;  %363 = vst [vmem:[#allocation2 + $0x38] sm:$0xf] %v1104_v43 }
  0x29   : > { %873 = vmatpush.bf16.msra.mxu0 %v1336_v12  ;;  %v272_v50 = vor.u32 %v271_v41, %v268_v36  ;;  %v413_v51 = vshrl.u32 %v1113_v46, 16  ;;  %v1114_v52 = vld [vmem:[%s1497_s24 + $0x1c] sm:$0x1]  ;;  %v1115_v53 = vld [vmem:[%s1497_s24 + $0x20] sm:$0xf]  ;;  %v416_v60 = vshll.u32 %v1113_v46, 16 }
  0x2a   : > { %902 = vmatpush.bf16.msra.mxu1 %v1344_v13  ;;  %v264_v54 = vsel %vm1513_vm2, %v259_v49, %v263_v35  ;;  %v1116_v56 = vld [vmem:[%s1497_s24 + $0x24] sm:$0x1]  ;;  %v192_v58 = vld [vmem:[%s1497_s24 + $0x20] sm:$0xf]  ;;  %v422_v61 = vshll.u32 %v1114_v52, 16  ;;  %v427_v0 = vshrl.u32 %v1115_v53, 16 }
  0x2b   : > { %931 = vmatpush.bf16.msra.mxu2 %v1352_v24  ;;  %v273_v55 = vrot.slane %v272_v50, 4  ;;  %v415_v57 = vrot.slane %v413_v51, 4  ;;  %v1321_v59 = vld [vmem:[#allocation2 + $0xc] sm:$0xf]  ;;  %345 = vst [vmem:[#allocation2 + $0x24] sm:$0xf] %v264_v54 }
  0x2c   : > { %960 = vmatpush.bf16.msra.mxu3 %v1360_v30  ;;  %874 = vmatmul.bf16.vlgmr.msra.gmra.mxu0 %v1128_v38  ;;  %v1137_v62 = vld [vmem:[#allocation2 + $0x18] sm:$0xf0]  ;;  %v430_v1 = vshll.u32 %v1115_v53, 16  ;;  %v436_v2 = vshll.u32 %v1116_v56, 16  ;;  %v418_v4 = vrot.slane %v416_v60, 5  ;;  %v429_v6 = vrot.slane %v427_v0, 4 }
  0x2d   : > { %903 = vmatmul.bf16.vlgmr.msra.gmra.mxu1 %v1132_v48  ;;  %v278_v63 = vsel %vm1513_vm2, %v273_v55, %v277_v42  ;;  %v1140_v3 = vor.u32 %v1321_v59, %v1137_v62  ;;  %v193_v5 = vld [vmem:[%s1497_s24 + $0x28] sm:$0xf]  ;;  %v424_v9 = vrot.slane %v422_v61, 5  ;;  %200 = vst [vmem:[#allocation2 + $0x40] sm:$0xf] %v192_v58 }
  0x2e   : > { %932 = vmatmul.bf16.vlgmr.msra.gmra.mxu2 %v1136_v45  ;;  %346 = vst [vmem:[#allocation2 + $0x34] sm:$0xf] %v278_v63  ;;  %v432_v7 = vrot.slane %v430_v1, 5  ;;  %v419_v8 = vor.u32 %v418_v4, %v415_v57  ;;  %v438_v10 = vrot.slane %v436_v2, 5  ;;  %v212_v11 = vld [vmem:[%s1497_s24 + $0x20] sm:$0xf] }
  0x2f   : > { %961 = vmatmul.bf16.vlgmr.msra.gmra.mxu3 %v1140_v3  ;;  %201 = vst [vmem:[#allocation2 + $0x50] sm:$0xf] %v193_v5  ;;  %v213_v13 = vld [vmem:[%s1497_s24 + $0x24] sm:$0x1]  ;;  %v214_v14 = vld [vmem:[%s1497_s24 + $0x28] sm:$0xf] }
  0x30   : > { %v433_v12 = vor.u32 %v432_v7, %v429_v6  ;;  %v1143_v15 = vld [vmem:[#allocation2 + $0x20] sm:$0xf]  ;;  %v1326_v16 = vld [vmem:[#allocation2 + $0x2c] sm:$0xf0]  ;;  %v420_v17 = vrot.slane %v419_v8, 4  ;;  %v280_v19 = vshrl.u32 %v212_v11, 16 }
  0x31   : > { %v215_v18 = vld [vmem:[%s1497_s24 + $0x2c] sm:$0x1]  ;;  %v283_v20 = vshll.u32 %v212_v11, 16  ;;  %v289_v21 = vshll.u32 %v213_v13, 16  ;;  %v1151_v22 = vld [vmem:[#allocation2 + $0x28] sm:$0xf]  ;;  %v1144_v40 = vor.u32 %v1326_v16, %v1143_v15 }
  0x32   : > { %v1327_v23 = vld [vmem:[#allocation2 + $0x34] sm:$0xf0]  ;;  %v434_v24 = vrot.slane %v433_v12, 4  ;;  %v294_v25 = vshrl.u32 %v214_v14, 16  ;;  %v297_v26 = vshll.u32 %v214_v14, 16  ;;  %v303_v27 = vshll.u32 %v215_v18, 16 }
  0x33   : > { %v1324_v28 = vld [vmem:[#allocation2 + $0x24] sm:$0xf]  ;;  %v425_v29 = vsel %vm1513_vm2, %v420_v17, %v424_v9  ;;  %v282_v30 = vrot.slane %v280_v19, 4  ;;  %v285_v31 = vrot.slane %v283_v20, 5  ;;  %v1105_v32 = vld [vmem:[%s1497_s24 + $0x28] sm:$0xf]  ;;  %v1152_v45 = vor.u32 %v1327_v23, %v1151_v22 }
  0x34   : > { %v439_v34 = vsel %vm1513_vm2, %v434_v24, %v438_v10  ;;  %506 = vst [vmem:[#allocation2 + $0x2c] sm:$0xf] %v425_v29  ;;  %v296_v35 = vrot.slane %v294_v25, 4  ;;  %v299_v36 = vrot.slane %v297_v26, 5  ;;  %v291_v38 = vrot.slane %v289_v21, 5 }
  0x35   : > { %v1145_v33 = vld [vmem:[#allocation2 + $0x30] sm:$0xf0]  ;;  %507 = vst [vmem:[#allocation2 + $0x3c] sm:$0xf] %v439_v34  ;;  %v286_v37 = vor.u32 %v285_v31, %v282_v30  ;;  %v1106_v39 = vld [vmem:[%s1497_s24 + $0x30] sm:$0xf] }
  0x36   : > { %v1148_v41 = vor.u32 %v1324_v28, %v1145_v33  ;;  %v300_v42 = vor.u32 %v299_v36, %v296_v35  ;;  %v305_v43 = vrot.slane %v303_v27, 5  ;;  %364 = vst [vmem:[#allocation2 + $0x48] sm:$0xf] %v1105_v32  ;;  %v1117_v44 = vld [vmem:[%s1497_s24 + $0x28] sm:$0xf] }
  0x37   : > { %v287_v46 = vrot.slane %v286_v37, 4  ;;  %365 = vst [vmem:[#allocation2 + $0x58] sm:$0xf] %v1106_v39  ;;  %v441_v48 = vshrl.u32 %v1117_v44, 16  ;;  %v1118_v50 = vld [vmem:[%s1497_s24 + $0x2c] sm:$0x1] }
  0x38   : > { %v301_v49 = vrot.slane %v300_v42, 4  ;;  %v1119_v51 = vld [vmem:[%s1497_s24 + $0x30] sm:$0xf]  ;;  %v444_v52 = vshll.u32 %v1117_v44, 16  ;;  %v1120_v54 = vld [vmem:[%s1497_s24 + $0x34] sm:$0x1] }
  0x39   : > { %v292_v53 = vsel %vm1513_vm2, %v287_v46, %v291_v38  ;;  %v443_v55 = vrot.slane %v441_v48, 4  ;;  %v450_v56 = vshll.u32 %v1118_v50, 16  ;;  %v455_v57 = vshrl.u32 %v1119_v51, 16  ;;  %v194_v4 = vld [vmem:[%s1497_s24 + $0x30] sm:$0xf] }
  0x3a   : > { %v306_v58 = vsel %vm1513_vm2, %v301_v49, %v305_v43  ;;  %347 = vst [vmem:[#allocation2 + $0x44] sm:$0xf] %v292_v53  ;;  %v446_v59 = vrot.slane %v444_v52, 5  ;;  %v458_v60 = vshll.u32 %v1119_v51, 16  ;;  %v464_v61 = vshll.u32 %v1120_v54, 16 }
  0x3b   : > { %v1325_v62 = vld [vmem:[#allocation2 + $0x2c] sm:$0xf]  ;;  %348 = vst [vmem:[#allocation2 + $0x54] sm:$0xf] %v306_v58  ;;  %v457_v63 = vrot.slane %v455_v57, 4  ;;  %v452_v2 = vrot.slane %v450_v56, 5 }
  0x3c   : > { %879 = vmatmul.bf16.gmra.mxu0 %v1144_v40  ;;  %v1153_v0 = vld [vmem:[#allocation2 + $0x38] sm:$0xf0]  ;;  %v447_v1 = vor.u32 %v446_v59, %v443_v55  ;;  %v460_v3 = vrot.slane %v458_v60, 5  ;;  %v195_v6 = vld [vmem:[%s1497_s24 + $0x38] sm:$0xf]  ;;  %v466_v9 = vrot.slane %v464_v61, 5 }
  0x3d   : > { %908 = vmatmul.bf16.gmra.mxu1 %v1148_v41  ;;  %v1156_v5 = vor.u32 %v1325_v62, %v1153_v0  ;;  %202 = vst [vmem:[#allocation2 + $0x60] sm:$0xf] %v194_v4  ;;  %v216_v10 = vld [vmem:[%s1497_s24 + $0x30] sm:$0xf]  ;;  %v217_v11 = vld [vmem:[%s1497_s24 + $0x34] sm:$0x1] }
  0x3e   : > { %937 = vmatmul.bf16.gmra.mxu2 %v1152_v45  ;;  %v448_v7 = vrot.slane %v447_v1, 4  ;;  %v461_v8 = vor.u32 %v460_v3, %v457_v63  ;;  %203 = vst [vmem:[#allocation2 + $0x70] sm:$0xf] %v195_v6  ;;  %v218_v12 = vld [vmem:[%s1497_s24 + $0x38] sm:$0xf]  ;;  %v308_v17 = vshrl.u32 %v216_v10, 16 }
  0x3f   : > { %966 = vmatmul.bf16.gmra.mxu3 %v1156_v5  ;;  %v1159_v13 = vld [vmem:[#allocation2 + $0x40] sm:$0xf]  ;;  %v219_v16 = vld [vmem:[%s1497_s24 + $0x3c] sm:$0x1]  ;;  %v311_v18 = vshll.u32 %v216_v10, 16  ;;  %v317_v20 = vshll.u32 %v217_v11, 16 }
  0x40   : > { %v453_v14 = vsel %vm1513_vm2, %v448_v7, %v452_v2  ;;  %v462_v15 = vrot.slane %v461_v8, 4  ;;  %v1330_v19 = vld [vmem:[#allocation2 + $0x4c] sm:$0xf0]  ;;  %v322_v21 = vshrl.u32 %v218_v12, 16  ;;  %v1167_v23 = vld [vmem:[#allocation2 + $0x48] sm:$0xf] }
  0x41   : > { %508 = vst [vmem:[#allocation2 + $0x4c] sm:$0xf] %v453_v14  ;;  %v1328_v22 = vld [vmem:[#allocation2 + $0x44] sm:$0xf]  ;;  %v310_v25 = vrot.slane %v308_v17, 4  ;;  %v313_v26 = vrot.slane %v311_v18, 5  ;;  %v1160_v36 = vor.u32 %v1330_v19, %v1159_v13 }
  0x42   : > { %v467_v24 = vsel %vm1513_vm2, %v462_v15, %v466_v9  ;;  %v325_v27 = vshll.u32 %v218_v12, 16  ;;  %v1161_v28 = vld [vmem:[#allocation2 + $0x50] sm:$0xf0]  ;;  %v324_v29 = vrot.slane %v322_v21, 4  ;;  %v331_v30 = vshll.u32 %v219_v16, 16 }
  0x43   : > { %509 = vst [vmem:[#allocation2 + $0x5c] sm:$0xf] %v467_v24  ;;  %v1331_v31 = vld [vmem:[#allocation2 + $0x54] sm:$0xf0]  ;;  %v314_v32 = vor.u32 %v313_v26, %v310_v25  ;;  %v319_v33 = vrot.slane %v317_v20, 5  ;;  %v1164_v38 = vor.u32 %v1328_v22, %v1161_v28 }
  0x44   : > { %v327_v34 = vrot.slane %v325_v27, 5  ;;  %v1107_v35 = vld [vmem:[%s1497_s24 + $0x38] sm:$0xf]  ;;  %v1108_v37 = vld [vmem:[%s1497_s24 + $0x40] sm:$0xf]  ;;  %v333_v41 = vrot.slane %v331_v30, 5  ;;  %v1168_v43 = vor.u32 %v1331_v31, %v1167_v23 }
  0x45   : > { %v315_v39 = vrot.slane %v314_v32, 4  ;;  %366 = vst [vmem:[#allocation2 + $0x68] sm:$0xf] %v1107_v35  ;;  %v1121_v42 = vld [vmem:[%s1497_s24 + $0x38] sm:$0xf] }
  0x46   : > { %v328_v40 = vor.u32 %v327_v34, %v324_v29  ;;  %367 = vst [vmem:[#allocation2 + $0x78] sm:$0xf] %v1108_v37  ;;  %v1122_v44 = vld [vmem:[%s1497_s24 + $0x3c] sm:$0x1]  ;;  %v1123_v45 = vld [vmem:[%s1497_s24 + $0x40] sm:$0xf] }
  0x47   : > { %v320_v48 = vsel %vm1513_vm2, %v315_v39, %v319_v33  ;;  %v1124_v50 = vld [vmem:[%s1497_s24 + $0x44] sm:$0x1]  ;;  %v469_v51 = vshrl.u32 %v1121_v42, 16  ;;  %v472_v52 = vshll.u32 %v1121_v42, 16  ;;  %v478_v53 = vshll.u32 %v1122_v44, 16 }
  0x48   : > { %v1329_v46 = vld [vmem:[#allocation2 + $0x4c] sm:$0xf]  ;;  %v329_v49 = vrot.slane %v328_v40, 4  ;;  %349 = vst [vmem:[#allocation2 + $0x64] sm:$0xf] %v320_v48  ;;  %v483_v54 = vshrl.u32 %v1123_v45, 16 }
  0x49   : > { %v486_v55 = vshll.u32 %v1123_v45, 16  ;;  %v471_v58 = vrot.slane %v469_v51, 4  ;;  %v492_v59 = vshll.u32 %v1124_v50, 16  ;;  %v474_v61 = vrot.slane %v472_v52, 5  ;;  %v1175_v7 = vld [vmem:[#allocation2 + $0x60] sm:$0xf] }
  0x4a   : > { %v1169_v56 = vld [vmem:[#allocation2 + $0x58] sm:$0xf0]  ;;  %v334_v57 = vsel %vm1513_vm2, %v329_v49, %v333_v41  ;;  %v485_v62 = vrot.slane %v483_v54, 4  ;;  %v480_v1 = vrot.slane %v478_v53, 5  ;;  %v1334_v8 = vld [vmem:[#allocation2 + $0x6c] sm:$0xf0] }
  0x4b   : > { %v1172_v60 = vor.u32 %v1329_v46, %v1169_v56  ;;  %350 = vst [vmem:[#allocation2 + $0x74] sm:$0xf] %v334_v57  ;;  %v488_v63 = vrot.slane %v486_v55, 5  ;;  %v475_v0 = vor.u32 %v474_v61, %v471_v58  ;;  %v494_v3 = vrot.slane %v492_v59, 5  ;;  %v1588_v47 = vld [vmem:[%s1626_s2] ss:$0 sm:$0xff] }
  0x4c   : > { %884 = vmatmul.bf16.gmra.mxu0 %v1160_v36  ;;  %v1183_v12 = vld [vmem:[#allocation2 + $0x68] sm:$0xf]  ;;  %v1176_v14 = vor.u32 %v1334_v8, %v1175_v7  ;;  %v1595_v33 = vld [vmem:[%s1626_s2 + $0x1] ss:$0 sm:$0xff] }
  0x4d   : > { %913 = vmatmul.bf16.gmra.mxu1 %v1164_v38  ;;  %v489_v2 = vor.u32 %v488_v63, %v485_v62  ;;  %v476_v4 = vrot.slane %v475_v0, 4  ;;  %v1335_v13 = vld [vmem:[#allocation2 + $0x74] sm:$0xf0] }
  0x4e   : > { %942 = vmatmul.bf16.gmra.mxu2 %v1168_v43  ;;  %v1184_v16 = vor.u32 %v1335_v13, %v1183_v12 }
  0x4f   : > { %971 = vmatmul.bf16.gmra.mxu3 %v1172_v60  ;;  %v490_v5 = vrot.slane %v489_v2, 4  ;;  %v481_v6 = vsel %vm1513_vm2, %v476_v4, %v480_v1  ;;  %v1332_v10 = vld [vmem:[#allocation2 + $0x64] sm:$0xf] }
  0x50   : > { %510 = vst [vmem:[#allocation2 + $0x6c] sm:$0xf] %v481_v6 }
  0x51   : > { %v495_v9 = vsel %vm1513_vm2, %v490_v5, %v494_v3 }
  0x52   : > { %v1177_v11 = vld [vmem:[#allocation2 + $0x70] sm:$0xf0]  ;;  %511 = vst [vmem:[#allocation2 + $0x7c] sm:$0xf] %v495_v9 }
  0x53   : > { %v1180_v15 = vor.u32 %v1332_v10, %v1177_v11 }
  0x57   : > { %v1333_v17 = vld [vmem:[#allocation2 + $0x6c] sm:$0xf] }
  0x59   : > { %v1185_v18 = vld [vmem:[#allocation2 + $0x78] sm:$0xf0] }
  0x5a   : > { %v1188_v19 = vor.u32 %v1333_v17, %v1185_v18 }
  0x5c   : > { %889 = vmatmul.bf16.gmra.mxu0 %v1176_v14 }
  0x5d   : > { %918 = vmatmul.bf16.gmra.mxu1 %v1180_v15 }
  0x5e   : > { %947 = vmatmul.bf16.gmra.mxu2 %v1184_v16 }
  0x5f   : > { %976 = vmatmul.bf16.gmra.mxu3 %v1188_v19 }
  0xa9   : > { %v875_v20 = vpop.f32.mrf.mxu0 }
  0xaa   : > { %v904_v21 = vpop.f32.mrf.mxu1  ;;  %v876_v22 = vadd.f32 %v1588_v47, %v875_v20 }
  0xac   : > { %v905_v24 = vadd.f32 %v904_v21, %v876_v22 }
  0xb1   : > { %v933_v23 = vpop.f32.mrf.mxu2  ;;  %v877_v25 = vpop.f32.mrf.mxu0 }
  0xb2   : > { %v906_v26 = vpop.f32.mrf.mxu1  ;;  %v878_v27 = vadd.f32 %v1588_v47, %v877_v25  ;;  %v962_v28 = vpop.f32.mrf.mxu3  ;;  %v934_v29 = vadd.f32 %v933_v23, %v905_v24 }
  0xb4   : > { %v907_v30 = vadd.f32 %v906_v26, %v878_v27  ;;  %v963_v32 = vadd.f32 %v962_v28, %v934_v29 }
  0xb6   : > { %v992_v38 = vmul.f32 %v1595_v33, %v963_v32  ;;  %vm982_vm3 = vcmp.ge.f32.partialorder %v963_v32, 0.0 }
  0xb8   : > { %v1000_v43 = vsel %vm982_vm3, %v963_v32, %v992_v38 }
  0xb9   : > { %v935_v31 = vpop.f32.mrf.mxu2  ;;  %v880_v35 = vpop.f32.mrf.mxu0 }
  0xba   : > { %v936_v34 = vadd.f32 %v935_v31, %v907_v30  ;;  %v909_v36 = vpop.f32.mrf.mxu1  ;;  %v964_v37 = vpop.f32.mrf.mxu3  ;;  %v881_v40 = vadd.f32 %v1588_v47, %v880_v35 }
  0xbc   : > { %v965_v39 = vadd.f32 %v964_v37, %v936_v34  ;;  %v910_v45 = vadd.f32 %v909_v36, %v881_v40 }
  0xbe   : > { %vm983_vm4 = vcmp.ge.f32.partialorder %v965_v39, 0.0  ;;  %v993_v41 = vmul.f32 %v1595_v33, %v965_v39 }
  0xc0   : > { %v1001_v44 = vsel %vm983_vm4, %v965_v39, %v993_v41 }
  0xc1   : > { %v938_v42 = vpop.f32.mrf.mxu2  ;;  %v882_v46 = vpop.f32.mrf.mxu0  ;;  %v1371_v49 = vpack.c.bf16 %v1001_v44, %v1000_v43 }
  0xc2   : > { %v911_v48 = vpop.f32.mrf.mxu1  ;;  %v883_v50 = vadd.f32 %v1588_v47, %v882_v46  ;;  %v967_v51 = vpop.f32.mrf.mxu3  ;;  %v939_v52 = vadd.f32 %v938_v42, %v910_v45 }
  0xc3   : > { %1372 = vst [vmem:[%s1604_s5] sm:$0xff] %v1371_v49  }
  0xc4   : > { %v912_v53 = vadd.f32 %v911_v48, %v883_v50  ;;  %v968_v55 = vadd.f32 %v967_v51, %v939_v52 }
  0xc6   : > { %v994_v60 = vmul.f32 %v1595_v33, %v968_v55  ;;  %vm984_vm5 = vcmp.ge.f32.partialorder %v968_v55, 0.0 }
  0xc8   : > { %v1002_v1 = vsel %vm984_vm5, %v968_v55, %v994_v60 }
  0xc9   : > { %v940_v54 = vpop.f32.mrf.mxu2  ;;  %v885_v57 = vpop.f32.mrf.mxu0 }
  0xca   : > { %v941_v56 = vadd.f32 %v940_v54, %v912_v53  ;;  %v914_v58 = vpop.f32.mrf.mxu1  ;;  %v969_v59 = vpop.f32.mrf.mxu3  ;;  %v886_v62 = vadd.f32 %v1588_v47, %v885_v57 }
  0xcc   : > { %v970_v61 = vadd.f32 %v969_v59, %v941_v56  ;;  %v915_v3 = vadd.f32 %v914_v58, %v886_v62 }
  0xce   : > { %vm985_vm6 = vcmp.ge.f32.partialorder %v970_v61, 0.0  ;;  %v995_v63 = vmul.f32 %v1595_v33, %v970_v61 }
  0xd0   : > { %v1003_v2 = vsel %vm985_vm6, %v970_v61, %v995_v63 }
  0xd1   : > { %v943_v0 = vpop.f32.mrf.mxu2  ;;  %v887_v4 = vpop.f32.mrf.mxu0  ;;  %v1376_v5 = vpack.c.bf16 %v1003_v2, %v1002_v1 }
  0xd2   : > { %v916_v6 = vpop.f32.mrf.mxu1  ;;  %v888_v7 = vadd.f32 %v1588_v47, %v887_v4  ;;  %v972_v8 = vpop.f32.mrf.mxu3  ;;  %v944_v9 = vadd.f32 %v943_v0, %v915_v3 }
  0xd3   : > { %1388 = vst [vmem:[%s1604_s5 + $0x8] sm:$0xff] %v1376_v5  }
  0xd4   : > { %v917_v10 = vadd.f32 %v916_v6, %v888_v7  ;;  %v973_v12 = vadd.f32 %v972_v8, %v944_v9 }
  0xd6   : > { %v996_v17 = vmul.f32 %v1595_v33, %v973_v12  ;;  %vm986_vm7 = vcmp.ge.f32.partialorder %v973_v12, 0.0 }
  0xd8   : > { %v1004_v22 = vsel %vm986_vm7, %v973_v12, %v996_v17 }
  0xd9   : > { %v945_v11 = vpop.f32.mrf.mxu2  ;;  %v890_v14 = vpop.f32.mrf.mxu0 }
  0xda   : > { %v946_v13 = vadd.f32 %v945_v11, %v917_v10  ;;  %v974_v15 = vpop.f32.mrf.mxu3  ;;  %v919_v16 = vpop.f32.mrf.mxu1  ;;  %v891_v19 = vadd.f32 %v1588_v47, %v890_v14 }
  0xdc   : > { %v975_v18 = vadd.f32 %v974_v15, %v946_v13  ;;  %v920_v24 = vadd.f32 %v919_v16, %v891_v19 }
  0xde   : > { %vm987_vm8 = vcmp.ge.f32.partialorder %v975_v18, 0.0  ;;  %v997_v20 = vmul.f32 %v1595_v33, %v975_v18 }
  0xe0   : > { %v1005_v23 = vsel %vm987_vm8, %v975_v18, %v997_v20 }
  0xe1   : > { %v948_v21 = vpop.f32.mrf.mxu2  ;;  %v892_v25 = vpop.f32.mrf.mxu0  ;;  %v1381_v26 = vpack.c.bf16 %v1005_v23, %v1004_v22 }
  0xe2   : > { %v893_v27 = vadd.f32 %v1588_v47, %v892_v25  ;;  %v977_v28 = vpop.f32.mrf.mxu3  ;;  %v949_v29 = vadd.f32 %v948_v21, %v920_v24  ;;  %v921_v30 = vpop.f32.mrf.mxu1 }
  0xe3   : > { %1389 = vst [vmem:[%s1604_s5 + $0x10] sm:$0xff] %v1381_v26  }
  0xe4   : > { %v922_v31 = vadd.f32 %v921_v30, %v893_v27  ;;  %v978_v34 = vadd.f32 %v977_v28, %v949_v29 }
  0xe6   : > { %v998_v37 = vmul.f32 %v1595_v33, %v978_v34  ;;  %vm988_vm9 = vcmp.ge.f32.partialorder %v978_v34, 0.0 }
  0xe8   : > { %v1006_v40 = vsel %vm988_vm9, %v978_v34, %v998_v37 }
  0xe9   : > { %v950_v32 = vpop.f32.mrf.mxu2 }
  0xea   : > { %v951_v35 = vadd.f32 %v950_v32, %v922_v31  ;;  %v979_v36 = vpop.f32.mrf.mxu3 }
  0xec   : > { %v980_v38 = vadd.f32 %v979_v36, %v951_v35 }
  0xee   : > { %vm989_vm10 = vcmp.ge.f32.partialorder %v980_v38, 0.0  ;;  %v999_v39 = vmul.f32 %v1595_v33, %v980_v38 }
  0xf0   : > { %v1007_v41 = vsel %vm989_vm10, %v980_v38, %v999_v39 }
  0xf1   : > { %v1386_v47 = vpack.c.bf16 %v1007_v41, %v1006_v40 }
  0xf3   : > { %1390 = vst [vmem:[%s1604_s5 + $0x18] sm:$0xff] %v1386_v47  }
  0xf4 PF: > { %s14_s12 = sadd.s32 1, %s1455_s12  }
  0xf5   : > { %p11_p7 = scmp.ge.s32.totalorder %s14_s12, 4  }
  0xf7   :  { %13 = sbr.rel (!%p11_p7) target bundleno = 1 (0x1), region = 68 }
  0xfc   :  { %1045 = vsyncpa [#allocation4], 1 }
  0xfd   :  { %1047 = vsyncpa [#allocation4 + $0x1], 1 }

// kernel: encoder_forward.9
= control target key start
LH: loop header
LB: loop body
LE: loop exit
PB: predicated region body
PF: predicated region fallthrough
CT: control target
= control target key end

     0   :  { %s2792_s12 = smov 0   ;;  %s3353_s0 = inlined_call_operand.vmem [shape: bf16[2,10,10,128], index: 0, kind: input, shape index: {}]   ;;  %s3354_s1 = inlined_call_operand.vmem [shape: bf16[1152,128], index: 1, kind: input, shape index: {}]   ;;  %s3355_s2 = inlined_call_operand.vmem [shape: f32[2,128], index: 2, kind: input, shape index: {}]   ;;  %s3356_s3 = inlined_call_operand.vmem [shape: bf16[2,64,128], index: 3, kind: output, shape index: {}]  }
   0x1 LB: > { %s2059_s13 = sadd.s32 4294967295, %s2770_s12   ;;  %p2063_p0 = scmp.ge.s32.totalorder %s2770_s12, 1  ;;  %s2770_s12 = sphi %s2792_s12, %s13_s12  }
   0x2   : > { %p137_p1 = scmp.lt.s32.totalorder %s2770_s12, 3 }
   0x4   : > { %p138_p2 = pnand %p2063_p0, %p137_p1 }
   0x5   : > { %p161_p3 = scmp.lt.s32.totalorder (!%p138_p2), %s2059_s13, 1 }
   0x6   : > { %141 = sbr.rel (%p138_p2) target bundleno = 335 (0x14f), region = 32 }
   0xb   : > { %v2649_v0 = vld [vmem:[%s3354_s1 + $0x38] sm:$0xff]  ;;  %v2648_v2 = vld [vmem:[%s3354_s1 + $0x30] sm:$0xff]  ;;  %s3362_s13 = smov (!%p161_p3, %s2059_s13), 1  ;;  %v2647_v6 = vld [vmem:[%s3354_s1 + $0x28] sm:$0xff]  ;;  %vm366_vm0 = vcmask 1042432   ;;  %vm367_vm1 = vcmask 1046532  }
   0xc   : > { %v2665_v1 = vld [vmem:[%s3354_s1 + $0xb8] sm:$0xff]  ;;  %2737 = vmatpush.bf16.msra.mxu1 %v2649_v0  ;;  %1701 = vmatpush.bf16.msra.mxu0 %v2649_v0  ;;  %v2664_v3 = vld [vmem:[%s3354_s1 + $0xb0] sm:$0xff]  ;;  %s2753_s24 = smul.u32 80, %s3362_s13  ;;  %v2663_v7 = vld [vmem:[%s3354_s1 + $0xa8] sm:$0xff]  ;;  %vm203_vm3 = vsmask.f32 3328 }
   0xd   : > { %1759 = vmatpush.bf16.msra.mxu2 %v2665_v1  ;;  %v2673_v4 = vld [vmem:[%s3354_s1 + $0xf8] sm:$0xff]  ;;  %v2672_v5 = vld [vmem:[%s3354_s1 + $0xf0] sm:$0xff]  ;;  %v2646_v12 = vld [vmem:[%s3354_s1 + $0x20] sm:$0xff]  ;;  %vm204_vm4 = vsmask.f32 7440  ;;  %s2605_s20 = sshll.u32 %s3362_s13, 5 }
   0xe   : > { %1788 = vmatpush.bf16.msra.mxu3 %v2673_v4  ;;  %s2827_s4 = scalar_lea.vmem %s3353_s0, %s2753_s24  ;;  %v2662_v13 = vld [vmem:[%s3354_s1 + $0xa0] sm:$0xff]  ;;  %v2671_v14 = vld [vmem:[%s3354_s1 + $0xe8] sm:$0xff]  ;;  %vm2851_vm2 = vmor %vm366_vm0, %vm367_vm1  ;;  %s3329_s23 = scalar_lea.vmem %s3356_s3, %s2605_s20 }
   0xf   : > { %v175_v8 = vld [vmem:[%s2827_s4 + $0x20] sm:$0xf]  ;;  %v176_v9 = vld [vmem:[%s2827_s4 + $0x28] sm:$0xf]  ;;  %v335_v16 = vld [vmem:[%s2827_s4 + $0x4] sm:$0x1] }
  0x10   : > { %2738 = vmatpush.bf16.msra.mxu1 %v2648_v2  ;;  %1702 = vmatpush.bf16.msra.mxu0 %v2648_v2  ;;  %183 = vst [vmem:[#allocation2 + $0x90] sm:$0xf] %v175_v8  ;;  %v171_v10 = vld [vmem:[%s2827_s4] sm:$0xf]  ;;  %v172_v11 = vld [vmem:[%s2827_s4 + $0x8] sm:$0xf]  ;;  %vm2947_vm5 = vmor %vm203_vm3, %vm204_vm4 }
  0x11   : > { %1760 = vmatpush.bf16.msra.mxu2 %v2664_v3  ;;  %184 = vst [vmem:[#allocation2 + $0xb4] sm:$0xf] %v176_v9  ;;  %v334_v15 = vld [vmem:[%s2827_s4] sm:$0xe]  ;;  %v336_v17 = vld [vmem:[%s2827_s4 + $0x8] sm:$0xe] }
  0x12   : > { %1789 = vmatpush.bf16.msra.mxu3 %v2672_v5  ;;  %179 = vst [vmem:[#allocation2] sm:$0xf] %v171_v10  ;;  %v337_v18 = vld [vmem:[%s2827_s4 + $0xc] sm:$0x1]  ;;  %v2067_v20 = vrot.slane %v334_v15, 9  ;;  %v371_v21 = vrot.slane %v335_v16, 5 }
  0x13   : > { %180 = vst [vmem:[#allocation2 + $0x24] sm:$0xf] %v172_v11  ;;  %v2068_v22 = vrot.slane %v336_v17, 9  ;;  %v375_v23 = vrot.slane %v337_v18, 5  ;;  %v2670_v24 = vld [vmem:[%s3354_s1 + $0xe0] sm:$0xff]  ;;  %v2645_v25 = vld [vmem:[%s3354_s1 + $0x18] sm:$0xff] }
  0x14   : > { %2739 = vmatpush.bf16.msra.mxu1 %v2647_v6  ;;  %1703 = vmatpush.bf16.msra.mxu0 %v2647_v6  ;;  %v372_v26 = vsel %vm2851_vm2, %v2067_v20, %v371_v21  ;;  %v177_v28 = vld [vmem:[%s2827_s4 + $0x30] sm:$0xf]  ;;  %v2661_v29 = vld [vmem:[%s3354_s1 + $0x98] sm:$0xff]  ;;  %v2075_v36 = vld [vmem:[%s2827_s4 + $0x8] sm:$0xf] }
  0x15   : > { %1761 = vmatpush.bf16.msra.mxu2 %v2663_v7  ;;  %v376_v27 = vsel %vm2851_vm2, %v2068_v22, %v375_v23  ;;  %409 = vst [vmem:[#allocation2 + $0x8] sm:$0xf] %v372_v26  ;;  %v178_v30 = vld [vmem:[%s2827_s4 + $0x38] sm:$0xf]  ;;  %v173_v31 = vld [vmem:[%s2827_s4 + $0x10] sm:$0xf] }
  0x16   : > { %1790 = vmatpush.bf16.msra.mxu3 %v2671_v14  ;;  %410 = vst [vmem:[#allocation2 + $0x2c] sm:$0xf] %v376_v27  ;;  %v2669_v32 = vld [vmem:[%s3354_s1 + $0xd8] sm:$0xff]  ;;  %v2644_v34 = vld [vmem:[%s3354_s1 + $0x10] sm:$0xff]  ;;  %v2643_v42 = vld [vmem:[%s3354_s1 + $0x8] sm:$0xff] }
  0x17   : > { %185 = vst [vmem:[#allocation2 + $0xd8] sm:$0xf] %v177_v28  ;;  %v174_v33 = vld [vmem:[%s2827_s4 + $0x18] sm:$0xf]  ;;  %v2660_v35 = vld [vmem:[%s3354_s1 + $0x90] sm:$0xff]  ;;  %v2659_v44 = vld [vmem:[%s3354_s1 + $0x88] sm:$0xff] }
  0x18   : > { %2740 = vmatpush.bf16.msra.mxu1 %v2646_v12  ;;  %1704 = vmatpush.bf16.msra.mxu0 %v2646_v12  ;;  %186 = vst [vmem:[#allocation2 + $0xfc] sm:$0xf] %v178_v30  ;;  %v2076_v37 = vld [vmem:[%s2827_s4 + $0x10] sm:$0xf]  ;;  %v339_v40 = vld [vmem:[%s2827_s4 + $0x14] sm:$0x1] }
  0x19   : > { %1762 = vmatpush.bf16.msra.mxu2 %v2662_v13  ;;  %181 = vst [vmem:[#allocation2 + $0x48] sm:$0xf] %v173_v31  ;;  %v2668_v38 = vld [vmem:[%s3354_s1 + $0xd0] sm:$0xff]  ;;  %v340_v41 = vld [vmem:[%s2827_s4 + $0x18] sm:$0xe]  ;;  %v379_v46 = vrot.slane %v339_v40, 5 }
  0x1a   : > { %1791 = vmatpush.bf16.msra.mxu3 %v2670_v24  ;;  %182 = vst [vmem:[#allocation2 + $0x6c] sm:$0xf] %v174_v33  ;;  %v338_v39 = vld [vmem:[%s2827_s4 + $0x10] sm:$0xe]  ;;  %v341_v43 = vld [vmem:[%s2827_s4 + $0x1c] sm:$0x1] }
  0x1b   : > { %426 = vst [vmem:[#allocation2 + $0xc] sm:$0xf] %v2075_v36  ;;  %v2069_v45 = vrot.slane %v338_v39, 9  ;;  %v2070_v47 = vrot.slane %v340_v41, 9  ;;  %v383_v48 = vrot.slane %v341_v43, 5  ;;  %v2642_v49 = vld [vmem:[%s3354_s1] sm:$0xff] }
  0x1c   : > { %2741 = vmatpush.bf16.msra.mxu1 %v2645_v25  ;;  %1705 = vmatpush.bf16.msra.mxu0 %v2645_v25  ;;  %427 = vst [vmem:[#allocation2 + $0x30] sm:$0xf] %v2076_v37  ;;  %v2245_v50 = vld [vmem:[#allocation2 + $0x90] sm:$0xf]  ;;  %v2628_v51 = vld [vmem:[#allocation2 + $0xb0] sm:$0xf0] }
  0x1d   : > { %1763 = vmatpush.bf16.msra.mxu2 %v2661_v29  ;;  %v2667_v52 = vld [vmem:[%s3354_s1 + $0xc8] sm:$0xff]  ;;  %v2657_v53 = vld [vmem:[%s3354_s1 + $0x78] sm:$0xff]  ;;  %v2658_v54 = vld [vmem:[%s3354_s1 + $0x80] sm:$0xff]  ;;  %v380_v58 = vsel %vm2851_vm2, %v2069_v45, %v379_v46  ;;  %v384_v59 = vsel %vm2851_vm2, %v2070_v47, %v383_v48  ;;  %v2246_v1 = vor.u32 %v2628_v51, %v2245_v50 }
  0x1e   : > { %1792 = vmatpush.bf16.msra.mxu3 %v2669_v32  ;;  %v2173_v55 = vld [vmem:[#allocation2] sm:$0xf]  ;;  %v2610_v56 = vld [vmem:[#allocation2 + $0x20] sm:$0xf0]  ;;  %v2181_v57 = vld [vmem:[#allocation2 + $0x8] sm:$0xf] }
  0x1f   : > { %v2681_v60 = vld [vmem:[%s3354_s1 + $0x138] sm:$0xff]  ;;  %v2611_v61 = vld [vmem:[#allocation2 + $0x28] sm:$0xf0]  ;;  %411 = vst [vmem:[#allocation2 + $0x50] sm:$0xf] %v380_v58  ;;  %v2656_v5 = vld [vmem:[%s3354_s1 + $0x70] sm:$0xff]  ;;  %v2174_v6 = vor.u32 %v2610_v56, %v2173_v55 }
  0x20   : > { %2742 = vmatpush.bf16.msra.mxu1 %v2644_v34  ;;  %1706 = vmatpush.bf16.msra.mxu0 %v2644_v34  ;;  %v2697_v62 = vld [vmem:[%s3354_s1 + $0x1b8] sm:$0xff]  ;;  %v187_v63 = vld [vmem:[%s2827_s4] sm:$0xf]  ;;  %412 = vst [vmem:[#allocation2 + $0x74] sm:$0xf] %v384_v59  ;;  %v2182_v10 = vor.u32 %v2611_v61, %v2181_v57  ;;  %v2680_v22 = vld [vmem:[%s3354_s1 + $0x130] sm:$0xff] }
  0x21   : > { %1764 = vmatpush.bf16.msra.mxu2 %v2660_v35  ;;  %v188_v0 = vld [vmem:[%s2827_s4 + $0x4] sm:$0x1]  ;;  %v189_v3 = vld [vmem:[%s2827_s4 + $0x8] sm:$0xf]  ;;  %v190_v4 = vld [vmem:[%s2827_s4 + $0xc] sm:$0x1] }
  0x22   : > { %1793 = vmatpush.bf16.msra.mxu3 %v2668_v38  ;;  %v2607_v2 = vld [vmem:[#allocation2 + $0xc] sm:$0xf]  ;;  %v207_v8 = vshrl.u32 %v187_v63, 16  ;;  %v210_v9 = vshll.u32 %v187_v63, 16  ;;  %v2666_v11 = vld [vmem:[%s3354_s1 + $0xc0] sm:$0xff]  ;;  %v216_v12 = vshll.u32 %v188_v0, 16 }
  0x23   : > { %v2183_v7 = vld [vmem:[#allocation2 + $0x2c] sm:$0xf0]  ;;  %v221_v13 = vshrl.u32 %v189_v3, 16  ;;  %v224_v14 = vshll.u32 %v189_v3, 16  ;;  %v2077_v15 = vld [vmem:[%s2827_s4 + $0x18] sm:$0xf] }
  0x24   : > { %2743 = vmatpush.bf16.msra.mxu1 %v2643_v42  ;;  %1707 = vmatpush.bf16.msra.mxu0 %v2643_v42  ;;  %v2705_v16 = vld [vmem:[%s3354_s1 + $0x1f8] sm:$0xff]  ;;  %v209_v17 = vrot.slane %v207_v8, 4  ;;  %v212_v18 = vrot.slane %v210_v9, 5  ;;  %v230_v20 = vshll.u32 %v190_v4, 16  ;;  %v2078_v21 = vld [vmem:[%s2827_s4 + $0x20] sm:$0xf]  ;;  %v2186_v27 = vor.u32 %v2607_v2, %v2183_v7 }
  0x25   : > { %1765 = vmatpush.bf16.msra.mxu2 %v2659_v44  ;;  %v2696_v23 = vld [vmem:[%s3354_s1 + $0x1b0] sm:$0xff]  ;;  %v223_v24 = vrot.slane %v221_v13, 4  ;;  %v226_v25 = vrot.slane %v224_v14, 5  ;;  %428 = vst [vmem:[#allocation2 + $0x54] sm:$0xf] %v2077_v15  ;;  %v2655_v26 = vld [vmem:[%s3354_s1 + $0x68] sm:$0xff] }
  0x26   : > { %1794 = vmatpush.bf16.msra.mxu3 %v2667_v52  ;;  %v213_v28 = vor.u32 %v212_v18, %v209_v17  ;;  %v218_v29 = vrot.slane %v216_v12, 5  ;;  %v2679_v30 = vld [vmem:[%s3354_s1 + $0x128] sm:$0xff]  ;;  %v232_v33 = vrot.slane %v230_v20, 5  ;;  %429 = vst [vmem:[#allocation2 + $0x78] sm:$0xf] %v2078_v21  ;;  %v2704_v38 = vld [vmem:[%s3354_s1 + $0x1f0] sm:$0xff] }
  0x27   : > { %v227_v32 = vor.u32 %v226_v25, %v223_v24  ;;  %v2695_v34 = vld [vmem:[%s3354_s1 + $0x1a8] sm:$0xff]  ;;  %v2085_v40 = vld [vmem:[%s2827_s4 + $0x10] sm:$0xf]  ;;  %v2086_v41 = vld [vmem:[%s2827_s4 + $0x14] sm:$0x1] }
  0x28   : > { %2744 = vmatpush.bf16.msra.mxu1 %v2642_v49  ;;  %1708 = vmatpush.bf16.msra.mxu0 %v2642_v49  ;;  %v214_v35 = vrot.slane %v213_v28, 4  ;;  %v2083_v36 = vld [vmem:[%s2827_s4 + $0x8] sm:$0xf]  ;;  %v2084_v37 = vld [vmem:[%s2827_s4 + $0xc] sm:$0x1]  ;;  %v2654_v43 = vld [vmem:[%s3354_s1 + $0x60] sm:$0xff] }
  0x29   : > { %1766 = vmatpush.bf16.msra.mxu2 %v2658_v54  ;;  %v228_v39 = vrot.slane %v227_v32, 4  ;;  %v451_v42 = vshrl.u32 %v2083_v36, 16  ;;  %v454_v45 = vshll.u32 %v2083_v36, 16  ;;  %v460_v46 = vshll.u32 %v2084_v37, 16  ;;  %v342_v48 = vld [vmem:[%s2827_s4 + $0x20] sm:$0xe] }
  0x2a   : > { %1795 = vmatpush.bf16.msra.mxu3 %v2666_v11  ;;  %v219_v44 = vsel %vm2947_vm5, %v214_v35, %v218_v29  ;;  %v465_v47 = vshrl.u32 %v2085_v40, 16  ;;  %v2967_v49 = vld [vmem:[#allocation2 + $0xd8] sm:$0xf]  ;;  %v2969_v50 = vld [vmem:[#allocation2 + $0xf8] sm:$0xf0]  ;;  %v2678_v51 = vld [vmem:[%s3354_s1 + $0x120] sm:$0xff] }
  0x2b   : > { %1719 = vmatmul.bf16.vlgmr.msra.gmra.mxu1 %v2246_v1  ;;  %1709 = vmatmul.bf16.vlgmr.msra.gmra.mxu0 %v2174_v6  ;;  %v2974_v52 = vld [vmem:[#allocation2 + $0x48] sm:$0xf]  ;;  %326 = vst [vmem:[#allocation2 + $0x4] sm:$0xf] %v219_v44  ;;  %v453_v54 = vrot.slane %v451_v42, 4  ;;  %v468_v55 = vshll.u32 %v2085_v40, 16  ;;  %v2282_v13 = vor.u32 %v2969_v50, %v2967_v49 }
  0x2c   : > { %1730 = vmatpush.bf16.msrb.mxu1 %v2657_v53  ;;  %1817 = vmatpush.bf16.msrb.mxu0 %v2681_v60  ;;  %v233_v53 = vsel %vm2947_vm5, %v228_v39, %v232_v33  ;;  %v474_v56 = vshll.u32 %v2086_v41, 16  ;;  %v2978_v57 = vld [vmem:[#allocation2 + $0x68] sm:$0xf0]  ;;  %v456_v58 = vrot.slane %v454_v45, 5  ;;  %v467_v60 = vrot.slane %v465_v47, 4  ;;  %v2694_v0 = vld [vmem:[%s3354_s1 + $0x1a0] sm:$0xff] }
  0x2d   : > { %1875 = vmatpush.bf16.msrb.mxu2 %v2697_v62  ;;  %1796 = vmatmul.bf16.vlgmr.msra.gmra.mxu3 %v2186_v27  ;;  %327 = vst [vmem:[#allocation2 + $0x28] sm:$0xf] %v233_v53  ;;  %v2703_v59 = vld [vmem:[%s3354_s1 + $0x1e8] sm:$0xff]  ;;  %v470_v61 = vrot.slane %v468_v55, 5  ;;  %v343_v62 = vld [vmem:[%s2827_s4 + $0x24] sm:$0x1]  ;;  %v2210_v14 = vor.u32 %v2978_v57, %v2974_v52 }
  0x2e   : > { %1767 = vmatmul.bf16.vlgmr.msra.gmra.mxu2 %v2182_v10  ;;  %1904 = vmatpush.bf16.msrb.mxu3 %v2705_v16  ;;  %v2071_v63 = vrot.slane %v342_v48, 9  ;;  %v2653_v1 = vld [vmem:[%s3354_s1 + $0x58] sm:$0xff]  ;;  %v2217_v2 = vld [vmem:[#allocation2 + $0x50] sm:$0xf]  ;;  %v457_v3 = vor.u32 %v456_v58, %v453_v54  ;;  %v462_v4 = vrot.slane %v460_v46, 5  ;;  %v387_v9 = vrot.slane %v343_v62, 5 }
  0x2f   : > { %v344_v6 = vld [vmem:[%s2827_s4 + $0x28] sm:$0xe]  ;;  %v345_v7 = vld [vmem:[%s2827_s4 + $0x2c] sm:$0x1]  ;;  %v471_v8 = vor.u32 %v470_v61, %v467_v60  ;;  %v191_v11 = vld [vmem:[%s2827_s4 + $0x10] sm:$0xf] }
  0x30   : > { %1731 = vmatpush.bf16.msrb.mxu1 %v2656_v5  ;;  %1818 = vmatpush.bf16.msrb.mxu0 %v2680_v22  ;;  %v476_v5 = vrot.slane %v474_v56, 5  ;;  %v2072_v10 = vrot.slane %v344_v6, 9  ;;  %v192_v12 = vld [vmem:[%s2827_s4 + $0x14] sm:$0x1]  ;;  %v458_v16 = vrot.slane %v457_v3, 4  ;;  %v391_v17 = vrot.slane %v345_v7, 5 }
  0x31   : > { %1876 = vmatpush.bf16.msrb.mxu2 %v2696_v23  ;;  %v2620_v15 = vld [vmem:[#allocation2 + $0x70] sm:$0xf0]  ;;  %v193_v18 = vld [vmem:[%s2827_s4 + $0x18] sm:$0xf]  ;;  %v472_v23 = vrot.slane %v471_v8, 4  ;;  %v388_v24 = vsel %vm2851_vm2, %v2071_v63, %v387_v9  ;;  %v235_v25 = vshrl.u32 %v191_v11, 16 }
  0x32   : > { %1905 = vmatpush.bf16.msrb.mxu3 %v2704_v38  ;;  %v2677_v20 = vld [vmem:[%s3354_s1 + $0x118] sm:$0xff]  ;;  %v2616_v21 = vld [vmem:[#allocation2 + $0x54] sm:$0xf]  ;;  %v463_v27 = vsel %vm2947_vm5, %v458_v16, %v462_v4  ;;  %v392_v28 = vsel %vm2851_vm2, %v2072_v10, %v391_v17  ;;  %413 = vst [vmem:[#allocation2 + $0x98] sm:$0xf] %v388_v24  ;;  %v249_v32 = vshrl.u32 %v193_v18, 16  ;;  %v2218_v33 = vor.u32 %v2620_v15, %v2217_v2 }
  0x33   : > { %v2219_v22 = vld [vmem:[#allocation2 + $0x74] sm:$0xf0]  ;;  %v194_v29 = vld [vmem:[%s2827_s4 + $0x1c] sm:$0x1]  ;;  %570 = vst [vmem:[#allocation2 + $0x10] sm:$0xf] %v463_v27 }
  0x34   : > { %1732 = vmatpush.bf16.msrb.mxu1 %v2655_v26  ;;  %1819 = vmatpush.bf16.msrb.mxu0 %v2679_v30  ;;  %v238_v26 = vshll.u32 %v191_v11, 16  ;;  %v244_v30 = vshll.u32 %v192_v12, 16  ;;  %v237_v35 = vrot.slane %v235_v25, 4  ;;  %v2079_v37 = vld [vmem:[%s2827_s4 + $0x28] sm:$0xf]  ;;  %v2652_v38 = vld [vmem:[%s3354_s1 + $0x50] sm:$0xff]  ;;  %v2222_v46 = vor.u32 %v2616_v21, %v2219_v22 }
  0x35   : > { %1877 = vmatpush.bf16.msrb.mxu2 %v2695_v34  ;;  %v477_v34 = vsel %vm2947_vm5, %v472_v23, %v476_v5  ;;  %v2676_v39 = vld [vmem:[%s3354_s1 + $0x110] sm:$0xff]  ;;  %v251_v40 = vrot.slane %v249_v32, 4  ;;  %v252_v41 = vshll.u32 %v193_v18, 16  ;;  %414 = vst [vmem:[#allocation2 + $0xbc] sm:$0xf] %v392_v28  ;;  %v258_v44 = vshll.u32 %v194_v29, 16 }
  0x36   : > { %1906 = vmatpush.bf16.msrb.mxu3 %v2703_v59  ;;  %v240_v36 = vrot.slane %v238_v26, 5  ;;  %571 = vst [vmem:[#allocation2 + $0x34] sm:$0xf] %v477_v34  ;;  %v2080_v45 = vld [vmem:[%s2827_s4 + $0x30] sm:$0xf]  ;;  %v2693_v48 = vld [vmem:[%s3354_s1 + $0x198] sm:$0xff] }
  0x37   : > { %v254_v47 = vrot.slane %v252_v41, 5  ;;  %430 = vst [vmem:[#allocation2 + $0x9c] sm:$0xf] %v2079_v37  ;;  %v2702_v49 = vld [vmem:[%s3354_s1 + $0x1e0] sm:$0xff]  ;;  %v2651_v52 = vld [vmem:[%s3354_s1 + $0x48] sm:$0xff]  ;;  %v260_v54 = vrot.slane %v258_v44, 5 }
  0x38   : > { %1733 = vmatpush.bf16.msrb.mxu1 %v2654_v43  ;;  %1820 = vmatpush.bf16.msrb.mxu0 %v2678_v51  ;;  %v241_v42 = vor.u32 %v240_v36, %v237_v35  ;;  %v246_v43 = vrot.slane %v244_v30, 5  ;;  %431 = vst [vmem:[#allocation2 + $0xc0] sm:$0xf] %v2080_v45  ;;  %v2087_v51 = vld [vmem:[%s2827_s4 + $0x18] sm:$0xf]  ;;  %v2675_v57 = vld [vmem:[%s3354_s1 + $0x108] sm:$0xff] }
  0x39   : > { %1878 = vmatpush.bf16.msrb.mxu2 %v2694_v0  ;;  %v255_v53 = vor.u32 %v254_v47, %v251_v40  ;;  %v2088_v55 = vld [vmem:[%s2827_s4 + $0x1c] sm:$0x1]  ;;  %v2089_v56 = vld [vmem:[%s2827_s4 + $0x20] sm:$0xf]  ;;  %v2090_v59 = vld [vmem:[%s2827_s4 + $0x24] sm:$0x1] }
  0x3a   : > { %v242_v50 = vrot.slane %v241_v42, 4  ;;  %v479_v60 = vshrl.u32 %v2087_v51, 16  ;;  %v482_v61 = vshll.u32 %v2087_v51, 16  ;;  %v488_v62 = vshll.u32 %v2088_v55, 16  ;;  %1907 = vmatpush.bf16.msrb.mxu3 %v2702_v49  ;;  %v2650_v4 = vld [vmem:[%s3354_s1 + $0x40] sm:$0xff]  ;;  %v2689_v5 = vld [vmem:[%s3354_s1 + $0x178] sm:$0xff] }
  0x3b   : > { %1724 = vmatmul.bf16.gmra.mxu1 %v2282_v13  ;;  %1714 = vmatmul.bf16.gmra.mxu0 %v2210_v14  ;;  %v256_v63 = vrot.slane %v255_v53, 4  ;;  %v493_v0 = vshrl.u32 %v2089_v56, 16  ;;  %v496_v3 = vshll.u32 %v2089_v56, 16  ;;  %v502_v8 = vshll.u32 %v2090_v59, 16  ;;  %v346_v9 = vld [vmem:[%s2827_s4 + $0x30] sm:$0xe] }
  0x3c   : > { %1734 = vmatpush.bf16.msrb.mxu1 %v2653_v1  ;;  %1821 = vmatpush.bf16.msrb.mxu0 %v2677_v20  ;;  %v247_v58 = vsel %vm2947_vm5, %v242_v50, %v246_v43  ;;  %v481_v1 = vrot.slane %v479_v60, 4  ;;  %v484_v2 = vrot.slane %v482_v61, 5  ;;  %v2606_v10 = vld [vmem:[#allocation2 + $0x4] sm:$0xf]  ;;  %v2175_v11 = vld [vmem:[#allocation2 + $0x24] sm:$0xf0] }
  0x3d   : > { %1879 = vmatpush.bf16.msrb.mxu2 %v2693_v48  ;;  %1801 = vmatmul.bf16.gmra.mxu3 %v2222_v46  ;;  %328 = vst [vmem:[#allocation2 + $0x4c] sm:$0xf] %v247_v58  ;;  %v261_v6 = vsel %vm2947_vm5, %v256_v63, %v260_v54  ;;  %v495_v7 = vrot.slane %v493_v0, 4  ;;  %v2674_v12 = vld [vmem:[%s3354_s1 + $0x100] sm:$0xff]  ;;  %v2189_v13 = vld [vmem:[#allocation2 + $0x10] sm:$0xf]  ;;  %v2178_v43 = vor.u32 %v2606_v10, %v2175_v11 }
  0x3e   : > { %1772 = vmatmul.bf16.gmra.mxu2 %v2218_v33  ;;  %329 = vst [vmem:[#allocation2 + $0x70] sm:$0xf] %v261_v6  ;;  %v485_v14 = vor.u32 %v484_v2, %v481_v1  ;;  %v490_v15 = vrot.slane %v488_v62, 5  ;;  %v498_v16 = vrot.slane %v496_v3, 5  ;;  %v2073_v17 = vrot.slane %v346_v9, 9  ;;  %v3052_v22 = vld [vmem:[%s3354_s1 + $0x238] sm:$0xff] }
  0x3f   : > { %v2612_v18 = vld [vmem:[#allocation2 + $0x30] sm:$0xf0]  ;;  %v2253_v20 = vld [vmem:[#allocation2 + $0x98] sm:$0xf]  ;;  %v504_v21 = vrot.slane %v502_v8, 5  ;;  %v2687_v53 = vld [vmem:[%s3354_s1 + $0x168] sm:$0xff] }
  0x40   : > { %1735 = vmatpush.bf16.msrb.mxu1 %v2652_v38  ;;  %1822 = vmatpush.bf16.msrb.mxu0 %v2676_v39  ;;  %v347_v23 = vld [vmem:[%s2827_s4 + $0x34] sm:$0x1]  ;;  %v486_v25 = vrot.slane %v485_v14, 4  ;;  %v499_v26 = vor.u32 %v498_v16, %v495_v7  ;;  %v348_v27 = vld [vmem:[%s2827_s4 + $0x38] sm:$0xe]  ;;  %v2190_v44 = vor.u32 %v2612_v18, %v2189_v13  ;;  %v2691_v59 = vld [vmem:[%s3354_s1 + $0x188] sm:$0xff] }
  0x41   : > { %v2688_v24 = vld [vmem:[%s3354_s1 + $0x170] sm:$0xff]  ;;  %v349_v28 = vld [vmem:[%s2827_s4 + $0x3c] sm:$0x1]  ;;  %v395_v29 = vrot.slane %v347_v23, 5  ;;  %v2074_v32 = vrot.slane %v348_v27, 9  ;;  %v2690_v6 = vld [vmem:[%s3354_s1 + $0x180] sm:$0xff] }
  0x42   : > { %v2629_v30 = vld [vmem:[#allocation2 + $0xb8] sm:$0xf0]  ;;  %v399_v33 = vrot.slane %v349_v28, 5  ;;  %v2692_v34 = vld [vmem:[%s3354_s1 + $0x190] sm:$0xff]  ;;  %v2255_v37 = vld [vmem:[#allocation2 + $0xbc] sm:$0xf0]  ;;  %v491_v38 = vsel %vm2947_vm5, %v486_v25, %v490_v15 }
  0x43   : > { %v2701_v35 = vld [vmem:[%s3354_s1 + $0x1d8] sm:$0xff]  ;;  %v500_v39 = vrot.slane %v499_v26, 4  ;;  %v396_v40 = vsel %vm2851_vm2, %v2073_v17, %v395_v29  ;;  %v3073_v41 = vld [vmem:[%s3354_s1 + $0x230] sm:$0xff]  ;;  %v195_v42 = vld [vmem:[%s2827_s4 + $0x20] sm:$0xf]  ;;  %1880 = vmatpush.bf16.msrb.mxu2 %v2692_v34  ;;  %v2254_v48 = vor.u32 %v2629_v30, %v2253_v20 }
  0x44   : > { %1736 = vmatpush.bf16.msrb.mxu1 %v2651_v52  ;;  %1823 = vmatpush.bf16.msrb.mxu0 %v2675_v57  ;;  %v2625_v36 = vld [vmem:[#allocation2 + $0x9c] sm:$0xf]  ;;  %572 = vst [vmem:[#allocation2 + $0x58] sm:$0xf] %v491_v38  ;;  %v400_v45 = vsel %vm2851_vm2, %v2074_v32, %v399_v33  ;;  %v196_v46 = vld [vmem:[%s2827_s4 + $0x24] sm:$0x1] }
  0x45   : > { %v197_v47 = vld [vmem:[%s2827_s4 + $0x28] sm:$0xf]  ;;  %v505_v49 = vsel %vm2947_vm5, %v500_v39, %v504_v21  ;;  %415 = vst [vmem:[#allocation2 + $0xe0] sm:$0xf] %v396_v40  ;;  %1908 = vmatpush.bf16.msrb.mxu3 %v2701_v35  ;;  %v198_v50 = vld [vmem:[%s2827_s4 + $0x2c] sm:$0x1]  ;;  %v2258_v60 = vor.u32 %v2625_v36, %v2255_v37 }
  0x46   : > { %v263_v51 = vshrl.u32 %v195_v42, 16  ;;  %v266_v52 = vshll.u32 %v195_v42, 16  ;;  %573 = vst [vmem:[#allocation2 + $0x7c] sm:$0xf] %v505_v49  ;;  %v272_v54 = vshll.u32 %v196_v46, 16  ;;  %v277_v55 = vshrl.u32 %v197_v47, 16 }
  0x47   : > { %416 = vst [vmem:[#allocation2 + $0x104] sm:$0xf] %v400_v45  ;;  %v280_v58 = vshll.u32 %v197_v47, 16  ;;  %v286_v63 = vshll.u32 %v198_v50, 16  ;;  %v2700_v0 = vld [vmem:[%s3354_s1 + $0x1d0] sm:$0xff]  ;;  %1881 = vmatpush.bf16.msrb.mxu2 %v2691_v59  ;;  %v2686_v8 = vld [vmem:[%s3354_s1 + $0x160] sm:$0xff] }
  0x48   : > { %1737 = vmatpush.bf16.msrb.mxu1 %v2650_v4  ;;  %1824 = vmatpush.bf16.msrb.mxu0 %v2674_v12  ;;  %v265_v56 = vrot.slane %v263_v51, 4  ;;  %v268_v57 = vrot.slane %v266_v52, 5  ;;  %v274_v61 = vrot.slane %v272_v54, 5  ;;  %v279_v62 = vrot.slane %v277_v55, 4  ;;  %v2081_v3 = vld [vmem:[%s2827_s4 + $0x38] sm:$0xf] }
  0x49   : > { %v282_v2 = vrot.slane %v280_v58, 5  ;;  %v2082_v4 = vld [vmem:[%s2827_s4 + $0x40] sm:$0xf]  ;;  %432 = vst [vmem:[#allocation2 + $0xe4] sm:$0xf] %v2081_v3  ;;  %1909 = vmatpush.bf16.msrb.mxu3 %v2700_v0  ;;  %v288_v11 = vrot.slane %v286_v63, 5 }
  0x4a   : > { %v269_v1 = vor.u32 %v268_v57, %v265_v56  ;;  %v2091_v7 = vld [vmem:[%s2827_s4 + $0x28] sm:$0xf]  ;;  %433 = vst [vmem:[#allocation2 + $0x108] sm:$0xf] %v2082_v4  ;;  %v2092_v13 = vld [vmem:[%s2827_s4 + $0x2c] sm:$0x1] }
  0x4b   : > { %1738 = vmatmul.bf16.vlgmr.msrb.gmra.mxu1 %v2178_v43  ;;  %1825 = vmatmul.bf16.vlgmr.msrb.gmra.mxu0 %v2190_v44  ;;  %v283_v10 = vor.u32 %v282_v2, %v279_v62  ;;  %v507_v12 = vshrl.u32 %v2091_v7, 16  ;;  %v2093_v14 = vld [vmem:[%s2827_s4 + $0x30] sm:$0xf]  ;;  %v3110_v15 = vld [vmem:[#allocation2 + $0x4c] sm:$0xf]  ;;  %v2685_v20 = vld [vmem:[%s3354_s1 + $0x158] sm:$0xff] }
  0x4c   : > { %1846 = vmatpush.bf16.msra.mxu1 %v2689_v5  ;;  %1933 = vmatpush.bf16.msra.mxu0 %v3052_v22  ;;  %v3099_v5 = vld [vmem:[%s3354_s1 + $0x228] sm:$0xff]  ;;  %v270_v9 = vrot.slane %v269_v1, 4  ;;  %v3112_v16 = vld [vmem:[#allocation2 + $0x6c] sm:$0xf0]  ;;  %v2094_v21 = vld [vmem:[%s2827_s4 + $0x34] sm:$0x1] }
  0x4d   : > { %1806 = vmatmul.bf16.gmra.mxu3 %v2258_v60  ;;  %v284_v18 = vrot.slane %v283_v10, 4  ;;  %v509_v23 = vrot.slane %v507_v12, 4  ;;  %v2621_v25 = vld [vmem:[#allocation2 + $0x78] sm:$0xf0]  ;;  %v3121_v26 = vld [vmem:[#allocation2 + $0xe0] sm:$0xf]  ;;  %1882 = vmatpush.bf16.msrb.mxu2 %v2690_v6  ;;  %v2214_v42 = vor.u32 %v3110_v15, %v3112_v16 }
  0x4e   : > { %1777 = vmatmul.bf16.gmra.mxu2 %v2254_v48  ;;  %v275_v17 = vsel %vm2947_vm5, %v270_v9, %v274_v61  ;;  %v3123_v27 = vld [vmem:[#allocation2 + $0x100] sm:$0xf0]  ;;  %v510_v28 = vshll.u32 %v2091_v7, 16  ;;  %v516_v29 = vshll.u32 %v2092_v13, 16  ;;  %v521_v32 = vshrl.u32 %v2093_v14, 16  ;;  %v2699_v38 = vld [vmem:[%s3354_s1 + $0x1c8] sm:$0xff] }
  0x4f   : > { %330 = vst [vmem:[#allocation2 + $0x94] sm:$0xf] %v275_v17  ;;  %v289_v30 = vsel %vm2947_vm5, %v284_v18, %v288_v11  ;;  %v524_v33 = vshll.u32 %v2093_v14, 16  ;;  %v2123_v34 = vld [vmem:[%s2827_s4 + $0x10] sm:$0xf]  ;;  %v530_v37 = vshll.u32 %v2094_v21, 16  ;;  %1910 = vmatpush.bf16.msrb.mxu3 %v2699_v38  ;;  %v2290_v48 = vor.u32 %v3123_v27, %v3121_v26 }
  0x50   : > { %1847 = vmatpush.bf16.msra.mxu1 %v2688_v24  ;;  %1934 = vmatpush.bf16.msra.mxu0 %v3073_v41  ;;  %v2225_v24 = vld [vmem:[#allocation2 + $0x58] sm:$0xf]  ;;  %331 = vst [vmem:[#allocation2 + $0xb8] sm:$0xf] %v289_v30  ;;  %v512_v36 = vrot.slane %v510_v28, 5  ;;  %v523_v39 = vrot.slane %v521_v32, 4 }
  0x51   : > { %v2124_v35 = vld [vmem:[%s2827_s4 + $0x18] sm:$0xf]  ;;  %2745 = vmatpush.bf16.msra.mxu2 %v3052_v22  ;;  %v526_v40 = vrot.slane %v524_v33, 5  ;;  %667 = vst [vmem:[#allocation2 + $0x18] sm:$0xf] %v2123_v34  ;;  %v518_v44 = vrot.slane %v516_v29, 5  ;;  %v2226_v47 = vor.u32 %v2621_v25, %v2225_v24 }
  0x52   : > { %v513_v43 = vor.u32 %v512_v36, %v509_v23  ;;  %v532_v45 = vrot.slane %v530_v37, 5  ;;  %v2684_v22 = vld [vmem:[%s3354_s1 + $0x150] sm:$0xff]  ;;  %668 = vst [vmem:[#allocation2 + $0x3c] sm:$0xf] %v2124_v35  ;;  %v2710_v46 = vld [vmem:[%s3354_s1 + $0x220] sm:$0xff]  ;;  %v2683_v10 = vld [vmem:[%s3354_s1 + $0x148] sm:$0xff] }
  0x53   : > { %v2634_v49 = vld [vmem:[#allocation2 + $0xe4] sm:$0xf]  ;;  %v527_v50 = vor.u32 %v526_v40, %v523_v39  ;;  %v199_v51 = vld [vmem:[%s2827_s4 + $0x30] sm:$0xf]  ;;  %v200_v52 = vld [vmem:[%s2827_s4 + $0x34] sm:$0x1] }
  0x54   : > { %1848 = vmatpush.bf16.msra.mxu1 %v2687_v53  ;;  %1935 = vmatpush.bf16.msra.mxu0 %v3099_v5  ;;  %v201_v53 = vld [vmem:[%s2827_s4 + $0x38] sm:$0xf]  ;;  %v514_v54 = vrot.slane %v513_v43, 4  ;;  %v202_v55 = vld [vmem:[%s2827_s4 + $0x3c] sm:$0x1]  ;;  %v291_v56 = vshrl.u32 %v199_v51, 16 }
  0x55   : > { %2746 = vmatpush.bf16.msra.mxu2 %v3073_v41  ;;  %v294_v57 = vshll.u32 %v199_v51, 16  ;;  %v300_v58 = vshll.u32 %v200_v52, 16  ;;  %v2291_v59 = vld [vmem:[#allocation2 + $0x104] sm:$0xf0]  ;;  %v528_v60 = vrot.slane %v527_v50, 4  ;;  %v305_v61 = vshrl.u32 %v201_v53, 16 }
  0x56   : > { %v308_v62 = vshll.u32 %v201_v53, 16  ;;  %v314_v63 = vshll.u32 %v202_v55, 16  ;;  %v519_v0 = vsel %vm2947_vm5, %v514_v54, %v518_v44  ;;  %v293_v1 = vrot.slane %v291_v56, 4  ;;  %v2095_v3 = vld [vmem:[%s2827_s4 + $0x38] sm:$0xf]  ;;  %v2698_v13 = vld [vmem:[%s3354_s1 + $0x1c0] sm:$0xff] }
  0x57   : > { %v296_v2 = vrot.slane %v294_v57, 5  ;;  %v533_v41 = vsel %vm2947_vm5, %v528_v60, %v532_v45  ;;  %574 = vst [vmem:[#allocation2 + $0xa0] sm:$0xf] %v519_v0  ;;  %v307_v4 = vrot.slane %v305_v61, 4  ;;  %v2294_v7 = vor.u32 %v2634_v49, %v2291_v59  ;;  %v2096_v14 = vld [vmem:[%s2827_s4 + $0x3c] sm:$0x1]  ;;  %1911 = vmatpush.bf16.msrb.mxu3 %v2698_v13 }
  0x58   : > { %1849 = vmatpush.bf16.msra.mxu1 %v2686_v8  ;;  %1936 = vmatpush.bf16.msra.mxu0 %v2710_v46  ;;  %v310_v6 = vrot.slane %v308_v62, 5  ;;  %575 = vst [vmem:[#allocation2 + $0xc4] sm:$0xf] %v533_v41  ;;  %v302_v9 = vrot.slane %v300_v58, 5  ;;  %v316_v12 = vrot.slane %v314_v63, 5  ;;  %v538_v18 = vshll.u32 %v2095_v3, 16 }
  0x59   : > { %2747 = vmatpush.bf16.msra.mxu2 %v3099_v5  ;;  %v297_v8 = vor.u32 %v296_v2, %v293_v1  ;;  %v535_v5 = vshrl.u32 %v2095_v3, 16  ;;  %v2097_v16 = vld [vmem:[%s2827_s4 + $0x40] sm:$0xf]  ;;  %v2098_v17 = vld [vmem:[%s2827_s4 + $0x44] sm:$0x1]  ;;  %v544_v23 = vshll.u32 %v2096_v14, 16 }
  0x5a   : > { %v311_v11 = vor.u32 %v310_v6, %v307_v4  ;;  %v549_v24 = vshrl.u32 %v2097_v16, 16  ;;  %v540_v26 = vrot.slane %v538_v18, 5  ;;  %v552_v27 = vshll.u32 %v2097_v16, 16  ;;  %v2131_v29 = vld [vmem:[%s2827_s4 + $0x10] sm:$0xf]  ;;  %v2709_v30 = vld [vmem:[%s3354_s1 + $0x218] sm:$0xff] }
  0x5b   : > { %1743 = vmatmul.bf16.gmra.mxu1 %v2214_v42  ;;  %1830 = vmatmul.bf16.gmra.mxu0 %v2226_v47  ;;  %v298_v15 = vrot.slane %v297_v8, 4  ;;  %v537_v21 = vrot.slane %v535_v5, 4  ;;  %v558_v28 = vshll.u32 %v2098_v17, 16  ;;  %v546_v33 = vrot.slane %v544_v23, 5  ;;  %v2132_v35 = vld [vmem:[%s2827_s4 + $0x14] sm:$0x1] }
  0x5c   : > { %1850 = vmatpush.bf16.msra.mxu1 %v2685_v20  ;;  %v312_v20 = vrot.slane %v311_v11, 4  ;;  %v551_v34 = vrot.slane %v549_v24, 4  ;;  %v2624_v36 = vld [vmem:[#allocation2 + $0x94] sm:$0xf]  ;;  %v2247_v37 = vld [vmem:[#allocation2 + $0xb4] sm:$0xf0]  ;;  %1937 = vmatpush.bf16.msra.mxu0 %v2709_v30 }
  0x5d   : > { %1811 = vmatmul.bf16.gmra.mxu3 %v2294_v7  ;;  %v303_v25 = vsel %vm2947_vm5, %v298_v15, %v302_v9  ;;  %2748 = vmatpush.bf16.msra.mxu2 %v2710_v46  ;;  %v541_v38 = vor.u32 %v540_v26, %v537_v21  ;;  %v554_v39 = vrot.slane %v552_v27, 5  ;;  %v560_v40 = vrot.slane %v558_v28, 5  ;;  %v2133_v42 = vld [vmem:[%s2827_s4 + $0x18] sm:$0xf]  ;;  %v2134_v46 = vld [vmem:[%s2827_s4 + $0x1c] sm:$0x1] }
  0x5e   : > { %1782 = vmatmul.bf16.gmra.mxu2 %v2290_v48  ;;  %v317_v32 = vsel %vm2947_vm5, %v312_v20, %v316_v12  ;;  %332 = vst [vmem:[#allocation2 + $0xdc] sm:$0xf] %v303_v25  ;;  %v2261_v43 = vld [vmem:[#allocation2 + $0xa0] sm:$0xf]  ;;  %v2197_v45 = vld [vmem:[#allocation2 + $0x18] sm:$0xf]  ;;  %v2250_v1 = vor.u32 %v2624_v36, %v2247_v37 }
  0x5f   : > { %333 = vst [vmem:[#allocation2 + $0x100] sm:$0xf] %v317_v32  ;;  %v2630_v44 = vld [vmem:[#allocation2 + $0xc0] sm:$0xf0]  ;;  %v692_v47 = vshrl.u32 %v2131_v29, 16  ;;  %v695_v48 = vshll.u32 %v2131_v29, 16  ;;  %v555_v50 = vor.u32 %v554_v39, %v551_v34 }
  0x60   : > { %1851 = vmatpush.bf16.msra.mxu1 %v2684_v22  ;;  %v2613_v22 = vld [vmem:[#allocation2 + $0x38] sm:$0xf0]  ;;  %v542_v49 = vrot.slane %v541_v38, 4  ;;  %v701_v51 = vshll.u32 %v2132_v35, 16  ;;  %v2682_v52 = vld [vmem:[%s3354_s1 + $0x140] sm:$0xff]  ;;  %v2708_v54 = vld [vmem:[%s3354_s1 + $0x210] sm:$0xff]  ;;  %v2262_v6 = vor.u32 %v2630_v44, %v2261_v43 }
  0x61   : > { %v2125_v53 = vld [vmem:[%s2827_s4 + $0x20] sm:$0xf]  ;;  %2749 = vmatpush.bf16.msra.mxu2 %v2709_v30  ;;  %v694_v55 = vrot.slane %v692_v47, 4  ;;  %v697_v56 = vrot.slane %v695_v48, 5  ;;  %v706_v57 = vshrl.u32 %v2133_v42, 16  ;;  %v709_v58 = vshll.u32 %v2133_v42, 16  ;;  %1938 = vmatpush.bf16.msra.mxu0 %v2708_v54 }
  0x62   : > { %v2126_v59 = vld [vmem:[%s2827_s4 + $0x28] sm:$0xf]  ;;  %v547_v60 = vsel %vm2947_vm5, %v542_v49, %v546_v33  ;;  %v556_v61 = vrot.slane %v555_v50, 4  ;;  %v703_v62 = vrot.slane %v701_v51, 5  ;;  %v715_v63 = vshll.u32 %v2134_v46, 16  ;;  %v2706_v23 = vld [vmem:[%s3354_s1 + $0x200] sm:$0xff] }
  0x63   : > { %669 = vst [vmem:[#allocation2 + $0x60] sm:$0xf] %v2125_v53  ;;  %v2707_v0 = vld [vmem:[%s3354_s1 + $0x208] sm:$0xff]  ;;  %v698_v2 = vor.u32 %v697_v56, %v694_v55  ;;  %v708_v3 = vrot.slane %v706_v57, 4  ;;  %v711_v41 = vrot.slane %v709_v58, 5  ;;  %v2198_v7 = vor.u32 %v2613_v22, %v2197_v45 }
  0x64   : > { %1852 = vmatpush.bf16.msra.mxu1 %v2683_v10  ;;  %576 = vst [vmem:[#allocation2 + $0xe8] sm:$0xf] %v547_v60  ;;  %v2099_v4 = vld [vmem:[%s2827_s4 + $0x8] sm:$0xe]  ;;  %v561_v8 = vsel %vm2947_vm5, %v556_v61, %v560_v40  ;;  %v717_v11 = vrot.slane %v715_v63, 5 }
  0x65   : > { %670 = vst [vmem:[#allocation2 + $0x84] sm:$0xf] %v2126_v59  ;;  %2750 = vmatpush.bf16.msra.mxu2 %v2708_v54  ;;  %v699_v9 = vrot.slane %v698_v2, 4  ;;  %v712_v10 = vor.u32 %v711_v41, %v708_v3  ;;  %v2115_v12 = vrot.slane %v2099_v4, 9  ;;  %1939 = vmatpush.bf16.msra.mxu0 %v2707_v0  ;;  %v2100_v13 = vld [vmem:[%s2827_s4 + $0xc] sm:$0x1] }
  0x66   : > { %577 = vst [vmem:[#allocation2 + $0x10c] sm:$0xf] %v561_v8  ;;  %v2101_v14 = vld [vmem:[%s2827_s4 + $0x10] sm:$0xe]  ;;  %v2102_v5 = vld [vmem:[%s2827_s4 + $0x14] sm:$0x1] }
  0x67   : > { %v704_v15 = vsel %vm2947_vm5, %v699_v9, %v703_v62  ;;  %v713_v16 = vrot.slane %v712_v10, 4  ;;  %v612_v17 = vrot.slane %v2100_v13, 5  ;;  %v2116_v18 = vrot.slane %v2101_v14, 9  ;;  %v2135_v20 = vld [vmem:[%s2827_s4 + $0x20] sm:$0xf] }
  0x68   : > { %1853 = vmatpush.bf16.msra.mxu1 %v2682_v52  ;;  %811 = vst [vmem:[#allocation2 + $0x1c] sm:$0xf] %v704_v15  ;;  %v616_v21 = vrot.slane %v2102_v5, 5  ;;  %v2136_v24 = vld [vmem:[%s2827_s4 + $0x24] sm:$0x1]  ;;  %v720_v29 = vshrl.u32 %v2135_v20, 16 }
  0x69   : > { %v718_v25 = vsel %vm2947_vm5, %v713_v16, %v717_v11  ;;  %v613_v26 = vsel %vm2851_vm2, %v2115_v12, %v612_v17  ;;  %v2137_v27 = vld [vmem:[%s2827_s4 + $0x28] sm:$0xf]  ;;  %1940 = vmatpush.bf16.msra.mxu0 %v2706_v23  ;;  %v723_v30 = vshll.u32 %v2135_v20, 16  ;;  %2751 = vmatpush.bf16.msra.mxu2 %v2707_v0  ;;  %v2138_v32 = vld [vmem:[%s2827_s4 + $0x2c] sm:$0x1]  ;;  %v729_v33 = vshll.u32 %v2136_v24, 16 }
  0x6a   : > { %812 = vst [vmem:[#allocation2 + $0x40] sm:$0xf] %v718_v25  ;;  %v617_v28 = vsel %vm2851_vm2, %v2116_v18, %v616_v21  ;;  %v734_v34 = vshrl.u32 %v2137_v27, 16  ;;  %v722_v35 = vrot.slane %v720_v29, 4  ;;  %v737_v39 = vshll.u32 %v2137_v27, 16 }
  0x6b   : > { %1748 = vmatmul.bf16.gmra.mxu1 %v2250_v1  ;;  %1835 = vmatmul.bf16.gmra.mxu0 %v2262_v6  ;;  %650 = vst [vmem:[#allocation2 + $0x14] sm:$0xf] %v613_v26  ;;  %v725_v36 = vrot.slane %v723_v30, 5  ;;  %v731_v37 = vrot.slane %v729_v33, 5  ;;  %v2147_v40 = vld [vmem:[%s2827_s4 + $0x10] sm:$0xe] }
  0x6c   : > { %651 = vst [vmem:[#allocation2 + $0x38] sm:$0xf] %v617_v28  ;;  %v736_v38 = vrot.slane %v734_v34, 4  ;;  %v743_v43 = vshll.u32 %v2138_v32, 16  ;;  %v2148_v44 = vld [vmem:[%s2827_s4 + $0x14] sm:$0x1] }
  0x6d   : > { %v726_v42 = vor.u32 %v725_v36, %v722_v35  ;;  %v2149_v45 = vld [vmem:[%s2827_s4 + $0x18] sm:$0xe]  ;;  %v2163_v22 = vrot.slane %v2147_v40, 9  ;;  %2752 = vmatpush.bf16.msra.mxu2 %v2706_v23  ;;  %v2633_v46 = vld [vmem:[#allocation2 + $0xdc] sm:$0xf]  ;;  %v739_v51 = vrot.slane %v737_v39, 5 }
  0x6e   : > { %1883 = vmatmul.bf16.vlgmr.msrb.gmra.mxu2 %v2198_v7  ;;  %v2283_v47 = vld [vmem:[#allocation2 + $0xfc] sm:$0xf0]  ;;  %v2297_v48 = vld [vmem:[#allocation2 + $0xe8] sm:$0xf]  ;;  %v2639_v49 = vld [vmem:[#allocation2 + $0x108] sm:$0xf0] }
  0x6f   : > { %v2609_v50 = vld [vmem:[#allocation2 + $0x1c] sm:$0xf]  ;;  %v853_v53 = vrot.slane %v2148_v44, 5  ;;  %v2233_v54 = vld [vmem:[#allocation2 + $0x60] sm:$0xf]  ;;  %v727_v56 = vrot.slane %v726_v42, 4  ;;  %v740_v61 = vor.u32 %v739_v51, %v736_v38  ;;  %v2286_v7 = vor.u32 %v2633_v46, %v2283_v47 }
  0x70   : > { %v2150_v52 = vld [vmem:[%s2827_s4 + $0x1c] sm:$0x1]  ;;  %v2622_v55 = vld [vmem:[#allocation2 + $0x80] sm:$0xf0]  ;;  %v2164_v57 = vrot.slane %v2149_v45, 9  ;;  %v745_v62 = vrot.slane %v743_v43, 5  ;;  %v2298_v8 = vor.u32 %v2639_v49, %v2297_v48 }
  0x71   : > { %v857_v58 = vrot.slane %v2150_v52, 5  ;;  %v2127_v59 = vld [vmem:[%s2827_s4 + $0x30] sm:$0xf]  ;;  %v2199_v60 = vld [vmem:[#allocation2 + $0x3c] sm:$0xf0]  ;;  %v854_v63 = vsel %vm2851_vm2, %v2163_v22, %v853_v53  ;;  %v732_v1 = vsel %vm2947_vm5, %v727_v56, %v731_v37  ;;  %v741_v4 = vrot.slane %v740_v61, 4 }
  0x72   : > { %671 = vst [vmem:[#allocation2 + $0xa8] sm:$0xf] %v2127_v59  ;;  %v2202_v0 = vor.u32 %v2609_v50, %v2199_v60  ;;  %v2128_v3 = vld [vmem:[%s2827_s4 + $0x38] sm:$0xf]  ;;  %v2104_v9 = vld [vmem:[%s2827_s4 + $0x1c] sm:$0x1]  ;;  %v2234_v11 = vor.u32 %v2622_v55, %v2233_v54 }
  0x73   : > { %v858_v2 = vsel %vm2851_vm2, %v2164_v57, %v857_v58  ;;  %891 = vst [vmem:[#allocation2 + $0x20] sm:$0xf] %v854_v63  ;;  %v2103_v41 = vld [vmem:[%s2827_s4 + $0x18] sm:$0xe]  ;;  %v2105_v10 = vld [vmem:[%s2827_s4 + $0x20] sm:$0xe]  ;;  %v746_v12 = vsel %vm2947_vm5, %v741_v4, %v745_v62 }
  0x74   : > { %813 = vst [vmem:[#allocation2 + $0x64] sm:$0xf] %v732_v1  ;;  %v2117_v6 = vrot.slane %v2103_v41, 9  ;;  %1912 = vmatmul.bf16.vlgmr.msrb.gmra.mxu3 %v2202_v0  ;;  %v2106_v13 = vld [vmem:[%s2827_s4 + $0x24] sm:$0x1]  ;;  %v620_v14 = vrot.slane %v2104_v9, 5 }
  0x75   : > { %892 = vst [vmem:[#allocation2 + $0x44] sm:$0xf] %v858_v2  ;;  %v2118_v5 = vrot.slane %v2105_v10, 9  ;;  %v624_v15 = vrot.slane %v2106_v13, 5  ;;  %v2139_v16 = vld [vmem:[%s2827_s4 + $0x30] sm:$0xf] }
  0x76   : > { %672 = vst [vmem:[#allocation2 + $0xcc] sm:$0xf] %v2128_v3  ;;  %v621_v17 = vsel %vm2851_vm2, %v2117_v6, %v620_v14  ;;  %v2140_v18 = vld [vmem:[%s2827_s4 + $0x34] sm:$0x1]  ;;  %v2141_v20 = vld [vmem:[%s2827_s4 + $0x38] sm:$0xf] }
  0x77   : > { %814 = vst [vmem:[#allocation2 + $0x88] sm:$0xf] %v746_v12  ;;  %v2142_v21 = vld [vmem:[%s2827_s4 + $0x3c] sm:$0x1]  ;;  %v625_v23 = vsel %vm2851_vm2, %v2118_v5, %v624_v15  ;;  %v748_v24 = vshrl.u32 %v2139_v16, 16  ;;  %v751_v25 = vshll.u32 %v2139_v16, 16 }
  0x78   : > { %652 = vst [vmem:[#allocation2 + $0x5c] sm:$0xf] %v621_v17  ;;  %v757_v26 = vshll.u32 %v2140_v18, 16  ;;  %v762_v27 = vshrl.u32 %v2141_v20, 16  ;;  %v765_v30 = vshll.u32 %v2141_v20, 16  ;;  %v771_v32 = vshll.u32 %v2142_v21, 16 }
  0x79   : > { %653 = vst [vmem:[#allocation2 + $0x80] sm:$0xf] %v625_v23  ;;  %v750_v28 = vrot.slane %v748_v24, 4  ;;  %v753_v29 = vrot.slane %v751_v25, 5  ;;  %v2151_v34 = vld [vmem:[%s2827_s4 + $0x20] sm:$0xe] }
  0x7a   : > { %v764_v33 = vrot.slane %v762_v27, 4  ;;  %v759_v37 = vrot.slane %v757_v26, 5  ;;  %v767_v38 = vrot.slane %v765_v30, 5  ;;  %v2152_v39 = vld [vmem:[%s2827_s4 + $0x24] sm:$0x1]  ;;  %v773_v48 = vrot.slane %v771_v32, 5 }
  0x7b   : > { %1753 = vmatmul.bf16.gmra.mxu1 %v2286_v7  ;;  %1840 = vmatmul.bf16.gmra.mxu0 %v2298_v8  ;;  %v2618_v35 = vld [vmem:[#allocation2 + $0x64] sm:$0xf]  ;;  %v754_v36 = vor.u32 %v753_v29, %v750_v28  ;;  %v2153_v42 = vld [vmem:[%s2827_s4 + $0x28] sm:$0xe]  ;;  %v2154_v43 = vld [vmem:[%s2827_s4 + $0x2c] sm:$0x1] }
  0x7c   : > { %v2608_v44 = vld [vmem:[#allocation2 + $0x14] sm:$0xf]  ;;  %v2191_v45 = vld [vmem:[#allocation2 + $0x34] sm:$0xf0]  ;;  %v2205_v22 = vld [vmem:[#allocation2 + $0x20] sm:$0xf]  ;;  %v768_v47 = vor.u32 %v767_v38, %v764_v33 }
  0x7d   : > { %v755_v46 = vrot.slane %v754_v36, 4  ;;  %v2165_v49 = vrot.slane %v2151_v34, 9  ;;  %v2129_v50 = vld [vmem:[%s2827_s4 + $0x40] sm:$0xf]  ;;  %v2614_v51 = vld [vmem:[#allocation2 + $0x40] sm:$0xf0]  ;;  %v2194_v2 = vor.u32 %v2608_v44, %v2191_v45 }
  0x7e   : > { %1888 = vmatmul.bf16.gmra.mxu2 %v2234_v11  ;;  %v2235_v40 = vld [vmem:[#allocation2 + $0x84] sm:$0xf0]  ;;  %v861_v52 = vrot.slane %v2152_v39, 5  ;;  %v2166_v53 = vrot.slane %v2153_v42, 9  ;;  %v865_v54 = vrot.slane %v2154_v43, 5  ;;  %v769_v59 = vrot.slane %v768_v47, 4 }
  0x7f   : > { %v2238_v55 = vor.u32 %v2618_v35, %v2235_v40  ;;  %v2269_v56 = vld [vmem:[#allocation2 + $0xa8] sm:$0xf]  ;;  %v2631_v57 = vld [vmem:[#allocation2 + $0xc8] sm:$0xf0]  ;;  %v760_v58 = vsel %vm2947_vm5, %v755_v46, %v759_v37  ;;  %673 = vst [vmem:[#allocation2 + $0xf0] sm:$0xf] %v2129_v50  ;;  %v2206_v3 = vor.u32 %v2614_v51, %v2205_v22 }
  0x80   : > { %815 = vst [vmem:[#allocation2 + $0xac] sm:$0xf] %v760_v58  ;;  %v862_v60 = vsel %vm2851_vm2, %v2165_v49, %v861_v52  ;;  %v866_v61 = vsel %vm2851_vm2, %v2166_v53, %v865_v54  ;;  %v2130_v62 = vld [vmem:[%s2827_s4 + $0x48] sm:$0xf]  ;;  %v774_v63 = vsel %vm2947_vm5, %v769_v59, %v773_v48  ;;  %v2108_v1 = vld [vmem:[%s2827_s4 + $0x2c] sm:$0x1]  ;;  %v2270_v10 = vor.u32 %v2631_v57, %v2269_v56 }
  0x81   : > { %893 = vst [vmem:[#allocation2 + $0x68] sm:$0xf] %v862_v60  ;;  %v2107_v0 = vld [vmem:[%s2827_s4 + $0x28] sm:$0xe]  ;;  %v2109_v41 = vld [vmem:[%s2827_s4 + $0x30] sm:$0xe] }
  0x82   : > { %816 = vst [vmem:[#allocation2 + $0xd0] sm:$0xf] %v774_v63  ;;  %v2110_v4 = vld [vmem:[%s2827_s4 + $0x34] sm:$0x1]  ;;  %v2119_v6 = vrot.slane %v2107_v0, 9  ;;  %v628_v7 = vrot.slane %v2108_v1, 5 }
  0x83   : > { %894 = vst [vmem:[#allocation2 + $0x8c] sm:$0xf] %v866_v61  ;;  %v2120_v8 = vrot.slane %v2109_v41, 9  ;;  %v632_v9 = vrot.slane %v2110_v4, 5  ;;  %v2143_v11 = vld [vmem:[%s2827_s4 + $0x40] sm:$0xf] }
  0x84   : > { %1917 = vmatmul.bf16.gmra.mxu3 %v2238_v55  ;;  %674 = vst [vmem:[#allocation2 + $0x114] sm:$0xf] %v2130_v62  ;;  %v2144_v12 = vld [vmem:[%s2827_s4 + $0x44] sm:$0x1]  ;;  %v629_v13 = vsel %vm2851_vm2, %v2119_v6, %v628_v7  ;;  %v2145_v5 = vld [vmem:[%s2827_s4 + $0x48] sm:$0xf] }
  0x85   : > { %v633_v14 = vsel %vm2851_vm2, %v2120_v8, %v632_v9  ;;  %v2146_v15 = vld [vmem:[%s2827_s4 + $0x4c] sm:$0x1]  ;;  %v776_v16 = vshrl.u32 %v2143_v11, 16  ;;  %v779_v17 = vshll.u32 %v2143_v11, 16  ;;  %654 = vst [vmem:[#allocation2 + $0xa4] sm:$0xf] %v629_v13 }
  0x86   : > { %v785_v18 = vshll.u32 %v2144_v12, 16  ;;  %v790_v20 = vshrl.u32 %v2145_v5, 16  ;;  %655 = vst [vmem:[#allocation2 + $0xc8] sm:$0xf] %v633_v14  ;;  %v793_v25 = vshll.u32 %v2145_v5, 16  ;;  %v799_v26 = vshll.u32 %v2146_v15, 16 }
  0x87   : > { %v778_v21 = vrot.slane %v776_v16, 4  ;;  %v781_v23 = vrot.slane %v779_v17, 5  ;;  %v2155_v29 = vld [vmem:[%s2827_s4 + $0x30] sm:$0xe]  ;;  %v2156_v30 = vld [vmem:[%s2827_s4 + $0x34] sm:$0x1] }
  0x88   : > { %v792_v24 = vrot.slane %v790_v20, 4  ;;  %v787_v28 = vrot.slane %v785_v18, 5  ;;  %v2627_v32 = vld [vmem:[#allocation2 + $0xac] sm:$0xf]  ;;  %v795_v34 = vrot.slane %v793_v25, 5  ;;  %v801_v37 = vrot.slane %v799_v26, 5 }
  0x89   : > { %v782_v27 = vor.u32 %v781_v23, %v778_v21  ;;  %v2271_v33 = vld [vmem:[#allocation2 + $0xcc] sm:$0xf0]  ;;  %v2157_v35 = vld [vmem:[%s2827_s4 + $0x38] sm:$0xe]  ;;  %v2158_v38 = vld [vmem:[%s2827_s4 + $0x3c] sm:$0x1] }
  0x8a   : > { %v2167_v39 = vrot.slane %v2155_v29, 9  ;;  %v796_v40 = vor.u32 %v795_v34, %v792_v24  ;;  %v869_v42 = vrot.slane %v2156_v30, 5  ;;  %v2168_v43 = vrot.slane %v2157_v35, 9  ;;  %v2159_v44 = vld [vmem:[%s2827_s4 + $0x40] sm:$0xe] }
  0x8b   : > { %1854 = vmatmul.bf16.vlgmr.msra.gmra.mxu1 %v2194_v2  ;;  %1941 = vmatmul.bf16.vlgmr.msra.gmra.mxu0 %v2206_v3  ;;  %v783_v36 = vrot.slane %v782_v27, 4  ;;  %v2160_v45 = vld [vmem:[%s2827_s4 + $0x44] sm:$0x1]  ;;  %v873_v46 = vrot.slane %v2158_v38, 5  ;;  %v2161_v47 = vld [vmem:[%s2827_s4 + $0x48] sm:$0xe]  ;;  %v2274_v56 = vor.u32 %v2627_v32, %v2271_v33 }
  0x8c   : > { %v2169_v48 = vrot.slane %v2159_v44, 9  ;;  %v2617_v49 = vld [vmem:[#allocation2 + $0x5c] sm:$0xf]  ;;  %v2227_v50 = vld [vmem:[#allocation2 + $0x7c] sm:$0xf0]  ;;  %v797_v53 = vrot.slane %v796_v40, 4  ;;  %v870_v54 = vsel %vm2851_vm2, %v2167_v39, %v869_v42 }
  0x8d   : > { %v788_v22 = vsel %vm2947_vm5, %v783_v36, %v787_v28  ;;  %v2241_v51 = vld [vmem:[#allocation2 + $0x68] sm:$0xf]  ;;  %v2623_v52 = vld [vmem:[#allocation2 + $0x88] sm:$0xf0]  ;;  %v877_v55 = vrot.slane %v2160_v45, 5  ;;  %v874_v59 = vsel %vm2851_vm2, %v2168_v43, %v873_v46  ;;  %v2170_v61 = vrot.slane %v2161_v47, 9 }
  0x8e   : > { %1893 = vmatmul.bf16.gmra.mxu2 %v2270_v10  ;;  %817 = vst [vmem:[#allocation2 + $0xf4] sm:$0xf] %v788_v22  ;;  %v2305_v57 = vld [vmem:[#allocation2 + $0xf0] sm:$0xf]  ;;  %v2640_v58 = vld [vmem:[#allocation2 + $0x110] sm:$0xf0]  ;;  %v802_v62 = vsel %vm2947_vm5, %v797_v53, %v801_v37  ;;  %v2230_v8 = vor.u32 %v2617_v49, %v2227_v50  ;;  %v2242_v31 = vor.u32 %v2623_v52, %v2241_v51 }
  0x8f   : > { %895 = vst [vmem:[#allocation2 + $0xb0] sm:$0xf] %v870_v54  ;;  %v2162_v60 = vld [vmem:[%s2827_s4 + $0x4c] sm:$0x1]  ;;  %v878_v63 = vsel %vm2851_vm2, %v2169_v48, %v877_v55  ;;  %v2111_v1 = vld [vmem:[%s2827_s4 + $0x38] sm:$0xe]  ;;  %v2306_v11 = vor.u32 %v2640_v58, %v2305_v57 }
  0x90   : > { %896 = vst [vmem:[#allocation2 + $0xd4] sm:$0xf] %v874_v59  ;;  %v881_v0 = vrot.slane %v2162_v60, 5  ;;  %v2112_v2 = vld [vmem:[%s2827_s4 + $0x3c] sm:$0x1]  ;;  %v2121_v6 = vrot.slane %v2111_v1, 9 }
  0x91   : > { %818 = vst [vmem:[#allocation2 + $0x118] sm:$0xf] %v802_v62  ;;  %v2113_v3 = vld [vmem:[%s2827_s4 + $0x40] sm:$0xe]  ;;  %v2114_v4 = vld [vmem:[%s2827_s4 + $0x44] sm:$0x1] }
  0x92   : > { %v882_v41 = vsel %vm2851_vm2, %v2170_v61, %v881_v0  ;;  %897 = vst [vmem:[#allocation2 + $0xf8] sm:$0xf] %v878_v63  ;;  %v636_v7 = vrot.slane %v2112_v2, 5  ;;  %v2122_v9 = vrot.slane %v2113_v3, 9  ;;  %v640_v10 = vrot.slane %v2114_v4, 5 }
  0x93   : > { %898 = vst [vmem:[#allocation2 + $0x11c] sm:$0xf] %v882_v41  ;;  %v2626_v15 = vld [vmem:[#allocation2 + $0xa4] sm:$0xf]  ;;  %v2263_v17 = vld [vmem:[#allocation2 + $0xc4] sm:$0xf0] }
  0x94   : > { %1922 = vmatmul.bf16.gmra.mxu3 %v2274_v56  ;;  %v637_v12 = vsel %vm2851_vm2, %v2121_v6, %v636_v7  ;;  %v641_v13 = vsel %vm2851_vm2, %v2122_v9, %v640_v10  ;;  %v2266_v24 = vor.u32 %v2626_v15, %v2263_v17  ;;  %v2762_v45 = vld [vmem:[%s3355_s2] ss:$0 sm:$0xff] }
  0x95   : > { %656 = vst [vmem:[#allocation2 + $0xec] sm:$0xf] %v637_v12  ;;  %v2636_v14 = vld [vmem:[#allocation2 + $0xf4] sm:$0xf] }
  0x96   : > { %657 = vst [vmem:[#allocation2 + $0x110] sm:$0xf] %v641_v13  ;;  %v2277_v18 = vld [vmem:[#allocation2 + $0xb0] sm:$0xf] }
  0x97   : > { %v2632_v20 = vld [vmem:[#allocation2 + $0xd0] sm:$0xf0] }
  0x98   : > { %v2307_v5 = vld [vmem:[#allocation2 + $0x114] sm:$0xf0]  ;;  %v2278_v25 = vor.u32 %v2632_v20, %v2277_v18 }
  0x99   : > { %v2310_v16 = vor.u32 %v2636_v14, %v2307_v5  ;;  %v2313_v21 = vld [vmem:[#allocation2 + $0xf8] sm:$0xf] }
  0x9a   : > { %v2641_v23 = vld [vmem:[#allocation2 + $0x118] sm:$0xf0] }
  0x9b   : > { %1859 = vmatmul.bf16.gmra.mxu1 %v2230_v8  ;;  %1946 = vmatmul.bf16.gmra.mxu0 %v2242_v31  ;;  %v2314_v27 = vor.u32 %v2641_v23, %v2313_v21 }
  0x9c   : > { %v2635_v33 = vld [vmem:[#allocation2 + $0xec] sm:$0xf] }
  0x9d   : > { %v2299_v34 = vld [vmem:[#allocation2 + $0x10c] sm:$0xf0] }
  0x9e   : > { %1898 = vmatmul.bf16.gmra.mxu2 %v2306_v11  ;;  %v2302_v35 = vor.u32 %v2635_v33, %v2299_v34 }
  0xa4   : > { %1927 = vmatmul.bf16.gmra.mxu3 %v2310_v16 }
  0xa8   : > { %v1720_v26 = vpop.f32.mrf.mxu1  ;;  %v1710_v19 = vpop.f32.mrf.mxu0 }
  0xa9   : > { %v1711_v22 = vadd.f32 %v2762_v45, %v1710_v19  ;;  %v1721_v11 = vadd.f32 %v2762_v45, %v1720_v26 }
  0xab   : > { %1864 = vmatmul.bf16.gmra.mxu1 %v2266_v24  ;;  %1951 = vmatmul.bf16.gmra.mxu0 %v2278_v25 }
  0xae   : > { %1956 = vmatmul.bf16.vlgmr.msra.gmra.mxu2 %v2314_v27 }
  0xb0   : > { %v1722_v29 = vpop.f32.mrf.mxu1  ;;  %v1712_v30 = vpop.f32.mrf.mxu0 }
  0xb1   : > { %v1768_v28 = vpop.f32.mrf.mxu2  ;;  %v1797_v32 = vpop.f32.mrf.mxu3  ;;  %v1713_v53 = vadd.f32 %v2762_v45, %v1712_v30  ;;  %v1723_v18 = vadd.f32 %v2762_v45, %v1722_v29 }
  0xb8   : > { %v1725_v37 = vpop.f32.mrf.mxu1  ;;  %v1715_v38 = vpop.f32.mrf.mxu0 }
  0xb9   : > { %v1770_v36 = vpop.f32.mrf.mxu2  ;;  %v3288_v39 = vpop.f32.mrf.mxu3  ;;  %v1716_v61 = vadd.f32 %v2762_v45, %v1715_v38  ;;  %v1726_v26 = vadd.f32 %v2762_v45, %v1725_v37 }
  0xbb   : > { %1869 = vmatmul.bf16.gmra.mxu1 %v2302_v35 }
  0xc0   : > { %v1727_v42 = vpop.f32.mrf.mxu1  ;;  %v1717_v43 = vpop.f32.mrf.mxu0 }
  0xc1   : > { %v1773_v40 = vpop.f32.mrf.mxu2  ;;  %v1802_v44 = vpop.f32.mrf.mxu3  ;;  %v1718_v41 = vadd.f32 %v2762_v45, %v1717_v43  ;;  %v1728_v29 = vadd.f32 %v2762_v45, %v1727_v42 }
  0xc8   : > { %v1739_v47 = vpop.f32.mrf.mxu1  ;;  %v1826_v48 = vpop.f32.mrf.mxu0 }
  0xc9   : > { %v1775_v46 = vpop.f32.mrf.mxu2  ;;  %v1740_v49 = vadd.f32 %v1739_v47, %v1711_v22  ;;  %v3293_v51 = vpop.f32.mrf.mxu3 }
  0xcb   : > { %v1769_v50 = vadd.f32 %v1768_v28, %v1740_v49 }
  0xcd   : > { %v1798_v52 = vadd.f32 %v1797_v32, %v1769_v50 }
  0xcf   : > { %v1827_v54 = vadd.f32 %v1826_v48, %v1798_v52 }
  0xd0   : > { %v1741_v56 = vpop.f32.mrf.mxu1  ;;  %v1828_v57 = vpop.f32.mrf.mxu0 }
  0xd1   : > { %v1778_v55 = vpop.f32.mrf.mxu2  ;;  %v1742_v58 = vadd.f32 %v1741_v56, %v1713_v53  ;;  %v1807_v60 = vpop.f32.mrf.mxu3 }
  0xd3   : > { %v1771_v59 = vadd.f32 %v1770_v36, %v1742_v58 }
  0xd5   : > { %v1800_v52 = vadd.f32 %v3288_v39, %v1771_v59 }
  0xd8   : > { %v1744_v63 = vpop.f32.mrf.mxu1  ;;  %v1831_v0 = vpop.f32.mrf.mxu0 }
  0xd9   : > { %v1780_v62 = vpop.f32.mrf.mxu2  ;;  %v1745_v1 = vadd.f32 %v1744_v63, %v1716_v61  ;;  %v3297_v7 = vpop.f32.mrf.mxu3 }
  0xdb   : > { %v1774_v2 = vadd.f32 %v1773_v40, %v1745_v1 }
  0xdd   : > { %v1803_v3 = vadd.f32 %v1802_v44, %v1774_v2 }
  0xdf   : > { %v3295_v4 = vadd.f32 %v1831_v0, %v1803_v3 }
  0xe0   : > { %v1746_v8 = vpop.f32.mrf.mxu1  ;;  %v3299_v31 = vpop.f32.mrf.mxu0 }
  0xe1   : > { %v1783_v6 = vpop.f32.mrf.mxu2  ;;  %v1747_v9 = vadd.f32 %v1746_v8, %v1718_v41  ;;  %v1812_v15 = vpop.f32.mrf.mxu3 }
  0xe3   : > { %v1776_v10 = vadd.f32 %v1775_v46, %v1747_v9 }
  0xe5   : > { %v1805_v41 = vadd.f32 %v3293_v51, %v1776_v10 }
  0xe8   : > { %v1749_v13 = vpop.f32.mrf.mxu1  ;;  %v1836_v14 = vpop.f32.mrf.mxu0 }
  0xe9   : > { %v1785_v12 = vpop.f32.mrf.mxu2  ;;  %v1750_v5 = vadd.f32 %v1749_v13, %v1721_v11  ;;  %v3307_v27 = vpop.f32.mrf.mxu3 }
  0xeb   : > { %v1779_v16 = vadd.f32 %v1778_v55, %v1750_v5  ;;  %v1829_v55 = vadd.f32 %v1828_v57, %v1800_v52 }
  0xed   : > { %v1808_v17 = vadd.f32 %v1807_v60, %v1779_v16 }
  0xef   : > { %v3301_v20 = vadd.f32 %v1836_v14, %v1808_v17  ;;  %v1834_v14 = vadd.f32 %v3299_v31, %v1805_v41 }
  0xf0   : > { %v1751_v23 = vpop.f32.mrf.mxu1  ;;  %v3303_v24 = vpop.f32.mrf.mxu0 }
  0xf1   : > { %v1884_v21 = vpop.f32.mrf.mxu2  ;;  %v1752_v25 = vadd.f32 %v1751_v23, %v1723_v18 }
  0xf3   : > { %v3305_v19 = vadd.f32 %v1780_v62, %v1752_v25  ;;  %v3319_v62 = vld [vmem:[%s3355_s2 + $0x1] ss:$0 sm:$0xff] }
  0xf7   : > { %v1913_v36 = vpop.f32.mrf.mxu3 }
  0xf8   : > { %v1754_v30 = vpop.f32.mrf.mxu1  ;;  %v1841_v32 = vpop.f32.mrf.mxu0 }
  0xf9   : > { %v1886_v28 = vpop.f32.mrf.mxu2  ;;  %v1755_v33 = vadd.f32 %v1754_v30, %v1726_v26 }
  0xfb   : > { %v1784_v34 = vadd.f32 %v1783_v6, %v1755_v33 }
  0xfd   : > { %v1813_v35 = vadd.f32 %v1812_v15, %v1784_v34 }
  0xff   : > { %v3309_v38 = vadd.f32 %v1841_v32, %v1813_v35  ;;  %v1915_v47 = vpop.f32.mrf.mxu3  ;;  %v1810_v32 = vadd.f32 %v3297_v7, %v3305_v19 }
 0x100   : > { %v1756_v43 = vpop.f32.mrf.mxu1  ;;  %v3311_v44 = vpop.f32.mrf.mxu0 }
 0x101   : > { %v1889_v40 = vpop.f32.mrf.mxu2  ;;  %v1757_v22 = vadd.f32 %v1756_v43, %v1728_v29  ;;  %v1839_v29 = vadd.f32 %v3303_v24, %v1810_v32 }
 0x103   : > { %v3313_v46 = vadd.f32 %v1785_v12, %v1757_v22 }
 0x107   : > { %v1918_v60 = vpop.f32.mrf.mxu3 }
 0x108   : > { %v1855_v48 = vpop.f32.mrf.mxu1  ;;  %v1942_v37 = vpop.f32.mrf.mxu0 }
 0x109   : > { %v1856_v49 = vadd.f32 %v1855_v48, %v1827_v54  ;;  %v1891_v50 = vpop.f32.mrf.mxu2 }
 0x10b   : > { %v1885_v53 = vadd.f32 %v1884_v21, %v1856_v49 }
 0x10d   : > { %v1914_v42 = vadd.f32 %v1913_v36, %v1885_v53 }
 0x10f   : > { %v1943_v61 = vadd.f32 %v1942_v37, %v1914_v42  ;;  %v1920_v12 = vpop.f32.mrf.mxu3  ;;  %v1815_v42 = vadd.f32 %v3307_v27, %v3313_v46 }
 0x110   : > { %v1857_v45 = vpop.f32.mrf.mxu1  ;;  %v1944_v56 = vpop.f32.mrf.mxu0 }
 0x111   : > { %v1858_v58 = vadd.f32 %v1857_v45, %v1829_v55  ;;  %v1894_v0 = vpop.f32.mrf.mxu2  ;;  %v1972_v1 = vmul.f32 %v3319_v62, %v1943_v61  ;;  %vm1962_vm6 = vcmp.ge.f32.partialorder %v1943_v61, 0.0 }
 0x113   : > { %v1887_v63 = vadd.f32 %v1886_v28, %v1858_v58  ;;  %v1980_v6 = vsel %vm1962_vm6, %v1943_v61, %v1972_v1 }
 0x115   : > { %v1916_v54 = vadd.f32 %v1915_v47, %v1887_v63  ;;  %v1844_v63 = vadd.f32 %v3311_v44, %v1815_v42 }
 0x117   : > { %v1945_v39 = vadd.f32 %v1944_v56, %v1916_v54  ;;  %v1923_v18 = vpop.f32.mrf.mxu3 }
 0x118   : > { %v1860_v57 = vpop.f32.mrf.mxu1  ;;  %v1947_v59 = vpop.f32.mrf.mxu0 }
 0x119   : > { %vm1963_vm7 = vcmp.ge.f32.partialorder %v1945_v39, 0.0  ;;  %v1973_v2 = vmul.f32 %v3319_v62, %v1945_v39  ;;  %v1861_v3 = vadd.f32 %v1860_v57, %v3295_v4  ;;  %v1896_v13 = vpop.f32.mrf.mxu2 }
 0x11b   : > { %v1981_v8 = vsel %vm1963_vm7, %v1945_v39, %v1973_v2  ;;  %v1890_v9 = vadd.f32 %v1889_v40, %v1861_v3 }
 0x11c   : > { %v2717_v11 = vpack.c.bf16 %v1981_v8, %v1980_v6 }
 0x11d   : > { %v1919_v5 = vadd.f32 %v1918_v60, %v1890_v9 }
 0x11e   : > { %2718 = vst [vmem:[%s3329_s23] sm:$0xff] %v2717_v11  }
 0x11f   : > { %v1948_v51 = vadd.f32 %v1947_v59, %v1919_v5  ;;  %v1925_v43 = vpop.f32.mrf.mxu3 }
 0x120   : > { %v1862_v15 = vpop.f32.mrf.mxu1  ;;  %v1949_v4 = vpop.f32.mrf.mxu0 }
 0x121   : > { %v1863_v16 = vadd.f32 %v1862_v15, %v1834_v14  ;;  %v1974_v21 = vmul.f32 %v3319_v62, %v1948_v51  ;;  %vm1964_vm8 = vcmp.ge.f32.partialorder %v1948_v51, 0.0  ;;  %v1899_v25 = vpop.f32.mrf.mxu2 }
 0x123   : > { %v1892_v10 = vadd.f32 %v1891_v50, %v1863_v16  ;;  %v1982_v33 = vsel %vm1964_vm8, %v1948_v51, %v1974_v21 }
 0x125   : > { %v1921_v17 = vadd.f32 %v1920_v12, %v1892_v10 }
 0x127   : > { %v1950_v23 = vadd.f32 %v1949_v4, %v1921_v17  ;;  %v1928_v55 = vpop.f32.mrf.mxu3 }
 0x128   : > { %v1865_v26 = vpop.f32.mrf.mxu1  ;;  %v1952_v30 = vpop.f32.mrf.mxu0 }
 0x129   : > { %vm1965_vm9 = vcmp.ge.f32.partialorder %v1950_v23, 0.0  ;;  %v1975_v28 = vmul.f32 %v3319_v62, %v1950_v23  ;;  %v1866_v31 = vadd.f32 %v1865_v26, %v3301_v20  ;;  %v1901_v48 = vpop.f32.mrf.mxu2 }
 0x12b   : > { %v1983_v34 = vsel %vm1965_vm9, %v1950_v23, %v1975_v28  ;;  %v1895_v35 = vadd.f32 %v1894_v0, %v1866_v31 }
 0x12c   : > { %v2722_v36 = vpack.c.bf16 %v1983_v34, %v1982_v33 }
 0x12d   : > { %v1924_v40 = vadd.f32 %v1923_v18, %v1895_v35 }
 0x12e   : > { %2734 = vst [vmem:[%s3329_s23 + $0x8] sm:$0xff] %v2722_v36  }
 0x12f   : > { %v1953_v37 = vadd.f32 %v1952_v30, %v1924_v40  ;;  %v1930_v59 = vpop.f32.mrf.mxu3 }
 0x130   : > { %v1867_v22 = vpop.f32.mrf.mxu1  ;;  %v1954_v50 = vpop.f32.mrf.mxu0 }
 0x131   : > { %v1868_v47 = vadd.f32 %v1867_v22, %v1839_v29  ;;  %v1976_v52 = vmul.f32 %v3319_v62, %v1953_v37  ;;  %vm1966_vm10 = vcmp.ge.f32.partialorder %v1953_v37, 0.0  ;;  %v1957_v61 = vpop.f32.mrf.mxu2 }
 0x133   : > { %v1897_v49 = vadd.f32 %v1896_v13, %v1868_v47  ;;  %v1984_v45 = vsel %vm1966_vm10, %v1953_v37, %v1976_v52 }
 0x135   : > { %v1926_v20 = vadd.f32 %v1925_v43, %v1897_v49 }
 0x137   : > { %v1955_v7 = vadd.f32 %v1954_v50, %v1926_v20 }
 0x138   : > { %v1870_v19 = vpop.f32.mrf.mxu1 }
 0x139   : > { %vm1967_vm11 = vcmp.ge.f32.partialorder %v1955_v7, 0.0  ;;  %v1977_v53 = vmul.f32 %v3319_v62, %v1955_v7  ;;  %v1871_v24 = vadd.f32 %v1870_v19, %v3309_v38  ;;  %v1959_v2 = vpop.f32.mrf.mxu2 }
 0x13b   : > { %v1985_v56 = vsel %vm1967_vm11, %v1955_v7, %v1977_v53  ;;  %v1900_v58 = vadd.f32 %v1899_v25, %v1871_v24 }
 0x13c   : > { %v2727_v60 = vpack.c.bf16 %v1985_v56, %v1984_v45 }
 0x13d   : > { %v1929_v0 = vadd.f32 %v1928_v55, %v1900_v58 }
 0x13e   : > { %2735 = vst [vmem:[%s3329_s23 + $0x10] sm:$0xff] %v2727_v60  }
 0x13f   : > { %v1958_v39 = vadd.f32 %v1957_v61, %v1929_v0 }
 0x140   : > { %v1872_v54 = vpop.f32.mrf.mxu1 }
 0x141   : > { %v1873_v1 = vadd.f32 %v1872_v54, %v1844_v63  ;;  %v1978_v3 = vmul.f32 %v3319_v62, %v1958_v39  ;;  %vm1968_vm12 = vcmp.ge.f32.partialorder %v1958_v39, 0.0 }
 0x143   : > { %v1902_v57 = vadd.f32 %v1901_v48, %v1873_v1  ;;  %v1986_v41 = vsel %vm1968_vm12, %v1958_v39, %v1978_v3 }
 0x145   : > { %v1931_v38 = vadd.f32 %v1930_v59, %v1902_v57 }
 0x147   : > { %v1960_v27 = vadd.f32 %v1959_v2, %v1931_v38 }
 0x149   : > { %vm1969_vm13 = vcmp.ge.f32.partialorder %v1960_v27, 0.0  ;;  %v1979_v46 = vmul.f32 %v3319_v62, %v1960_v27 }
 0x14b   : > { %v1987_v6 = vsel %vm1969_vm13, %v1960_v27, %v1979_v46 }
 0x14c   : > { %v2732_v8 = vpack.c.bf16 %v1987_v6, %v1986_v41 }
 0x14e   : > { %2736 = vst [vmem:[%s3329_s23 + $0x18] sm:$0xff] %v2732_v8  }
 0x14f PF: > { %s13_s12 = sadd.s32 1, %s2770_s12  }
 0x150   : > { %p10_p4 = scmp.ge.s32.totalorder %s13_s12, 4  }
 0x152   :  { %12 = sbr.rel (!%p10_p4) target bundleno = 1 (0x1), region = 64 }

// kernel: encoder_forward.10
= control target key start
LH: loop header
LB: loop body
LE: loop exit
PB: predicated region body
PF: predicated region fallthrough
CT: control target
= control target key end

     0   :  { %s1905_s12 = smov 0   ;;  %s2278_s0 = inlined_call_operand.vmem [shape: bf16[2,5,5,512], index: 0, kind: input, shape index: {}]   ;;  %s2279_s1 = inlined_call_operand.vmem [shape: bf16[1152,128], index: 1, kind: input, shape index: {}]   ;;  %s2280_s2 = inlined_call_operand.vmem [shape: f32[2,128], index: 2, kind: input, shape index: {}]   ;;  %s2281_s3 = inlined_call_operand.vmem [shape: bf16[2,16,128], index: 3, kind: output, shape index: {}]  }
   0x1 LB: > { %s1437_s13 = sadd.s32 4294967295, %s1883_s12   ;;  %p1441_p0 = scmp.ge.s32.totalorder %s1883_s12, 1  ;;  %s1883_s12 = sphi %s1905_s12, %s13_s12  }
   0x2   : > { %p137_p1 = scmp.lt.s32.totalorder %s1883_s12, 3 }
   0x4   : > { %p138_p2 = pnand %p1441_p0, %p137_p1 }
   0x5   : > { %p161_p3 = scmp.lt.s32.totalorder (!%p138_p2), %s1437_s13, 1 }
   0x6   : > { %141 = sbr.rel (%p138_p2) target bundleno = 249 (0xf9), region = 32 }
   0xb   : > { %v1796_v0 = vld [vmem:[%s2279_s1 + $0x38] sm:$0xff]  ;;  %v1795_v4 = vld [vmem:[%s2279_s1 + $0x30] sm:$0xff]  ;;  %s2289_s13 = smov (!%p161_p3, %s1437_s13), 1  ;;  %v1794_v8 = vld [vmem:[%s2279_s1 + $0x28] sm:$0xff]  ;;  %vm199_vm0 = vcmask 1041408   ;;  %vm203_vm1 = vcmask 1045508  }
   0xc   : > { %v1812_v1 = vld [vmem:[%s2279_s1 + $0xb8] sm:$0xff]  ;;  %1244 = vmatpush.bf16.msra.mxu0 %v1796_v0  ;;  %v1811_v5 = vld [vmem:[%s2279_s1 + $0xb0] sm:$0xff]  ;;  %v1810_v9 = vld [vmem:[%s2279_s1 + $0xa8] sm:$0xff]  ;;  %s1866_s11 = smul.u32 80, %s2289_s13  ;;  %vm207_vm2 = vcmask 1043456   ;;  %vm264_vm3 = vcmask 1043458  }
   0xd   : > { %v1804_v2 = vld [vmem:[%s2279_s1 + $0x78] sm:$0xff]  ;;  %1272 = vmatpush.bf16.msra.mxu2 %v1812_v1  ;;  %v1803_v6 = vld [vmem:[%s2279_s1 + $0x70] sm:$0xff]  ;;  %v1802_v10 = vld [vmem:[%s2279_s1 + $0x68] sm:$0xff]  ;;  %vm286_vm4 = vsmask.f32 1280  ;;  %s1779_s19 = sshll.u32 %s2289_s13, 3 }
   0xe   : > { %v1820_v3 = vld [vmem:[%s2279_s1 + $0xf8] sm:$0xff]  ;;  %1258 = vmatpush.bf16.msra.mxu1 %v1804_v2  ;;  %v1819_v7 = vld [vmem:[%s2279_s1 + $0xf0] sm:$0xff]  ;;  %v1818_v11 = vld [vmem:[%s2279_s1 + $0xe8] sm:$0xff]  ;;  %s1967_s24 = scalar_lea.vmem %s2278_s0, %s1866_s11  ;;  %vm287_vm5 = vsmask.f32 3336  ;;  %s170_s22 = scalar_lea.vmem %s2281_s3, %s1779_s19 }
   0xf   : > { %1286 = vmatpush.bf16.msra.mxu3 %v1820_v3  ;;  %v1793_v12 = vld [vmem:[%s2279_s1 + $0x20] sm:$0xff]  ;;  %v1792_v16 = vld [vmem:[%s2279_s1 + $0x18] sm:$0xff]  ;;  %v1791_v20 = vld [vmem:[%s2279_s1 + $0x10] sm:$0xff]  ;;  %vm289_vm6 = vsmask.f32 5392 }
  0x10   : > { %1245 = vmatpush.bf16.msra.mxu0 %v1795_v4  ;;  %v1809_v13 = vld [vmem:[%s2279_s1 + $0xa0] sm:$0xff]  ;;  %v1808_v17 = vld [vmem:[%s2279_s1 + $0x98] sm:$0xff]  ;;  %v1807_v21 = vld [vmem:[%s2279_s1 + $0x90] sm:$0xff]  ;;  %vm291_vm8 = vsmask.f32 7448 }
  0x11   : > { %1273 = vmatpush.bf16.msra.mxu2 %v1811_v5  ;;  %v1801_v14 = vld [vmem:[%s2279_s1 + $0x60] sm:$0xff]  ;;  %v1800_v18 = vld [vmem:[%s2279_s1 + $0x58] sm:$0xff]  ;;  %v172_v23 = vld [vmem:[%s1967_s24 + $0x8] sm:$0x33] }
  0x12   : > { %1259 = vmatpush.bf16.msra.mxu1 %v1803_v6  ;;  %v1817_v15 = vld [vmem:[%s2279_s1 + $0xe0] sm:$0xff]  ;;  %v1816_v19 = vld [vmem:[%s2279_s1 + $0xd8] sm:$0xff]  ;;  %v173_v24 = vld [vmem:[%s1967_s24 + $0x10] sm:$0x33]  ;;  %v188_v31 = vrot.slane %v172_v23, 4  ;;  %v189_v34 = vrot.slane %v172_v23, 6 }
  0x13   : > { %1287 = vmatpush.bf16.msra.mxu3 %v1819_v7  ;;  %v171_v22 = vld [vmem:[%s1967_s24] sm:$0x33]  ;;  %v174_v25 = vld [vmem:[%s1967_s24 + $0x18] sm:$0x33]  ;;  %v176_v27 = vld [vmem:[%s1967_s24 + $0x28] sm:$0x33] }
  0x14   : > { %1246 = vmatpush.bf16.msra.mxu0 %v1794_v8  ;;  %v175_v26 = vld [vmem:[%s1967_s24 + $0x20] sm:$0x33]  ;;  %v177_v28 = vld [vmem:[%s1967_s24 + $0x30] sm:$0x33]  ;;  %v178_v29 = vld [vmem:[%s1967_s24 + $0x38] sm:$0x33]  ;;  %v206_v45 = vsel %vm203_vm1, %v188_v31, %v189_v34 }
  0x15   : > { %1274 = vmatpush.bf16.msra.mxu2 %v1810_v9  ;;  %v187_v30 = vrot.slane %v171_v22, 2  ;;  %v1799_v32 = vld [vmem:[%s2279_s1 + $0x50] sm:$0xff]  ;;  %v190_v35 = vrot.slane %v173_v24, 2  ;;  %v191_v36 = vrot.slane %v174_v25, 4  ;;  %v192_v37 = vrot.slane %v174_v25, 6  ;;  %v1790_v46 = vld [vmem:[%s2279_s1 + $0x8] sm:$0xff]  ;;  %vm2072_vm7 = vmor %vm286_vm4, %vm287_vm5 }
  0x16   : > { %1260 = vmatpush.bf16.msra.mxu1 %v1802_v10  ;;  %v1815_v33 = vld [vmem:[%s2279_s1 + $0xd0] sm:$0xff]  ;;  %v193_v38 = vrot.slane %v175_v26, 2  ;;  %v194_v39 = vrot.slane %v176_v27, 4  ;;  %v195_v40 = vrot.slane %v176_v27, 6  ;;  %v196_v41 = vrot.slane %v177_v28, 2  ;;  %v1806_v47 = vld [vmem:[%s2279_s1 + $0x88] sm:$0xff]  ;;  %vm2089_vm9 = vmor %vm2072_vm7, %vm289_vm6 }
  0x17   : > { %1288 = vmatpush.bf16.msra.mxu3 %v1818_v11  ;;  %v197_v42 = vrot.slane %v178_v29, 4  ;;  %v198_v43 = vrot.slane %v178_v29, 6  ;;  %v202_v44 = vsel %vm199_vm0, %v171_v22, %v187_v30  ;;  %v211_v49 = vsel %vm199_vm0, %v173_v24, %v190_v35  ;;  %v249_v51 = vld [vmem:[%s1967_s24] sm:$0x7]  ;;  %v1798_v52 = vld [vmem:[%s2279_s1 + $0x48] sm:$0xff]  ;;  %v1828_v6 = vld [vmem:[%s2279_s1 + $0x138] sm:$0xff] }
  0x18   : > { %1247 = vmatpush.bf16.msra.mxu0 %v1793_v12  ;;  %v208_v48 = vsel %vm207_vm2, %v202_v44, %v206_v45  ;;  %v214_v50 = vsel %vm203_vm1, %v191_v36, %v192_v37  ;;  %v1814_v53 = vld [vmem:[%s2279_s1 + $0xc8] sm:$0xff]  ;;  %v218_v55 = vsel %vm199_vm0, %v175_v26, %v193_v38  ;;  %v221_v56 = vsel %vm203_vm1, %v194_v39, %v195_v40  ;;  %v250_v57 = vld [vmem:[%s1967_s24 + $0x10] sm:$0x7]  ;;  %v251_v61 = vld [vmem:[%s1967_s24 + $0x20] sm:$0x7] }
  0x19   : > { %1275 = vmatpush.bf16.msra.mxu2 %v1809_v13  ;;  %v215_v54 = vsel %vm207_vm2, %v211_v49, %v214_v50  ;;  %230 = vst [vmem:[#allocation1] ss:$2 sm:$0xff] %v208_v48  ;;  %v222_v58 = vsel %vm207_vm2, %v218_v55, %v221_v56  ;;  %v225_v59 = vsel %vm199_vm0, %v177_v28, %v196_v41  ;;  %v252_v62 = vld [vmem:[%s1967_s24 + $0x30] sm:$0x7]  ;;  %v1789_v63 = vld [vmem:[%s2279_s1] sm:$0xff]  ;;  %v257_v1 = vrot.slane %v249_v51, 2  ;;  %vm2105_vm10 = vmor %vm2089_vm9, %vm291_vm8 }
  0x1a   : > { %1261 = vmatpush.bf16.msra.mxu1 %v1801_v14  ;;  %v228_v60 = vsel %vm203_vm1, %v197_v42, %v198_v43  ;;  %232 = vst [vmem:[#allocation1 + $0x1] ss:$2 sm:$0xff] %v215_v54  ;;  %v258_v2 = vrot.slane %v250_v57, 2  ;;  %v1805_v3 = vld [vmem:[%s2279_s1 + $0x80] sm:$0xff]  ;;  %v259_v4 = vrot.slane %v251_v61, 2  ;;  %v1844_v7 = vld [vmem:[%s2279_s1 + $0x1b8] sm:$0xff] }
  0x1b   : > { %1289 = vmatpush.bf16.msra.mxu3 %v1817_v15  ;;  %v229_v0 = vsel %vm207_vm2, %v225_v59, %v228_v60  ;;  %234 = vst [vmem:[#allocation1 + $0x10] ss:$2 sm:$0xff] %v222_v58  ;;  %v2036_v5 = vld [vmem:[%s1967_s24 + $0x8] sm:$0x7]  ;;  %v1797_v8 = vld [vmem:[%s2279_s1 + $0x40] sm:$0xff]  ;;  %v260_v9 = vrot.slane %v252_v62, 2  ;;  %v263_v10 = vsel %vm199_vm0, %v249_v51, %v257_v1  ;;  %v265_v11 = vsel %vm264_vm3, %v249_v51, %v257_v1 }
  0x1c   : > { %1248 = vmatpush.bf16.msra.mxu0 %v1792_v16  ;;  %236 = vst [vmem:[#allocation1 + $0x11] ss:$2 sm:$0xff] %v229_v0  ;;  %v1813_v12 = vld [vmem:[%s2279_s1 + $0xc0] sm:$0xff]  ;;  %v1836_v13 = vld [vmem:[%s2279_s1 + $0x178] sm:$0xff]  ;;  %v267_v15 = vrot.slane %v265_v11, 2  ;;  %v271_v16 = vsel %vm264_vm3, %v250_v57, %v258_v2  ;;  %v370_v23 = vrot.slane %v2036_v5, 2  ;;  %v276_v30 = vsel %vm199_vm0, %v251_v61, %v259_v4 }
  0x1d   : > { %1276 = vmatpush.bf16.msra.mxu2 %v1808_v17  ;;  %v1852_v14 = vld [vmem:[%s2279_s1 + $0x1f8] sm:$0xff]  ;;  %v277_v17 = vsel %vm264_vm3, %v251_v61, %v259_v4  ;;  %v273_v24 = vrot.slane %v271_v16, 2  ;;  %v293_v25 = vshrl.u32 %v263_v10, 16  ;;  %v296_v26 = vshll.u32 %v263_v10, 16  ;;  %v1835_v28 = vld [vmem:[%s2279_s1 + $0x170] sm:$0xff]  ;;  %v1826_v43 = vld [vmem:[%s2279_s1 + $0x128] sm:$0xff] }
  0x1e   : > { %1262 = vmatpush.bf16.msra.mxu1 %v1800_v18  ;;  %v1827_v18 = vld [vmem:[%s2279_s1 + $0x130] sm:$0xff]  ;;  %v302_v27 = vshll.u32 %v267_v15, 16  ;;  %v279_v31 = vrot.slane %v277_v17, 2  ;;  %v1842_v44 = vld [vmem:[%s2279_s1 + $0x1a8] sm:$0xff]  ;;  %v319_v51 = vshrl.u32 %v276_v30, 16  ;;  %v1825_v1 = vld [vmem:[%s2279_s1 + $0x120] sm:$0xff] }
  0x1f   : > { %1290 = vmatpush.bf16.msra.mxu3 %v1816_v19  ;;  %v1843_v19 = vld [vmem:[%s2279_s1 + $0x1b0] sm:$0xff]  ;;  %v295_v37 = vrot.slane %v293_v25, 6  ;;  %v298_v38 = vrot.slane %v296_v26, 7  ;;  %v315_v48 = vshll.u32 %v273_v24, 16  ;;  %v1834_v49 = vld [vmem:[%s2279_s1 + $0x168] sm:$0xff]  ;;  %v376_v25 = vsel %vm199_vm0, %v2036_v5, %v370_v23  ;;  %v1853_v50 = vld [vmem:[%s2279_s1 + $0x200] sm:$0xff] }
  0x20   : > { %1249 = vmatpush.bf16.msra.mxu0 %v1791_v20  ;;  %v270_v20 = vsel %vm199_vm0, %v250_v57, %v258_v2  ;;  %v1851_v34 = vld [vmem:[%s2279_s1 + $0x1f0] sm:$0xff]  ;;  %v304_v39 = vrot.slane %v302_v27, 7  ;;  %v1850_v55 = vld [vmem:[%s2279_s1 + $0x1e8] sm:$0xff]  ;;  %v321_v60 = vrot.slane %v319_v51, 6  ;;  %v363_v0 = vld [vmem:[%s1967_s24 + $0x18] sm:$0x7]  ;;  %v377_v26 = vsel %vm264_vm3, %v2036_v5, %v370_v23 }
  0x21   : > { %1277 = vmatpush.bf16.msra.mxu2 %v1807_v21  ;;  %v2068_v21 = vsel %vm264_vm3, %v252_v62, %v260_v9  ;;  %v237_v29 = vld.sshfl [vmem:[#allocation1] sm:$0xff pattern:$0x75643120]  ;;  %v238_v35 = vld.sshfl [vmem:[#allocation1 + $0x8] sm:$0xff pattern:$0x75643120]  ;;  %v299_v45 = vor.u32 %v298_v38, %v295_v37 }
  0x22   : > { %1263 = vmatpush.bf16.msra.mxu1 %v1799_v32  ;;  %v282_v32 = vsel %vm199_vm0, %v252_v62, %v260_v9  ;;  %245 = vst [vmem:[#allocation2] sm:$0xff] %v237_v29  ;;  %v306_v40 = vshrl.u32 %v270_v20, 16  ;;  %v317_v58 = vrot.slane %v315_v48, 7  ;;  %v1841_v2 = vld [vmem:[%s2279_s1 + $0x1a0] sm:$0xff]  ;;  %v365_v17 = vld [vmem:[%s1967_s24 + $0x38] sm:$0x7] }
  0x23   : > { %1291 = vmatpush.bf16.msra.mxu3 %v1815_v33  ;;  %v285_v33 = vrot.slane %v2068_v21, 2  ;;  %v239_v41 = vld.sshfl [vmem:[#allocation1 + $0x10] sm:$0xff pattern:$0x75643120]  ;;  %246 = vst [vmem:[#allocation2 + $0x8] sm:$0xff] %v238_v35  ;;  %v332_v54 = vshrl.u32 %v282_v32, 16 }
  0x24   : > { %1250 = vmatpush.bf16.msra.mxu0 %v1790_v46  ;;  %v240_v42 = vld.sshfl [vmem:[#allocation1 + $0x18] sm:$0xff pattern:$0x75643120]  ;;  %247 = vst [vmem:[#allocation2 + $0x24] sm:$0xff] %v239_v41  ;;  %v308_v46 = vrot.slane %v306_v40, 6  ;;  %v300_v56 = vrot.slane %v299_v45, 2 }
  0x25   : > { %1278 = vmatpush.bf16.msra.mxu2 %v1806_v47  ;;  %v309_v47 = vshll.u32 %v270_v20, 16  ;;  %248 = vst [vmem:[#allocation2 + $0x2c] sm:$0xff] %v240_v42  ;;  %v335_v59 = vshll.u32 %v282_v32, 16  ;;  %v1833_v9 = vld [vmem:[%s2279_s1 + $0x160] sm:$0xff]  ;;  %v1824_v20 = vld [vmem:[%s2279_s1 + $0x118] sm:$0xff]  ;;  %v373_v42 = vrot.slane %v365_v17, 2 }
  0x26   : > { %1264 = vmatpush.bf16.msra.mxu1 %v1798_v52  ;;  %v322_v52 = vshll.u32 %v276_v30, 16  ;;  %v1840_v29 = vld [vmem:[%s2279_s1 + $0x198] sm:$0xff]  ;;  %v401_v48 = vshll.u32 %v376_v25, 16  ;;  %v1823_v51 = vld [vmem:[%s2279_s1 + $0x110] sm:$0xff] }
  0x27   : > { %1292 = vmatpush.bf16.msra.mxu3 %v1814_v53  ;;  %v328_v53 = vshll.u32 %v279_v31, 16  ;;  %v311_v57 = vrot.slane %v309_v47, 7  ;;  %v1848_v41 = vld [vmem:[%s2279_s1 + $0x1d8] sm:$0xff]  ;;  %v398_v47 = vshrl.u32 %v376_v25, 16  ;;  %v1449_v25 = vld [vmem:[%s1967_s24 + $0x10] sm:$0x7] }
  0x28   : > { %1251 = vmatpush.bf16.msra.mxu0 %v1789_v63  ;;  %v324_v61 = vrot.slane %v322_v52, 7  ;;  %v334_v63 = vrot.slane %v332_v54, 6  ;;  %v1839_v52 = vld [vmem:[%s2279_s1 + $0x190] sm:$0xff]  ;;  %v394_v54 = vsel %vm199_vm0, %v365_v17, %v373_v42 }
  0x29   : > { %1279 = vmatpush.bf16.msra.mxu2 %v1805_v3  ;;  %v330_v62 = vrot.slane %v328_v53, 7  ;;  %v305_v3 = vsel %vm2105_vm10, %v300_v56, %v304_v39  ;;  %v312_v4 = vor.u32 %v311_v57, %v308_v46  ;;  %v1455_v10 = vld [vmem:[#allocation2] sm:$0xf]  ;;  %v1780_v11 = vld [vmem:[#allocation2 + $0x4] sm:$0xf]  ;;  %v1832_v39 = vld [vmem:[%s2279_s1 + $0x158] sm:$0xff] }
  0x2a   : > { %1265 = vmatpush.bf16.msra.mxu1 %v1797_v8  ;;  %v364_v8 = vld [vmem:[%s1967_s24 + $0x28] sm:$0x7]  ;;  %346 = vst [vmem:[#allocation1] ss:$2 sm:$0xff] %v305_v3  ;;  %v1781_v31 = vld [vmem:[#allocation2 + $0xc] sm:$0xf] }
  0x2b   : > { %1293 = vmatpush.bf16.msra.mxu3 %v1813_v12  ;;  %v325_v12 = vor.u32 %v324_v61, %v321_v60  ;;  %v1457_v21 = vld [vmem:[#allocation2 + $0x24] sm:$0xf0]  ;;  %v372_v24 = vrot.slane %v364_v8, 2  ;;  %v400_v60 = vrot.slane %v398_v47, 6  ;;  %v403_v61 = vrot.slane %v401_v48, 7 }
  0x2c   : > { %1300 = vmatpush.bf16.msrb.mxu0 %v1828_v6  ;;  %v337_v6 = vrot.slane %v335_v59, 7  ;;  %v1460_v30 = vor.u32 %v1780_v11, %v1457_v21  ;;  %v1465_v35 = vld [vmem:[#allocation2 + $0x2c] sm:$0xf0]  ;;  %v1831_v57 = vld [vmem:[%s2279_s1 + $0x150] sm:$0xff]  ;;  %v437_v11 = vshrl.u32 %v394_v54, 16 }
  0x2d   : > { %1328 = vmatpush.bf16.msrb.mxu2 %v1844_v7  ;;  %v341_v7 = vshll.u32 %v285_v33, 16  ;;  %v326_v22 = vrot.slane %v325_v12, 2  ;;  %v1468_v38 = vor.u32 %v1781_v31, %v1465_v35  ;;  %v388_v45 = vsel %vm199_vm0, %v364_v8, %v372_v24  ;;  %v1446_v12 = vld [vmem:[%s1967_s24 + $0x20] sm:$0x33] }
  0x2e   : > { %1314 = vmatpush.bf16.msrb.mxu1 %v1836_v13  ;;  %v1849_v13 = vld [vmem:[%s2279_s1 + $0x1e0] sm:$0xff]  ;;  %v338_v15 = vor.u32 %v337_v6, %v334_v63  ;;  %v389_v46 = vsel %vm264_vm3, %v364_v8, %v372_v24  ;;  %v1822_v63 = vld [vmem:[%s2279_s1 + $0x108] sm:$0xff]  ;;  %v1445_v6 = vld [vmem:[%s1967_s24 + $0x10] sm:$0x33]  ;;  %v404_v8 = vor.u32 %v403_v61, %v400_v60 }
  0x2f   : > { %1342 = vmatpush.bf16.msrb.mxu3 %v1852_v14  ;;  %v313_v14 = vrot.slane %v312_v4, 2  ;;  %v343_v16 = vrot.slane %v341_v7, 7  ;;  %v331_v36 = vsel %vm2105_vm10, %v326_v22, %v330_v62  ;;  %1266 = vmatmul.bf16.vlgmr.msra.gmra.mxu1 %v1460_v30  ;;  %v391_v53 = vrot.slane %v389_v46, 2  ;;  %v2191_v24 = vld [vmem:[%s1967_s24 + $0x40] sm:$0x33] }
  0x30   : > { %1301 = vmatpush.bf16.msrb.mxu0 %v1827_v18  ;;  %v371_v18 = vrot.slane %v363_v0, 2  ;;  %v339_v33 = vrot.slane %v338_v15, 2  ;;  %352 = vst [vmem:[#allocation1 + $0x10] ss:$2 sm:$0xff] %v331_v36  ;;  %1294 = vmatmul.bf16.vlgmr.msra.gmra.mxu3 %v1468_v38  ;;  %v424_v4 = vshrl.u32 %v388_v45, 16  ;;  %v479_v47 = vrot.slane %v2191_v24, 2 }
  0x31   : > { %1329 = vmatpush.bf16.msrb.mxu2 %v1843_v19  ;;  %v1784_v19 = vld [vmem:[#allocation2 + $0x20] sm:$0xf0]  ;;  %v318_v32 = vsel %vm2105_vm10, %v313_v14, %v317_v58  ;;  %v1847_v58 = vld [vmem:[%s2279_s1 + $0x1d0] sm:$0xff]  ;;  %v1450_v35 = vld [vmem:[%s1967_s24 + $0x20] sm:$0x7] }
  0x32   : > { %1315 = vmatpush.bf16.msrb.mxu1 %v1835_v28  ;;  %v1456_v27 = vor.u32 %v1784_v19, %v1455_v10  ;;  %v1463_v28 = vld [vmem:[#allocation2 + $0x8] sm:$0xf]  ;;  %349 = vst [vmem:[#allocation1 + $0x1] ss:$2 sm:$0xff] %v318_v32  ;;  %v382_v5 = vsel %vm199_vm0, %v363_v0, %v371_v18  ;;  %v383_v23 = vsel %vm264_vm3, %v363_v0, %v371_v18  ;;  %v1838_v0 = vld [vmem:[%s2279_s1 + $0x188] sm:$0xff]  ;;  %v433_v10 = vshll.u32 %v391_v53, 16 }
  0x33   : > { %1343 = vmatpush.bf16.msrb.mxu3 %v1851_v34  ;;  %v1785_v34 = vld [vmem:[#allocation2 + $0x28] sm:$0xf0]  ;;  %v344_v40 = vsel %vm2105_vm10, %v339_v33, %v343_v16  ;;  %v1846_v14 = vld [vmem:[%s2279_s1 + $0x1c8] sm:$0xff]  ;;  %v426_v16 = vrot.slane %v424_v4, 6  ;;  %v1451_v36 = vld [vmem:[%s1967_s24 + $0x30] sm:$0x7] }
  0x34   : > { %1302 = vmatpush.bf16.msrb.mxu0 %v1826_v43  ;;  %v1464_v37 = vor.u32 %v1785_v34, %v1463_v28  ;;  %355 = vst [vmem:[#allocation1 + $0x11] ss:$2 sm:$0xff] %v344_v40  ;;  %v379_v43 = vrot.slane %v377_v26, 2  ;;  %v2188_v18 = vld [vmem:[%s1967_s24 + $0x30] sm:$0x33]  ;;  %v1821_v26 = vld [vmem:[%s2279_s1 + $0x100] sm:$0xff] }
  0x35   : > { %1330 = vmatpush.bf16.msrb.mxu2 %v1842_v44  ;;  %1252 = vmatmul.bf16.vlgmr.msra.gmra.mxu0 %v1456_v27  ;;  %v385_v44 = vrot.slane %v383_v23, 2  ;;  %v439_v28 = vrot.slane %v437_v11, 6  ;;  %v435_v33 = vrot.slane %v433_v10, 7  ;;  %v476_v34 = vrot.slane %v1445_v6, 2  ;;  %v1860_v40 = vld [vmem:[%s2279_s1 + $0x238] sm:$0xff] }
  0x36   : > { %1316 = vmatpush.bf16.msrb.mxu1 %v1834_v49  ;;  %1280 = vmatmul.bf16.vlgmr.msra.gmra.mxu2 %v1464_v37  ;;  %v411_v49 = vshrl.u32 %v382_v5, 16  ;;  %v407_v56 = vshll.u32 %v379_v43, 16  ;;  %v478_v43 = vrot.slane %v2188_v18, 2  ;;  %v1452_v48 = vld [vmem:[%s1967_s24 + $0x40] sm:$0x7]  ;;  %v491_v10 = vsel %vm199_vm0, %v2191_v24, %v479_v47 }
  0x37   : > { %1344 = vmatpush.bf16.msrb.mxu3 %v1850_v55  ;;  %v395_v55 = vsel %vm264_vm3, %v365_v17, %v373_v42  ;;  %v420_v3 = vshll.u32 %v385_v44, 16  ;;  %v440_v17 = vshll.u32 %v394_v54, 16  ;;  %v1845_v44 = vld [vmem:[%s2279_s1 + $0x1c0] sm:$0xff]  ;;  %v514_v54 = vrot.slane %v1450_v35, 2 }
  0x38   : > { %1303 = vmatpush.bf16.msrb.mxu0 %v1825_v1  ;;  %v397_v59 = vrot.slane %v395_v55, 2  ;;  %v413_v62 = vrot.slane %v411_v49, 6  ;;  %v409_v1 = vrot.slane %v407_v56, 7  ;;  %v513_v49 = vrot.slane %v1449_v25, 2 }
  0x39   : > { %1331 = vmatpush.bf16.msrb.mxu2 %v1841_v2  ;;  %v414_v2 = vshll.u32 %v382_v5, 16  ;;  %v356_v7 = vld.sshfl [vmem:[#allocation1] sm:$0xff pattern:$0x75643120]  ;;  %v422_v21 = vrot.slane %v420_v3, 7  ;;  %v515_v55 = vrot.slane %v1451_v36, 2  ;;  %v525_v3 = vsel %vm199_vm0, %v1450_v35, %v514_v54 }
  0x3a   : > { %1317 = vmatpush.bf16.msrb.mxu1 %v1833_v9  ;;  %v427_v9 = vshll.u32 %v388_v45, 16  ;;  %360 = vst [vmem:[#allocation2 + $0x10] sm:$0xf] %v356_v7  ;;  %v446_v30 = vshll.u32 %v397_v59, 16  ;;  %v1837_v5 = vld [vmem:[%s2279_s1 + $0x180] sm:$0xff]  ;;  %v1859_v59 = vld [vmem:[%s2279_s1 + $0x230] sm:$0xff] }
  0x3b   : > { %1345 = vmatpush.bf16.msrb.mxu3 %v1849_v13  ;;  %v1830_v13 = vld [vmem:[%s2279_s1 + $0x148] sm:$0xff]  ;;  %v416_v15 = vrot.slane %v414_v2, 7  ;;  %v357_v19 = vld.sshfl [vmem:[#allocation1 + $0x10] sm:$0xff pattern:$0x75643120]  ;;  %v516_v61 = vrot.slane %v1452_v48, 2  ;;  %v531_v4 = vsel %vm199_vm0, %v1451_v36, %v515_v55 }
  0x3c   : > { %1304 = vmatpush.bf16.msrb.mxu0 %v1824_v20  ;;  %v405_v20 = vrot.slane %v404_v8, 2  ;;  %v429_v22 = vrot.slane %v427_v9, 7  ;;  %361 = vst [vmem:[#allocation2 + $0x34] sm:$0xf] %v357_v19  ;;  %v448_v38 = vrot.slane %v446_v30, 7  ;;  %v532_v8 = vsel %vm264_vm3, %v1451_v36, %v515_v55  ;;  %v1857_v36 = vld [vmem:[%s2279_s1 + $0x220] sm:$0xff] }
  0x3d   : > { %1332 = vmatpush.bf16.msrb.mxu2 %v1840_v29  ;;  %v417_v27 = vor.u32 %v416_v15, %v413_v62  ;;  %v442_v29 = vrot.slane %v440_v17, 7  ;;  %v520_v62 = vsel %vm264_vm3, %v1449_v25, %v513_v49  ;;  %v538_v9 = vsel %vm264_vm3, %v1452_v48, %v516_v61  ;;  %v1855_v55 = vld [vmem:[%s2279_s1 + $0x210] sm:$0xff] }
  0x3e   : > { %1318 = vmatpush.bf16.msrb.mxu1 %v1832_v39  ;;  %v410_v31 = vsel %vm2105_vm10, %v405_v20, %v409_v1  ;;  %v430_v32 = vor.u32 %v429_v22, %v426_v16  ;;  %v477_v39 = vrot.slane %v1446_v12, 2  ;;  %v522_v2 = vrot.slane %v520_v62, 2 }
  0x3f   : > { %1346 = vmatpush.bf16.msrb.mxu3 %v1848_v41  ;;  %v418_v23 = vrot.slane %v417_v27, 2  ;;  %v443_v37 = vor.u32 %v442_v29, %v439_v28  ;;  %451 = vst [vmem:[#allocation1] ss:$2 sm:$0xff] %v410_v31  ;;  %v1829_v41 = vld [vmem:[%s2279_s1 + $0x140] sm:$0xff]  ;;  %v534_v11 = vrot.slane %v532_v8, 2  ;;  %v554_v15 = vshrl.u32 %v525_v3, 16 }
  0x40   : > { %1305 = vmatpush.bf16.msrb.mxu0 %v1823_v51  ;;  %v431_v42 = vrot.slane %v430_v32, 2  ;;  %v557_v16 = vshll.u32 %v525_v3, 16  ;;  %v567_v17 = vshrl.u32 %v531_v4, 16  ;;  %v537_v20 = vsel %vm199_vm0, %v1452_v48, %v516_v61 }
  0x41   : > { %1333 = vmatpush.bf16.msrb.mxu2 %v1839_v52  ;;  %v423_v45 = vsel %vm2105_vm10, %v418_v23, %v422_v21  ;;  %v444_v46 = vrot.slane %v443_v37, 2  ;;  %v482_v52 = vsel %vm199_vm0, %v1445_v6, %v476_v34  ;;  %v1471_v53 = vld [vmem:[#allocation2 + $0x10] sm:$0xf]  ;;  %v488_v6 = vsel %vm199_vm0, %v2188_v18, %v478_v43  ;;  %v1858_v18 = vld [vmem:[%s2279_s1 + $0x228] sm:$0xff] }
  0x42   : > { %1319 = vmatpush.bf16.msrb.mxu1 %v1831_v57  ;;  %v436_v51 = vsel %vm2105_vm10, %v431_v42, %v435_v33  ;;  %454 = vst [vmem:[#allocation1 + $0x1] ss:$2 sm:$0xff] %v423_v45  ;;  %v485_v57 = vsel %vm199_vm0, %v1446_v12, %v477_v39  ;;  %v550_v22 = vshll.u32 %v522_v2, 16  ;;  %v556_v24 = vrot.slane %v554_v15, 6 }
  0x43   : > { %1347 = vmatpush.bf16.msrb.mxu3 %v1847_v58  ;;  %v449_v56 = vsel %vm2105_vm10, %v444_v46, %v448_v38  ;;  %457 = vst [vmem:[#allocation1 + $0x10] ss:$2 sm:$0xff] %v436_v51  ;;  %v519_v58 = vsel %vm199_vm0, %v1449_v25, %v513_v49  ;;  %v1786_v60 = vld [vmem:[#allocation2 + $0x30] sm:$0xf0]  ;;  %v570_v25 = vshll.u32 %v531_v4, 16  ;;  %v569_v28 = vrot.slane %v567_v17, 6 }
  0x44   : > { %1306 = vmatpush.bf16.msrb.mxu0 %v1822_v63  ;;  %460 = vst [vmem:[#allocation1 + $0x11] ss:$2 sm:$0xff] %v449_v56  ;;  %v526_v63 = vsel %vm264_vm3, %v1450_v35, %v514_v54  ;;  %v1472_v1 = vor.u32 %v1786_v60, %v1471_v53  ;;  %v576_v33 = vshll.u32 %v534_v11, 16  ;;  %v580_v34 = vshrl.u32 %v537_v20, 16  ;;  %v1856_v46 = vld [vmem:[%s2279_s1 + $0x218] sm:$0xff]  ;;  %v1854_v60 = vld [vmem:[%s2279_s1 + $0x208] sm:$0xff] }
  0x45   : > { %1334 = vmatpush.bf16.msrb.mxu2 %v1838_v0  ;;  %v541_v0 = vshrl.u32 %v519_v58, 16  ;;  %v528_v7 = vrot.slane %v526_v63, 2  ;;  %v572_v31 = vrot.slane %v570_v25, 7  ;;  %v583_v35 = vshll.u32 %v537_v20, 16  ;;  %v1875_v11 = vld [vmem:[%s2280_s2] ss:$0 sm:$0xff] }
  0x46   : > { %1320 = vmatpush.bf16.msrb.mxu1 %v1830_v13  ;;  %v544_v13 = vshll.u32 %v519_v58, 16  ;;  %v552_v23 = vrot.slane %v550_v22, 7  ;;  %v582_v39 = vrot.slane %v580_v34, 6 }
  0x47   : > { %1348 = vmatpush.bf16.msrb.mxu3 %v1846_v14  ;;  %v543_v12 = vrot.slane %v541_v0, 6  ;;  %v540_v14 = vrot.slane %v538_v9, 2  ;;  %v563_v27 = vshll.u32 %v528_v7, 16  ;;  %v573_v37 = vor.u32 %v572_v31, %v569_v28 }
  0x48   : > { %1307 = vmatpush.bf16.msrb.mxu0 %v1821_v26  ;;  %v546_v21 = vrot.slane %v544_v13, 7  ;;  %v559_v26 = vrot.slane %v557_v16, 7 }
  0x49   : > { %1335 = vmatpush.bf16.msrb.mxu2 %v1837_v5  ;;  %v461_v19 = vld.sshfl [vmem:[#allocation1] sm:$0xff pattern:$0x75643120]  ;;  %v589_v38 = vshll.u32 %v540_v14, 16  ;;  %v565_v42 = vrot.slane %v563_v27, 7  ;;  %v574_v43 = vrot.slane %v573_v37, 2 }
  0x4a   : > { %1321 = vmatpush.bf16.msrb.mxu1 %v1829_v41  ;;  %492 = vst [vmem:[#allocation1] ss:$2 sm:$0xff] %v482_v52  ;;  %v547_v30 = vor.u32 %v546_v21, %v543_v12  ;;  %v560_v32 = vor.u32 %v559_v26, %v556_v24 }
  0x4b   : > { %1349 = vmatpush.bf16.msrb.mxu3 %v1845_v44  ;;  %1308 = vmatmul.bf16.vlgmr.msrb.gmra.mxu0 %v1472_v1  ;;  %v462_v29 = vld.sshfl [vmem:[#allocation1 + $0x10] sm:$0xff pattern:$0x75643120]  ;;  %494 = vst [vmem:[#allocation1 + $0x1] ss:$2 sm:$0xff] %v485_v57  ;;  %v578_v44 = vrot.slane %v576_v33, 7 }
  0x4c   : > { %1356 = vmatpush.bf16.msra.mxu0 %v1860_v40  ;;  %496 = vst [vmem:[#allocation1 + $0x10] ss:$2 sm:$0xff] %v488_v6  ;;  %v548_v5 = vrot.slane %v547_v30, 2  ;;  %v585_v40 = vrot.slane %v583_v35, 7  ;;  %v561_v41 = vrot.slane %v560_v32, 2  ;;  %v591_v48 = vrot.slane %v589_v38, 7 }
  0x4d   : > { %498 = vst [vmem:[#allocation1 + $0x11] ss:$2 sm:$0xff] %v491_v10  ;;  %v579_v54 = vsel %vm2105_vm10, %v574_v43, %v578_v44 }
  0x4e   : > { %465 = vst [vmem:[#allocation2 + $0x14] sm:$0xf] %v461_v19  ;;  %v586_v45 = vor.u32 %v585_v40, %v582_v39  ;;  %v553_v47 = vsel %vm2105_vm10, %v548_v5, %v552_v23  ;;  %v566_v52 = vsel %vm2105_vm10, %v561_v41, %v565_v42  ;;  %v1876_v42 = vld [vmem:[%s2280_s2 + $0x1] ss:$0 sm:$0xff] }
  0x4f   : > { %466 = vst [vmem:[#allocation2 + $0x38] sm:$0xf] %v462_v29 }
  0x50   : > { %1357 = vmatpush.bf16.msra.mxu0 %v1859_v59  ;;  %v587_v51 = vrot.slane %v586_v45, 2 }
  0x52   : > { %v499_v49 = vld.sshfl [vmem:[#allocation1] sm:$0xff pattern:$0x75643120]  ;;  %v592_v56 = vsel %vm2105_vm10, %v587_v51, %v591_v48 }
  0x53   : > { %503 = vst [vmem:[#allocation2 + $0x18] sm:$0xff] %v499_v49 }
  0x54   : > { %1358 = vmatpush.bf16.msra.mxu0 %v1858_v18  ;;  %v500_v53 = vld.sshfl [vmem:[#allocation1 + $0x10] sm:$0xff pattern:$0x75643120]  ;;  %594 = vst [vmem:[#allocation1] ss:$2 sm:$0xff] %v553_v47 }
  0x55   : > { %504 = vst [vmem:[#allocation2 + $0x3c] sm:$0xff] %v500_v53  ;;  %v1782_v57 = vld [vmem:[#allocation2 + $0x14] sm:$0xf] }
  0x56   : > { %597 = vst [vmem:[#allocation1 + $0x1] ss:$2 sm:$0xff] %v566_v52  ;;  %v1473_v58 = vld [vmem:[#allocation2 + $0x34] sm:$0xf0] }
  0x57   : > { %600 = vst [vmem:[#allocation1 + $0x10] ss:$2 sm:$0xff] %v579_v54  ;;  %v1476_v59 = vor.u32 %v1782_v57, %v1473_v58 }
  0x58   : > { %1359 = vmatpush.bf16.msra.mxu0 %v1857_v36  ;;  %603 = vst [vmem:[#allocation1 + $0x11] ss:$2 sm:$0xff] %v592_v56 }
  0x59   : > { %1322 = vmatmul.bf16.vlgmr.msrb.gmra.mxu1 %v1476_v59 }
  0x5a   : > { %v1479_v61 = vld [vmem:[#allocation2 + $0x18] sm:$0xf]  ;;  %v1783_v62 = vld [vmem:[#allocation2 + $0x1c] sm:$0xf] }
  0x5c   : > { %1360 = vmatpush.bf16.msra.mxu0 %v1856_v46  ;;  %v1787_v63 = vld [vmem:[#allocation2 + $0x38] sm:$0xf0]  ;;  %v1481_v0 = vld [vmem:[#allocation2 + $0x3c] sm:$0xf0] }
  0x5d   : > { %v1480_v1 = vor.u32 %v1787_v63, %v1479_v61  ;;  %v1484_v2 = vor.u32 %v1783_v62, %v1481_v0  ;;  %v604_v3 = vld.sshfl [vmem:[#allocation1] sm:$0xff pattern:$0x75643120] }
  0x5e   : > { %608 = vst [vmem:[#allocation2 + $0x20] sm:$0xf] %v604_v3 }
  0x5f   : > { %1336 = vmatmul.bf16.vlgmr.msrb.gmra.mxu2 %v1480_v1  ;;  %1350 = vmatmul.bf16.vlgmr.msrb.gmra.mxu3 %v1484_v2  ;;  %v605_v4 = vld.sshfl [vmem:[#allocation1 + $0x10] sm:$0xff pattern:$0x75643120] }
  0x60   : > { %1361 = vmatpush.bf16.msra.mxu0 %v1855_v55  ;;  %609 = vst [vmem:[#allocation2 + $0x44] sm:$0xf] %v605_v4 }
  0x64   : > { %1362 = vmatpush.bf16.msra.mxu0 %v1854_v60 }
  0x65   : > { %v1487_v6 = vld [vmem:[#allocation2 + $0x20] sm:$0xf] }
  0x67   : > { %v1788_v7 = vld [vmem:[#allocation2 + $0x40] sm:$0xf0] }
  0x68   : > { %1363 = vmatpush.bf16.msra.mxu0 %v1853_v50  ;;  %v1488_v8 = vor.u32 %v1788_v7, %v1487_v6 }
  0x6b   : > { %1364 = vmatmul.bf16.vlgmr.msra.gmra.mxu0 %v1488_v8 }
  0xac   : > { %v1267_v10 = vpop.f32.mrf.mxu1 }
  0xb2   : > { %v1253_v9 = vpop.f32.mrf.mxu0 }
  0xb3   : > { %v1254_v13 = vadd.f32 %v1875_v11, %v1253_v9  ;;  %v1295_v15 = vpop.f32.mrf.mxu3 }
  0xb4   : > { %v1269_v17 = vpop.f32.mrf.mxu1 }
  0xb5   : > { %v1268_v16 = vadd.f32 %v1267_v10, %v1254_v13 }
  0xb9   : > { %v1281_v14 = vpop.f32.mrf.mxu2 }
  0xba   : > { %v1255_v12 = vpop.f32.mrf.mxu0  ;;  %v1282_v19 = vadd.f32 %v1281_v14, %v1268_v16 }
  0xbb   : > { %v1256_v20 = vadd.f32 %v1875_v11, %v1255_v12  ;;  %v1297_v22 = vpop.f32.mrf.mxu3 }
  0xbc   : > { %v1296_v25 = vadd.f32 %v1295_v15, %v1282_v19 }
  0xbd   : > { %v1270_v24 = vadd.f32 %v1269_v17, %v1256_v20 }
  0xc1   : > { %v1283_v21 = vpop.f32.mrf.mxu2 }
  0xc2   : > { %v1284_v28 = vadd.f32 %v1283_v21, %v1270_v24 }
  0xc4   : > { %v1298_v33 = vadd.f32 %v1297_v22, %v1284_v28 }
  0xc8   : > { %v1309_v18 = vpop.f32.mrf.mxu0 }
  0xc9   : > { %v1310_v27 = vadd.f32 %v1309_v18, %v1296_v25 }
  0xd0   : > { %v1311_v29 = vpop.f32.mrf.mxu0 }
  0xd1   : > { %v1312_v34 = vadd.f32 %v1311_v29, %v1298_v33 }
  0xd6   : > { %v1323_v26 = vpop.f32.mrf.mxu1 }
  0xd7   : > { %v1324_v30 = vadd.f32 %v1323_v26, %v1310_v27 }
  0xde   : > { %v1325_v36 = vpop.f32.mrf.mxu1 }
  0xdf   : > { %v1326_v23 = vadd.f32 %v1325_v36, %v1312_v34 }
  0xe2   : > { %v1337_v31 = vpop.f32.mrf.mxu2  ;;  %v1351_v32 = vpop.f32.mrf.mxu3 }
  0xe3   : > { %v1338_v35 = vadd.f32 %v1337_v31, %v1324_v30 }
  0xe5   : > { %v1352_v37 = vadd.f32 %v1351_v32, %v1338_v35 }
  0xe8   : > { %v1365_v5 = vpop.f32.mrf.mxu0 }
  0xe9   : > { %v1366_v41 = vadd.f32 %v1365_v5, %v1352_v37 }
  0xea   : > { %v1339_v38 = vpop.f32.mrf.mxu2  ;;  %v1353_v40 = vpop.f32.mrf.mxu3 }
  0xeb   : > { %v1340_v39 = vadd.f32 %v1339_v38, %v1326_v23  ;;  %v1374_v45 = vmul.f32 %v1876_v42, %v1366_v41  ;;  %vm1370_vm11 = vcmp.ge.f32.partialorder %v1366_v41, 0.0 }
  0xed   : > { %v1354_v43 = vadd.f32 %v1353_v40, %v1340_v39  ;;  %v1376_v48 = vsel %vm1370_vm11, %v1366_v41, %v1374_v45 }
  0xf0   : > { %v1367_v44 = vpop.f32.mrf.mxu0 }
  0xf1   : > { %v1368_v46 = vadd.f32 %v1367_v44, %v1354_v43 }
  0xf3   : > { %vm1371_vm12 = vcmp.ge.f32.partialorder %v1368_v46, 0.0  ;;  %v1375_v47 = vmul.f32 %v1876_v42, %v1368_v46 }
  0xf5   : > { %v1377_v49 = vsel %vm1371_vm12, %v1368_v46, %v1375_v47 }
  0xf6   : > { %v1864_v51 = vpack.c.bf16 %v1377_v49, %v1376_v48 }
  0xf8   : > { %1865 = vst [vmem:[%s170_s22] sm:$0xff] %v1864_v51  }
  0xf9 PF: > { %s13_s12 = sadd.s32 1, %s1883_s12  }
  0xfa   : > { %p10_p4 = scmp.ge.s32.totalorder %s13_s12, 4  }
  0xfc   :  { %12 = sbr.rel (!%p10_p4) target bundleno = 1 (0x1), region = 78 }

// kernel: encoder_forward.11
= control target key start
LH: loop header
LB: loop body
LE: loop exit
PB: predicated region body
PF: predicated region fallthrough
CT: control target
= control target key end

     0   :  { %s2121_s12 = smov 0   ;;  %s2591_s0 = inlined_call_operand.vmem [shape: bf16[2,6,6,128], index: 0, kind: input, shape index: {}]   ;;  %s2592_s1 = inlined_call_operand.vmem [shape: bf16[1152,128], index: 1, kind: input, shape index: {}]   ;;  %s2593_s2 = inlined_call_operand.vmem [shape: f32[2,128], index: 2, kind: input, shape index: {}]   ;;  %s2594_s3 = inlined_call_operand.vmem [shape: bf16[2,16,128], index: 3, kind: output, shape index: {}]  }
   0x1 LB: > { %s1613_s13 = sadd.s32 4294967295, %s2099_s12   ;;  %p1617_p0 = scmp.ge.s32.totalorder %s2099_s12, 1  ;;  %s2099_s12 = sphi %s2121_s12, %s13_s12  }
   0x2   : > { %p137_p1 = scmp.lt.s32.totalorder %s2099_s12, 3 }
   0x4   : > { %p138_p2 = pnand %p1617_p0, %p137_p1 }
   0x5   : > { %p161_p3 = scmp.lt.s32.totalorder (!%p138_p2), %s1613_s13, 1 }
   0x6   : > { %141 = sbr.rel (%p138_p2) target bundleno = 271 (0x10f), region = 32 }
   0xb   : > { %v2012_v0 = vld [vmem:[%s2592_s1 + $0x38] sm:$0xff]  ;;  %v2011_v2 = vld [vmem:[%s2592_s1 + $0x30] sm:$0xff]  ;;  %s2608_s13 = smov (!%p161_p3, %s1613_s13), 1  ;;  %v2010_v7 = vld [vmem:[%s2592_s1 + $0x28] sm:$0xff]  ;;  %vm204_vm0 = vcmask 1041408   ;;  %vm208_vm1 = vcmask 1043458  }
   0xc   : > { %v2020_v1 = vld [vmem:[%s2592_s1 + $0x78] sm:$0xff]  ;;  %1420 = vmatpush.bf16.msra.mxu0 %v2012_v0  ;;  %v2019_v3 = vld [vmem:[%s2592_s1 + $0x70] sm:$0xff]  ;;  %v2018_v8 = vld [vmem:[%s2592_s1 + $0x68] sm:$0xff]  ;;  %s2082_s7 = smul.u32 24, %s2608_s13  ;;  %vm230_vm2 = vsmask.f32 1280 }
   0xd   : > { %1434 = vmatpush.bf16.msra.mxu1 %v2020_v1  ;;  %v2028_v4 = vld [vmem:[%s2592_s1 + $0xb8] sm:$0xff]  ;;  %v2027_v5 = vld [vmem:[%s2592_s1 + $0xb0] sm:$0xff]  ;;  %v2026_v10 = vld [vmem:[%s2592_s1 + $0xa8] sm:$0xff]  ;;  %vm231_vm3 = vsmask.f32 3336  ;;  %vm346_vm6 = vcmask 1040384  }
   0xe   : > { %1448 = vmatpush.bf16.msra.mxu2 %v2028_v4  ;;  %v2036_v6 = vld [vmem:[%s2592_s1 + $0xf8] sm:$0xff]  ;;  %v2035_v9 = vld [vmem:[%s2592_s1 + $0xf0] sm:$0xff]  ;;  %v2009_v11 = vld [vmem:[%s2592_s1 + $0x20] sm:$0xff]  ;;  %s2180_s22 = scalar_lea.vmem %s2591_s0, %s2082_s7  ;;  %vm233_vm4 = vsmask.f32 5392  ;;  %vm347_vm7 = vcmask 1042434  }
   0xf   : > { %1462 = vmatpush.bf16.msra.mxu3 %v2036_v6  ;;  %v2017_v12 = vld [vmem:[%s2592_s1 + $0x60] sm:$0xff]  ;;  %v2034_v14 = vld [vmem:[%s2592_s1 + $0xe8] sm:$0xff]  ;;  %v2008_v18 = vld [vmem:[%s2592_s1 + $0x18] sm:$0xff]  ;;  %vm235_vm5 = vsmask.f32 7448  ;;  %vm349_vm9 = vcmask 1044484  }
  0x10   : > { %1421 = vmatpush.bf16.msra.mxu0 %v2011_v2  ;;  %v2025_v13 = vld [vmem:[%s2592_s1 + $0xa0] sm:$0xff]  ;;  %v173_v17 = vld [vmem:[%s2180_s22 + $0x8] sm:$0x3]  ;;  %v2016_v19 = vld [vmem:[%s2592_s1 + $0x58] sm:$0xff]  ;;  %vm351_vm11 = vcmask 1046534   ;;  %s1995_s19 = sshll.u32 %s2608_s13, 3 }
  0x11   : > { %1435 = vmatpush.bf16.msra.mxu1 %v2019_v3  ;;  %v171_v15 = vld [vmem:[%s2180_s22] sm:$0x3]  ;;  %v172_v16 = vld [vmem:[%s2180_s22 + $0x4] sm:$0x3]  ;;  %v174_v20 = vld [vmem:[%s2180_s22 + $0xc] sm:$0x3]  ;;  %s170_s23 = scalar_lea.vmem %s2594_s3, %s1995_s19 }
  0x12   : > { %1449 = vmatpush.bf16.msra.mxu2 %v2027_v5  ;;  %176 = vst [vmem:[#allocation1] ss:$2 sm:$0xff] %v171_v15  ;;  %v192_v21 = vld [vmem:[%s2180_s22] sm:$0x7]  ;;  %v2024_v22 = vld [vmem:[%s2592_s1 + $0x98] sm:$0xff]  ;;  %v2007_v32 = vld [vmem:[%s2592_s1 + $0x10] sm:$0xff] }
  0x13   : > { %1463 = vmatpush.bf16.msra.mxu3 %v2035_v9  ;;  %179 = vst [vmem:[#allocation1 + $0x1] ss:$2 sm:$0xff] %v172_v16  ;;  %v2033_v23 = vld [vmem:[%s2592_s1 + $0xe0] sm:$0xff]  ;;  %v200_v24 = vrot.slane %v192_v21, 2  ;;  %v194_v26 = vld [vmem:[%s2180_s22 + $0x8] sm:$0x7]  ;;  %vm2212_vm8 = vmor %vm230_vm2, %vm231_vm3 }
  0x14   : > { %1422 = vmatpush.bf16.msra.mxu0 %v2010_v7  ;;  %182 = vst [vmem:[#allocation1 + $0x10] ss:$2 sm:$0xff] %v173_v17  ;;  %v193_v25 = vld [vmem:[%s2180_s22 + $0x4] sm:$0x7]  ;;  %v195_v27 = vld [vmem:[%s2180_s22 + $0xc] sm:$0x7]  ;;  %vm2240_vm10 = vmor %vm2212_vm8, %vm233_vm4 }
  0x15   : > { %1436 = vmatpush.bf16.msra.mxu1 %v2018_v8  ;;  %185 = vst [vmem:[#allocation1 + $0x11] ss:$2 sm:$0xff] %v174_v20  ;;  %v201_v28 = vrot.slane %v193_v25, 2  ;;  %v202_v29 = vrot.slane %v194_v26, 2  ;;  %v207_v30 = vsel %vm204_vm0, %v192_v21, %v200_v24  ;;  %v209_v31 = vsel %vm208_vm1, %v192_v21, %v200_v24  ;;  %v2015_v33 = vld [vmem:[%s2592_s1 + $0x50] sm:$0xff]  ;;  %v2032_v39 = vld [vmem:[%s2592_s1 + $0xd8] sm:$0xff]  ;;  %vm2257_vm12 = vmor %vm2240_vm10, %vm235_vm5 }
  0x16   : > { %1450 = vmatpush.bf16.msra.mxu2 %v2026_v10  ;;  %v203_v34 = vrot.slane %v195_v27, 2  ;;  %v211_v35 = vrot.slane %v209_v31, 2  ;;  %v237_v37 = vshrl.u32 %v207_v30, 16  ;;  %v240_v38 = vshll.u32 %v207_v30, 16  ;;  %v2006_v43 = vld [vmem:[%s2592_s1 + $0x8] sm:$0xff]  ;;  %v2023_v45 = vld [vmem:[%s2592_s1 + $0x90] sm:$0xff]  ;;  %vm2271_vm13 = vmor %vm346_vm6, %vm347_vm7 }
  0x17   : > { %1464 = vmatpush.bf16.msra.mxu3 %v2034_v14  ;;  %v214_v40 = vsel %vm204_vm0, %v193_v25, %v201_v28  ;;  %v215_v41 = vsel %vm208_vm1, %v193_v25, %v201_v28  ;;  %v221_v42 = vsel %vm208_vm1, %v194_v26, %v202_v29  ;;  %v2014_v44 = vld [vmem:[%s2592_s1 + $0x48] sm:$0xff]  ;;  %v220_v47 = vsel %vm204_vm0, %v194_v26, %v202_v29  ;;  %v2031_v50 = vld [vmem:[%s2592_s1 + $0xd0] sm:$0xff]  ;;  %v306_v62 = vld [vmem:[%s2180_s22] sm:$0x6] }
  0x18   : > { %1423 = vmatpush.bf16.msra.mxu0 %v2009_v11  ;;  %v217_v46 = vrot.slane %v215_v41, 2  ;;  %v223_v48 = vrot.slane %v221_v42, 2  ;;  %v227_v49 = vsel %vm208_vm1, %v195_v27, %v203_v34  ;;  %v226_v52 = vsel %vm204_vm0, %v195_v27, %v203_v34  ;;  %v2022_v57 = vld [vmem:[%s2592_s1 + $0x88] sm:$0xff]  ;;  %v2249_v63 = vld [vmem:[%s2180_s22 + $0x4] sm:$0x6]  ;;  %v2044_v11 = vld [vmem:[%s2592_s1 + $0x138] sm:$0xff] }
  0x19   : > { %1437 = vmatpush.bf16.msra.mxu1 %v2017_v12  ;;  %v229_v53 = vrot.slane %v227_v49, 2  ;;  %v239_v55 = vrot.slane %v237_v37, 6  ;;  %v242_v56 = vrot.slane %v240_v38, 7  ;;  %v246_v58 = vshll.u32 %v211_v35, 16  ;;  %v2005_v5 = vld [vmem:[%s2592_s1] sm:$0xff]  ;;  %v2052_v24 = vld [vmem:[%s2592_s1 + $0x178] sm:$0xff]  ;;  %vm2297_vm14 = vmor %vm2271_vm13, %vm349_vm9 }
  0x1a   : > { %1451 = vmatpush.bf16.msra.mxu2 %v2025_v13  ;;  %v186_v51 = vld.sshfl [vmem:[#allocation1] sm:$0xff pattern:$0x75643120]  ;;  %v250_v59 = vshrl.u32 %v214_v40, 16  ;;  %v253_v60 = vshll.u32 %v214_v40, 16  ;;  %v259_v61 = vshll.u32 %v217_v46, 16  ;;  %vm2320_vm15 = vmor %vm2297_vm14, %vm351_vm11 }
  0x1b   : > { %1465 = vmatpush.bf16.msra.mxu3 %v2033_v23  ;;  %190 = vst [vmem:[#allocation2] sm:$0xf] %v186_v51  ;;  %v243_v1 = vor.u32 %v242_v56, %v239_v55  ;;  %v263_v2 = vshrl.u32 %v220_v47, 16  ;;  %v266_v3 = vshll.u32 %v220_v47, 16  ;;  %v272_v4 = vshll.u32 %v223_v48, 16  ;;  %v2013_v17 = vld [vmem:[%s2592_s1 + $0x40] sm:$0xff] }
  0x1c   : > { %1424 = vmatpush.bf16.msra.mxu0 %v2008_v18  ;;  %v187_v0 = vld.sshfl [vmem:[#allocation1 + $0x10] sm:$0xff pattern:$0x75643120]  ;;  %v248_v7 = vrot.slane %v246_v58, 7  ;;  %v252_v8 = vrot.slane %v250_v59, 6  ;;  %v255_v9 = vrot.slane %v253_v60, 7 }
  0x1d   : > { %1438 = vmatpush.bf16.msra.mxu1 %v2016_v19  ;;  %191 = vst [vmem:[#allocation2 + $0x24] sm:$0xf] %v187_v0  ;;  %v261_v10 = vrot.slane %v259_v61, 7  ;;  %v244_v12 = vrot.slane %v243_v1, 2  ;;  %v265_v13 = vrot.slane %v263_v2, 6  ;;  %v268_v14 = vrot.slane %v266_v3, 7 }
  0x1e   : > { %1452 = vmatpush.bf16.msra.mxu2 %v2024_v22  ;;  %v274_v15 = vrot.slane %v272_v4, 7  ;;  %v308_v16 = vld [vmem:[%s2180_s22 + $0x8] sm:$0x6]  ;;  %v256_v18 = vor.u32 %v255_v9, %v252_v8  ;;  %v276_v19 = vshrl.u32 %v226_v52, 16  ;;  %v279_v20 = vshll.u32 %v226_v52, 16  ;;  %v2021_v25 = vld [vmem:[%s2592_s1 + $0x80] sm:$0xff] }
  0x1f   : > { %1466 = vmatpush.bf16.msra.mxu3 %v2032_v39  ;;  %v285_v21 = vshll.u32 %v229_v53, 16  ;;  %v309_v22 = vld [vmem:[%s2180_s22 + $0xc] sm:$0x6]  ;;  %v249_v27 = vsel %vm2257_vm12, %v244_v12, %v248_v7  ;;  %v269_v28 = vor.u32 %v268_v14, %v265_v13  ;;  %v314_v29 = vrot.slane %v306_v62, 2  ;;  %v2043_v35 = vld [vmem:[%s2592_s1 + $0x130] sm:$0xff]  ;;  %v2060_v37 = vld [vmem:[%s2592_s1 + $0x1b8] sm:$0xff] }
  0x20   : > { %1425 = vmatpush.bf16.msra.mxu0 %v2007_v32  ;;  %v2030_v26 = vld [vmem:[%s2592_s1 + $0xc8] sm:$0xff]  ;;  %v315_v30 = vrot.slane %v2249_v63, 2  ;;  %v257_v31 = vrot.slane %v256_v18, 2  ;;  %v278_v32 = vrot.slane %v276_v19, 6  ;;  %290 = vst [vmem:[#allocation1] ss:$2 sm:$0xff] %v249_v27 }
  0x21   : > { %1439 = vmatpush.bf16.msra.mxu1 %v2015_v33  ;;  %v281_v33 = vrot.slane %v279_v20, 7  ;;  %v287_v34 = vrot.slane %v285_v21, 7  ;;  %v270_v38 = vrot.slane %v269_v28, 2  ;;  %v316_v39 = vrot.slane %v308_v16, 2  ;;  %v1633_v49 = vld [vmem:[%s2180_s22 + $0x4] sm:$0x7] }
  0x22   : > { %1453 = vmatpush.bf16.msra.mxu2 %v2023_v45  ;;  %v1671_v36 = vld [vmem:[#allocation2] sm:$0xf]  ;;  %v317_v40 = vrot.slane %v309_v22, 2  ;;  %v320_v41 = vsel %vm204_vm0, %v306_v62, %v314_v29  ;;  %v262_v45 = vsel %vm2257_vm12, %v257_v31, %v261_v10  ;;  %v322_v47 = vsel %vm208_vm1, %v306_v62, %v314_v29  ;;  %v2059_v58 = vld [vmem:[%s2592_s1 + $0x1b0] sm:$0xff]  ;;  %v2049_v21 = vld [vmem:[%s2592_s1 + $0x160] sm:$0xff] }
  0x23   : > { %1467 = vmatpush.bf16.msra.mxu3 %v2031_v50  ;;  %v282_v46 = vor.u32 %v281_v33, %v278_v32  ;;  %v1621_v48 = vrot.slane %v320_v41, 9  ;;  %v275_v51 = vsel %vm2257_vm12, %v270_v38, %v274_v15  ;;  %293 = vst [vmem:[#allocation1 + $0x1] ss:$2 sm:$0xff] %v262_v45  ;;  %v327_v52 = vsel %vm204_vm0, %v2249_v63, %v315_v30  ;;  %v1634_v62 = vld [vmem:[%s2180_s22 + $0x8] sm:$0x7]  ;;  %v2068_v23 = vld [vmem:[%s2592_s1 + $0x1f8] sm:$0xff] }
  0x24   : > { %1426 = vmatpush.bf16.msra.mxu0 %v2006_v43  ;;  %v2051_v43 = vld [vmem:[%s2592_s1 + $0x170] sm:$0xff]  ;;  %v2000_v50 = vld [vmem:[#allocation2 + $0x20] sm:$0xf0]  ;;  %v329_v53 = vsel %vm208_vm1, %v2249_v63, %v315_v30  ;;  %296 = vst [vmem:[#allocation1 + $0x10] ss:$2 sm:$0xff] %v275_v51  ;;  %v334_v59 = vsel %vm204_vm0, %v308_v16, %v316_v39  ;;  %v336_v60 = vsel %vm208_vm1, %v308_v16, %v316_v39  ;;  %v1623_v61 = vrot.slane %v327_v52, 9 }
  0x25   : > { %1440 = vmatpush.bf16.msra.mxu1 %v2014_v44  ;;  %v2029_v44 = vld [vmem:[%s2592_s1 + $0xc0] sm:$0xff]  ;;  %v1672_v54 = vor.u32 %v2000_v50, %v1671_v36  ;;  %v283_v55 = vrot.slane %v282_v46, 2  ;;  %v1635_v63 = vld [vmem:[%s2180_s22 + $0xc] sm:$0x7]  ;;  %v341_v1 = vsel %vm204_vm0, %v309_v22, %v317_v40  ;;  %v343_v2 = vsel %vm208_vm1, %v309_v22, %v317_v40  ;;  %v2067_v30 = vld [vmem:[%s2592_s1 + $0x1f0] sm:$0xff] }
  0x26   : > { %1454 = vmatpush.bf16.msra.mxu2 %v2022_v57  ;;  %v1622_v57 = vrot.slane %v322_v47, 9  ;;  %v1624_v3 = vrot.slane %v329_v53, 9  ;;  %v2042_v4 = vld [vmem:[%s2592_s1 + $0x128] sm:$0xff]  ;;  %v416_v8 = vrot.slane %v1633_v49, 2  ;;  %v1625_v9 = vrot.slane %v334_v59, 9  ;;  %v2057_v29 = vld [vmem:[%s2592_s1 + $0x1a0] sm:$0xff] }
  0x27   : > { %1468 = vmatpush.bf16.msra.mxu3 %v2030_v26  ;;  %v288_v0 = vsel %vm2257_vm12, %v283_v55, %v287_v34  ;;  %v1626_v10 = vrot.slane %v336_v60, 9  ;;  %v417_v12 = vrot.slane %v1634_v62, 2  ;;  %v418_v13 = vrot.slane %v1635_v63, 2  ;;  %v2058_v22 = vld [vmem:[%s2592_s1 + $0x1a8] sm:$0xff]  ;;  %v2040_v38 = vld [vmem:[%s2592_s1 + $0x118] sm:$0xff] }
  0x28   : > { %1427 = vmatpush.bf16.msra.mxu0 %v2005_v5  ;;  %v2050_v5 = vld [vmem:[%s2592_s1 + $0x168] sm:$0xff]  ;;  %299 = vst [vmem:[#allocation1 + $0x11] ss:$2 sm:$0xff] %v288_v0  ;;  %v356_v7 = vsel %vm2320_vm15, %v1621_v48, %v1622_v57  ;;  %v360_v14 = vsel %vm2320_vm15, %v1623_v61, %v1624_v3  ;;  %v1627_v15 = vrot.slane %v341_v1, 9  ;;  %v1628_v16 = vrot.slane %v343_v2, 9  ;;  %v2048_v39 = vld [vmem:[%s2592_s1 + $0x158] sm:$0xff] }
  0x29   : > { %1441 = vmatpush.bf16.msra.mxu1 %v2013_v17  ;;  %v2041_v17 = vld [vmem:[%s2592_s1 + $0x120] sm:$0xff]  ;;  %v422_v19 = vsel %vm204_vm0, %v1633_v49, %v416_v8  ;;  %v423_v20 = vsel %vm208_vm1, %v1633_v49, %v416_v8  ;;  %v364_v26 = vsel %vm2320_vm15, %v1625_v9, %v1626_v10  ;;  %v434_v27 = vsel %vm204_vm0, %v1635_v63, %v418_v13  ;;  %v1630_v49 = vld [vmem:[%s2180_s22 + $0x8] sm:$0x3]  ;;  %v2047_v61 = vld [vmem:[%s2592_s1 + $0x150] sm:$0xff] }
  0x2a   : > { %1455 = vmatpush.bf16.msra.mxu2 %v2021_v25  ;;  %v300_v18 = vld.sshfl [vmem:[#allocation1] sm:$0xff pattern:$0x75643120]  ;;  %v428_v25 = vsel %vm204_vm0, %v1634_v62, %v417_v12  ;;  %v368_v28 = vsel %vm2320_vm15, %v1627_v15, %v1628_v16  ;;  %v425_v31 = vrot.slane %v423_v20, 2  ;;  %v429_v32 = vsel %vm208_vm1, %v1634_v62, %v417_v12  ;;  %v1631_v0 = vld [vmem:[%s2180_s22 + $0xc] sm:$0x3] }
  0x2b   : > { %1428 = vmatmul.bf16.vlgmr.msra.gmra.mxu0 %v1672_v54  ;;  %1469 = vmatpush.bf16.msra.mxu3 %v2029_v44  ;;  %370 = vst [vmem:[#allocation1] ss:$2 sm:$0xff] %v356_v7  ;;  %v444_v33 = vshrl.u32 %v422_v19, 16  ;;  %v447_v36 = vshll.u32 %v422_v19, 16  ;;  %v460_v42 = vshll.u32 %v428_v25, 16  ;;  %v431_v45 = vrot.slane %v429_v32, 2 }
  0x2c   : > { %1476 = vmatpush.bf16.msrb.mxu0 %v2044_v11  ;;  %v1636_v11 = vld [vmem:[%s2180_s22 + $0x10] sm:$0x7]  ;;  %373 = vst [vmem:[#allocation1 + $0x1] ss:$2 sm:$0xff] %v360_v14  ;;  %v1629_v44 = vld [vmem:[%s2180_s22 + $0x4] sm:$0x3] }
  0x2d   : > { %1490 = vmatpush.bf16.msrb.mxu1 %v2052_v24  ;;  %v419_v24 = vrot.slane %v1636_v11, 2  ;;  %304 = vst [vmem:[#allocation2 + $0x4] sm:$0xf] %v300_v18  ;;  %v446_v46 = vrot.slane %v444_v33, 6  ;;  %v449_v47 = vrot.slane %v447_v36, 7  ;;  %v473_v48 = vshll.u32 %v434_v27, 16 }
  0x2e   : > { %1504 = vmatpush.bf16.msrb.mxu2 %v2060_v37  ;;  %v457_v37 = vshrl.u32 %v428_v25, 16  ;;  %v2384_v51 = vshll.u32 %v425_v31, 16  ;;  %v462_v53 = vrot.slane %v460_v42, 7  ;;  %v2039_v54 = vld [vmem:[%s2592_s1 + $0x110] sm:$0xff]  ;;  %v1637_v59 = vld [vmem:[%s2180_s22 + $0x4] sm:$0x6] }
  0x2f   : > { %1518 = vmatpush.bf16.msrb.mxu3 %v2068_v23  ;;  %v301_v34 = vld.sshfl [vmem:[#allocation1 + $0x10] sm:$0xff pattern:$0x75643120]  ;;  %v440_v40 = vsel %vm204_vm0, %v1636_v11, %v419_v24  ;;  %v441_v41 = vsel %vm208_vm1, %v1636_v11, %v419_v24  ;;  %v450_v1 = vor.u32 %v449_v47, %v446_v46  ;;  %v466_v2 = vshll.u32 %v431_v45, 16  ;;  %v2038_v7 = vld [vmem:[%s2592_s1 + $0x108] sm:$0xff]  ;;  %v2056_v20 = vld [vmem:[%s2592_s1 + $0x198] sm:$0xff] }
  0x30   : > { %1477 = vmatpush.bf16.msrb.mxu0 %v2043_v35  ;;  %v435_v35 = vsel %vm208_vm1, %v1635_v63, %v418_v13  ;;  %376 = vst [vmem:[#allocation1 + $0x10] ss:$2 sm:$0xff] %v364_v26  ;;  %v459_v52 = vrot.slane %v457_v37, 6  ;;  %v443_v55 = vrot.slane %v441_v41, 2  ;;  %v483_v57 = vshrl.u32 %v440_v40, 16  ;;  %v2046_v25 = vld [vmem:[%s2592_s1 + $0x148] sm:$0xff] }
  0x31   : > { %1491 = vmatpush.bf16.msrb.mxu1 %v2051_v43  ;;  %v470_v43 = vshrl.u32 %v434_v27, 16  ;;  %379 = vst [vmem:[#allocation1 + $0x11] ss:$2 sm:$0xff] %v368_v28  ;;  %v437_v50 = vrot.slane %v435_v35, 2  ;;  %v475_v63 = vrot.slane %v473_v48, 7  ;;  %v455_v8 = vrot.slane %v2384_v51, 7 }
  0x32   : > { %1505 = vmatpush.bf16.msrb.mxu2 %v2059_v58  ;;  %305 = vst [vmem:[#allocation2 + $0x28] sm:$0xf] %v301_v34  ;;  %v486_v58 = vshll.u32 %v440_v40, 16  ;;  %v485_v3 = vrot.slane %v483_v57, 6  ;;  %v463_v9 = vor.u32 %v462_v53, %v459_v52  ;;  %v1639_v12 = vld [vmem:[%s2180_s22 + $0xc] sm:$0x6] }
  0x33   : > { %1519 = vmatpush.bf16.msrb.mxu3 %v2067_v30  ;;  %v380_v60 = vld.sshfl [vmem:[#allocation1] sm:$0xff pattern:$0x75643120]  ;;  %v472_v62 = vrot.slane %v470_v43, 6  ;;  %v2400_v10 = vshll.u32 %v437_v50, 16  ;;  %v2403_v14 = vshll.u32 %v443_v55, 16 }
  0x34   : > { %1478 = vmatpush.bf16.msrb.mxu0 %v2042_v4  ;;  %384 = vst [vmem:[#allocation2 + $0x8] sm:$0xf] %v380_v60  ;;  %v1638_v4 = vld [vmem:[%s2180_s22 + $0x8] sm:$0x6]  ;;  %v488_v11 = vrot.slane %v486_v58, 7  ;;  %v521_v16 = vrot.slane %v1637_v59, 2 }
  0x35   : > { %1492 = vmatpush.bf16.msrb.mxu1 %v2050_v5  ;;  %v1632_v5 = vld [vmem:[%s2180_s22 + $0x10] sm:$0x3]  ;;  %392 = vst [vmem:[#allocation1] ss:$2 sm:$0xff] %v1629_v44  ;;  %v1996_v13 = vld [vmem:[#allocation2 + $0x4] sm:$0xf]  ;;  %v476_v18 = vor.u32 %v475_v63, %v472_v62 }
  0x36   : > { %1506 = vmatpush.bf16.msrb.mxu2 %v2058_v22  ;;  %395 = vst [vmem:[#allocation1 + $0x1] ss:$2 sm:$0xff] %v1630_v49  ;;  %v1640_v15 = vld [vmem:[%s2180_s22 + $0x10] sm:$0x6]  ;;  %v522_v19 = vrot.slane %v1638_v4, 2  ;;  %v451_v23 = vrot.slane %v450_v1, 2  ;;  %v489_v24 = vor.u32 %v488_v11, %v485_v3  ;;  %v527_v32 = vsel %vm204_vm0, %v1637_v59, %v521_v16 }
  0x37   : > { %v464_v27 = vrot.slane %v463_v9, 2  ;;  %v468_v28 = vrot.slane %v466_v2, 7  ;;  %v481_v30 = vrot.slane %v2400_v10, 7  ;;  %v523_v31 = vrot.slane %v1639_v12, 2  ;;  %v2065_v33 = vld [vmem:[%s2592_s1 + $0x1e0] sm:$0xff]  ;;  %v2076_v42 = vld [vmem:[%s2592_s1 + $0x238] sm:$0xff] }
  0x38   : > { %1479 = vmatpush.bf16.msrb.mxu0 %v2041_v17  ;;  %v381_v17 = vld.sshfl [vmem:[#allocation1 + $0x10] sm:$0xff pattern:$0x75643120]  ;;  %v2037_v34 = vld [vmem:[%s2592_s1 + $0x100] sm:$0xff]  ;;  %v477_v35 = vrot.slane %v476_v18, 2  ;;  %v524_v36 = vrot.slane %v1640_v15, 2  ;;  %v529_v37 = vsel %vm208_vm1, %v1637_v59, %v521_v16  ;;  %v2442_v47 = vsel %vm208_vm1, %v1638_v4, %v522_v19 }
  0x39   : > { %1493 = vmatpush.bf16.msrb.mxu1 %v2049_v21  ;;  %v2066_v21 = vld [vmem:[%s2592_s1 + $0x1e8] sm:$0xff]  ;;  %385 = vst [vmem:[#allocation2 + $0x2c] sm:$0xf] %v381_v17  ;;  %v1673_v22 = vld [vmem:[#allocation2 + $0x24] sm:$0xf0]  ;;  %v490_v40 = vrot.slane %v489_v24, 2  ;;  %v469_v46 = vsel %vm2257_vm12, %v464_v27, %v468_v28  ;;  %v2445_v49 = vsel %vm204_vm0, %v1639_v12, %v523_v31  ;;  %v2448_v50 = vsel %vm208_vm1, %v1639_v12, %v523_v31 }
  0x3a   : > { %1507 = vmatpush.bf16.msrb.mxu2 %v2057_v29  ;;  %v1676_v26 = vor.u32 %v1996_v13, %v1673_v22  ;;  %398 = vst [vmem:[#allocation1 + $0x10] ss:$2 sm:$0xff] %v1631_v0  ;;  %v2055_v29 = vld [vmem:[%s2592_s1 + $0x190] sm:$0xff]  ;;  %1520 = vmatpush.bf16.msrb.mxu3 %v2066_v21  ;;  %v494_v41 = vrot.slane %v2403_v14, 7  ;;  %v2045_v43 = vld [vmem:[%s2592_s1 + $0x140] sm:$0xff]  ;;  %v1641_v48 = vrot.slane %v527_v32, 9  ;;  %v482_v57 = vsel %vm2257_vm12, %v477_v35, %v481_v30 }
  0x3b   : > { %401 = vst [vmem:[#allocation1 + $0x11] ss:$2 sm:$0xff] %v1632_v5  ;;  %v1679_v44 = vld [vmem:[#allocation2 + $0x8] sm:$0xf]  ;;  %v1642_v51 = vrot.slane %v529_v37, 9  ;;  %v2458_v58 = vsel %vm204_vm0, %v1640_v15, %v524_v36  ;;  %v1644_v62 = vrot.slane %v2442_v47, 9 }
  0x3c   : > { %1480 = vmatpush.bf16.msrb.mxu0 %v2040_v38  ;;  %1442 = vmatmul.bf16.vlgmr.msra.gmra.mxu1 %v1676_v26  ;;  %v2428_v38 = vsel %vm204_vm0, %v1638_v4, %v522_v19  ;;  %v2075_v53 = vld [vmem:[%s2592_s1 + $0x230] sm:$0xff]  ;;  %v1654_v59 = vld [vmem:[%s2180_s22 + $0xc] sm:$0x7]  ;;  %v2064_v0 = vld [vmem:[%s2592_s1 + $0x1d8] sm:$0xff]  ;;  %v495_v3 = vsel %vm2257_vm12, %v490_v40, %v494_v41  ;;  %v1645_v4 = vrot.slane %v2445_v49, 9  ;;  %v1646_v5 = vrot.slane %v2448_v50, 9 }
  0x3d   : > { %1494 = vmatpush.bf16.msrb.mxu1 %v2048_v39  ;;  %v456_v39 = vsel %vm2257_vm12, %v451_v23, %v455_v8  ;;  %v402_v45 = vld.sshfl [vmem:[#allocation1] sm:$0xff pattern:$0x75643120]  ;;  %v1643_v52 = vrot.slane %v2428_v38, 9  ;;  %v2054_v63 = vld [vmem:[%s2592_s1 + $0x188] sm:$0xff]  ;;  %v1647_v8 = vrot.slane %v2458_v58, 9  ;;  %v556_v13 = vsel %vm2320_vm15, %v1641_v48, %v1642_v51 }
  0x3e   : > { %1508 = vmatpush.bf16.msrb.mxu2 %v2056_v20  ;;  %406 = vst [vmem:[#allocation2 + $0xc] sm:$0xf] %v402_v45  ;;  %1521 = vmatpush.bf16.msrb.mxu3 %v2065_v33  ;;  %v2063_v9 = vld [vmem:[%s2592_s1 + $0x1d0] sm:$0xff]  ;;  %v2053_v14 = vld [vmem:[%s2592_s1 + $0x180] sm:$0xff]  ;;  %v2074_v19 = vld [vmem:[%s2592_s1 + $0x228] sm:$0xff]  ;;  %v564_v41 = vsel %vm2320_vm15, %v1645_v4, %v1646_v5 }
  0x3f   : > { %497 = vst [vmem:[#allocation1] ss:$2 sm:$0xff] %v456_v39  ;;  %v1655_v10 = vld [vmem:[%s2180_s22 + $0x10] sm:$0x7]  ;;  %v2073_v27 = vld [vmem:[%s2592_s1 + $0x220] sm:$0xff]  ;;  %v2062_v48 = vld [vmem:[%s2592_s1 + $0x1c8] sm:$0xff] }
  0x40   : > { %1481 = vmatpush.bf16.msrb.mxu0 %v2039_v54  ;;  %v1653_v54 = vld [vmem:[%s2180_s22 + $0x8] sm:$0x7]  ;;  %v2001_v55 = vld [vmem:[#allocation2 + $0x28] sm:$0xf0]  ;;  %500 = vst [vmem:[#allocation1 + $0x1] ss:$2 sm:$0xff] %v469_v46 }
  0x41   : > { %1495 = vmatpush.bf16.msrb.mxu1 %v2047_v61  ;;  %v1680_v60 = vor.u32 %v2001_v55, %v1679_v44  ;;  %v2462_v61 = vsel %vm208_vm1, %v1640_v15, %v524_v36  ;;  %v616_v1 = vrot.slane %v1653_v54, 2  ;;  %v1656_v15 = vld [vmem:[%s2180_s22 + $0x14] sm:$0x7]  ;;  %v618_v16 = vrot.slane %v1655_v10, 2  ;;  %v1657_v49 = vld [vmem:[%s2180_s22 + $0x8] sm:$0x6] }
  0x42   : > { %1509 = vmatpush.bf16.msrb.mxu2 %v2055_v29  ;;  %v403_v2 = vld.sshfl [vmem:[#allocation1 + $0x10] sm:$0xff pattern:$0x75643120]  ;;  %1522 = vmatpush.bf16.msrb.mxu3 %v2064_v0  ;;  %v1648_v18 = vrot.slane %v2462_v61, 9  ;;  %v619_v20 = vrot.slane %v1656_v15, 2  ;;  %v2072_v61 = vld [vmem:[%s2592_s1 + $0x218] sm:$0xff] }
  0x43   : > { %1456 = vmatmul.bf16.vlgmr.msra.gmra.mxu2 %v1680_v60  ;;  %407 = vst [vmem:[#allocation2 + $0x30] sm:$0xf] %v403_v2  ;;  %v622_v11 = vsel %vm204_vm0, %v1653_v54, %v616_v1  ;;  %v623_v12 = vsel %vm208_vm1, %v1653_v54, %v616_v1  ;;  %v634_v24 = vsel %vm204_vm0, %v1655_v10, %v618_v16  ;;  %v1658_v50 = vld [vmem:[%s2180_s22 + $0xc] sm:$0x6]  ;;  %v1659_v51 = vld [vmem:[%s2180_s22 + $0x10] sm:$0x6] }
  0x44   : > { %1482 = vmatpush.bf16.msrb.mxu0 %v2038_v7  ;;  %v617_v7 = vrot.slane %v1654_v59, 2  ;;  %503 = vst [vmem:[#allocation1 + $0x10] ss:$2 sm:$0xff] %v482_v57  ;;  %v625_v21 = vrot.slane %v623_v12, 2  ;;  %v644_v26 = vshrl.u32 %v622_v11, 16  ;;  %v640_v29 = vsel %vm204_vm0, %v1656_v15, %v619_v20  ;;  %v2061_v0 = vld [vmem:[%s2592_s1 + $0x1c0] sm:$0xff] }
  0x45   : > { %1496 = vmatpush.bf16.msrb.mxu1 %v2046_v25  ;;  %506 = vst [vmem:[#allocation1 + $0x11] ss:$2 sm:$0xff] %v495_v3  ;;  %v635_v25 = vsel %vm208_vm1, %v1655_v10, %v618_v16  ;;  %v641_v30 = vsel %vm208_vm1, %v1656_v15, %v619_v20  ;;  %v647_v31 = vshll.u32 %v622_v11, 16  ;;  %v1997_v32 = vld [vmem:[#allocation2 + $0xc] sm:$0xf]  ;;  %v670_v39 = vshrl.u32 %v634_v24, 16 }
  0x46   : > { %1510 = vmatpush.bf16.msrb.mxu2 %v2054_v63  ;;  %v2489_v17 = vsel %vm208_vm1, %v1654_v59, %v617_v7  ;;  %v628_v22 = vsel %vm204_vm0, %v1654_v59, %v617_v7  ;;  %1523 = vmatpush.bf16.msrb.mxu3 %v2063_v9  ;;  %v637_v28 = vrot.slane %v635_v25, 2  ;;  %v643_v36 = vrot.slane %v641_v30, 2  ;;  %v1660_v1 = vld [vmem:[%s2180_s22 + $0x14] sm:$0x6]  ;;  %v1649_v7 = vld [vmem:[%s2180_s22 + $0x8] sm:$0x3] }
  0x47   : > { %v631_v23 = vrot.slane %v2489_v17, 2  ;;  %v507_v33 = vld.sshfl [vmem:[#allocation1] sm:$0xff pattern:$0x75643120]  ;;  %v657_v35 = vshrl.u32 %v628_v22, 16  ;;  %v2506_v37 = vshll.u32 %v625_v21, 16 }
  0x48   : > { %1483 = vmatpush.bf16.msrb.mxu0 %v2037_v34  ;;  %v560_v34 = vsel %vm2320_vm15, %v1643_v52, %v1644_v62  ;;  %511 = vst [vmem:[#allocation2 + $0x10] sm:$0xf] %v507_v33  ;;  %v660_v38 = vshll.u32 %v628_v22, 16  ;;  %v2510_v45 = vrot.slane %v644_v26, 6  ;;  %v2512_v46 = vrot.slane %v647_v31, 7  ;;  %v2071_v16 = vld [vmem:[%s2592_s1 + $0x210] sm:$0xff] }
  0x49   : > { %1497 = vmatpush.bf16.msrb.mxu1 %v2045_v43  ;;  %570 = vst [vmem:[#allocation1] ss:$2 sm:$0xff] %v556_v13  ;;  %v679_v43 = vshll.u32 %v637_v28, 16  ;;  %v672_v47 = vrot.slane %v670_v39, 6  ;;  %v2522_v54 = vrot.slane %v657_v35, 6  ;;  %v683_v58 = vshrl.u32 %v640_v29, 16 }
  0x4a   : > { %1511 = vmatpush.bf16.msrb.mxu2 %v2053_v14  ;;  %v1681_v40 = vld [vmem:[#allocation2 + $0x2c] sm:$0xf0]  ;;  %573 = vst [vmem:[#allocation1 + $0x1] ss:$2 sm:$0xff] %v560_v34  ;;  %v2524_v55 = vrot.slane %v660_v38, 7  ;;  %v686_v59 = vshll.u32 %v640_v29, 16  ;;  %1524 = vmatpush.bf16.msrb.mxu3 %v2062_v48  ;;  %v650_v2 = vor.u32 %v2512_v46, %v2510_v45 }
  0x4b   : > { %v1684_v44 = vor.u32 %v1997_v32, %v1681_v40  ;;  %v692_v60 = vshll.u32 %v643_v36, 16  ;;  %v681_v63 = vrot.slane %v679_v43, 7  ;;  %v2535_v3 = vshll.u32 %v631_v23, 16  ;;  %v1650_v12 = vld [vmem:[%s2180_s22 + $0xc] sm:$0x3] }
  0x4c   : > { %1532 = vmatpush.bf16.msra.mxu0 %v2076_v42  ;;  %v673_v42 = vshll.u32 %v634_v24, 16  ;;  %v508_v52 = vld.sshfl [vmem:[#allocation1 + $0x10] sm:$0xff pattern:$0x75643120]  ;;  %v685_v4 = vrot.slane %v683_v58, 6  ;;  %v688_v5 = vrot.slane %v686_v59, 7  ;;  %v663_v13 = vor.u32 %v2524_v55, %v2522_v54 }
  0x4d   : > { %1470 = vmatmul.bf16.vlgmr.msra.gmra.mxu3 %v1684_v44  ;;  %512 = vst [vmem:[#allocation2 + $0x34] sm:$0xf] %v508_v52  ;;  %v721_v9 = vrot.slane %v1657_v49, 2  ;;  %v722_v10 = vrot.slane %v1658_v50, 2  ;;  %v723_v11 = vrot.slane %v1659_v51, 2  ;;  %v694_v15 = vrot.slane %v692_v60, 7 }
  0x4e   : > { %v675_v57 = vrot.slane %v673_v42, 7  ;;  %576 = vst [vmem:[#allocation1 + $0x10] ss:$2 sm:$0xff] %v564_v41  ;;  %v689_v14 = vor.u32 %v688_v5, %v685_v4  ;;  %v724_v17 = vrot.slane %v1660_v1, 2  ;;  %1525 = vmatpush.bf16.msrb.mxu3 %v2061_v0  ;;  %v1651_v24 = vld [vmem:[%s2180_s22 + $0x10] sm:$0x3] }
  0x4f   : > { %v727_v21 = vsel %vm204_vm0, %v1657_v49, %v721_v9  ;;  %v729_v22 = vsel %vm208_vm1, %v1657_v49, %v721_v9  ;;  %v734_v23 = vsel %vm204_vm0, %v1658_v50, %v722_v10  ;;  %v736_v26 = vsel %vm208_vm1, %v1658_v50, %v722_v10  ;;  %v1652_v30 = vld [vmem:[%s2180_s22 + $0x14] sm:$0x3]  ;;  %v2070_v40 = vld [vmem:[%s2592_s1 + $0x208] sm:$0xff] }
  0x50   : > { %1533 = vmatpush.bf16.msra.mxu0 %v2075_v53  ;;  %v568_v53 = vsel %vm2320_vm15, %v1647_v8, %v1648_v18  ;;  %v676_v62 = vor.u32 %v675_v57, %v672_v47  ;;  %v1687_v18 = vld [vmem:[#allocation2 + $0x10] sm:$0xf]  ;;  %v690_v25 = vrot.slane %v689_v14, 2  ;;  %v743_v28 = vsel %vm208_vm1, %v1659_v51, %v723_v11  ;;  %v2091_v14 = vld [vmem:[%s2593_s2] ss:$0 sm:$0xff] }
  0x51   : > { %579 = vst [vmem:[#allocation1 + $0x11] ss:$2 sm:$0xff] %v568_v53  ;;  %v748_v31 = vsel %vm204_vm0, %v1660_v1, %v724_v17  ;;  %v750_v32 = vsel %vm208_vm1, %v1660_v1, %v724_v17  ;;  %v1661_v33 = vrot.slane %v727_v21, 9  ;;  %v1662_v34 = vrot.slane %v729_v22, 9 }
  0x52   : > { %v677_v8 = vrot.slane %v676_v62, 2  ;;  %v695_v36 = vsel %vm2257_vm12, %v690_v25, %v694_v15  ;;  %v1663_v38 = vrot.slane %v734_v23, 9  ;;  %v1664_v39 = vrot.slane %v736_v26, 9 }
  0x53   : > { %v756_v42 = vsel %vm2320_vm15, %v1661_v33, %v1662_v34  ;;  %v1666_v44 = vrot.slane %v743_v28, 9  ;;  %v1667_v45 = vrot.slane %v748_v31, 9  ;;  %v651_v46 = vrot.slane %v650_v2, 2 }
  0x54   : > { %1534 = vmatpush.bf16.msra.mxu0 %v2074_v19  ;;  %v580_v19 = vld.sshfl [vmem:[#allocation1] sm:$0xff pattern:$0x75643120]  ;;  %v682_v20 = vsel %vm2257_vm12, %v677_v8, %v681_v63  ;;  %v2002_v29 = vld [vmem:[#allocation2 + $0x30] sm:$0xf0]  ;;  %v655_v47 = vrot.slane %v2506_v37, 7  ;;  %v760_v48 = vsel %vm2320_vm15, %v1663_v38, %v1664_v39 }
  0x55   : > { %584 = vst [vmem:[#allocation2 + $0x14] sm:$0xf] %v580_v19  ;;  %v1688_v35 = vor.u32 %v2002_v29, %v1687_v18  ;;  %v1668_v49 = vrot.slane %v750_v32, 9  ;;  %v664_v50 = vrot.slane %v663_v13, 2  ;;  %v2069_v37 = vld [vmem:[%s2592_s1 + $0x200] sm:$0xff] }
  0x56   : > { %592 = vst [vmem:[#allocation1] ss:$2 sm:$0xff] %v1649_v7  ;;  %v656_v54 = vsel %vm2257_vm12, %v651_v46, %v655_v47 }
  0x57   : > { %595 = vst [vmem:[#allocation1 + $0x1] ss:$2 sm:$0xff] %v1650_v12  ;;  %1484 = vmatmul.bf16.vlgmr.msrb.gmra.mxu0 %v1688_v35  ;;  %v768_v53 = vsel %vm2320_vm15, %v1667_v45, %v1668_v49  ;;  %v2092_v45 = vld [vmem:[%s2593_s2 + $0x1] ss:$0 sm:$0xff] }
  0x58   : > { %1535 = vmatpush.bf16.msra.mxu0 %v2073_v27  ;;  %v741_v27 = vsel %vm204_vm0, %v1659_v51, %v723_v11  ;;  %v581_v41 = vld.sshfl [vmem:[#allocation1 + $0x10] sm:$0xff pattern:$0x75643120]  ;;  %v668_v51 = vrot.slane %v2535_v3, 7 }
  0x59   : > { %v1665_v43 = vrot.slane %v741_v27, 9  ;;  %585 = vst [vmem:[#allocation2 + $0x38] sm:$0xf] %v581_v41 }
  0x5a   : > { %598 = vst [vmem:[#allocation1 + $0x10] ss:$2 sm:$0xff] %v1651_v24  ;;  %v669_v58 = vsel %vm2257_vm12, %v664_v50, %v668_v51 }
  0x5b   : > { %v764_v52 = vsel %vm2320_vm15, %v1665_v43, %v1666_v44  ;;  %601 = vst [vmem:[#allocation1 + $0x11] ss:$2 sm:$0xff] %v1652_v30 }
  0x5c   : > { %1536 = vmatpush.bf16.msra.mxu0 %v2072_v61  ;;  %v1998_v55 = vld [vmem:[#allocation2 + $0x14] sm:$0xf] }
  0x5e   : > { %v602_v57 = vld.sshfl [vmem:[#allocation1] sm:$0xff pattern:$0x75643120] }
  0x5f   : > { %606 = vst [vmem:[#allocation2 + $0x18] sm:$0xf] %v602_v57 }
  0x60   : > { %1537 = vmatpush.bf16.msra.mxu0 %v2071_v16  ;;  %v1689_v59 = vld [vmem:[#allocation2 + $0x34] sm:$0xf0]  ;;  %697 = vst [vmem:[#allocation1] ss:$2 sm:$0xff] %v656_v54 }
  0x61   : > { %v1692_v60 = vor.u32 %v1998_v55, %v1689_v59  ;;  %700 = vst [vmem:[#allocation1 + $0x1] ss:$2 sm:$0xff] %v669_v58 }
  0x62   : > { %v603_v56 = vld.sshfl [vmem:[#allocation1 + $0x10] sm:$0xff pattern:$0x75643120] }
  0x63   : > { %1498 = vmatmul.bf16.vlgmr.msrb.gmra.mxu1 %v1692_v60  ;;  %607 = vst [vmem:[#allocation2 + $0x3c] sm:$0xf] %v603_v56 }
  0x64   : > { %1538 = vmatpush.bf16.msra.mxu0 %v2070_v40  ;;  %703 = vst [vmem:[#allocation1 + $0x10] ss:$2 sm:$0xff] %v682_v20 }
  0x65   : > { %706 = vst [vmem:[#allocation1 + $0x11] ss:$2 sm:$0xff] %v695_v36 }
  0x66   : > { %v1695_v61 = vld [vmem:[#allocation2 + $0x18] sm:$0xf] }
  0x68   : > { %1539 = vmatpush.bf16.msra.mxu0 %v2069_v37  ;;  %v707_v62 = vld.sshfl [vmem:[#allocation1] sm:$0xff pattern:$0x75643120] }
  0x69   : > { %711 = vst [vmem:[#allocation2 + $0x1c] sm:$0xf] %v707_v62 }
  0x6a   : > { %v2003_v63 = vld [vmem:[#allocation2 + $0x38] sm:$0xf0]  ;;  %770 = vst [vmem:[#allocation1] ss:$2 sm:$0xff] %v756_v42 }
  0x6b   : > { %v1696_v0 = vor.u32 %v2003_v63, %v1695_v61  ;;  %773 = vst [vmem:[#allocation1 + $0x1] ss:$2 sm:$0xff] %v760_v48 }
  0x6c   : > { %v708_v6 = vld.sshfl [vmem:[#allocation1 + $0x10] sm:$0xff pattern:$0x75643120] }
  0x6d   : > { %1512 = vmatmul.bf16.vlgmr.msrb.gmra.mxu2 %v1696_v0  ;;  %712 = vst [vmem:[#allocation2 + $0x40] sm:$0xf] %v708_v6 }
  0x6e   : > { %776 = vst [vmem:[#allocation1 + $0x10] ss:$2 sm:$0xff] %v764_v52 }
  0x6f   : > { %779 = vst [vmem:[#allocation1 + $0x11] ss:$2 sm:$0xff] %v768_v53 }
  0x70   : > { %v1999_v1 = vld [vmem:[#allocation2 + $0x1c] sm:$0xf] }
  0x72   : > { %v780_v2 = vld.sshfl [vmem:[#allocation1] sm:$0xff pattern:$0x75643120] }
  0x73   : > { %784 = vst [vmem:[#allocation2 + $0x20] sm:$0xf] %v780_v2 }
  0x74   : > { %v1697_v3 = vld [vmem:[#allocation2 + $0x3c] sm:$0xf0] }
  0x75   : > { %v1700_v4 = vor.u32 %v1999_v1, %v1697_v3 }
  0x76   : > { %v781_v5 = vld.sshfl [vmem:[#allocation1 + $0x10] sm:$0xff pattern:$0x75643120] }
  0x77   : > { %1526 = vmatmul.bf16.vlgmr.msrb.gmra.mxu3 %v1700_v4  ;;  %785 = vst [vmem:[#allocation2 + $0x44] sm:$0xf] %v781_v5 }
  0x7a   : > { %v1703_v7 = vld [vmem:[#allocation2 + $0x20] sm:$0xf] }
  0x7e   : > { %v2004_v8 = vld [vmem:[#allocation2 + $0x40] sm:$0xf0] }
  0x7f   : > { %v1704_v9 = vor.u32 %v2004_v8, %v1703_v7 }
  0x81   : > { %1540 = vmatmul.bf16.vlgmr.msra.gmra.mxu0 %v1704_v9 }
  0xa8   : > { %v1429_v10 = vpop.f32.mrf.mxu0 }
  0xa9   : > { %v1430_v15 = vadd.f32 %v2091_v14, %v1429_v10 }
  0xb0   : > { %v1431_v12 = vpop.f32.mrf.mxu0 }
  0xb1   : > { %v1432_v21 = vadd.f32 %v2091_v14, %v1431_v12 }
  0xb9   : > { %v1443_v11 = vpop.f32.mrf.mxu1 }
  0xba   : > { %v1444_v18 = vadd.f32 %v1443_v11, %v1430_v15 }
  0xc1   : > { %v1445_v17 = vpop.f32.mrf.mxu1 }
  0xc2   : > { %v1446_v23 = vadd.f32 %v1445_v17, %v1432_v21 }
  0xc6   : > { %v1457_v13 = vpop.f32.mrf.mxu2 }
  0xc7   : > { %v1458_v22 = vadd.f32 %v1457_v13, %v1444_v18 }
  0xce   : > { %v1459_v20 = vpop.f32.mrf.mxu2 }
  0xcf   : > { %v1460_v28 = vadd.f32 %v1459_v20, %v1446_v23 }
  0xd0   : > { %v1471_v16 = vpop.f32.mrf.mxu3 }
  0xd1   : > { %v1472_v26 = vadd.f32 %v1471_v16, %v1458_v22 }
  0xd4   : > { %v1485_v19 = vpop.f32.mrf.mxu0 }
  0xd5   : > { %v1486_v30 = vadd.f32 %v1485_v19, %v1472_v26 }
  0xd8   : > { %v1473_v24 = vpop.f32.mrf.mxu3 }
  0xd9   : > { %v1474_v31 = vadd.f32 %v1473_v24, %v1460_v28 }
  0xdc   : > { %v1487_v29 = vpop.f32.mrf.mxu0 }
  0xdd   : > { %v1488_v35 = vadd.f32 %v1487_v29, %v1474_v31 }
  0xe0   : > { %v1499_v25 = vpop.f32.mrf.mxu1 }
  0xe1   : > { %v1500_v33 = vadd.f32 %v1499_v25, %v1486_v30 }
  0xe8   : > { %v1501_v34 = vpop.f32.mrf.mxu1 }
  0xe9   : > { %v1502_v40 = vadd.f32 %v1501_v34, %v1488_v35 }
  0xf0   : > { %v1513_v27 = vpop.f32.mrf.mxu2 }
  0xf1   : > { %v1514_v36 = vadd.f32 %v1513_v27, %v1500_v33 }
  0xf8   : > { %v1515_v38 = vpop.f32.mrf.mxu2 }
  0xf9   : > { %v1516_v42 = vadd.f32 %v1515_v38, %v1502_v40 }
  0xfa   : > { %v1527_v32 = vpop.f32.mrf.mxu3 }
  0xfb   : > { %v1528_v41 = vadd.f32 %v1527_v32, %v1514_v36 }
  0xfe   : > { %v1541_v39 = vpop.f32.mrf.mxu0 }
  0xff   : > { %v1542_v44 = vadd.f32 %v1541_v39, %v1528_v41 }
 0x101   : > { %v1550_v48 = vmul.f32 %v2092_v45, %v1542_v44  ;;  %vm1546_vm0 = vcmp.ge.f32.partialorder %v1542_v44, 0.0 }
 0x102   : > { %v1529_v43 = vpop.f32.mrf.mxu3 }
 0x103   : > { %v1530_v46 = vadd.f32 %v1529_v43, %v1516_v42  ;;  %v1552_v51 = vsel %vm1546_vm0, %v1542_v44, %v1550_v48 }
 0x106   : > { %v1543_v47 = vpop.f32.mrf.mxu0 }
 0x107   : > { %v1544_v49 = vadd.f32 %v1543_v47, %v1530_v46 }
 0x109   : > { %vm1547_vm1 = vcmp.ge.f32.partialorder %v1544_v49, 0.0  ;;  %v1551_v50 = vmul.f32 %v2092_v45, %v1544_v49 }
 0x10b   : > { %v1553_v52 = vsel %vm1547_vm1, %v1544_v49, %v1551_v50 }
 0x10c   : > { %v2080_v53 = vpack.c.bf16 %v1553_v52, %v1552_v51 }
 0x10e   : > { %2081 = vst [vmem:[%s170_s23] sm:$0xff] %v2080_v53  }
 0x10f PF: > { %s13_s12 = sadd.s32 1, %s2099_s12  }
 0x110   : > { %p10_p4 = scmp.ge.s32.totalorder %s13_s12, 4  }
 0x112   :  { %12 = sbr.rel (!%p10_p4) target bundleno = 1 (0x1), region = 91 }

// kernel: encoder_forward.12
= control target key start
LH: loop header
LB: loop body
LE: loop exit
PB: predicated region body
PF: predicated region fallthrough
CT: control target
= control target key end

     0   :  { %s1626_s12 = smov 0   ;;  %s1962_s0 = inlined_call_operand.vmem [shape: bf16[2,3,3,512], index: 0, kind: input, shape index: {}]   ;;  %s1963_s1 = inlined_call_operand.vmem [shape: bf16[1152,128], index: 1, kind: input, shape index: {}]   ;;  %s1964_s2 = inlined_call_operand.vmem [shape: f32[2,128], index: 2, kind: input, shape index: {}]   ;;  %s1965_s3 = inlined_call_operand.vmem [shape: bf16[2,4,128], index: 3, kind: output, shape index: {}]  }
   0x1 LB: > { %s1208_s13 = sadd.s32 4294967295, %s1604_s12   ;;  %p1212_p0 = scmp.ge.s32.totalorder %s1604_s12, 1  ;;  %s1604_s12 = sphi %s1626_s12, %s13_s12  }
   0x2   : > { %p137_p1 = scmp.lt.s32.totalorder %s1604_s12, 3 }
   0x4   : > { %p138_p2 = pnand %p1212_p0, %p137_p1 }
   0x5   : > { %p160_p3 = scmp.lt.s32.totalorder (!%p138_p2), %s1208_s13, 1 }
   0x6   : > { %141 = sbr.rel (%p138_p2) target bundleno = 245 (0xf5), region = 32 }
   0xb   : > { %v1522_v0 = vld [vmem:[%s1963_s1 + $0x38] sm:$0xff]  ;;  %v1521_v3 = vld [vmem:[%s1963_s1 + $0x30] sm:$0xff]  ;;  %s1971_s13 = smov (!%p160_p3, %s1208_s13), 1  ;;  %v1520_v8 = vld [vmem:[%s1963_s1 + $0x28] sm:$0xff]  ;;  %vm179_vm0 = vcmask 1040384   ;;  %vm183_vm1 = vcmask 1042434  }
   0xc   : > { %v1538_v1 = vld [vmem:[%s1963_s1 + $0xb8] sm:$0xff]  ;;  %1031 = vmatpush.bf16.msra.mxu0 %v1522_v0  ;;  %v1537_v5 = vld [vmem:[%s1963_s1 + $0xb0] sm:$0xff]  ;;  %s1587_s5 = smul.u32 24, %s1971_s13  ;;  %v1536_v9 = vld [vmem:[%s1963_s1 + $0xa8] sm:$0xff]  ;;  %vm187_vm2 = vcmask 1041408   ;;  %vm219_vm3 = vcmask 1041409  }
   0xd   : > { %v1546_v2 = vld [vmem:[%s1963_s1 + $0xf8] sm:$0xff]  ;;  %1057 = vmatpush.bf16.msra.mxu2 %v1538_v1  ;;  %v1545_v6 = vld [vmem:[%s1963_s1 + $0xf0] sm:$0xff]  ;;  %v1544_v10 = vld [vmem:[%s1963_s1 + $0xe8] sm:$0xff]  ;;  %vm221_vm4 = vcmask 1043459   ;;  %vm239_vm5 = vsmask.f32 256 }
   0xe   : > { %v1530_v4 = vld [vmem:[%s1963_s1 + $0x78] sm:$0xff]  ;;  %1070 = vmatpush.bf16.msra.mxu3 %v1546_v2  ;;  %v1529_v7 = vld [vmem:[%s1963_s1 + $0x70] sm:$0xff]  ;;  %v1528_v11 = vld [vmem:[%s1963_s1 + $0x68] sm:$0xff]  ;;  %s1679_s18 = scalar_lea.vmem %s1962_s0, %s1587_s5  ;;  %vm240_vm6 = vsmask.f32 1284  ;;  %vm223_vm7 = vcmask 1042433  }
   0xf   : > { %1044 = vmatpush.bf16.msra.mxu1 %v1530_v4  ;;  %v1519_v12 = vld [vmem:[%s1963_s1 + $0x20] sm:$0xff]  ;;  %vm242_vm8 = vsmask.f32 2312  ;;  %v1518_v16 = vld [vmem:[%s1963_s1 + $0x18] sm:$0xff]  ;;  %vm244_vm9 = vsmask.f32 3340  ;;  %vm241_vm13 = vmor %vm239_vm5, %vm240_vm6 }
  0x10   : > { %1032 = vmatpush.bf16.msra.mxu0 %v1521_v3  ;;  %v1535_v13 = vld [vmem:[%s1963_s1 + $0xa0] sm:$0xff]  ;;  %vm246_vm10 = vsmask.f32 4368  ;;  %vm248_vm11 = vsmask.f32 5396  ;;  %v1534_v17 = vld [vmem:[%s1963_s1 + $0x98] sm:$0xff]  ;;  %vm243_vm15 = vmor %vm241_vm13, %vm242_vm8 }
  0x11   : > { %1058 = vmatpush.bf16.msra.mxu2 %v1537_v5  ;;  %v1543_v14 = vld [vmem:[%s1963_s1 + $0xe0] sm:$0xff]  ;;  %v170_v19 = vld [vmem:[%s1679_s18 + $0x8] sm:$0x55]  ;;  %vm250_vm12 = vsmask.f32 6424  ;;  %v1542_v20 = vld [vmem:[%s1963_s1 + $0xd8] sm:$0xff] }
  0x12   : > { %1071 = vmatpush.bf16.msra.mxu3 %v1545_v6  ;;  %v1527_v15 = vld [vmem:[%s1963_s1 + $0x60] sm:$0xff]  ;;  %v1526_v21 = vld [vmem:[%s1963_s1 + $0x58] sm:$0xff]  ;;  %v176_v25 = vrot.slane %v170_v19, 1  ;;  %v177_v26 = vrot.slane %v170_v19, 2  ;;  %v178_v27 = vrot.slane %v170_v19, 3  ;;  %vm245_vm5 = vmor %vm243_vm15, %vm244_vm9  ;;  %s1214_s17 = sshll.u32 %s1971_s13, 1 }
  0x13   : > { %1045 = vmatpush.bf16.msra.mxu1 %v1529_v7  ;;  %v169_v18 = vld [vmem:[%s1679_s18] sm:$0x55]  ;;  %vm252_vm14 = vsmask.f32 7452  ;;  %v203_v32 = vld [vmem:[%s1679_s18 + $0x8] sm:$0x3]  ;;  %vm247_vm6 = vmor %vm245_vm5, %vm246_vm10  ;;  %s168_s21 = scalar_lea.vmem %s1965_s3, %s1214_s17 }
  0x14   : > { %1033 = vmatpush.bf16.msra.mxu0 %v1520_v8  ;;  %v173_v22 = vrot.slane %v169_v18, 1  ;;  %v174_v23 = vrot.slane %v169_v18, 2  ;;  %v175_v24 = vrot.slane %v169_v18, 3  ;;  %v202_v28 = vld [vmem:[%s1679_s18] sm:$0x3]  ;;  %v191_v31 = vsel %vm179_vm0, %v170_v19, %v176_v25  ;;  %v1517_v39 = vld [vmem:[%s1963_s1 + $0x10] sm:$0xff]  ;;  %vm249_vm8 = vmor %vm247_vm6, %vm248_vm11 }
  0x15   : > { %1059 = vmatpush.bf16.msra.mxu2 %v1536_v9  ;;  %v206_v33 = vrot.slane %v202_v28, 1  ;;  %v278_v34 = vld [vmem:[%s1679_s18 + $0x4] sm:$0x3]  ;;  %v194_v36 = vsel %vm183_vm1, %v177_v26, %v178_v27  ;;  %v207_v37 = vrot.slane %v202_v28, 2  ;;  %v208_v38 = vrot.slane %v202_v28, 3  ;;  %v1533_v44 = vld [vmem:[%s1963_s1 + $0x90] sm:$0xff]  ;;  %vm1739_vm9 = vmor %vm249_vm8, %vm250_vm12 }
  0x16   : > { %1072 = vmatpush.bf16.msra.mxu3 %v1544_v10  ;;  %v182_v29 = vsel %vm179_vm0, %v169_v18, %v173_v22  ;;  %v186_v30 = vsel %vm183_vm1, %v174_v23, %v175_v24  ;;  %v195_v40 = vsel %vm187_vm2, %v191_v31, %v194_v36  ;;  %v209_v41 = vrot.slane %v203_v32, 1  ;;  %v1541_v45 = vld [vmem:[%s1963_s1 + $0xd0] sm:$0xff]  ;;  %v279_v56 = vld [vmem:[%s1679_s18 + $0xc] sm:$0x3]  ;;  %vm1761_vm10 = vmor %vm1739_vm9, %vm252_vm14 }
  0x17   : > { %1046 = vmatpush.bf16.msra.mxu1 %v1528_v11  ;;  %v188_v35 = vsel %vm187_vm2, %v182_v29, %v186_v30  ;;  %v210_v42 = vrot.slane %v203_v32, 2  ;;  %v214_v43 = vsel %vm179_vm0, %v202_v28, %v206_v33  ;;  %198 = vst [vmem:[#allocation1 + $0x1] ss:$2 sm:$0xff] %v195_v40  ;;  %v211_v46 = vrot.slane %v203_v32, 3  ;;  %v1525_v50 = vld [vmem:[%s1963_s1 + $0x50] sm:$0xff]  ;;  %v1516_v61 = vld [vmem:[%s1963_s1 + $0x8] sm:$0xff] }
  0x18   : > { %1034 = vmatpush.bf16.msra.mxu0 %v1519_v12  ;;  %196 = vst [vmem:[#allocation1] ss:$2 sm:$0xff] %v188_v35  ;;  %v217_v47 = vsel %vm183_vm1, %v207_v37, %v208_v38  ;;  %v220_v48 = vsel %vm219_vm3, %v202_v28, %v206_v33  ;;  %v282_v49 = vrot.slane %v278_v34, 1  ;;  %v222_v52 = vsel %vm221_vm4, %v207_v37, %v208_v38  ;;  %v1532_v2 = vld [vmem:[%s1963_s1 + $0x88] sm:$0xff]  ;;  %v1515_v18 = vld [vmem:[%s1963_s1] sm:$0xff]  ;;  %v1554_v24 = vld [vmem:[%s1963_s1 + $0x138] sm:$0xff] }
  0x19   : > { %1060 = vmatpush.bf16.msra.mxu2 %v1535_v13  ;;  %v218_v51 = vsel %vm187_vm2, %v214_v43, %v217_v47  ;;  %v229_v53 = vsel %vm179_vm0, %v203_v32, %v209_v41  ;;  %v234_v54 = vsel %vm219_vm3, %v203_v32, %v209_v41  ;;  %v224_v57 = vsel %vm223_vm7, %v220_v48, %v222_v52  ;;  %v1540_v3 = vld [vmem:[%s1963_s1 + $0xc8] sm:$0xff]  ;;  %v1531_v25 = vld [vmem:[%s1963_s1 + $0x80] sm:$0xff]  ;;  %v1570_v30 = vld [vmem:[%s1963_s1 + $0x1b8] sm:$0xff] }
  0x1a   : > { %1073 = vmatpush.bf16.msra.mxu3 %v1543_v14  ;;  %v232_v58 = vsel %vm183_vm1, %v210_v42, %v211_v46  ;;  %v235_v59 = vsel %vm221_vm4, %v210_v42, %v211_v46  ;;  %v254_v60 = vshrl.u32 %v218_v51, 16  ;;  %v226_v62 = vrot.slane %v224_v57, 1  ;;  %v1524_v9 = vld [vmem:[%s1963_s1 + $0x48] sm:$0xff]  ;;  %v1539_v29 = vld [vmem:[%s1963_s1 + $0xc0] sm:$0xff]  ;;  %v1562_v37 = vld [vmem:[%s1963_s1 + $0x178] sm:$0xff] }
  0x1b   : > { %1047 = vmatpush.bf16.msra.mxu1 %v1527_v15  ;;  %v233_v63 = vsel %vm187_vm2, %v229_v53, %v232_v58  ;;  %v236_v0 = vsel %vm223_vm7, %v234_v54, %v235_v59  ;;  %v283_v1 = vrot.slane %v278_v34, 2  ;;  %v284_v7 = vrot.slane %v278_v34, 3  ;;  %v1523_v35 = vld [vmem:[%s1963_s1 + $0x40] sm:$0xff]  ;;  %v1553_v41 = vld [vmem:[%s1963_s1 + $0x130] sm:$0xff]  ;;  %v1221_v47 = vld [vmem:[%s1679_s18 + $0x8] sm:$0x3] }
  0x1c   : > { %1035 = vmatpush.bf16.msra.mxu0 %v1518_v16  ;;  %v238_v4 = vrot.slane %v236_v0, 1  ;;  %v262_v6 = vshrl.u32 %v233_v63, 16  ;;  %v285_v8 = vrot.slane %v279_v56, 1  ;;  %v259_v10 = vshll.u32 %v226_v62, 16  ;;  %v1569_v43 = vld [vmem:[%s1963_s1 + $0x1b0] sm:$0xff]  ;;  %v1552_v51 = vld [vmem:[%s1963_s1 + $0x128] sm:$0xff] }
  0x1d   : > { %1061 = vmatpush.bf16.msra.mxu2 %v1534_v17  ;;  %v286_v11 = vrot.slane %v279_v56, 2  ;;  %v287_v12 = vrot.slane %v279_v56, 3  ;;  %v290_v13 = vsel %vm179_vm0, %v278_v34, %v282_v49  ;;  %v293_v15 = vsel %vm183_vm1, %v283_v1, %v284_v7  ;;  %v1577_v46 = vld [vmem:[%s1963_s1 + $0x1f0] sm:$0xff]  ;;  %v1568_v52 = vld [vmem:[%s1963_s1 + $0x1a8] sm:$0xff]  ;;  %v1555_v5 = vld [vmem:[%s1963_s1 + $0x140] sm:$0xff] }
  0x1e   : > { %1074 = vmatpush.bf16.msra.mxu3 %v1542_v20  ;;  %v267_v14 = vshll.u32 %v238_v4, 16  ;;  %v295_v16 = vsel %vm219_vm3, %v278_v34, %v282_v49  ;;  %v296_v17 = vsel %vm221_vm4, %v283_v1, %v284_v7  ;;  %v261_v20 = vsel %vm1761_vm10, %v254_v60, %v259_v10  ;;  %v1578_v34 = vld [vmem:[%s1963_s1 + $0x1f8] sm:$0xff]  ;;  %v1561_v48 = vld [vmem:[%s1963_s1 + $0x170] sm:$0xff]  ;;  %v1551_v7 = vld [vmem:[%s1963_s1 + $0x120] sm:$0xff] }
  0x1f   : > { %1048 = vmatpush.bf16.msra.mxu1 %v1526_v21  ;;  %v1775_v19 = vld [vmem:[#allocation1] sm:$0xff]  ;;  %v294_v21 = vsel %vm187_vm2, %v290_v13, %v293_v15  ;;  %v297_v22 = vsel %vm223_vm7, %v295_v16, %v296_v17  ;;  %v302_v23 = vsel %vm179_vm0, %v279_v56, %v285_v8  ;;  %v305_v28 = vsel %vm183_vm1, %v286_v11, %v287_v12  ;;  %v1220_v54 = vld [vmem:[%s1679_s18 + $0x10] sm:$0x5] }
  0x20   : > { %1036 = vmatpush.bf16.msra.mxu0 %v1517_v39  ;;  %v269_v26 = vsel %vm1761_vm10, %v262_v6, %v267_v14  ;;  %v299_v27 = vrot.slane %v297_v22, 1  ;;  %271 = vst [vmem:[#allocation1] ss:$2 sm:$0xff] %v261_v20  ;;  %v306_v31 = vsel %vm187_vm2, %v302_v23, %v305_v28  ;;  %v307_v32 = vsel %vm219_vm3, %v279_v56, %v285_v8  ;;  %v1576_v56 = vld [vmem:[%s1963_s1 + $0x1e8] sm:$0xff]  ;;  %v1567_v8 = vld [vmem:[%s1963_s1 + $0x1a0] sm:$0xff]  ;;  %v1550_v20 = vld [vmem:[%s1963_s1 + $0x118] sm:$0xff] }
  0x21   : > { %1062 = vmatpush.bf16.msra.mxu2 %v1533_v44  ;;  %v308_v33 = vsel %vm221_vm4, %v286_v11, %v287_v12  ;;  %274 = vst [vmem:[#allocation1 + $0x1] ss:$2 sm:$0xff] %v269_v26  ;;  %v312_v39 = vshrl.u32 %v294_v21, 16  ;;  %v320_v42 = vshrl.u32 %v306_v31, 16  ;;  %v371_v59 = vrot.slane %v1221_v47, 1  ;;  %v1575_v11 = vld [vmem:[%s1963_s1 + $0x1e0] sm:$0xff] }
  0x22   : > { %1075 = vmatpush.bf16.msra.mxu3 %v1541_v45  ;;  %v309_v36 = vsel %vm223_vm7, %v307_v32, %v308_v33  ;;  %v317_v40 = vshll.u32 %v299_v27, 16  ;;  %v1219_v45 = vld [vmem:[%s1679_s18 + $0x8] sm:$0x5]  ;;  %v372_v60 = vrot.slane %v1221_v47, 2  ;;  %v345_v4 = vrot.slane %v1220_v54, 2  ;;  %v1559_v16 = vld [vmem:[%s1963_s1 + $0x160] sm:$0xff] }
  0x23   : > { %1049 = vmatpush.bf16.msra.mxu1 %v1525_v50  ;;  %v311_v38 = vrot.slane %v309_v36, 1  ;;  %v1222_v50 = vld [vmem:[%s1679_s18 + $0x10] sm:$0x3]  ;;  %v341_v55 = vrot.slane %v1219_v45, 1  ;;  %v342_v58 = vrot.slane %v1219_v45, 2  ;;  %v343_v62 = vrot.slane %v1219_v45, 3 }
  0x24   : > { %1037 = vmatpush.bf16.msra.mxu0 %v1516_v61  ;;  %v319_v49 = vsel %vm1761_vm10, %v312_v39, %v317_v40  ;;  %v373_v61 = vrot.slane %v1221_v47, 3  ;;  %v374_v63 = vrot.slane %v1222_v50, 1  ;;  %v375_v0 = vrot.slane %v1222_v50, 2  ;;  %v1566_v26 = vld [vmem:[%s1963_s1 + $0x198] sm:$0xff]  ;;  %v1573_v39 = vld [vmem:[%s1963_s1 + $0x1d0] sm:$0xff] }
  0x25   : > { %1063 = vmatpush.bf16.msra.mxu2 %v1532_v2  ;;  %v325_v44 = vshll.u32 %v311_v38, 16  ;;  %v376_v1 = vrot.slane %v1222_v50, 3  ;;  %v1560_v2 = vld [vmem:[%s1963_s1 + $0x168] sm:$0xff]  ;;  %v346_v6 = vrot.slane %v1220_v54, 3  ;;  %v349_v12 = vsel %vm179_vm0, %v1219_v45, %v341_v55  ;;  %v1574_v31 = vld [vmem:[%s1963_s1 + $0x1d8] sm:$0xff]  ;;  %v1565_v38 = vld [vmem:[%s1963_s1 + $0x190] sm:$0xff] }
  0x26   : > { %1076 = vmatpush.bf16.msra.mxu3 %v1540_v3  ;;  %v344_v3 = vrot.slane %v1220_v54, 1  ;;  %v385_v10 = vsel %vm221_vm4, %v372_v60, %v373_v61  ;;  %v352_v13 = vsel %vm183_vm1, %v342_v58, %v343_v62  ;;  %v396_v14 = vsel %vm219_vm3, %v1222_v50, %v374_v63  ;;  %v1558_v33 = vld [vmem:[%s1963_s1 + $0x158] sm:$0xff] }
  0x27   : > { %1050 = vmatpush.bf16.msra.mxu1 %v1524_v9  ;;  %v327_v53 = vsel %vm1761_vm10, %v320_v42, %v325_v44  ;;  %v384_v9 = vsel %vm219_vm3, %v1221_v47, %v371_v59  ;;  %v397_v15 = vsel %vm221_vm4, %v375_v0, %v376_v1  ;;  %v353_v22 = vsel %vm187_vm2, %v349_v12, %v352_v13  ;;  %v1557_v42 = vld [vmem:[%s1963_s1 + $0x150] sm:$0xff]  ;;  %v1596_v13 = vld [vmem:[%s1964_s2] ss:$0 sm:$0xff] }
  0x28   : > { %1038 = vmatpush.bf16.msra.mxu0 %v1515_v18  ;;  %v275_v57 = vld [vmem:[#allocation1] sm:$0xff]  ;;  %v356_v17 = vsel %vm179_vm0, %v1220_v54, %v344_v3  ;;  %v359_v18 = vsel %vm183_vm1, %v345_v4, %v346_v6  ;;  %v386_v21 = vsel %vm223_vm7, %v384_v9, %v385_v10  ;;  %v379_v23 = vsel %vm179_vm0, %v1221_v47, %v371_v59  ;;  %v1572_v47 = vld [vmem:[%s1963_s1 + $0x1c8] sm:$0xff] }
  0x29   : > { %1064 = vmatpush.bf16.msra.mxu2 %v1531_v25  ;;  %329 = vst [vmem:[#allocation1] ss:$2 sm:$0xff] %v319_v49  ;;  %v398_v25 = vsel %vm223_vm7, %v396_v14, %v397_v15  ;;  %v360_v28 = vsel %vm187_vm2, %v356_v17, %v359_v18  ;;  %v388_v32 = vrot.slane %v386_v21, 1  ;;  %v1556_v49 = vld [vmem:[%s1963_s1 + $0x148] sm:$0xff]  ;;  %v1571_v54 = vld [vmem:[%s1963_s1 + $0x1c0] sm:$0xff] }
  0x2a   : > { %1077 = vmatpush.bf16.msra.mxu3 %v1539_v29  ;;  %332 = vst [vmem:[#allocation1 + $0x1] ss:$2 sm:$0xff] %v327_v53  ;;  %v391_v29 = vsel %vm179_vm0, %v1222_v50, %v374_v63  ;;  %v400_v36 = vrot.slane %v398_v25, 1  ;;  %v1563_v53 = vld [vmem:[%s1963_s1 + $0x180] sm:$0xff]  ;;  %v1585_v63 = vld [vmem:[%s1963_s1 + $0x230] sm:$0xff] }
  0x2b   : > { %1051 = vmatpush.bf16.msra.mxu1 %v1523_v35  ;;  %277 = vst [vmem:[#allocation2 + $0x8] sm:$0x3] %v275_v57  ;;  %v1586_v57 = vld [vmem:[%s1963_s1 + $0x238] sm:$0xff]  ;;  %v1579_v9 = vld [vmem:[%s1963_s1 + $0x200] sm:$0xff] }
  0x2c   : > { %1083 = vmatpush.bf16.msrb.mxu0 %v1554_v24  ;;  %v382_v24 = vsel %vm183_vm1, %v372_v60, %v373_v61  ;;  %v414_v45 = vshll.u32 %v400_v36, 16 }
  0x2d   : > { %1109 = vmatpush.bf16.msrb.mxu2 %v1570_v30  ;;  %v394_v30 = vsel %vm183_vm1, %v375_v0, %v376_v1  ;;  %v383_v35 = vsel %vm187_vm2, %v379_v23, %v382_v24  ;;  %v1583_v0 = vld [vmem:[%s1963_s1 + $0x220] sm:$0xff]  ;;  %v1582_v1 = vld [vmem:[%s1963_s1 + $0x218] sm:$0xff] }
  0x2e   : > { %1122 = vmatpush.bf16.msrb.mxu3 %v1578_v34  ;;  %v1549_v34 = vld [vmem:[%s1963_s1 + $0x110] sm:$0xff]  ;;  %v401_v40 = vshrl.u32 %v383_v35, 16 }
  0x2f   : > { %1096 = vmatpush.bf16.msrb.mxu1 %v1562_v37  ;;  %v395_v37 = vsel %vm187_vm2, %v391_v29, %v394_v30 }
  0x30   : > { %1084 = vmatpush.bf16.msrb.mxu0 %v1553_v41  ;;  %v406_v41 = vshll.u32 %v388_v32, 16  ;;  %v409_v44 = vshrl.u32 %v395_v37, 16  ;;  %v1597_v37 = vld [vmem:[%s1964_s2 + $0x1] ss:$0 sm:$0xff] }
  0x31   : > { %1110 = vmatpush.bf16.msrb.mxu2 %v1569_v43  ;;  %v333_v27 = vld [vmem:[#allocation1] sm:$0xff]  ;;  %v1548_v43 = vld [vmem:[%s1963_s1 + $0x108] sm:$0xff] }
  0x32   : > { %1123 = vmatpush.bf16.msrb.mxu3 %v1577_v46  ;;  %335 = vst [vmem:[#allocation2 + $0xa] sm:$0x3] %v333_v27  ;;  %v1564_v46 = vld [vmem:[%s1963_s1 + $0x188] sm:$0xff] }
  0x33   : > { %1097 = vmatpush.bf16.msrb.mxu1 %v1561_v48  ;;  %361 = vst [vmem:[#allocation1] ss:$2 sm:$0xff] %v353_v22  ;;  %v408_v48 = vsel %vm1761_vm10, %v401_v40, %v406_v41 }
  0x34   : > { %1085 = vmatpush.bf16.msrb.mxu0 %v1552_v51  ;;  %363 = vst [vmem:[#allocation1 + $0x1] ss:$2 sm:$0xff] %v360_v28  ;;  %v416_v51 = vsel %vm1761_vm10, %v409_v44, %v414_v45 }
  0x35   : > { %1111 = vmatpush.bf16.msrb.mxu2 %v1568_v52  ;;  %v1547_v52 = vld [vmem:[%s1963_s1 + $0x100] sm:$0xff] }
  0x36   : > { %1124 = vmatpush.bf16.msrb.mxu3 %v1576_v56 }
  0x37   : > { %1098 = vmatpush.bf16.msrb.mxu1 %v1560_v2 }
  0x38   : > { %1086 = vmatpush.bf16.msrb.mxu0 %v1551_v7  ;;  %v1581_v7 = vld [vmem:[%s1963_s1 + $0x210] sm:$0xff] }
  0x39   : > { %1112 = vmatpush.bf16.msrb.mxu2 %v1567_v8  ;;  %v1580_v8 = vld [vmem:[%s1963_s1 + $0x208] sm:$0xff] }
  0x3a   : > { %1125 = vmatpush.bf16.msrb.mxu3 %v1575_v11 }
  0x3b   : > { %1099 = vmatpush.bf16.msrb.mxu1 %v1559_v16  ;;  %v364_v50 = vld [vmem:[#allocation1] sm:$0xff] }
  0x3c   : > { %1087 = vmatpush.bf16.msrb.mxu0 %v1550_v20  ;;  %366 = vst [vmem:[#allocation2 + $0xc] sm:$0xf] %v364_v50 }
  0x3d   : > { %1113 = vmatpush.bf16.msrb.mxu2 %v1566_v26  ;;  %418 = vst [vmem:[#allocation1] ss:$2 sm:$0xff] %v408_v48 }
  0x3e   : > { %1126 = vmatpush.bf16.msrb.mxu3 %v1574_v31  ;;  %421 = vst [vmem:[#allocation1 + $0x1] ss:$2 sm:$0xff] %v416_v51 }
  0x3f   : > { %1100 = vmatpush.bf16.msrb.mxu1 %v1558_v33 }
  0x40   : > { %1088 = vmatpush.bf16.msrb.mxu0 %v1549_v34 }
  0x41   : > { %1114 = vmatpush.bf16.msrb.mxu2 %v1565_v38 }
  0x42   : > { %1127 = vmatpush.bf16.msrb.mxu3 %v1573_v39 }
  0x43   : > { %1101 = vmatpush.bf16.msrb.mxu1 %v1557_v42  ;;  %v426_v55 = vld [vmem:[#allocation2 + $0x8] sm:$0xff] }
  0x44   : > { %1089 = vmatpush.bf16.msrb.mxu0 %v1548_v43  ;;  %578 = vst [vmem:[#allocation1 + $0x20] ss:$4 sm:$0xff] %v426_v55 }
  0x45   : > { %1115 = vmatpush.bf16.msrb.mxu2 %v1564_v46  ;;  %v422_v56 = vld [vmem:[#allocation1] sm:$0xff] }
  0x46   : > { %1128 = vmatpush.bf16.msrb.mxu3 %v1572_v47  ;;  %424 = vst [vmem:[#allocation2 + $0x10] sm:$0x3] %v422_v56 }
  0x47   : > { %1102 = vmatpush.bf16.msrb.mxu1 %v1556_v49  ;;  %575 = vst [vmem:[#allocation1] ss:$4 sm:$0xff] %v1775_v19  ;;  %v1584_v19 = vld [vmem:[%s1963_s1 + $0x228] sm:$0xff] }
  0x48   : > { %1090 = vmatpush.bf16.msrb.mxu0 %v1547_v52 }
  0x49   : > { %1116 = vmatpush.bf16.msrb.mxu2 %v1563_v53 }
  0x4a   : > { %1129 = vmatpush.bf16.msrb.mxu3 %v1571_v54 }
  0x4b   : > { %1103 = vmatpush.bf16.msrb.mxu1 %v1555_v5  ;;  %v583_v2 = vld.sshfl [vmem:[#allocation1 + $0x20] sm:$0xff pattern:$0x73625140]  ;;  %v585_v3 = vld.sshfl [vmem:[#allocation1 + $0x30] sm:$0xff pattern:$0x73625140] }
  0x4c   : > { %v586_v4 = vld.sshfl [vmem:[#allocation1 + $0x38] sm:$0xff pattern:$0x73625140]  ;;  %v584_v6 = vld.sshfl [vmem:[#allocation1 + $0x28] sm:$0xff pattern:$0x73625140] }
  0x4d   : > { %v427_v58 = vld [vmem:[#allocation2 + $0x10] sm:$0x3] }
  0x4e   : > { %v579_v59 = vld.sshfl [vmem:[#allocation1] sm:$0xff pattern:$0x73625140]  ;;  %v581_v60 = vld.sshfl [vmem:[#allocation1 + $0x10] sm:$0xff pattern:$0x73625140] }
  0x4f   : > { %1039 = vmatmul.bf16.vlgmr.msra.gmra.mxu0 %v579_v59  ;;  %1065 = vmatmul.bf16.vlgmr.msra.gmra.mxu2 %v581_v60  ;;  %v582_v61 = vld.sshfl [vmem:[#allocation1 + $0x18] sm:$0xff pattern:$0x73625140]  ;;  %v580_v62 = vld.sshfl [vmem:[#allocation1 + $0x8] sm:$0xff pattern:$0x73625140] }
  0x50   : > { %1078 = vmatmul.bf16.vlgmr.msra.gmra.mxu3 %v582_v61  ;;  %1135 = vmatpush.bf16.msra.mxu0 %v1586_v57  ;;  %588 = vst [vmem:[#allocation1] ss:$4 sm:$0xff] %v427_v58 }
  0x51   : > { %1052 = vmatmul.bf16.vlgmr.msra.gmra.mxu1 %v580_v62 }
  0x54   : > { %1136 = vmatpush.bf16.msra.mxu0 %v1585_v63 }
  0x57   : > { %v589_v10 = vld.sshfl [vmem:[#allocation1] sm:$0xff pattern:$0x73625140] }
  0x58   : > { %1137 = vmatpush.bf16.msra.mxu0 %v1584_v19 }
  0x5c   : > { %1138 = vmatpush.bf16.msra.mxu0 %v1583_v0 }
  0x5f   : > { %1091 = vmatmul.bf16.vlgmr.msrb.gmra.mxu0 %v583_v2  ;;  %1117 = vmatmul.bf16.vlgmr.msrb.gmra.mxu2 %v585_v3 }
  0x60   : > { %1130 = vmatmul.bf16.vlgmr.msrb.gmra.mxu3 %v586_v4  ;;  %1139 = vmatpush.bf16.msra.mxu0 %v1582_v1 }
  0x61   : > { %1104 = vmatmul.bf16.vlgmr.msrb.gmra.mxu1 %v584_v6 }
  0x64   : > { %1140 = vmatpush.bf16.msra.mxu0 %v1581_v7 }
  0x68   : > { %1141 = vmatpush.bf16.msra.mxu0 %v1580_v8 }
  0x6c   : > { %1142 = vmatpush.bf16.msra.mxu0 %v1579_v9 }
  0x6f   : > { %1143 = vmatmul.bf16.vlgmr.msra.gmra.mxu0 %v589_v10 }
  0xcc   : > { %v1040_v11 = vpop.f32.mrf.mxu0 }
  0xcd   : > { %v1041_v17 = vadd.f32 %v1596_v13, %v1040_v11 }
  0xce   : > { %v1053_v12 = vpop.f32.mrf.mxu1 }
  0xcf   : > { %v1054_v20 = vadd.f32 %v1053_v12, %v1041_v17 }
  0xd2   : > { %v1066_v14 = vpop.f32.mrf.mxu2 }
  0xd3   : > { %v1079_v15 = vpop.f32.mrf.mxu3  ;;  %v1067_v22 = vadd.f32 %v1066_v14, %v1054_v20 }
  0xd4   : > { %v1042_v16 = vpop.f32.mrf.mxu0 }
  0xd5   : > { %v1080_v26 = vadd.f32 %v1079_v15, %v1067_v22 }
  0xd6   : > { %v1055_v18 = vpop.f32.mrf.mxu1 }
  0xda   : > { %v1068_v21 = vpop.f32.mrf.mxu2 }
  0xdb   : > { %v1081_v23 = vpop.f32.mrf.mxu3 }
  0xdc   : > { %v1092_v24 = vpop.f32.mrf.mxu0 }
  0xdd   : > { %v1093_v27 = vadd.f32 %v1092_v24, %v1080_v26 }
  0xde   : > { %v1105_v25 = vpop.f32.mrf.mxu1 }
  0xdf   : > { %v1106_v31 = vadd.f32 %v1105_v25, %v1093_v27 }
  0xe2   : > { %v1118_v28 = vpop.f32.mrf.mxu2 }
  0xe3   : > { %v1131_v29 = vpop.f32.mrf.mxu3  ;;  %v1119_v33 = vadd.f32 %v1118_v28, %v1106_v31 }
  0xe4   : > { %v1094_v30 = vpop.f32.mrf.mxu0 }
  0xe5   : > { %v1132_v35 = vadd.f32 %v1131_v29, %v1119_v33 }
  0xe6   : > { %v1107_v32 = vpop.f32.mrf.mxu1 }
  0xea   : > { %v1120_v34 = vpop.f32.mrf.mxu2 }
  0xeb   : > { %v1133_v36 = vpop.f32.mrf.mxu3 }
  0xec   : > { %v1144_v38 = vpop.f32.mrf.mxu0 }
  0xed   : > { %v1145_v39 = vadd.f32 %v1144_v38, %v1132_v35 }
  0xef   : > { %vm1148_vm0 = vcmp.ge.f32.partialorder %v1145_v39, 0.0  ;;  %v1151_v40 = vmul.f32 %v1597_v37, %v1145_v39 }
  0xf1   : > { %v1152_v41 = vsel %vm1148_vm0, %v1145_v39, %v1151_v40 }
  0xf2   : > { %v1153_v42 = vpack.c.bf16 %v1152_v41, %v1152_v41 }
  0xf4   : > { %1154 = vst [vmem:[%s168_s21] sm:$0x3] %v1153_v42  ;;  %v1146_v43 = vpop.f32.mrf.mxu0 }
  0xf5 PF: > { %s13_s12 = sadd.s32 1, %s1604_s12  }
  0xf6   : > { %p10_p4 = scmp.ge.s32.totalorder %s13_s12, 4  }
  0xf8   :  { %12 = sbr.rel (!%p10_p4) target bundleno = 1 (0x1), region = 69 }

// kernel: encoder_forward.13
= control target key start
LH: loop header
LB: loop body
LE: loop exit
PB: predicated region body
PF: predicated region fallthrough
CT: control target
= control target key end

     0   :  { %s1654_s12 = smov 0   ;;  %s1977_s0 = inlined_call_operand.vmem [shape: bf16[2,4,4,128], index: 0, kind: input, shape index: {}]   ;;  %s1978_s1 = inlined_call_operand.vmem [shape: bf16[1152,128], index: 1, kind: input, shape index: {}]   ;;  %s1979_s2 = inlined_call_operand.vmem [shape: f32[2,128], index: 2, kind: input, shape index: {}]   ;;  %s1980_s3 = inlined_call_operand.vmem [shape: bf16[2,4,128], index: 3, kind: output, shape index: {}]  }
   0x1 LB: > { %s1227_s13 = sadd.s32 4294967295, %s1632_s12   ;;  %p1231_p0 = scmp.ge.s32.totalorder %s1632_s12, 1  ;;  %s1632_s12 = sphi %s1654_s12, %s13_s12  }
   0x2   : > { %p137_p1 = scmp.lt.s32.totalorder %s1632_s12, 3 }
   0x4   : > { %p138_p2 = pnand %p1231_p0, %p137_p1 }
   0x5   : > { %p160_p3 = scmp.lt.s32.totalorder (!%p138_p2), %s1227_s13, 1 }
   0x6   : > { %141 = sbr.rel (%p138_p2) target bundleno = 309 (0x135), region = 32 }
   0xb   : > { %v1551_v0 = vld [vmem:[%s1978_s1 + $0x38] sm:$0xff]  ;;  %v1550_v3 = vld [vmem:[%s1978_s1 + $0x30] sm:$0xff]  ;;  %s1984_s13 = smov (!%p160_p3, %s1227_s13), 1  ;;  %v1549_v8 = vld [vmem:[%s1978_s1 + $0x28] sm:$0xff]  ;;  %vm189_vm0 = vcmask 1040384   ;;  %vm193_vm1 = vcmask 1042434  }
   0xc   : > { %v1567_v1 = vld [vmem:[%s1978_s1 + $0xb8] sm:$0xff]  ;;  %1050 = vmatpush.bf16.msra.mxu0 %v1551_v0  ;;  %v1566_v5 = vld [vmem:[%s1978_s1 + $0xb0] sm:$0xff]  ;;  %v1565_v9 = vld [vmem:[%s1978_s1 + $0xa8] sm:$0xff]  ;;  %s1543_s9 = sshll.u32 %s1984_s13, 3  ;;  %vm197_vm2 = vcmask 1041408   ;;  %vm199_vm3 = vcmask 1041409  }
   0xd   : > { %v1575_v2 = vld [vmem:[%s1978_s1 + $0xf8] sm:$0xff]  ;;  %1076 = vmatpush.bf16.msra.mxu2 %v1567_v1  ;;  %v1574_v6 = vld [vmem:[%s1978_s1 + $0xf0] sm:$0xff]  ;;  %v1573_v10 = vld [vmem:[%s1978_s1 + $0xe8] sm:$0xff]  ;;  %s1707_s18 = scalar_lea.vmem %s1977_s0, %s1543_s9  ;;  %vm201_vm4 = vcmask 1043459   ;;  %vm219_vm5 = vsmask.f32 256 }
   0xe   : > { %v1559_v4 = vld [vmem:[%s1978_s1 + $0x78] sm:$0xff]  ;;  %1089 = vmatpush.bf16.msra.mxu3 %v1575_v2  ;;  %v1558_v7 = vld [vmem:[%s1978_s1 + $0x70] sm:$0xff]  ;;  %v1557_v11 = vld [vmem:[%s1978_s1 + $0x68] sm:$0xff]  ;;  %vm220_vm6 = vsmask.f32 1284  ;;  %vm203_vm7 = vcmask 1042433  }
   0xf   : > { %1063 = vmatpush.bf16.msra.mxu1 %v1559_v4  ;;  %v1548_v12 = vld [vmem:[%s1978_s1 + $0x20] sm:$0xff]  ;;  %v1547_v15 = vld [vmem:[%s1978_s1 + $0x18] sm:$0xff]  ;;  %vm222_vm8 = vsmask.f32 2312  ;;  %vm224_vm9 = vsmask.f32 3340  ;;  %vm221_vm13 = vmor %vm219_vm5, %vm220_vm6 }
  0x10   : > { %1051 = vmatpush.bf16.msra.mxu0 %v1550_v3  ;;  %v1564_v13 = vld [vmem:[%s1978_s1 + $0xa0] sm:$0xff]  ;;  %v1563_v17 = vld [vmem:[%s1978_s1 + $0x98] sm:$0xff]  ;;  %vm226_vm10 = vsmask.f32 4368  ;;  %vm228_vm11 = vsmask.f32 5396  ;;  %vm223_vm14 = vmor %vm221_vm13, %vm222_vm8 }
  0x11   : > { %1077 = vmatpush.bf16.msra.mxu2 %v1566_v5  ;;  %v1572_v14 = vld [vmem:[%s1978_s1 + $0xe0] sm:$0xff]  ;;  %v1571_v18 = vld [vmem:[%s1978_s1 + $0xd8] sm:$0xff]  ;;  %vm230_vm12 = vsmask.f32 6424  ;;  %v1546_v31 = vld [vmem:[%s1978_s1 + $0x10] sm:$0xff]  ;;  %s1234_s19 = sshll.u32 %s1984_s13, 1 }
  0x12   : > { %1090 = vmatpush.bf16.msra.mxu3 %v1574_v6  ;;  %v1556_v16 = vld [vmem:[%s1978_s1 + $0x60] sm:$0xff]  ;;  %v1555_v23 = vld [vmem:[%s1978_s1 + $0x58] sm:$0xff]  ;;  %vm225_vm15 = vmor %vm223_vm14, %vm224_vm9  ;;  %vm232_vm6 = vsmask.f32 7452  ;;  %s168_s22 = scalar_lea.vmem %s1980_s3, %s1234_s19 }
  0x13   : > { %1064 = vmatpush.bf16.msra.mxu1 %v1558_v7  ;;  %v169_v19 = vld [vmem:[%s1707_s18] sm:$0x1]  ;;  %v170_v20 = vld [vmem:[%s1707_s18 + $0x2] sm:$0x1]  ;;  %v259_v30 = vld [vmem:[%s1707_s18 + $0x2] sm:$0x2] }
  0x14   : > { %1052 = vmatpush.bf16.msra.mxu0 %v1549_v8  ;;  %172 = vst [vmem:[#allocation1] ss:$2 sm:$0xff] %v169_v19  ;;  %v179_v21 = vld [vmem:[%s1707_s18] sm:$0x3]  ;;  %v180_v22 = vld [vmem:[%s1707_s18 + $0x2] sm:$0x3]  ;;  %vm227_vm5 = vmor %vm225_vm15, %vm226_vm10 }
  0x15   : > { %1078 = vmatpush.bf16.msra.mxu2 %v1565_v9  ;;  %175 = vst [vmem:[#allocation1 + $0x1] ss:$2 sm:$0xff] %v170_v20  ;;  %v183_v24 = vrot.slane %v179_v21, 1  ;;  %v184_v25 = vrot.slane %v179_v21, 2  ;;  %v185_v26 = vrot.slane %v179_v21, 3  ;;  %v186_v27 = vrot.slane %v180_v22, 1  ;;  %vm229_vm8 = vmor %vm227_vm5, %vm228_vm11 }
  0x16   : > { %1091 = vmatpush.bf16.msra.mxu3 %v1573_v10  ;;  %v187_v28 = vrot.slane %v180_v22, 2  ;;  %v188_v29 = vrot.slane %v180_v22, 3  ;;  %v1562_v36 = vld [vmem:[%s1978_s1 + $0x90] sm:$0xff]  ;;  %265 = vst [vmem:[#allocation1 + $0x10] sm:$0xff] %v259_v30  ;;  %vm231_vm9 = vmor %vm229_vm8, %vm230_vm12  ;;  %v1545_v49 = vld [vmem:[%s1978_s1 + $0x8] sm:$0xff] }
  0x17   : > { %1065 = vmatpush.bf16.msra.mxu1 %v1557_v11  ;;  %v192_v32 = vsel %vm189_vm0, %v179_v21, %v183_v24  ;;  %v196_v33 = vsel %vm193_vm1, %v184_v25, %v185_v26  ;;  %v200_v34 = vsel %vm199_vm3, %v179_v21, %v183_v24  ;;  %v202_v35 = vsel %vm201_vm4, %v184_v25, %v185_v26  ;;  %v1570_v37 = vld [vmem:[%s1978_s1 + $0xd0] sm:$0xff]  ;;  %v1561_v54 = vld [vmem:[%s1978_s1 + $0x88] sm:$0xff]  ;;  %vm1776_vm10 = vmor %vm231_vm9, %vm232_vm6 }
  0x18   : > { %1053 = vmatpush.bf16.msra.mxu0 %v1548_v12  ;;  %v198_v38 = vsel %vm197_vm2, %v192_v32, %v196_v33  ;;  %v204_v39 = vsel %vm203_vm7, %v200_v34, %v202_v35  ;;  %v209_v40 = vsel %vm189_vm0, %v180_v22, %v186_v27  ;;  %v1554_v41 = vld [vmem:[%s1978_s1 + $0x50] sm:$0xff]  ;;  %v212_v43 = vsel %vm193_vm1, %v187_v28, %v188_v29  ;;  %v1569_v55 = vld [vmem:[%s1978_s1 + $0xc8] sm:$0xff]  ;;  %v1544_v60 = vld [vmem:[%s1978_s1] sm:$0xff] }
  0x19   : > { %1079 = vmatpush.bf16.msra.mxu2 %v1564_v13  ;;  %v206_v42 = vrot.slane %v204_v39, 1  ;;  %v214_v44 = vsel %vm199_vm3, %v180_v22, %v186_v27  ;;  %v215_v45 = vsel %vm201_vm4, %v187_v28, %v188_v29  ;;  %v213_v46 = vsel %vm197_vm2, %v209_v40, %v212_v43  ;;  %v1553_v57 = vld [vmem:[%s1978_s1 + $0x48] sm:$0xff]  ;;  %v1583_v62 = vld [vmem:[%s1978_s1 + $0x138] sm:$0xff]  ;;  %v1560_v63 = vld [vmem:[%s1978_s1 + $0x80] sm:$0xff] }
  0x1a   : > { %1092 = vmatpush.bf16.msra.mxu3 %v1572_v14  ;;  %v216_v47 = vsel %vm203_vm7, %v214_v44, %v215_v45  ;;  %v234_v48 = vshrl.u32 %v198_v38, 16  ;;  %v242_v53 = vshrl.u32 %v213_v46, 16  ;;  %v1568_v0 = vld [vmem:[%s1978_s1 + $0xc0] sm:$0xff]  ;;  %v1599_v1 = vld [vmem:[%s1978_s1 + $0x1b8] sm:$0xff]  ;;  %v1582_v5 = vld [vmem:[%s1978_s1 + $0x130] sm:$0xff] }
  0x1b   : > { %1066 = vmatpush.bf16.msra.mxu1 %v1556_v16  ;;  %v218_v51 = vrot.slane %v216_v47, 1  ;;  %v239_v52 = vshll.u32 %v206_v42, 16  ;;  %v1607_v2 = vld [vmem:[%s1978_s1 + $0x1f8] sm:$0xff]  ;;  %v1552_v3 = vld [vmem:[%s1978_s1 + $0x40] sm:$0xff]  ;;  %v1598_v6 = vld [vmem:[%s1978_s1 + $0x1b0] sm:$0xff] }
  0x1c   : > { %1054 = vmatpush.bf16.msra.mxu0 %v1547_v15  ;;  %v176_v50 = vld [vmem:[#allocation1] sm:$0xff]  ;;  %v1591_v4 = vld [vmem:[%s1978_s1 + $0x178] sm:$0xff]  ;;  %v1606_v7 = vld [vmem:[%s1978_s1 + $0x1f0] sm:$0xff] }
  0x1d   : > { %1080 = vmatpush.bf16.msra.mxu2 %v1563_v17  ;;  %178 = vst [vmem:[#allocation2] sm:$0x3] %v176_v50  ;;  %v241_v58 = vsel %vm1776_vm10, %v234_v48, %v239_v52  ;;  %v247_v59 = vshll.u32 %v218_v51, 16  ;;  %v258_v8 = vld [vmem:[%s1707_s18] sm:$0x2]  ;;  %v1590_v9 = vld [vmem:[%s1978_s1 + $0x170] sm:$0xff] }
  0x1e   : > { %1093 = vmatpush.bf16.msra.mxu3 %v1571_v18  ;;  %251 = vst [vmem:[#allocation1] ss:$2 sm:$0xff] %v241_v58  ;;  %v1581_v11 = vld [vmem:[%s1978_s1 + $0x128] sm:$0xff]  ;;  %v1580_v15 = vld [vmem:[%s1978_s1 + $0x120] sm:$0xff]  ;;  %v267_v18 = vld [vmem:[#allocation1 + $0x11] ss:$2 sm:$0xff] }
  0x1f   : > { %1067 = vmatpush.bf16.msra.mxu1 %v1555_v23  ;;  %v249_v61 = vsel %vm1776_vm10, %v242_v53, %v247_v59  ;;  %v1597_v12 = vld [vmem:[%s1978_s1 + $0x1a8] sm:$0xff]  ;;  %v1239_v16 = vld [vmem:[%s1707_s18 + $0x2] sm:$0x3]  ;;  %v1244_v19 = vld [vmem:[%s1707_s18 + $0x4] sm:$0x2] }
  0x20   : > { %1055 = vmatpush.bf16.msra.mxu0 %v1546_v31  ;;  %254 = vst [vmem:[#allocation1 + $0x1] ss:$2 sm:$0xff] %v249_v61  ;;  %v1605_v13 = vld [vmem:[%s1978_s1 + $0x1e8] sm:$0xff]  ;;  %v1596_v17 = vld [vmem:[%s1978_s1 + $0x1a0] sm:$0xff]  ;;  %v1579_v23 = vld [vmem:[%s1978_s1 + $0x118] sm:$0xff]  ;;  %v289_v25 = vrot.slane %v1239_v16, 1 }
  0x21   : > { %1081 = vmatpush.bf16.msra.mxu2 %v1562_v36  ;;  %v1589_v14 = vld [vmem:[%s1978_s1 + $0x168] sm:$0xff]  ;;  %v1604_v20 = vld [vmem:[%s1978_s1 + $0x1e0] sm:$0xff]  ;;  %350 = vst [vmem:[#allocation1 + $0x10] sm:$0xff] %v1244_v19  ;;  %v290_v26 = vrot.slane %v1239_v16, 2  ;;  %v291_v27 = vrot.slane %v1239_v16, 3  ;;  %v1578_v31 = vld [vmem:[%s1978_s1 + $0x110] sm:$0xff] }
  0x22   : > { %1094 = vmatpush.bf16.msra.mxu3 %v1570_v37  ;;  %v1240_v21 = vld [vmem:[%s1707_s18 + $0x4] sm:$0x3]  ;;  %v302_v32 = vsel %vm199_vm3, %v1239_v16, %v289_v25  ;;  %v1577_v37 = vld [vmem:[%s1978_s1 + $0x108] sm:$0xff]  ;;  %v1237_v38 = vld [vmem:[%s1707_s18 + $0x2] sm:$0x1]  ;;  %v297_v39 = vsel %vm189_vm0, %v1239_v16, %v289_v25 }
  0x23   : > { %1068 = vmatpush.bf16.msra.mxu1 %v1554_v41  ;;  %v1588_v22 = vld [vmem:[%s1978_s1 + $0x160] sm:$0xff]  ;;  %v292_v28 = vrot.slane %v1240_v21, 1  ;;  %v293_v29 = vrot.slane %v1240_v21, 2  ;;  %v294_v30 = vrot.slane %v1240_v21, 3  ;;  %v303_v33 = vsel %vm201_vm4, %v290_v26, %v291_v27 }
  0x24   : > { %1056 = vmatpush.bf16.msra.mxu0 %v1545_v49  ;;  %v304_v36 = vsel %vm203_vm7, %v302_v32, %v303_v33  ;;  %v300_v40 = vsel %vm193_vm1, %v290_v26, %v291_v27  ;;  %v1238_v43 = vld [vmem:[%s1707_s18 + $0x4] sm:$0x1]  ;;  %v1252_v25 = vld [vmem:[%s1707_s18 + $0x6] sm:$0x2]  ;;  %v1603_v32 = vld [vmem:[%s1978_s1 + $0x1d8] sm:$0xff] }
  0x25   : > { %1082 = vmatpush.bf16.msra.mxu2 %v1561_v54  ;;  %v314_v34 = vsel %vm199_vm3, %v1240_v21, %v292_v28  ;;  %v315_v35 = vsel %vm201_vm4, %v293_v29, %v294_v30  ;;  %v309_v44 = vsel %vm189_vm0, %v1240_v21, %v292_v28  ;;  %v312_v45 = vsel %vm193_vm1, %v293_v29, %v294_v30  ;;  %v1247_v54 = vld [vmem:[%s1707_s18 + $0x4] sm:$0x3]  ;;  %v1246_v29 = vld [vmem:[%s1707_s18 + $0x6] sm:$0x1]  ;;  %v1587_v33 = vld [vmem:[%s1978_s1 + $0x158] sm:$0xff] }
  0x26   : > { %1095 = vmatpush.bf16.msra.mxu3 %v1569_v55  ;;  %v316_v41 = vsel %vm203_vm7, %v314_v34, %v315_v35  ;;  %v306_v46 = vrot.slane %v304_v36, 1  ;;  %v301_v47 = vsel %vm197_vm2, %v297_v39, %v300_v40  ;;  %v313_v49 = vsel %vm197_vm2, %v309_v44, %v312_v45  ;;  %v1248_v55 = vld [vmem:[%s1707_s18 + $0x6] sm:$0x3]  ;;  %v1245_v27 = vld [vmem:[%s1707_s18 + $0x4] sm:$0x1]  ;;  %v1594_v34 = vld [vmem:[%s1978_s1 + $0x190] sm:$0xff] }
  0x27   : > { %1069 = vmatpush.bf16.msra.mxu1 %v1553_v57  ;;  %v255_v10 = vld [vmem:[#allocation1] sm:$0xff]  ;;  %v318_v48 = vrot.slane %v316_v41, 1  ;;  %v319_v50 = vshrl.u32 %v301_v47, 16  ;;  %v327_v52 = vshrl.u32 %v313_v49, 16  ;;  %v374_v57 = vrot.slane %v1247_v54, 1  ;;  %v1602_v35 = vld [vmem:[%s1978_s1 + $0x1d0] sm:$0xff] }
  0x28   : > { %1057 = vmatpush.bf16.msra.mxu0 %v1544_v60  ;;  %257 = vst [vmem:[#allocation2 + $0x2] sm:$0x3] %v255_v10  ;;  %v324_v51 = vshll.u32 %v306_v46, 16  ;;  %v375_v58 = vrot.slane %v1247_v54, 2  ;;  %v376_v59 = vrot.slane %v1247_v54, 3  ;;  %v377_v60 = vrot.slane %v1248_v55, 1 }
  0x29   : > { %1083 = vmatpush.bf16.msra.mxu2 %v1560_v63  ;;  %261 = vst [vmem:[#allocation1] sm:$0xff] %v258_v8  ;;  %v332_v53 = vshll.u32 %v318_v48, 16  ;;  %v379_v63 = vrot.slane %v1248_v55, 3  ;;  %v1576_v56 = vld [vmem:[%s1978_s1 + $0x100] sm:$0xff]  ;;  %v1593_v39 = vld [vmem:[%s1978_s1 + $0x188] sm:$0xff] }
  0x2a   : > { %1096 = vmatpush.bf16.msra.mxu3 %v1568_v0  ;;  %v326_v61 = vsel %vm1776_vm10, %v319_v50, %v324_v51  ;;  %v385_v8 = vsel %vm193_vm1, %v375_v58, %v376_v59  ;;  %v394_v10 = vsel %vm189_vm0, %v1248_v55, %v377_v60  ;;  %v1251_v36 = vld [vmem:[%s1707_s18 + $0x4] sm:$0x2]  ;;  %v1601_v40 = vld [vmem:[%s1978_s1 + $0x1c8] sm:$0xff]  ;;  %v1615_v50 = vld [vmem:[%s1978_s1 + $0x238] sm:$0xff] }
  0x2b   : > { %1070 = vmatpush.bf16.msra.mxu1 %v1552_v3  ;;  %v388_v3 = vsel %vm201_vm4, %v375_v58, %v376_v59  ;;  %v1585_v41 = vld [vmem:[%s1978_s1 + $0x148] sm:$0xff]  ;;  %v1584_v47 = vld [vmem:[%s1978_s1 + $0x140] sm:$0xff] }
  0x2c   : > { %1102 = vmatpush.bf16.msrb.mxu0 %v1583_v62  ;;  %v378_v62 = vrot.slane %v1248_v55, 2  ;;  %v1613_v58 = vld [vmem:[%s1978_s1 + $0x228] sm:$0xff]  ;;  %v1612_v59 = vld [vmem:[%s1978_s1 + $0x220] sm:$0xff] }
  0x2d   : > { %1128 = vmatpush.bf16.msrb.mxu2 %v1599_v1  ;;  %v334_v1 = vsel %vm1776_vm10, %v327_v52, %v332_v53 }
  0x2e   : > { %1141 = vmatpush.bf16.msrb.mxu3 %v1607_v2  ;;  %v387_v2 = vsel %vm199_vm3, %v1247_v54, %v374_v57 }
  0x2f   : > { %1115 = vmatpush.bf16.msrb.mxu1 %v1591_v4  ;;  %v399_v4 = vsel %vm199_vm3, %v1248_v55, %v377_v60  ;;  %v1611_v60 = vld [vmem:[%s1978_s1 + $0x218] sm:$0xff] }
  0x30   : > { %1103 = vmatpush.bf16.msrb.mxu0 %v1582_v5  ;;  %v263_v24 = vld [vmem:[#allocation1 + $0x1] ss:$2 sm:$0xff]  ;;  %v389_v5 = vsel %vm203_vm7, %v387_v2, %v388_v3 }
  0x31   : > { %1129 = vmatpush.bf16.msrb.mxu2 %v1598_v6  ;;  %268 = vst [vmem:[#allocation1] ss:$2 sm:$0xff] %v263_v24  ;;  %v400_v6 = vsel %vm201_vm4, %v378_v62, %v379_v63  ;;  %v352_v24 = vld [vmem:[#allocation1 + $0x11] ss:$2 sm:$0xff]  ;;  %v1609_v2 = vld [vmem:[%s1978_s1 + $0x208] sm:$0xff]  ;;  %v1608_v3 = vld [vmem:[%s1978_s1 + $0x200] sm:$0xff] }
  0x32   : > { %1142 = vmatpush.bf16.msrb.mxu3 %v1606_v7  ;;  %270 = vst [vmem:[#allocation1 + $0x1] ss:$2 sm:$0xff] %v267_v18  ;;  %v382_v7 = vsel %vm189_vm0, %v1247_v54, %v374_v57  ;;  %v1614_v57 = vld [vmem:[%s1978_s1 + $0x230] sm:$0xff] }
  0x33   : > { %1116 = vmatpush.bf16.msrb.mxu1 %v1590_v9  ;;  %v391_v9 = vrot.slane %v389_v5, 1  ;;  %435 = vst [vmem:[#allocation1 + $0x10] sm:$0xff] %v1252_v25 }
  0x34   : > { %1104 = vmatpush.bf16.msrb.mxu0 %v1581_v11  ;;  %v386_v11 = vsel %vm197_vm2, %v382_v7, %v385_v8  ;;  %v1624_v7 = vld [vmem:[%s1979_s2] ss:$0 sm:$0xff] }
  0x35   : > { %1130 = vmatpush.bf16.msrb.mxu2 %v1597_v12  ;;  %v397_v12 = vsel %vm193_vm1, %v378_v62, %v379_v63  ;;  %v404_v16 = vshrl.u32 %v386_v11, 16 }
  0x36   : > { %1143 = vmatpush.bf16.msrb.mxu3 %v1605_v13  ;;  %v401_v13 = vsel %vm203_vm7, %v399_v4, %v400_v6 }
  0x37   : > { %1117 = vmatpush.bf16.msrb.mxu1 %v1589_v14  ;;  %v398_v14 = vsel %vm197_vm2, %v394_v10, %v397_v12 }
  0x38   : > { %1105 = vmatpush.bf16.msrb.mxu0 %v1580_v15  ;;  %v403_v15 = vrot.slane %v401_v13, 1  ;;  %v412_v18 = vshrl.u32 %v398_v14, 16 }
  0x39   : > { %1131 = vmatpush.bf16.msrb.mxu2 %v1596_v17  ;;  %v271_v42 = vld [vmem:[#allocation1] sm:$0xff]  ;;  %v409_v17 = vshll.u32 %v391_v9, 16 }
  0x3a   : > { %1144 = vmatpush.bf16.msrb.mxu3 %v1604_v20  ;;  %273 = vst [vmem:[#allocation2 + $0x4] sm:$0x3] %v271_v42  ;;  %v417_v20 = vshll.u32 %v403_v15, 16  ;;  %v1592_v42 = vld [vmem:[%s1978_s1 + $0x180] sm:$0xff]  ;;  %v437_v44 = vld [vmem:[#allocation1 + $0x11] ss:$2 sm:$0xff] }
  0x3b   : > { %1118 = vmatpush.bf16.msrb.mxu1 %v1588_v22  ;;  %278 = vst [vmem:[#allocation1] ss:$2 sm:$0xff] %v1237_v38  ;;  %v411_v19 = vsel %vm1776_vm10, %v404_v16, %v409_v17  ;;  %v1243_v22 = vld [vmem:[%s1707_s18 + $0x2] sm:$0x2]  ;;  %v1586_v38 = vld [vmem:[%s1978_s1 + $0x150] sm:$0xff] }
  0x3c   : > { %1106 = vmatpush.bf16.msrb.mxu0 %v1579_v23  ;;  %281 = vst [vmem:[#allocation1 + $0x1] ss:$2 sm:$0xff] %v1238_v43  ;;  %v419_v21 = vsel %vm1776_vm10, %v412_v18, %v417_v20  ;;  %v1600_v43 = vld [vmem:[%s1978_s1 + $0x1c0] sm:$0xff] }
  0x3e   : > { %1145 = vmatpush.bf16.msrb.mxu3 %v1603_v32 }
  0x3f   : > { %1119 = vmatpush.bf16.msrb.mxu1 %v1587_v33 }
  0x40   : > { %1107 = vmatpush.bf16.msrb.mxu0 %v1578_v31  ;;  %v1595_v31 = vld [vmem:[%s1978_s1 + $0x198] sm:$0xff] }
  0x41   : > { %1132 = vmatpush.bf16.msrb.mxu2 %v1595_v31 }
  0x42   : > { %1146 = vmatpush.bf16.msrb.mxu3 %v1602_v35 }
  0x43   : > { %v282_v0 = vld [vmem:[#allocation1] sm:$0xff]  ;;  %1120 = vmatpush.bf16.msrb.mxu1 %v1586_v38 }
  0x44   : > { %1108 = vmatpush.bf16.msrb.mxu0 %v1577_v37  ;;  %284 = vst [vmem:[#allocation2 + $0x6] sm:$0x3] %v282_v0 }
  0x45   : > { %336 = vst [vmem:[#allocation1] ss:$2 sm:$0xff] %v326_v61  ;;  %1133 = vmatpush.bf16.msrb.mxu2 %v1594_v34 }
  0x46   : > { %339 = vst [vmem:[#allocation1 + $0x1] ss:$2 sm:$0xff] %v334_v1  ;;  %1147 = vmatpush.bf16.msrb.mxu3 %v1601_v40  ;;  %v1610_v1 = vld [vmem:[%s1978_s1 + $0x210] sm:$0xff] }
  0x47   : > { %1121 = vmatpush.bf16.msrb.mxu1 %v1585_v41 }
  0x48   : > { %1109 = vmatpush.bf16.msrb.mxu0 %v1576_v56 }
  0x49   : > { %1134 = vmatpush.bf16.msrb.mxu2 %v1593_v39 }
  0x4a   : > { %1148 = vmatpush.bf16.msrb.mxu3 %v1600_v43 }
  0x4b   : > { %1122 = vmatpush.bf16.msrb.mxu1 %v1584_v47  ;;  %v444_v48 = vld [vmem:[#allocation2] sm:$0xff] }
  0x4d   : > { %v340_v23 = vld [vmem:[#allocation1] sm:$0xff]  ;;  %1135 = vmatpush.bf16.msrb.mxu2 %v1592_v42 }
  0x4e   : > { %342 = vst [vmem:[#allocation2 + $0x8] sm:$0x3] %v340_v23 }
  0x4f   : > { %346 = vst [vmem:[#allocation1] sm:$0xff] %v1243_v22 }
  0x56   : > { %v348_v26 = vld [vmem:[#allocation1 + $0x1] ss:$2 sm:$0xff] }
  0x57   : > { %353 = vst [vmem:[#allocation1] ss:$2 sm:$0xff] %v348_v26 }
  0x58   : > { %355 = vst [vmem:[#allocation1 + $0x1] ss:$2 sm:$0xff] %v352_v24 }
  0x5f   : > { %v356_v28 = vld [vmem:[#allocation1] sm:$0xff] }
  0x60   : > { %358 = vst [vmem:[#allocation2 + $0xa] sm:$0x3] %v356_v28 }
  0x61   : > { %363 = vst [vmem:[#allocation1] ss:$2 sm:$0xff] %v1245_v27 }
  0x62   : > { %366 = vst [vmem:[#allocation1 + $0x1] ss:$2 sm:$0xff] %v1246_v29 }
  0x69   : > { %v367_v30 = vld [vmem:[#allocation1] sm:$0xff] }
  0x6a   : > { %369 = vst [vmem:[#allocation2 + $0xc] sm:$0x3] %v367_v30  ;;  %v1625_v30 = vld [vmem:[%s1979_s2 + $0x1] ss:$0 sm:$0xff] }
  0x6b   : > { %421 = vst [vmem:[#allocation1] ss:$2 sm:$0xff] %v411_v19 }
  0x6c   : > { %424 = vst [vmem:[#allocation1 + $0x1] ss:$2 sm:$0xff] %v419_v21 }
  0x73   : > { %v425_v37 = vld [vmem:[#allocation1] sm:$0xff] }
  0x74   : > { %427 = vst [vmem:[#allocation2 + $0xe] sm:$0x3] %v425_v37 }
  0x75   : > { %431 = vst [vmem:[#allocation1] sm:$0xff] %v1251_v36 }
  0x7b   : > { %v445_v45 = vld [vmem:[#allocation2 + $0x8] sm:$0xff] }
  0x7c   : > { %v433_v46 = vld [vmem:[#allocation1 + $0x1] ss:$2 sm:$0xff]  ;;  %597 = vst [vmem:[#allocation1 + $0x20] ss:$4 sm:$0xff] %v445_v45 }
  0x7d   : > { %438 = vst [vmem:[#allocation1] ss:$2 sm:$0xff] %v433_v46 }
  0x7e   : > { %440 = vst [vmem:[#allocation1 + $0x1] ss:$2 sm:$0xff] %v437_v44 }
  0x83   : > { %v602_v61 = vld.sshfl [vmem:[#allocation1 + $0x20] sm:$0xff pattern:$0x73625140]  ;;  %v604_v62 = vld.sshfl [vmem:[#allocation1 + $0x30] sm:$0xff pattern:$0x73625140] }
  0x84   : > { %v605_v63 = vld.sshfl [vmem:[#allocation1 + $0x38] sm:$0xff pattern:$0x73625140]  ;;  %v603_v0 = vld.sshfl [vmem:[#allocation1 + $0x28] sm:$0xff pattern:$0x73625140] }
  0x85   : > { %v441_v49 = vld [vmem:[#allocation1] sm:$0xff] }
  0x86   : > { %443 = vst [vmem:[#allocation2 + $0x10] sm:$0x3] %v441_v49 }
  0x87   : > { %594 = vst [vmem:[#allocation1] ss:$4 sm:$0xff] %v444_v48 }
  0x8d   : > { %v446_v51 = vld [vmem:[#allocation2 + $0x10] sm:$0x3] }
  0x8e   : > { %v598_v52 = vld.sshfl [vmem:[#allocation1] sm:$0xff pattern:$0x73625140]  ;;  %v600_v53 = vld.sshfl [vmem:[#allocation1 + $0x10] sm:$0xff pattern:$0x73625140] }
  0x8f   : > { %1058 = vmatmul.bf16.vlgmr.msra.gmra.mxu0 %v598_v52  ;;  %1084 = vmatmul.bf16.vlgmr.msra.gmra.mxu2 %v600_v53  ;;  %v601_v54 = vld.sshfl [vmem:[#allocation1 + $0x18] sm:$0xff pattern:$0x73625140]  ;;  %v599_v55 = vld.sshfl [vmem:[#allocation1 + $0x8] sm:$0xff pattern:$0x73625140] }
  0x90   : > { %1097 = vmatmul.bf16.vlgmr.msra.gmra.mxu3 %v601_v54  ;;  %1154 = vmatpush.bf16.msra.mxu0 %v1615_v50  ;;  %607 = vst [vmem:[#allocation1] ss:$4 sm:$0xff] %v446_v51 }
  0x91   : > { %1071 = vmatmul.bf16.vlgmr.msra.gmra.mxu1 %v599_v55 }
  0x94   : > { %1155 = vmatpush.bf16.msra.mxu0 %v1614_v57 }
  0x97   : > { %v608_v4 = vld.sshfl [vmem:[#allocation1] sm:$0xff pattern:$0x73625140] }
  0x98   : > { %1156 = vmatpush.bf16.msra.mxu0 %v1613_v58 }
  0x9c   : > { %1157 = vmatpush.bf16.msra.mxu0 %v1612_v59 }
  0x9f   : > { %1110 = vmatmul.bf16.vlgmr.msrb.gmra.mxu0 %v602_v61  ;;  %1136 = vmatmul.bf16.vlgmr.msrb.gmra.mxu2 %v604_v62 }
  0xa0   : > { %1149 = vmatmul.bf16.vlgmr.msrb.gmra.mxu3 %v605_v63  ;;  %1158 = vmatpush.bf16.msra.mxu0 %v1611_v60 }
  0xa1   : > { %1123 = vmatmul.bf16.vlgmr.msrb.gmra.mxu1 %v603_v0 }
  0xa4   : > { %1159 = vmatpush.bf16.msra.mxu0 %v1610_v1 }
  0xa8   : > { %1160 = vmatpush.bf16.msra.mxu0 %v1609_v2 }
  0xac   : > { %1161 = vmatpush.bf16.msra.mxu0 %v1608_v3 }
  0xaf   : > { %1162 = vmatmul.bf16.vlgmr.msra.gmra.mxu0 %v608_v4 }
 0x10c   : > { %v1059_v5 = vpop.f32.mrf.mxu0 }
 0x10d   : > { %v1060_v11 = vadd.f32 %v1624_v7, %v1059_v5 }
 0x10e   : > { %v1072_v6 = vpop.f32.mrf.mxu1 }
 0x10f   : > { %v1073_v13 = vadd.f32 %v1072_v6, %v1060_v11 }
 0x112   : > { %v1085_v8 = vpop.f32.mrf.mxu2 }
 0x113   : > { %v1098_v9 = vpop.f32.mrf.mxu3  ;;  %v1086_v15 = vadd.f32 %v1085_v8, %v1073_v13 }
 0x114   : > { %v1061_v10 = vpop.f32.mrf.mxu0 }
 0x115   : > { %v1099_v19 = vadd.f32 %v1098_v9, %v1086_v15 }
 0x116   : > { %v1074_v12 = vpop.f32.mrf.mxu1 }
 0x11a   : > { %v1087_v14 = vpop.f32.mrf.mxu2 }
 0x11b   : > { %v1100_v16 = vpop.f32.mrf.mxu3 }
 0x11c   : > { %v1111_v17 = vpop.f32.mrf.mxu0 }
 0x11d   : > { %v1112_v20 = vadd.f32 %v1111_v17, %v1099_v19 }
 0x11e   : > { %v1124_v18 = vpop.f32.mrf.mxu1 }
 0x11f   : > { %v1125_v24 = vadd.f32 %v1124_v18, %v1112_v20 }
 0x122   : > { %v1137_v21 = vpop.f32.mrf.mxu2 }
 0x123   : > { %v1150_v22 = vpop.f32.mrf.mxu3  ;;  %v1138_v26 = vadd.f32 %v1137_v21, %v1125_v24 }
 0x124   : > { %v1113_v23 = vpop.f32.mrf.mxu0 }
 0x125   : > { %v1151_v28 = vadd.f32 %v1150_v22, %v1138_v26 }
 0x126   : > { %v1126_v25 = vpop.f32.mrf.mxu1 }
 0x12a   : > { %v1139_v27 = vpop.f32.mrf.mxu2 }
 0x12b   : > { %v1152_v29 = vpop.f32.mrf.mxu3 }
 0x12c   : > { %v1163_v56 = vpop.f32.mrf.mxu0 }
 0x12d   : > { %v1164_v31 = vadd.f32 %v1163_v56, %v1151_v28 }
 0x12f   : > { %vm1167_vm0 = vcmp.ge.f32.partialorder %v1164_v31, 0.0  ;;  %v1170_v32 = vmul.f32 %v1625_v30, %v1164_v31 }
 0x131   : > { %v1171_v33 = vsel %vm1167_vm0, %v1164_v31, %v1170_v32 }
 0x132   : > { %v1172_v34 = vpack.c.bf16 %v1171_v33, %v1171_v33 }
 0x134   : > { %1173 = vst [vmem:[%s168_s22] sm:$0x3] %v1172_v34  ;;  %v1165_v35 = vpop.f32.mrf.mxu0 }
 0x135 PF: > { %s13_s12 = sadd.s32 1, %s1632_s12  }
 0x136   : > { %p10_p4 = scmp.ge.s32.totalorder %s13_s12, 4  }
 0x138   :  { %12 = sbr.rel (!%p10_p4) target bundleno = 1 (0x1), region = 80 }

// kernel: encoder_forward.14
= control target key start
LH: loop header
LB: loop body
LE: loop exit
PB: predicated region body
PF: predicated region fallthrough
CT: control target
= control target key end

     0   :  { %s1400_s12 = smov 0   ;;  %s1681_s0 = inlined_call_operand.vmem [shape: bf16[2,2,2,512], index: 0, kind: input, shape index: {}]   ;;  %s1682_s1 = inlined_call_operand.vmem [shape: bf16[1152,128], index: 1, kind: input, shape index: {}]   ;;  %s1683_s2 = inlined_call_operand.vmem [shape: f32[2,128], index: 2, kind: input, shape index: {}]   ;;  %s1684_s3 = inlined_call_operand.vmem [shape: bf16[2,1,128], index: 3, kind: output, shape index: {}]  }
   0x1 LB: > { %s991_s13 = sadd.s32 4294967295, %s1378_s12   ;;  %p995_p0 = scmp.ge.s32.totalorder %s1378_s12, 1  ;;  %s1378_s12 = sphi %s1400_s12, %s13_s12  }
   0x2   : > { %p136_p1 = scmp.lt.s32.totalorder %s1378_s12, 3 }
   0x4   : > { %p137_p2 = pnand %p995_p0, %p136_p1 }
   0x5   : > { %p157_p3 = scmp.lt.s32.totalorder (!%p137_p2), %s991_s13, 1 }
   0x6   : > { %140 = sbr.rel (%p137_p2) target bundleno = 242 (0xf2), region = 32 }
   0xb   : > { %v1299_v0 = vld [vmem:[%s1682_s1 + $0x38] sm:$0xff]  ;;  %v1298_v4 = vld [vmem:[%s1682_s1 + $0x30] sm:$0xff]  ;;  %v1297_v8 = vld [vmem:[%s1682_s1 + $0x28] sm:$0xff]  ;;  %s1692_s13 = smov (!%p157_p3, %s991_s13), 1  ;;  %vm165_vm0 = vcmask 1040384   ;;  %vm168_vm2 = vcmask 1041409  }
   0xc   : > { %v1315_v1 = vld [vmem:[%s1682_s1 + $0xb8] sm:$0xff]  ;;  %819 = vmatpush.bf16.msra.mxu0 %v1299_v0  ;;  %v1314_v5 = vld [vmem:[%s1682_s1 + $0xb0] sm:$0xff]  ;;  %v1313_v9 = vld [vmem:[%s1682_s1 + $0xa8] sm:$0xff]  ;;  %s996_s21 = sshll.u32 %s1692_s13, 3  ;;  %vm166_vm1 = vsmask.f32 256  ;;  %s163_s18 = scalar_lea.vmem %s1684_s3, %s1692_s13 }
   0xd   : > { %v1323_v2 = vld [vmem:[%s1682_s1 + $0xf8] sm:$0xff]  ;;  %845 = vmatpush.bf16.msra.mxu2 %v1315_v1  ;;  %v1322_v6 = vld [vmem:[%s1682_s1 + $0xf0] sm:$0xff]  ;;  %v1321_v10 = vld [vmem:[%s1682_s1 + $0xe8] sm:$0xff]  ;;  %s1468_s28 = scalar_lea.vmem %s1681_s0, %s996_s21  ;;  %vm169_vm3 = vsmask.f32 1280  ;;  %vm172_vm5 = vcmask 1042434  }
   0xe   : > { %v1307_v3 = vld [vmem:[%s1682_s1 + $0x78] sm:$0xff]  ;;  %858 = vmatpush.bf16.msra.mxu3 %v1323_v2  ;;  %v1306_v7 = vld [vmem:[%s1682_s1 + $0x70] sm:$0xff]  ;;  %v1305_v11 = vld [vmem:[%s1682_s1 + $0x68] sm:$0xff]  ;;  %vm173_vm6 = vsmask.f32 2304  ;;  %vm176_vm10 = vcmask 1043459  }
   0xf   : > { %832 = vmatpush.bf16.msra.mxu1 %v1307_v3  ;;  %v1296_v12 = vld [vmem:[%s1682_s1 + $0x20] sm:$0xff]  ;;  %v1295_v16 = vld [vmem:[%s1682_s1 + $0x18] sm:$0xff]  ;;  %v1294_v20 = vld [vmem:[%s1682_s1 + $0x10] sm:$0xff]  ;;  %vm177_vm8 = vsmask.f32 3328 }
  0x10   : > { %820 = vmatpush.bf16.msra.mxu0 %v1298_v4  ;;  %v1312_v13 = vld [vmem:[%s1682_s1 + $0xa0] sm:$0xff]  ;;  %v1311_v17 = vld [vmem:[%s1682_s1 + $0x98] sm:$0xff]  ;;  %v1310_v21 = vld [vmem:[%s1682_s1 + $0x90] sm:$0xff] }
  0x11   : > { %846 = vmatpush.bf16.msra.mxu2 %v1314_v5  ;;  %v1320_v14 = vld [vmem:[%s1682_s1 + $0xe0] sm:$0xff]  ;;  %v1319_v18 = vld [vmem:[%s1682_s1 + $0xd8] sm:$0xff]  ;;  %vm1483_vm4 = vmand %vm165_vm0, %vm166_vm1 }
  0x12   : > { %859 = vmatpush.bf16.msra.mxu3 %v1322_v6  ;;  %v1304_v15 = vld [vmem:[%s1682_s1 + $0x60] sm:$0xff]  ;;  %v1303_v19 = vld [vmem:[%s1682_s1 + $0x58] sm:$0xff]  ;;  %v1318_v23 = vld [vmem:[%s1682_s1 + $0xd0] sm:$0xff] }
  0x13   : > { %833 = vmatpush.bf16.msra.mxu1 %v1306_v7  ;;  %v1302_v24 = vld [vmem:[%s1682_s1 + $0x50] sm:$0xff]  ;;  %vm1493_vm7 = vmand %vm168_vm2, %vm169_vm3  ;;  %v183_v26 = vld [vmem:[%s1468_s28] sm:$0x1] }
  0x14   : > { %821 = vmatpush.bf16.msra.mxu0 %v1297_v8  ;;  %v190_v27 = vld [vmem:[#allocation2 + $0x4] sm:$0x1]  ;;  %v164_v28 = vld [vmem:[%s1468_s28] sm:$0xf]  ;;  %vm171_vm9 = vmor %vm1493_vm7, %vm1483_vm4  ;;  %v185_v30 = vshrl.u32 %v183_v26, 16 }
  0x15   : > { %847 = vmatpush.bf16.msra.mxu2 %v1313_v9  ;;  %v180_v29 = vld [vmem:[#allocation2] sm:$0xf]  ;;  %v193_v31 = vld [vmem:[%s1468_s28 + $0x2] sm:$0x1]  ;;  %v200_v32 = vld [vmem:[#allocation2 + $0x5] sm:$0x1] }
  0x16   : > { %860 = vmatpush.bf16.msra.mxu3 %v1321_v10  ;;  %vm174_vm11 = vmand %vm172_vm5, %vm173_vm6  ;;  %v195_v33 = vshrl.u32 %v193_v31, 16  ;;  %v999_v34 = vld [vmem:[%s1468_s28 + $0x4] sm:$0x3]  ;;  %v205_v35 = vld [vmem:[#allocation2 + $0x6] sm:$0x3]  ;;  %v191_v37 = vsel %vm1483_vm4, %v185_v30, %v190_v27 }
  0x17   : > { %834 = vmatpush.bf16.msra.mxu1 %v1305_v11  ;;  %vm1507_vm12 = vmor %vm174_vm11, %vm171_vm9  ;;  %v206_v38 = vsel %vm171_vm9, %v999_v34, %v205_v35  ;;  %v1000_v39 = vld [vmem:[%s1468_s28 + $0x4] sm:$0x1]  ;;  %v215_v40 = vld [vmem:[#allocation2 + $0x8] sm:$0x1]  ;;  %192 = vst [vmem:[#allocation2 + $0x4] sm:$0x1] %v191_v37 }
  0x18   : > { %822 = vmatpush.bf16.msra.mxu0 %v1296_v12  ;;  %vm178_vm13 = vmand %vm176_vm10, %vm177_vm8  ;;  %v201_v41 = vsel %vm1483_vm4, %v195_v33, %v200_v32  ;;  %v210_v42 = vshrl.u32 %v1000_v39, 16  ;;  %v1293_v43 = vld [vmem:[%s1682_s1 + $0x8] sm:$0xff]  ;;  %207 = vst [vmem:[#allocation2 + $0x6] sm:$0x3] %v206_v38  ;;  %v1292_v49 = vld [vmem:[%s1682_s1] sm:$0xff] }
  0x19   : > { %848 = vmatpush.bf16.msra.mxu2 %v1312_v13  ;;  %v1309_v44 = vld [vmem:[%s1682_s1 + $0x88] sm:$0xff]  ;;  %vm179_vm14 = vmor %vm178_vm13, %vm1507_vm12  ;;  %202 = vst [vmem:[#allocation2 + $0x5] sm:$0x1] %v201_v41  ;;  %v1308_v50 = vld [vmem:[%s1682_s1 + $0x80] sm:$0xff] }
  0x1a   : > { %861 = vmatpush.bf16.msra.mxu3 %v1320_v14  ;;  %v1317_v45 = vld [vmem:[%s1682_s1 + $0xc8] sm:$0xff]  ;;  %v181_v47 = vsel %vm179_vm14, %v164_v28, %v180_v29  ;;  %v216_v48 = vsel %vm1483_vm4, %v210_v42, %v215_v40  ;;  %v1331_v51 = vld [vmem:[%s1682_s1 + $0x138] sm:$0xff]  ;;  %v1316_v53 = vld [vmem:[%s1682_s1 + $0xc0] sm:$0xff] }
  0x1b   : > { %835 = vmatpush.bf16.msra.mxu1 %v1304_v15  ;;  %v1301_v46 = vld [vmem:[%s1682_s1 + $0x48] sm:$0xff]  ;;  %182 = vst [vmem:[#allocation2] sm:$0xf] %v181_v47  ;;  %v1347_v52 = vld [vmem:[%s1682_s1 + $0x1b8] sm:$0xff]  ;;  %v1300_v54 = vld [vmem:[%s1682_s1 + $0x40] sm:$0xff] }
  0x1c   : > { %823 = vmatpush.bf16.msra.mxu0 %v1295_v16  ;;  %217 = vst [vmem:[#allocation2 + $0x8] sm:$0x1] %v216_v48  ;;  %v1355_v55 = vld [vmem:[%s1682_s1 + $0x1f8] sm:$0xff]  ;;  %v1330_v57 = vld [vmem:[%s1682_s1 + $0x130] sm:$0xff]  ;;  %v1329_v62 = vld [vmem:[%s1682_s1 + $0x128] sm:$0xff] }
  0x1d   : > { %849 = vmatpush.bf16.msra.mxu2 %v1311_v17  ;;  %v1339_v56 = vld [vmem:[%s1682_s1 + $0x178] sm:$0xff]  ;;  %v1346_v58 = vld [vmem:[%s1682_s1 + $0x1b0] sm:$0xff]  ;;  %v1345_v63 = vld [vmem:[%s1682_s1 + $0x1a8] sm:$0xff] }
  0x1e   : > { %862 = vmatpush.bf16.msra.mxu3 %v1319_v18  ;;  %v1354_v60 = vld [vmem:[%s1682_s1 + $0x1f0] sm:$0xff]  ;;  %v1353_v0 = vld [vmem:[%s1682_s1 + $0x1e8] sm:$0xff]  ;;  %v1328_v2 = vld [vmem:[%s1682_s1 + $0x120] sm:$0xff] }
  0x1f   : > { %836 = vmatpush.bf16.msra.mxu1 %v1303_v19  ;;  %v1338_v61 = vld [vmem:[%s1682_s1 + $0x170] sm:$0xff]  ;;  %v1337_v1 = vld [vmem:[%s1682_s1 + $0x168] sm:$0xff]  ;;  %v1344_v3 = vld [vmem:[%s1682_s1 + $0x1a0] sm:$0xff] }
  0x20   : > { %824 = vmatpush.bf16.msra.mxu0 %v1294_v20  ;;  %v1352_v5 = vld [vmem:[%s1682_s1 + $0x1e0] sm:$0xff]  ;;  %v1327_v15 = vld [vmem:[%s1682_s1 + $0x118] sm:$0xff]  ;;  %v1326_v19 = vld [vmem:[%s1682_s1 + $0x110] sm:$0xff] }
  0x21   : > { %850 = vmatpush.bf16.msra.mxu2 %v1310_v21  ;;  %v1336_v9 = vld [vmem:[%s1682_s1 + $0x160] sm:$0xff]  ;;  %v1343_v16 = vld [vmem:[%s1682_s1 + $0x198] sm:$0xff]  ;;  %v1342_v20 = vld [vmem:[%s1682_s1 + $0x190] sm:$0xff] }
  0x22   : > { %863 = vmatpush.bf16.msra.mxu3 %v1318_v23  ;;  %v218_v59 = vld [vmem:[#allocation2] sm:$0xff]  ;;  %v1351_v17 = vld [vmem:[%s1682_s1 + $0x1d8] sm:$0xff]  ;;  %v1350_v21 = vld [vmem:[%s1682_s1 + $0x1d0] sm:$0xff] }
  0x23   : > { %837 = vmatpush.bf16.msra.mxu1 %v1302_v24  ;;  %366 = vst [vmem:[#allocation1] ss:$9 sm:$0xff] %v218_v59  ;;  %v219_v4 = vld [vmem:[#allocation2 + $0x8] sm:$0x1]  ;;  %v1335_v18 = vld [vmem:[%s1682_s1 + $0x158] sm:$0xff]  ;;  %v1325_v24 = vld [vmem:[%s1682_s1 + $0x108] sm:$0xff] }
  0x24   : > { %825 = vmatpush.bf16.msra.mxu0 %v1293_v43  ;;  %v1334_v23 = vld [vmem:[%s1682_s1 + $0x150] sm:$0xff]  ;;  %v1341_v25 = vld [vmem:[%s1682_s1 + $0x188] sm:$0xff]  ;;  %v1324_v28 = vld [vmem:[%s1682_s1 + $0x100] sm:$0xff] }
  0x25   : > { %851 = vmatpush.bf16.msra.mxu2 %v1309_v44  ;;  %v1349_v26 = vld [vmem:[%s1682_s1 + $0x1c8] sm:$0xff]  ;;  %v1340_v29 = vld [vmem:[%s1682_s1 + $0x180] sm:$0xff]  ;;  %v1363_v30 = vld [vmem:[%s1682_s1 + $0x238] sm:$0xff] }
  0x26   : > { %864 = vmatpush.bf16.msra.mxu3 %v1317_v45  ;;  %v1333_v27 = vld [vmem:[%s1682_s1 + $0x148] sm:$0xff]  ;;  %v1348_v31 = vld [vmem:[%s1682_s1 + $0x1c0] sm:$0xff]  ;;  %v1362_v33 = vld [vmem:[%s1682_s1 + $0x230] sm:$0xff] }
  0x27   : > { %838 = vmatpush.bf16.msra.mxu1 %v1301_v46  ;;  %v1332_v32 = vld [vmem:[%s1682_s1 + $0x140] sm:$0xff]  ;;  %v1361_v34 = vld [vmem:[%s1682_s1 + $0x228] sm:$0xff]  ;;  %v1359_v36 = vld [vmem:[%s1682_s1 + $0x218] sm:$0xff] }
  0x28   : > { %826 = vmatpush.bf16.msra.mxu0 %v1292_v49  ;;  %v1360_v35 = vld [vmem:[%s1682_s1 + $0x220] sm:$0xff]  ;;  %v1358_v37 = vld [vmem:[%s1682_s1 + $0x210] sm:$0xff]  ;;  %v1357_v38 = vld [vmem:[%s1682_s1 + $0x208] sm:$0xff] }
  0x29   : > { %852 = vmatpush.bf16.msra.mxu2 %v1308_v50  ;;  %v1356_v39 = vld [vmem:[%s1682_s1 + $0x200] sm:$0xff] }
  0x2a   : > { %865 = vmatpush.bf16.msra.mxu3 %v1316_v53  ;;  %v369_v6 = vld [vmem:[#allocation1 + $0x12] sm:$0xff]  ;;  %v367_v7 = vld [vmem:[#allocation1] sm:$0xff]  ;;  %v368_v10 = vld [vmem:[#allocation1 + $0x9] sm:$0xff] }
  0x2b   : > { %839 = vmatpush.bf16.msra.mxu1 %v1300_v54  ;;  %v370_v8 = vld [vmem:[#allocation1 + $0x1b] sm:$0xff]  ;;  %827 = vmatmul.bf16.vlgmr.msra.gmra.mxu0 %v367_v7  ;;  %v371_v12 = vld [vmem:[#allocation1 + $0x24] sm:$0xff]  ;;  %v372_v14 = vld [vmem:[#allocation1 + $0x2d] sm:$0xff] }
  0x2c   : > { %871 = vmatpush.bf16.msrb.mxu0 %v1331_v51  ;;  %853 = vmatmul.bf16.vlgmr.msra.gmra.mxu2 %v369_v6  ;;  %v373_v11 = vld [vmem:[#allocation1 + $0x36] sm:$0xff]  ;;  %v374_v13 = vld [vmem:[#allocation1 + $0x3f] sm:$0xff] }
  0x2d   : > { %897 = vmatpush.bf16.msrb.mxu2 %v1347_v52  ;;  %866 = vmatmul.bf16.vlgmr.msra.gmra.mxu3 %v370_v8  ;;  %376 = vst [vmem:[#allocation1] ss:$9 sm:$0xff] %v219_v4  ;;  %v364_v49 = vld [vmem:[%s1683_s2] sm:$0x1] }
  0x2e   : > { %910 = vmatpush.bf16.msrb.mxu3 %v1355_v55  ;;  %840 = vmatmul.bf16.vlgmr.msra.gmra.mxu1 %v368_v10  ;;  %v941_v7 = vld [vmem:[%s163_s18] sm:$0x1] }
  0x2f   : > { %884 = vmatpush.bf16.msrb.mxu1 %v1339_v56 }
  0x30   : > { %872 = vmatpush.bf16.msrb.mxu0 %v1330_v57 }
  0x31   : > { %898 = vmatpush.bf16.msrb.mxu2 %v1346_v58 }
  0x32   : > { %911 = vmatpush.bf16.msrb.mxu3 %v1354_v60 }
  0x33   : > { %885 = vmatpush.bf16.msrb.mxu1 %v1338_v61 }
  0x34   : > { %873 = vmatpush.bf16.msrb.mxu0 %v1329_v62  ;;  %v377_v40 = vld [vmem:[#allocation1] sm:$0xff] }
  0x35   : > { %899 = vmatpush.bf16.msrb.mxu2 %v1345_v63 }
  0x36   : > { %912 = vmatpush.bf16.msrb.mxu3 %v1353_v0 }
  0x37   : > { %886 = vmatpush.bf16.msrb.mxu1 %v1337_v1 }
  0x38   : > { %874 = vmatpush.bf16.msrb.mxu0 %v1328_v2 }
  0x39   : > { %900 = vmatpush.bf16.msrb.mxu2 %v1344_v3  ;;  %v937_v3 = vld [vmem:[%s1683_s2 + $0x1] sm:$0x1] }
  0x3a   : > { %913 = vmatpush.bf16.msrb.mxu3 %v1352_v5 }
  0x3b   : > { %887 = vmatpush.bf16.msrb.mxu1 %v1336_v9 }
  0x3c   : > { %875 = vmatpush.bf16.msrb.mxu0 %v1327_v15 }
  0x3d   : > { %901 = vmatpush.bf16.msrb.mxu2 %v1343_v16 }
  0x3e   : > { %914 = vmatpush.bf16.msrb.mxu3 %v1351_v17 }
  0x3f   : > { %888 = vmatpush.bf16.msrb.mxu1 %v1335_v18 }
  0x40   : > { %876 = vmatpush.bf16.msrb.mxu0 %v1326_v19 }
  0x41   : > { %902 = vmatpush.bf16.msrb.mxu2 %v1342_v20 }
  0x42   : > { %915 = vmatpush.bf16.msrb.mxu3 %v1350_v21 }
  0x43   : > { %889 = vmatpush.bf16.msrb.mxu1 %v1334_v23 }
  0x44   : > { %877 = vmatpush.bf16.msrb.mxu0 %v1325_v24 }
  0x45   : > { %903 = vmatpush.bf16.msrb.mxu2 %v1341_v25 }
  0x46   : > { %916 = vmatpush.bf16.msrb.mxu3 %v1349_v26 }
  0x47   : > { %890 = vmatpush.bf16.msrb.mxu1 %v1333_v27 }
  0x48   : > { %878 = vmatpush.bf16.msrb.mxu0 %v1324_v28 }
  0x49   : > { %904 = vmatpush.bf16.msrb.mxu2 %v1340_v29 }
  0x4a   : > { %917 = vmatpush.bf16.msrb.mxu3 %v1348_v31 }
  0x4b   : > { %891 = vmatpush.bf16.msrb.mxu1 %v1332_v32  ;;  %879 = vmatmul.bf16.vlgmr.msrb.gmra.mxu0 %v371_v12 }
  0x4c   : > { %923 = vmatpush.bf16.msra.mxu0 %v1363_v30  ;;  %905 = vmatmul.bf16.vlgmr.msrb.gmra.mxu2 %v373_v11 }
  0x4d   : > { %918 = vmatmul.bf16.vlgmr.msrb.gmra.mxu3 %v374_v13 }
  0x4e   : > { %892 = vmatmul.bf16.vlgmr.msrb.gmra.mxu1 %v372_v14 }
  0x50   : > { %924 = vmatpush.bf16.msra.mxu0 %v1362_v33 }
  0x54   : > { %925 = vmatpush.bf16.msra.mxu0 %v1361_v34 }
  0x58   : > { %926 = vmatpush.bf16.msra.mxu0 %v1360_v35 }
  0x5c   : > { %927 = vmatpush.bf16.msra.mxu0 %v1359_v36 }
  0x60   : > { %928 = vmatpush.bf16.msra.mxu0 %v1358_v37 }
  0x64   : > { %929 = vmatpush.bf16.msra.mxu0 %v1357_v38 }
  0x68   : > { %930 = vmatpush.bf16.msra.mxu0 %v1356_v39 }
  0x6b   : > { %931 = vmatmul.bf16.vlgmr.msra.gmra.mxu0 %v377_v40 }
  0xa8   : > { %v828_v41 = vpop.f32.mrf.mxu0 }
  0xa9   : > { %v829_v50 = vadd.f32 %v828_v41, %v364_v49 }
  0xab   : > { %v841_v42 = vpop.f32.mrf.mxu1 }
  0xac   : > { %v842_v53 = vadd.f32 %v841_v42, %v829_v50 }
  0xaf   : > { %v854_v43 = vpop.f32.mrf.mxu2 }
  0xb0   : > { %v867_v44 = vpop.f32.mrf.mxu3  ;;  %v830_v45 = vpop.f32.mrf.mxu0  ;;  %v855_v55 = vadd.f32 %v854_v43, %v842_v53 }
  0xb2   : > { %v868_v59 = vadd.f32 %v867_v44, %v855_v55 }
  0xb3   : > { %v843_v46 = vpop.f32.mrf.mxu1 }
  0xb7   : > { %v856_v47 = vpop.f32.mrf.mxu2 }
  0xb8   : > { %v869_v48 = vpop.f32.mrf.mxu3 }
  0xc8   : > { %v880_v51 = vpop.f32.mrf.mxu0 }
  0xc9   : > { %v881_v61 = vadd.f32 %v880_v51, %v868_v59 }
  0xcb   : > { %v893_v52 = vpop.f32.mrf.mxu1 }
  0xcc   : > { %v894_v63 = vadd.f32 %v893_v52, %v881_v61 }
  0xcf   : > { %v906_v54 = vpop.f32.mrf.mxu2 }
  0xd0   : > { %v919_v56 = vpop.f32.mrf.mxu3  ;;  %v882_v57 = vpop.f32.mrf.mxu0  ;;  %v907_v0 = vadd.f32 %v906_v54, %v894_v63 }
  0xd2   : > { %v920_v1 = vadd.f32 %v919_v56, %v907_v0 }
  0xd3   : > { %v895_v58 = vpop.f32.mrf.mxu1 }
  0xd7   : > { %v908_v60 = vpop.f32.mrf.mxu2 }
  0xd8   : > { %v921_v62 = vpop.f32.mrf.mxu3 }
  0xe8   : > { %v932_v2 = vpop.f32.mrf.mxu0 }
  0xe9   : > { %v933_v4 = vadd.f32 %v932_v2, %v920_v1 }
  0xeb   : > { %vm936_vm15 = vcmp.ge.f32.partialorder %v933_v4, 0.0  ;;  %v938_v5 = vmul.f32 %v937_v3, %v933_v4 }
  0xed   : > { %v939_v6 = vsel %vm936_vm15, %v933_v4, %v938_v5 }
  0xee   : > { %v940_v8 = vpack.c.bf16 %v939_v6, %v939_v6 }
  0xf0   : > { %v942_v9 = vsel %vm1483_vm4, %v940_v8, %v941_v7  ;;  %v934_v10 = vpop.f32.mrf.mxu0 }
  0xf1   : > { %943 = vst [vmem:[%s163_s18] sm:$0x1] %v942_v9 }
  0xf2 PF: > { %s13_s12 = sadd.s32 1, %s1378_s12  }
  0xf3   : > { %p10_p4 = scmp.ge.s32.totalorder %s13_s12, 4  }
  0xf5   :  { %12 = sbr.rel (!%p10_p4) target bundleno = 1 (0x1), region = 63 }

// kernel: encoder_forward.15
= control target key start
LH: loop header
LB: loop body
LE: loop exit
PB: predicated region body
PF: predicated region fallthrough
CT: control target
= control target key end

     0   :  { %8 = vsyncpa [#allocation4], 0  ;;  %s1542_s12 = smov 0   ;;  %s1622_s0 = inlined_call_operand.vmem [shape: bf16[2,3,3,128], index: 0, kind: input, shape index: {}]   ;;  %s1623_s1 = inlined_call_operand.hbm [shape: bf16[1152,128], index: 1, kind: input, shape index: {}]   ;;  %s1624_s2 = inlined_call_operand.vmem [shape: f32[2,128], index: 2, kind: input, shape index: {}]   ;;  %s1625_s3 = inlined_call_operand.vmem [shape: bf16[2,1,128], index: 3, kind: output, shape index: {}]  }
   0x1 LB: > { %s124_s15 = sshll.u32 %s1623_s1, 4  ;;  %s1551_s16 = sadd.s32 4294967295, %s1517_s12   ;;  %s1517_s12 = sphi %s1542_s12, %s14_s12   ;;  %s125_s15 = int_to_ptr.hbm [resolvable:$true] %s124_s15 }
   0x2   : > { %p1078_p0 = scmp.ge.s32.totalorder %s1517_s12, 1  ;;  %p113_p1 = scmp.lt.s32.totalorder %s1517_s12, 3 }
   0x3   : > { %p1464_p2 = scmp.eq.s32.totalorder %s1551_s16, 0  ;;  %s1519_s17 = smov [#allocation3]  }
   0x4   : > { %p114_p3 = pnand %p1078_p0, %p113_p1  ;;  %s126_s18 = sshll.u32 %s1519_s17, 4  ;;  %s127_s18 = int_to_ptr.vmem [resolvable:$true] %s126_s18 }
   0x5   : > { %s1520_s19 = smov 64   ;;  %s1521_s20 = smov 4  }
   0x6   : > { %p1460_p4 = pneg %p114_p3  ;;  %153 = sbr.rel (%p114_p3) target bundleno = 243 (0xf3), region = 32 }
   0x8   : > { %p1461_p5 = pnand %p1464_p2, %p1460_p4 }
   0xa   : > { %1463 = dma.hbm_to_vmem [thread:$0]  (!%p1461_p5), %s125_s15, 9216, %s127_s18, [#allocation4], %s1520_s19, %s1520_s19, %s1521_s20  }
   0xb   : > { %1512 = dma.done.wait (%p1464_p2), [#allocation4], 9216  }
   0xc   : > { %1514 = vsyncadd (%p1464_p2), [#allocation4], 4294958080  ;;  %v1390_v0 = vld [vmem:[#allocation3 + $0x38] sm:$0xff]  ;;  %v1389_v4 = vld [vmem:[#allocation3 + $0x30] sm:$0xff]  ;;  %p176_p6 = scmp.lt.s32.totalorder %s1551_s16, 1  ;;  %vm185_vm1 = vcmask 1040384  }
   0xd   : > { %v1406_v1 = vld [vmem:[#allocation3 + $0xb8] sm:$0xff]  ;;  %892 = vmatpush.bf16.msra.mxu0 %v1390_v0  ;;  %v1405_v5 = vld [vmem:[#allocation3 + $0xb0] sm:$0xff]  ;;  %v1388_v8 = vld [vmem:[#allocation3 + $0x28] sm:$0xff]  ;;  %vm186_vm0 = vsmask.f32 256  ;;  %vm200_vm3 = vcmask 1042434  }
   0xe   : > { %v1414_v2 = vld [vmem:[#allocation3 + $0xf8] sm:$0xff]  ;;  %918 = vmatpush.bf16.msra.mxu2 %v1406_v1  ;;  %v1413_v6 = vld [vmem:[#allocation3 + $0xf0] sm:$0xff]  ;;  %v1404_v9 = vld [vmem:[#allocation3 + $0xa8] sm:$0xff]  ;;  %s1629_s16 = smov (!%p176_p6, %s1551_s16), 1  ;;  %vm204_vm4 = vcmask 1041408  }
   0xf   : > { %v1398_v3 = vld [vmem:[#allocation3 + $0x78] sm:$0xff]  ;;  %931 = vmatpush.bf16.msra.mxu3 %v1414_v2  ;;  %v1397_v7 = vld [vmem:[#allocation3 + $0x70] sm:$0xff]  ;;  %v1412_v10 = vld [vmem:[#allocation3 + $0xe8] sm:$0xff]  ;;  %s1455_s21 = smul.u32 6, %s1629_s16  ;;  %s183_s4 = scalar_lea.vmem %s1625_s3, %s1629_s16 }
  0x10   : > { %905 = vmatpush.bf16.msra.mxu1 %v1398_v3  ;;  %v1396_v11 = vld [vmem:[#allocation3 + $0x68] sm:$0xff]  ;;  %v1387_v12 = vld [vmem:[#allocation3 + $0x20] sm:$0xff]  ;;  %v1386_v16 = vld [vmem:[#allocation3 + $0x18] sm:$0xff] }
  0x11   : > { %893 = vmatpush.bf16.msra.mxu0 %v1389_v4  ;;  %v1403_v13 = vld [vmem:[#allocation3 + $0xa0] sm:$0xff]  ;;  %v1402_v17 = vld [vmem:[#allocation3 + $0x98] sm:$0xff]  ;;  %vm1562_vm2 = vmand %vm185_vm1, %vm186_vm0  ;;  %s1569_s24 = scalar_lea.vmem %s1622_s0, %s1455_s21 }
  0x12   : > { %919 = vmatpush.bf16.msra.mxu2 %v1405_v5  ;;  %v1411_v14 = vld [vmem:[#allocation3 + $0xe0] sm:$0xff]  ;;  %v1410_v19 = vld [vmem:[#allocation3 + $0xd8] sm:$0xff]  ;;  %v184_v21 = vld [vmem:[%s1569_s24] sm:$0x1] }
  0x13   : > { %932 = vmatpush.bf16.msra.mxu3 %v1413_v6  ;;  %v1395_v15 = vld [vmem:[#allocation3 + $0x60] sm:$0xff]  ;;  %v1394_v20 = vld [vmem:[#allocation3 + $0x58] sm:$0xff]  ;;  %v188_v22 = vld [vmem:[#allocation2] sm:$0x1] }
  0x14   : > { %906 = vmatpush.bf16.msra.mxu1 %v1397_v7  ;;  %v191_v23 = vld [vmem:[%s1569_s24] sm:$0x1]  ;;  %v1385_v24 = vld [vmem:[#allocation3 + $0x10] sm:$0xff]  ;;  %v189_v25 = vsel %vm1562_vm2, %v184_v21, %v188_v22  ;;  %v225_v36 = vld [vmem:[#allocation2 + $0x3] sm:$0x1] }
  0x15   : > { %894 = vmatpush.bf16.msra.mxu0 %v1388_v8  ;;  %v193_v26 = vrot.slane %v191_v23, 1  ;;  %v194_v27 = vrot.slane %v191_v23, 2  ;;  %v195_v28 = vrot.slane %v191_v23, 3  ;;  %v1401_v29 = vld [vmem:[#allocation3 + $0x90] sm:$0xff]  ;;  %190 = vst [vmem:[#allocation2] sm:$0x1] %v189_v25 }
  0x16   : > { %920 = vmatpush.bf16.msra.mxu2 %v1404_v9  ;;  %v1409_v30 = vld [vmem:[#allocation3 + $0xd0] sm:$0xff]  ;;  %v1384_v37 = vld [vmem:[#allocation3 + $0x8] sm:$0xff]  ;;  %v211_v40 = vld [vmem:[#allocation2 + $0x1] sm:$0x1] }
  0x17   : > { %933 = vmatpush.bf16.msra.mxu3 %v1412_v10  ;;  %v214_v31 = vld [vmem:[%s1569_s24] sm:$0x2]  ;;  %v199_v33 = vsel %vm185_vm1, %v191_v23, %v193_v26  ;;  %v203_v34 = vsel %vm200_vm3, %v194_v27, %v195_v28  ;;  %v1085_v35 = vld [vmem:[%s1569_s24 + $0x2] sm:$0x1]  ;;  %v1400_v38 = vld [vmem:[#allocation3 + $0x88] sm:$0xff] }
  0x18   : > { %907 = vmatpush.bf16.msra.mxu1 %v1396_v11  ;;  %v1393_v32 = vld [vmem:[#allocation3 + $0x50] sm:$0xff]  ;;  %216 = vst [vmem:[#allocation1] sm:$0xff] %v214_v31  ;;  %v205_v39 = vsel %vm204_vm4, %v199_v33, %v203_v34  ;;  %v226_v41 = vsel %vm1562_vm2, %v1085_v35, %v225_v36  ;;  %v1408_v43 = vld [vmem:[#allocation3 + $0xc8] sm:$0xff]  ;;  %v259_v50 = vld [vmem:[#allocation2 + $0x6] sm:$0x1] }
  0x19   : > { %895 = vmatpush.bf16.msra.mxu0 %v1387_v12  ;;  %v1086_v42 = vld [vmem:[%s1569_s24 + $0x2] sm:$0x1]  ;;  %v206_v44 = vshrl.u32 %v205_v39, 16  ;;  %227 = vst [vmem:[#allocation2 + $0x3] sm:$0x1] %v226_v41  ;;  %v1392_v48 = vld [vmem:[#allocation3 + $0x48] sm:$0xff] }
  0x1a   : > { %921 = vmatpush.bf16.msra.mxu2 %v1403_v13  ;;  %v230_v45 = vrot.slane %v1086_v42, 1  ;;  %v231_v46 = vrot.slane %v1086_v42, 2  ;;  %v232_v47 = vrot.slane %v1086_v42, 3  ;;  %v1089_v49 = vld [vmem:[%s1569_s24 + $0x4] sm:$0x1]  ;;  %v1383_v0 = vld [vmem:[#allocation3] sm:$0xff] }
  0x1b   : > { %934 = vmatpush.bf16.msra.mxu3 %v1411_v14  ;;  %v212_v51 = vsel %vm1562_vm2, %v206_v44, %v211_v40  ;;  %v220_v52 = vld [vmem:[#allocation2 + $0x2] sm:$0x1]  ;;  %v245_v55 = vld [vmem:[#allocation2 + $0x4] sm:$0x1]  ;;  %v1090_v56 = vld [vmem:[%s1569_s24 + $0x4] sm:$0x1]  ;;  %v260_v59 = vsel %vm1562_vm2, %v1089_v49, %v259_v50 }
  0x1c   : > { %908 = vmatpush.bf16.msra.mxu1 %v1395_v15  ;;  %v235_v53 = vsel %vm185_vm1, %v1086_v42, %v230_v45  ;;  %v238_v54 = vsel %vm200_vm3, %v231_v46, %v232_v47  ;;  %213 = vst [vmem:[#allocation2 + $0x1] sm:$0x1] %v212_v51  ;;  %v1088_v58 = vld [vmem:[%s1569_s24 + $0x2] sm:$0x2]  ;;  %v264_v60 = vrot.slane %v1090_v56, 1  ;;  %v265_v61 = vrot.slane %v1090_v56, 2 }
  0x1d   : > { %896 = vmatpush.bf16.msra.mxu0 %v1386_v16  ;;  %v239_v57 = vsel %vm204_vm4, %v235_v53, %v238_v54  ;;  %261 = vst [vmem:[#allocation2 + $0x6] sm:$0x1] %v260_v59  ;;  %v266_v63 = vrot.slane %v1090_v56, 3  ;;  %v1399_v1 = vld [vmem:[#allocation3 + $0x80] sm:$0xff]  ;;  %v1422_v4 = vld [vmem:[#allocation3 + $0x138] sm:$0xff]  ;;  %v1421_v16 = vld [vmem:[#allocation3 + $0x130] sm:$0xff] }
  0x1e   : > { %922 = vmatpush.bf16.msra.mxu2 %v1402_v17  ;;  %v240_v62 = vshrl.u32 %v239_v57, 16  ;;  %v269_v3 = vsel %vm185_vm1, %v1090_v56, %v264_v60  ;;  %v1438_v5 = vld [vmem:[#allocation3 + $0x1b8] sm:$0xff]  ;;  %v1407_v9 = vld [vmem:[#allocation3 + $0xc0] sm:$0xff]  ;;  %v1437_v17 = vld [vmem:[#allocation3 + $0x1b0] sm:$0xff] }
  0x1f   : > { %935 = vmatpush.bf16.msra.mxu3 %v1410_v19  ;;  %v218_v2 = vld [vmem:[#allocation1 + $0x1] ss:$2 sm:$0xff]  ;;  %v272_v8 = vsel %vm200_vm3, %v265_v61, %v266_v63  ;;  %v1391_v10 = vld [vmem:[#allocation3 + $0x40] sm:$0xff]  ;;  %v1420_v25 = vld [vmem:[#allocation3 + $0x128] sm:$0xff] }
  0x20   : > { %909 = vmatpush.bf16.msra.mxu1 %v1394_v20  ;;  %v221_v6 = vsel %vm1562_vm2, %v218_v2, %v220_v52  ;;  %v246_v7 = vsel %vm1562_vm2, %v240_v62, %v245_v55  ;;  %250 = vst [vmem:[#allocation1] sm:$0xff] %v1088_v58  ;;  %v273_v11 = vsel %vm204_vm4, %v269_v3, %v272_v8  ;;  %v279_v12 = vld [vmem:[#allocation2 + $0x7] sm:$0x1]  ;;  %v254_v20 = vld [vmem:[#allocation2 + $0x5] sm:$0x1]  ;;  %v1445_v22 = vld [vmem:[#allocation3 + $0x1f0] sm:$0xff] }
  0x21   : > { %897 = vmatpush.bf16.msra.mxu0 %v1385_v24  ;;  %222 = vst [vmem:[#allocation2 + $0x2] sm:$0x1] %v221_v6  ;;  %v1446_v13 = vld [vmem:[#allocation3 + $0x1f8] sm:$0xff]  ;;  %v274_v15 = vshrl.u32 %v273_v11, 16  ;;  %v1092_v21 = vld [vmem:[%s1569_s24 + $0x4] sm:$0x2] }
  0x22   : > { %923 = vmatpush.bf16.msra.mxu2 %v1401_v29  ;;  %v1430_v14 = vld [vmem:[#allocation3 + $0x178] sm:$0xff]  ;;  %247 = vst [vmem:[#allocation2 + $0x4] sm:$0x1] %v246_v7  ;;  %v1429_v23 = vld [vmem:[#allocation3 + $0x170] sm:$0xff]  ;;  %v1436_v26 = vld [vmem:[#allocation3 + $0x1a8] sm:$0xff] }
  0x23   : > { %936 = vmatpush.bf16.msra.mxu3 %v1409_v30  ;;  %v280_v19 = vsel %vm1562_vm2, %v274_v15, %v279_v12  ;;  %v1444_v28 = vld [vmem:[#allocation3 + $0x1e8] sm:$0xff]  ;;  %v1419_v30 = vld [vmem:[#allocation3 + $0x120] sm:$0xff]  ;;  %v1418_v36 = vld [vmem:[#allocation3 + $0x118] sm:$0xff] }
  0x24   : > { %910 = vmatpush.bf16.msra.mxu1 %v1393_v32  ;;  %281 = vst [vmem:[#allocation2 + $0x7] sm:$0x1] %v280_v19  ;;  %v1428_v29 = vld [vmem:[#allocation3 + $0x168] sm:$0xff]  ;;  %v1435_v31 = vld [vmem:[#allocation3 + $0x1a0] sm:$0xff]  ;;  %v288_v32 = vld [vmem:[#allocation2 + $0x8] sm:$0x1] }
  0x25   : > { %898 = vmatpush.bf16.msra.mxu0 %v1384_v37  ;;  %v1443_v33 = vld [vmem:[#allocation3 + $0x1e0] sm:$0xff]  ;;  %v1434_v39 = vld [vmem:[#allocation3 + $0x198] sm:$0xff]  ;;  %v1417_v42 = vld [vmem:[#allocation3 + $0x110] sm:$0xff] }
  0x26   : > { %924 = vmatpush.bf16.msra.mxu2 %v1400_v38  ;;  %v1427_v34 = vld [vmem:[#allocation3 + $0x160] sm:$0xff]  ;;  %v1442_v40 = vld [vmem:[#allocation3 + $0x1d8] sm:$0xff]  ;;  %v1416_v44 = vld [vmem:[#allocation3 + $0x108] sm:$0xff] }
  0x27   : > { %937 = vmatpush.bf16.msra.mxu3 %v1408_v43  ;;  %v252_v24 = vld [vmem:[#allocation1 + $0x1] ss:$2 sm:$0xff]  ;;  %v1415_v57 = vld [vmem:[#allocation3 + $0x100] sm:$0xff]  ;;  %v1440_v58 = vld [vmem:[#allocation3 + $0x1c8] sm:$0xff] }
  0x28   : > { %911 = vmatpush.bf16.msra.mxu1 %v1392_v48  ;;  %v255_v27 = vsel %vm1562_vm2, %v252_v24, %v254_v20  ;;  %284 = vst [vmem:[#allocation1] sm:$0xff] %v1092_v21  ;;  %v1426_v41 = vld [vmem:[#allocation3 + $0x158] sm:$0xff]  ;;  %v1433_v43 = vld [vmem:[#allocation3 + $0x190] sm:$0xff]  ;;  %v1432_v48 = vld [vmem:[#allocation3 + $0x188] sm:$0xff] }
  0x29   : > { %899 = vmatpush.bf16.msra.mxu0 %v1383_v0  ;;  %256 = vst [vmem:[#allocation2 + $0x5] sm:$0x1] %v255_v27  ;;  %v1441_v45 = vld [vmem:[#allocation3 + $0x1d0] sm:$0xff]  ;;  %v1454_v59 = vld [vmem:[#allocation3 + $0x238] sm:$0xff]  ;;  %v1424_v60 = vld [vmem:[#allocation3 + $0x148] sm:$0xff] }
  0x2a   : > { %925 = vmatpush.bf16.msra.mxu2 %v1399_v1  ;;  %v1425_v47 = vld [vmem:[#allocation3 + $0x150] sm:$0xff]  ;;  %v1431_v61 = vld [vmem:[#allocation3 + $0x180] sm:$0xff]  ;;  %v1452_v1 = vld [vmem:[#allocation3 + $0x228] sm:$0xff] }
  0x2b   : > { %938 = vmatpush.bf16.msra.mxu3 %v1407_v9  ;;  %v1439_v62 = vld [vmem:[#allocation3 + $0x1c0] sm:$0xff]  ;;  %v1453_v63 = vld [vmem:[#allocation3 + $0x230] sm:$0xff]  ;;  %v1450_v3 = vld [vmem:[#allocation3 + $0x218] sm:$0xff] }
  0x2c   : > { %912 = vmatpush.bf16.msra.mxu1 %v1391_v10  ;;  %v1423_v0 = vld [vmem:[#allocation3 + $0x140] sm:$0xff]  ;;  %v437_v10 = vld [vmem:[%s1624_s2] sm:$0x1] }
  0x2d   : > { %944 = vmatpush.bf16.msrb.mxu0 %v1422_v4  ;;  %v1451_v2 = vld [vmem:[#allocation3 + $0x220] sm:$0xff]  ;;  %v1449_v4 = vld [vmem:[#allocation3 + $0x210] sm:$0xff] }
  0x2e   : > { %970 = vmatpush.bf16.msrb.mxu2 %v1438_v5  ;;  %v1448_v5 = vld [vmem:[#allocation3 + $0x208] sm:$0xff]  ;;  %v1447_v6 = vld [vmem:[#allocation3 + $0x200] sm:$0xff] }
  0x2f   : > { %983 = vmatpush.bf16.msrb.mxu3 %v1446_v13  ;;  %v286_v35 = vld [vmem:[#allocation1 + $0x1] ss:$2 sm:$0xff] }
  0x30   : > { %957 = vmatpush.bf16.msrb.mxu1 %v1430_v14  ;;  %v289_v37 = vsel %vm1562_vm2, %v286_v35, %v288_v32  ;;  %v291_v38 = vld [vmem:[#allocation2] sm:$0xff]  ;;  %v1010_v35 = vld [vmem:[%s1624_s2 + $0x1] sm:$0x1] }
  0x31   : > { %945 = vmatpush.bf16.msrb.mxu0 %v1421_v16  ;;  %290 = vst [vmem:[#allocation2 + $0x8] sm:$0x1] %v289_v37 }
  0x32   : > { %971 = vmatpush.bf16.msrb.mxu2 %v1437_v17  ;;  %439 = vst [vmem:[#allocation1] ss:$9 sm:$0xff] %v291_v38 }
  0x33   : > { %984 = vmatpush.bf16.msrb.mxu3 %v1445_v22 }
  0x34   : > { %958 = vmatpush.bf16.msrb.mxu1 %v1429_v23 }
  0x35   : > { %946 = vmatpush.bf16.msrb.mxu0 %v1420_v25 }
  0x36   : > { %972 = vmatpush.bf16.msrb.mxu2 %v1436_v26 }
  0x37   : > { %985 = vmatpush.bf16.msrb.mxu3 %v1444_v28 }
  0x38   : > { %959 = vmatpush.bf16.msrb.mxu1 %v1428_v29  ;;  %v292_v46 = vld [vmem:[#allocation2 + $0x8] sm:$0x1] }
  0x39   : > { %947 = vmatpush.bf16.msrb.mxu0 %v1419_v30  ;;  %v442_v49 = vld [vmem:[#allocation1 + $0x12] sm:$0xff]  ;;  %v440_v50 = vld [vmem:[#allocation1] sm:$0xff]  ;;  %v441_v52 = vld [vmem:[#allocation1 + $0x9] sm:$0xff] }
  0x3a   : > { %973 = vmatpush.bf16.msrb.mxu2 %v1435_v31  ;;  %v443_v51 = vld [vmem:[#allocation1 + $0x1b] sm:$0xff]  ;;  %900 = vmatmul.bf16.vlgmr.msra.gmra.mxu0 %v440_v50  ;;  %v444_v54 = vld [vmem:[#allocation1 + $0x24] sm:$0xff]  ;;  %v445_v56 = vld [vmem:[#allocation1 + $0x2d] sm:$0xff] }
  0x3b   : > { %986 = vmatpush.bf16.msrb.mxu3 %v1443_v33  ;;  %926 = vmatmul.bf16.vlgmr.msra.gmra.mxu2 %v442_v49  ;;  %v446_v53 = vld [vmem:[#allocation1 + $0x36] sm:$0xff]  ;;  %v447_v55 = vld [vmem:[#allocation1 + $0x3f] sm:$0xff] }
  0x3c   : > { %960 = vmatpush.bf16.msrb.mxu1 %v1427_v34  ;;  %939 = vmatmul.bf16.vlgmr.msra.gmra.mxu3 %v443_v51  ;;  %449 = vst [vmem:[#allocation1] ss:$9 sm:$0xff] %v292_v46 }
  0x3d   : > { %948 = vmatpush.bf16.msrb.mxu0 %v1418_v36  ;;  %913 = vmatmul.bf16.vlgmr.msra.gmra.mxu1 %v441_v52 }
  0x3e   : > { %974 = vmatpush.bf16.msrb.mxu2 %v1434_v39  ;;  %v1014_v39 = vld [vmem:[%s183_s4] sm:$0x1] }
  0x3f   : > { %987 = vmatpush.bf16.msrb.mxu3 %v1442_v40 }
  0x40   : > { %961 = vmatpush.bf16.msrb.mxu1 %v1426_v41 }
  0x41   : > { %949 = vmatpush.bf16.msrb.mxu0 %v1417_v42 }
  0x42   : > { %975 = vmatpush.bf16.msrb.mxu2 %v1433_v43 }
  0x43   : > { %988 = vmatpush.bf16.msrb.mxu3 %v1441_v45  ;;  %v450_v7 = vld [vmem:[#allocation1] sm:$0xff] }
  0x44   : > { %962 = vmatpush.bf16.msrb.mxu1 %v1425_v47 }
  0x45   : > { %950 = vmatpush.bf16.msrb.mxu0 %v1416_v44 }
  0x46   : > { %976 = vmatpush.bf16.msrb.mxu2 %v1432_v48 }
  0x47   : > { %989 = vmatpush.bf16.msrb.mxu3 %v1440_v58 }
  0x48   : > { %963 = vmatpush.bf16.msrb.mxu1 %v1424_v60 }
  0x49   : > { %951 = vmatpush.bf16.msrb.mxu0 %v1415_v57 }
  0x4a   : > { %977 = vmatpush.bf16.msrb.mxu2 %v1431_v61 }
  0x4b   : > { %990 = vmatpush.bf16.msrb.mxu3 %v1439_v62 }
  0x4c   : > { %964 = vmatpush.bf16.msrb.mxu1 %v1423_v0  ;;  %952 = vmatmul.bf16.vlgmr.msrb.gmra.mxu0 %v444_v54 }
  0x4d   : > { %996 = vmatpush.bf16.msra.mxu0 %v1454_v59  ;;  %978 = vmatmul.bf16.vlgmr.msrb.gmra.mxu2 %v446_v53 }
  0x4e   : > { %991 = vmatmul.bf16.vlgmr.msrb.gmra.mxu3 %v447_v55 }
  0x4f   : > { %965 = vmatmul.bf16.vlgmr.msrb.gmra.mxu1 %v445_v56 }
  0x51   : > { %997 = vmatpush.bf16.msra.mxu0 %v1453_v63 }
  0x55   : > { %998 = vmatpush.bf16.msra.mxu0 %v1452_v1 }
  0x59   : > { %999 = vmatpush.bf16.msra.mxu0 %v1451_v2 }
  0x5d   : > { %1000 = vmatpush.bf16.msra.mxu0 %v1450_v3 }
  0x61   : > { %1001 = vmatpush.bf16.msra.mxu0 %v1449_v4 }
  0x65   : > { %1002 = vmatpush.bf16.msra.mxu0 %v1448_v5 }
  0x69   : > { %1003 = vmatpush.bf16.msra.mxu0 %v1447_v6 }
  0x6c   : > { %1004 = vmatmul.bf16.vlgmr.msra.gmra.mxu0 %v450_v7 }
  0xb7   : > { %v901_v8 = vpop.f32.mrf.mxu0 }
  0xb8   : > { %v902_v14 = vadd.f32 %v901_v8, %v437_v10 }
  0xba   : > { %v914_v9 = vpop.f32.mrf.mxu1 }
  0xbb   : > { %v915_v16 = vadd.f32 %v914_v9, %v902_v14 }
  0xbe   : > { %v927_v11 = vpop.f32.mrf.mxu2 }
  0xbf   : > { %v940_v12 = vpop.f32.mrf.mxu3  ;;  %v903_v13 = vpop.f32.mrf.mxu0  ;;  %v928_v21 = vadd.f32 %v927_v11, %v915_v16 }
  0xc1   : > { %v941_v23 = vadd.f32 %v940_v12, %v928_v21 }
  0xc2   : > { %v916_v15 = vpop.f32.mrf.mxu1 }
  0xc6   : > { %v929_v17 = vpop.f32.mrf.mxu2 }
  0xc7   : > { %v942_v19 = vpop.f32.mrf.mxu3 }
  0xc9   : > { %v953_v20 = vpop.f32.mrf.mxu0 }
  0xca   : > { %v954_v27 = vadd.f32 %v953_v20, %v941_v23 }
  0xcc   : > { %v966_v22 = vpop.f32.mrf.mxu1 }
  0xcd   : > { %v967_v29 = vadd.f32 %v966_v22, %v954_v27 }
  0xd0   : > { %v979_v24 = vpop.f32.mrf.mxu2 }
  0xd1   : > { %v992_v25 = vpop.f32.mrf.mxu3  ;;  %v955_v26 = vpop.f32.mrf.mxu0  ;;  %v980_v32 = vadd.f32 %v979_v24, %v967_v29 }
  0xd3   : > { %v993_v33 = vadd.f32 %v992_v25, %v980_v32 }
  0xd4   : > { %v968_v28 = vpop.f32.mrf.mxu1 }
  0xd8   : > { %v981_v30 = vpop.f32.mrf.mxu2 }
  0xd9   : > { %v994_v31 = vpop.f32.mrf.mxu3 }
  0xe9   : > { %v1005_v34 = vpop.f32.mrf.mxu0 }
  0xea   : > { %v1006_v36 = vadd.f32 %v1005_v34, %v993_v33 }
  0xec   : > { %vm1009_vm5 = vcmp.ge.f32.partialorder %v1006_v36, 0.0  ;;  %v1011_v37 = vmul.f32 %v1010_v35, %v1006_v36 }
  0xee   : > { %v1012_v38 = vsel %vm1009_vm5, %v1006_v36, %v1011_v37 }
  0xef   : > { %v1013_v40 = vpack.c.bf16 %v1012_v38, %v1012_v38 }
  0xf1   : > { %v1015_v41 = vsel %vm1562_vm2, %v1013_v40, %v1014_v39  ;;  %v1007_v42 = vpop.f32.mrf.mxu0 }
  0xf2   : > { %1016 = vst [vmem:[%s183_s4] sm:$0x1] %v1015_v41 }
  0xf3 PF: > { %s14_s12 = sadd.s32 1, %s1517_s12  }
  0xf4   : > { %p11_p7 = scmp.ge.s32.totalorder %s14_s12, 4  }
  0xf6   :  { %13 = sbr.rel (!%p11_p7) target bundleno = 1 (0x1), region = 72 }
  0xfb   :  { %1034 = vsyncpa [#allocation4], 1 }
  0xfc   :  { %1036 = vsyncpa [#allocation4 + $0x1], 1 }

</bundles_post_ra>
